<compile_context>
chip_gen: v7x
topology: tpu7x:2x2x1
jax: 0.10.0
libtpu: 0.0.40
codegen_flags: <defaults>
</compile_context>

<pallas_src>
import functools
import math

import jax
import jax.numpy as jnp
from jax.experimental import pallas as pl
from jax.experimental.pallas import tpu as pltpu


LANE = 128     # lane width: conv output channels are padded to a multiple of this
ALIGN = 16     # sublane alignment safe for both f32 (8) and bf16 (16) blocks


def _round_up(x, m):
    return ((x + m - 1) // m) * m


# --------------- fused conv-GEMM + bias + ReLU + 2x2 max-pool kernel ---------------

def _conv_gemm_pool_kernel(a_ref, w_ref, b_ref, o_ref, acc_ref, *, k_groups, wp):
    # a_ref : (tm, K)  bf16, rows ordered (group, h_par, w_par, w_half), tm = k_groups*4*wp
    # w_ref : (K, Cp)  bf16   (Cout zero-padded to Cp, multiple of 128)
    # b_ref : (1, Cp)  f32
    # o_ref : (k_groups*wp, Cp) bf16   (pooled rows, ordered (group, w_half))
    # acc_ref: VMEM scratch (tm, Cp) f32
    acc_ref[...] = jnp.dot(a_ref[...], w_ref[...],
                           preferred_element_type=jnp.float32)
    bias = b_ref[...]
    for j in range(k_groups):                      # small static unroll
        base = j * 4 * wp
        c00 = acc_ref[pl.ds(base + 0 * wp, wp), :]   # (h_par=0, w_par=0)
        c01 = acc_ref[pl.ds(base + 1 * wp, wp), :]   # (h_par=0, w_par=1)
        c10 = acc_ref[pl.ds(base + 2 * wp, wp), :]   # (h_par=1, w_par=0)
        c11 = acc_ref[pl.ds(base + 3 * wp, wp), :]   # (h_par=1, w_par=1)
        m = jnp.maximum(jnp.maximum(c00, c01), jnp.maximum(c10, c11))
        # bias is per-channel and ReLU/max commute, so bias+ReLU go after the pool
        o_ref[pl.ds(j * wp, wp), :] = jnp.maximum(m + bias, 0.0).astype(o_ref.dtype)


def _pick_group_tile(groups_total, wp, target_rows):
    """#pooling row-groups per grid step: GEMM tile ~target_rows, blocks sublane-aligned."""
    k = max(1, round(target_rows / (4 * wp)))
    k = min(k, groups_total)
    while k < groups_total and (k * wp) % ALIGN != 0:
        k += 1
    if (k * wp) % ALIGN != 0:
        k = groups_total            # single full-extent block (always a legal shape)
    return k


def conv_gemm_pool(a, w, b, *, wp, groups_total, target_rows=512):
    """A is the pool-ordered im2col matrix; returns the pooled feature rows (bf16)."""
    M, K = a.shape
    K2, Cp = w.shape
    assert K == K2 and M == groups_total * 4 * wp and Cp % LANE == 0
    k = _pick_group_tile(groups_total, wp, target_rows)
    tm = k * 4 * wp
    out_m = groups_total * wp
    kernel = functools.partial(_conv_gemm_pool_kernel, k_groups=k, wp=wp)
    return pl.pallas_call(
        kernel,
        out_shape=jax.ShapeDtypeStruct((out_m, Cp), jnp.bfloat16),
        grid=(pl.cdiv(groups_total, k),),          # ragged last block; OOB stores dropped
        in_specs=[
            pl.BlockSpec((tm, K), lambda i: (i, 0)),
            pl.BlockSpec((K, Cp), lambda i: (0, 0)),
            pl.BlockSpec((1, Cp), lambda i: (0, 0)),
        ],
        out_specs=pl.BlockSpec((k * wp, Cp), lambda i: (i, 0)),
        scratch_shapes=[pltpu.VMEM((tm, Cp), jnp.float32)],
        compiler_params=pltpu.CompilerParams(dimension_semantics=("parallel",)),
    )(a, w, b)


# --------------------------------- fc kernels ---------------------------------

def _matmul_bias_relu_kernel(a_ref, w_ref, b_ref, o_ref):
    acc = jnp.dot(a_ref[...], w_ref[...], preferred_element_type=jnp.float32)
    o_ref[...] = jnp.maximum(acc + b_ref[...], 0.0).astype(o_ref.dtype)


def matmul_bias_relu(a, w, b, *, tm=256, out_dtype=jnp.bfloat16):
    """ReLU(a @ w + b); bf16 MXU inputs, f32 accumulate, row-tiled grid (no padding)."""
    M, K = a.shape
    K2, N = w.shape
    assert K == K2
    a = a.astype(jnp.bfloat16)
    w = w.astype(jnp.bfloat16)
    b2 = b.reshape(1, N).astype(jnp.float32)
    tm = M if M <= tm else tm          # tm is either the full M or a multiple of 16
    return pl.pallas_call(
        _matmul_bias_relu_kernel,
        out_shape=jax.ShapeDtypeStruct((M, N), out_dtype),
        grid=(pl.cdiv(M, tm),),
        in_specs=[
            pl.BlockSpec((tm, K), lambda i: (i, 0)),
            pl.BlockSpec((K, N), lambda i: (0, 0)),
            pl.BlockSpec((1, N), lambda i: (0, 0)),
        ],
        out_specs=pl.BlockSpec((tm, N), lambda i: (i, 0)),
        compiler_params=pltpu.CompilerParams(dimension_semantics=("parallel",)),
    )(a, w, b2)


def _fc_softmax_kernel(x_ref, w_ref, b_ref, o_ref):
    logits = jnp.dot(x_ref[...], w_ref[...], preferred_element_type=jnp.float32)
    logits = logits + b_ref[...]
    m = jnp.max(logits, axis=-1, keepdims=True)
    e = jnp.exp(logits - m)
    denom = jnp.sum(e, axis=-1, keepdims=True)
    o_ref[...] = e * pl.reciprocal(denom, approx=True)


def fc_softmax(x, w, b, *, tm=256):
    """softmax(x @ w + b, axis=1), row-tiled so big batches pipeline / split across TCs."""
    M, K = x.shape
    K2, N = w.shape
    assert K == K2
    x = x.astype(jnp.bfloat16)
    w = w.astype(jnp.bfloat16)
    b2 = b.reshape(1, N).astype(jnp.float32)
    tm = M if M <= tm else tm
    return pl.pallas_call(
        _fc_softmax_kernel,
        out_shape=jax.ShapeDtypeStruct((M, N), jnp.float32),
        grid=(pl.cdiv(M, tm),),
        in_specs=[
            pl.BlockSpec((tm, K), lambda i: (i, 0)),
            pl.BlockSpec((K, N), lambda i: (0, 0)),
            pl.BlockSpec((1, N), lambda i: (0, 0)),
        ],
        out_specs=pl.BlockSpec((tm, N), lambda i: (i, 0)),
        compiler_params=pltpu.CompilerParams(dimension_semantics=("parallel",)),
    )(x, w, b2)


# --------------------------------- model wrapper ---------------------------------

def conv_relu_pool_block(x, w, b, *, target_rows=512):
    """x: (N, H, W, >=Cin) bf16 NHWC (extra padded channels are ignored);
    w: (KH, KW, Cin, Cp) bf16 with Cout zero-padded to Cp; b: (1, Cp) f32.
    Returns pooled NHWC (N, Hp, Wp, Cp) bf16."""
    KH, KW, Cin, Cp = w.shape
    Nb, H, W, _ = x.shape
    Ho, Wo = H - KH + 1, W - KW + 1
    Hp, Wp = Ho // 2, Wo // 2

    # im2col in pool-friendly row order (b, h_out, w_parity, w_half); the padded
    # input channels from the previous layer are sliced away inside these same
    # slices, so no extra pass is needed.  Odd trailing conv rows/cols (discarded
    # by the floor pool) are simply never built.
    pieces = []
    for kh in range(KH):
        for kw in range(KW):
            ev = x[:, kh:kh + 2 * Hp, kw:kw + 2 * Wp:2, :Cin]
            od = x[:, kh:kh + 2 * Hp, kw + 1:kw + 2 * Wp:2, :Cin]
            pieces.append(jnp.stack([ev, od], axis=2))       # (Nb, 2Hp, 2, Wp, Cin)
    pat = jnp.concatenate(pieces, axis=-1)                   # (Nb, 2Hp, 2, Wp, KH*KW*Cin)
    A = pat.reshape(Nb * 2 * Hp * 2 * Wp, KH * KW * Cin).astype(jnp.bfloat16)
    Wm = w.reshape(KH * KW * Cin, Cp)

    pooled = conv_gemm_pool(A, Wm, b, wp=Wp, groups_total=Nb * Hp,
                            target_rows=target_rows)         # (Nb*Hp*Wp, Cp) bf16
    return pooled.reshape(Nb, Hp, Wp, Cp)


def species_cnn_forward(params, x_nchw, *, last_cout):
    # NCHW -> NHWC once; activations stay bf16 throughout.
    x = jnp.transpose(x_nchw, (0, 2, 3, 1)).astype(jnp.bfloat16)
    for (w, b) in params["conv"]:
        x = conv_relu_pool_block(x, w, b)
    # NHWC flatten: fc1_w's rows are defined in (h, w, c) order at init, which is the
    # one-time row permutation of a PyTorch NCHW-flatten fc1 weight -> no per-forward
    # transpose is needed.  Padded channels are sliced off (they are exactly zero).
    Nb = x.shape[0]
    x = x[..., :last_cout].reshape(Nb, -1)
    x = matmul_bias_relu(x, params["fc1_w"], params["fc1_b"])     # fc1 + ReLU (Pallas)
    # defaults: batch_norm=False and dropout_val=0.0 -> those branches are absent
    return fc_softmax(x, params["fc2_w"], params["fc2_b"])        # fc2 + softmax (Pallas)


def init_params(key, *, num_classes, num_filters, filter_size, dense_neurons,
                filter_org, in_spatial):
    if filter_org == 'same':
        filters = [num_filters] * 5
    elif filter_org == 'double':
        filters = [num_filters * 2 ** i for i in range(5)]
    else:  # 'half'
        filters = [num_filters // 2 ** i for i in range(5)]

    keys = jax.random.split(key, 12)
    conv = []
    cin = 3
    s = in_spatial
    for i in range(5):
        ksz = filter_size[i]
        cout = filters[i]
        cp = _round_up(cout, LANE)
        fan_in = ksz * ksz * cin
        w = jax.random.normal(keys[2 * i], (ksz, ksz, cin, cout), jnp.float32) / math.sqrt(fan_in)
        b = 0.01 * jax.random.normal(keys[2 * i + 1], (cout,), jnp.float32)
        # one-time lane padding of the output-channel dim + bf16 weight cast
        w = jnp.pad(w, ((0, 0), (0, 0), (0, 0), (0, cp - cout))).astype(jnp.bfloat16)
        b = jnp.pad(b, (0, cp - cout)).reshape(1, cp).astype(jnp.float32)
        conv.append((w, b))
        s = (s - ksz + 1) // 2        # conv(pad=0) then maxpool(2,2)
        cin = cout

    flat_dim = filters[4] * s * s     # what nn.LazyLinear would see
    fc1_w = (jax.random.normal(keys[10], (flat_dim, dense_neurons), jnp.float32)
             / math.sqrt(flat_dim)).astype(jnp.bfloat16)
    fc1_b = jnp.zeros((dense_neurons,), jnp.float32)
    fc2_w = (jax.random.normal(keys[11], (dense_neurons, num_classes), jnp.float32)
             / math.sqrt(dense_neurons)).astype(jnp.bfloat16)
    fc2_b = jnp.zeros((num_classes,), jnp.float32)
    params = {"conv": conv, "fc1_w": fc1_w, "fc1_b": fc1_b,
              "fc2_w": fc2_w, "fc2_b": fc2_b}
    return params, filters[-1]


if __name__ == "__main__":
    # Small but valid configuration: 5 conv(3x3, pad=0)+pool(2) stages need >= 94 spatial.
    num_classes = 10
    num_filters = 8          # filter_org='double' -> [8, 16, 32, 64, 128]
    filter_size = [3, 3, 3, 3, 3]
    dense_neurons = 64
    batch = 2
    spatial = 96             # 96 -> 47 -> 22 -> 10 -> 4 -> 1

    key = jax.random.PRNGKey(0)
    kx, kp = jax.random.split(key)
    params, last_cout = init_params(kp, num_classes=num_classes, num_filters=num_filters,
                                    filter_size=filter_size, dense_neurons=dense_neurons,
                                    filter_org='double', in_spatial=spatial)
    x = jax.random.normal(kx, (batch, 3, spatial, spatial), jnp.float32)

    fwd = jax.jit(functools.partial(species_cnn_forward, last_cout=last_cout))
    out = jax.block_until_ready(fwd(params, x))

    assert out.shape == (batch, num_classes)
    assert bool(jnp.all(jnp.isfinite(out)))
    # approx-reciprocal softmax: rows sum to 1 within the EUP approximation error
    assert bool(jnp.allclose(jnp.sum(out, axis=1), 1.0, atol=5e-3))
    print("KERNEL_OK")
</pallas_src>

<mosaic_0001>
module attributes {stable_mosaic.version = 11 : i64} {
  func.func @_conv_gemm_pool_kernel(%arg0: i32, %arg1: memref<3008x27xbf16, #tpu.memory_space<vmem>>, %arg2: memref<27x128xbf16, #tpu.memory_space<vmem>>, %arg3: memref<1x128xf32, #tpu.memory_space<vmem>>, %arg4: memref<752x128xbf16, #tpu.memory_space<vmem>>, %arg5: memref<3008x128xf32, #tpu.memory_space<vmem>>) attributes {dimension_semantics = [#tpu.dimension_semantics<parallel>], iteration_bounds = array<i64: 6>, scalar_prefetch = 0 : i64, scratch_operands = 1 : i64, tpu.core_type = #tpu.core_type<tc>, window_params = [{transform_indices = @transform_0, window_bounds = array<i64: 3008, 27>}, {pipeline_mode = #tpu.pipeline_mode<synchronous>, transform_indices = @transform_1, window_bounds = array<i64: 27, 128>}, {pipeline_mode = #tpu.pipeline_mode<synchronous>, transform_indices = @transform_2, window_bounds = array<i64: 1, 128>}, {transform_indices = @transform_3, window_bounds = array<i64: 752, 128>}]} {
    %c0 = arith.constant 0 : index
    %c0_0 = arith.constant 0 : index
    %0 = vector.load %arg1[%c0, %c0_0] : memref<3008x27xbf16, #tpu.memory_space<vmem>>, vector<3008x27xbf16>
    %c0_1 = arith.constant 0 : index
    %c0_2 = arith.constant 0 : index
    %1 = vector.load %arg2[%c0_1, %c0_2] : memref<27x128xbf16, #tpu.memory_space<vmem>>, vector<27x128xbf16>
    %cst = arith.constant dense<0.000000e+00> : vector<3008x128xf32>
    %2 = tpu.matmul %0, %1, %cst {dimension_numbers = #tpu.dot_dimension_numbers<[1], [0], [0], [1], [0, 0, 1, 1], [], []>} : vector<3008x27xbf16>, vector<27x128xbf16>, vector<3008x128xf32> -> vector<3008x128xf32>
    %c0_3 = arith.constant 0 : index
    %c0_4 = arith.constant 0 : index
    %3 = vector.load %arg5[%c0_3, %c0_4] : memref<3008x128xf32, #tpu.memory_space<vmem>>, vector<3008x128xf32>
    tpu.vector_store %arg5[%c0_3, %c0_4], %2 {strides = array<i32>} : memref<3008x128xf32, #tpu.memory_space<vmem>>, vector<3008x128xf32>,
    %c0_5 = arith.constant 0 : index
    %c0_6 = arith.constant 0 : index
    %4 = vector.load %arg3[%c0_5, %c0_6] : memref<1x128xf32, #tpu.memory_space<vmem>>, vector<1x128xf32>
    %c0_7 = arith.constant 0 : index
    %c0_8 = arith.constant 0 : index
    %5 = vector.load %arg5[%c0_7, %c0_8] : memref<3008x128xf32, #tpu.memory_space<vmem>>, vector<47x128xf32>
    %c47 = arith.constant 47 : index
    %c0_9 = arith.constant 0 : index
    %6 = vector.load %arg5[%c47, %c0_9] : memref<3008x128xf32, #tpu.memory_space<vmem>>, vector<47x128xf32>
    %c94 = arith.constant 94 : index
    %c0_10 = arith.constant 0 : index
    %7 = vector.load %arg5[%c94, %c0_10] : memref<3008x128xf32, #tpu.memory_space<vmem>>, vector<47x128xf32>
    %c141 = arith.constant 141 : index
    %c0_11 = arith.constant 0 : index
    %8 = vector.load %arg5[%c141, %c0_11] : memref<3008x128xf32, #tpu.memory_space<vmem>>, vector<47x128xf32>
    %9 = arith.maximumf %5, %6 : vector<47x128xf32>
    %10 = arith.maximumf %7, %8 : vector<47x128xf32>
    %11 = arith.maximumf %9, %10 : vector<47x128xf32>
    %12 = vector.broadcast %4 : vector<1x128xf32> to vector<47x128xf32>
    %13 = arith.addf %11, %12 : vector<47x128xf32>
    %cst_12 = arith.constant 0.000000e+00 : f32
    %14 = vector.broadcast %cst_12 : f32 to vector<47x128xf32>
    %15 = arith.maximumf %13, %14 : vector<47x128xf32>
    %16 = arith.truncf %15 : vector<47x128xf32> to vector<47x128xbf16>
    %c0_13 = arith.constant 0 : index
    %c0_14 = arith.constant 0 : index
    %17 = vector.load %arg4[%c0_13, %c0_14] : memref<752x128xbf16, #tpu.memory_space<vmem>>, vector<47x128xbf16>
    tpu.vector_store %arg4[%c0_13, %c0_14], %16 {strides = array<i32>} : memref<752x128xbf16, #tpu.memory_space<vmem>>, vector<47x128xbf16>,
    %c188 = arith.constant 188 : index
    %c0_15 = arith.constant 0 : index
    %18 = vector.load %arg5[%c188, %c0_15] : memref<3008x128xf32, #tpu.memory_space<vmem>>, vector<47x128xf32>
    %c235 = arith.constant 235 : index
    %c0_16 = arith.constant 0 : index
    %19 = vector.load %arg5[%c235, %c0_16] : memref<3008x128xf32, #tpu.memory_space<vmem>>, vector<47x128xf32>
    %c282 = arith.constant 282 : index
    %c0_17 = arith.constant 0 : index
    %20 = vector.load %arg5[%c282, %c0_17] : memref<3008x128xf32, #tpu.memory_space<vmem>>, vector<47x128xf32>
    %c329 = arith.constant 329 : index
    %c0_18 = arith.constant 0 : index
    %21 = vector.load %arg5[%c329, %c0_18] : memref<3008x128xf32, #tpu.memory_space<vmem>>, vector<47x128xf32>
    %22 = arith.maximumf %18, %19 : vector<47x128xf32>
    %23 = arith.maximumf %20, %21 : vector<47x128xf32>
    %24 = arith.maximumf %22, %23 : vector<47x128xf32>
    %25 = vector.broadcast %4 : vector<1x128xf32> to vector<47x128xf32>
    %26 = arith.addf %24, %25 : vector<47x128xf32>
    %cst_19 = arith.constant 0.000000e+00 : f32
    %27 = vector.broadcast %cst_19 : f32 to vector<47x128xf32>
    %28 = arith.maximumf %26, %27 : vector<47x128xf32>
    %29 = arith.truncf %28 : vector<47x128xf32> to vector<47x128xbf16>
    %c47_20 = arith.constant 47 : index
    %c0_21 = arith.constant 0 : index
    %30 = vector.load %arg4[%c47_20, %c0_21] : memref<752x128xbf16, #tpu.memory_space<vmem>>, vector<47x128xbf16>
    tpu.vector_store %arg4[%c47_20, %c0_21], %29 {strides = array<i32>} : memref<752x128xbf16, #tpu.memory_space<vmem>>, vector<47x128xbf16>,
    %c376 = arith.constant 376 : index
    %c0_22 = arith.constant 0 : index
    %31 = vector.load %arg5[%c376, %c0_22] : memref<3008x128xf32, #tpu.memory_space<vmem>>, vector<47x128xf32>
    %c423 = arith.constant 423 : index
    %c0_23 = arith.constant 0 : index
    %32 = vector.load %arg5[%c423, %c0_23] : memref<3008x128xf32, #tpu.memory_space<vmem>>, vector<47x128xf32>
    %c470 = arith.constant 470 : index
    %c0_24 = arith.constant 0 : index
    %33 = vector.load %arg5[%c470, %c0_24] : memref<3008x128xf32, #tpu.memory_space<vmem>>, vector<47x128xf32>
    %c517 = arith.constant 517 : index
    %c0_25 = arith.constant 0 : index
    %34 = vector.load %arg5[%c517, %c0_25] : memref<3008x128xf32, #tpu.memory_space<vmem>>, vector<47x128xf32>
    %35 = arith.maximumf %31, %32 : vector<47x128xf32>
    %36 = arith.maximumf %33, %34 : vector<47x128xf32>
    %37 = arith.maximumf %35, %36 : vector<47x128xf32>
    %38 = vector.broadcast %4 : vector<1x128xf32> to vector<47x128xf32>
    %39 = arith.addf %37, %38 : vector<47x128xf32>
    %cst_26 = arith.constant 0.000000e+00 : f32
    %40 = vector.broadcast %cst_26 : f32 to vector<47x128xf32>
    %41 = arith.maximumf %39, %40 : vector<47x128xf32>
    %42 = arith.truncf %41 : vector<47x128xf32> to vector<47x128xbf16>
    %c94_27 = arith.constant 94 : index
    %c0_28 = arith.constant 0 : index
    %43 = vector.load %arg4[%c94_27, %c0_28] : memref<752x128xbf16, #tpu.memory_space<vmem>>, vector<47x128xbf16>
    tpu.vector_store %arg4[%c94_27, %c0_28], %42 {strides = array<i32>} : memref<752x128xbf16, #tpu.memory_space<vmem>>, vector<47x128xbf16>,
    %c564 = arith.constant 564 : index
    %c0_29 = arith.constant 0 : index
    %44 = vector.load %arg5[%c564, %c0_29] : memref<3008x128xf32, #tpu.memory_space<vmem>>, vector<47x128xf32>
    %c611 = arith.constant 611 : index
    %c0_30 = arith.constant 0 : index
    %45 = vector.load %arg5[%c611, %c0_30] : memref<3008x128xf32, #tpu.memory_space<vmem>>, vector<47x128xf32>
    %c658 = arith.constant 658 : index
    %c0_31 = arith.constant 0 : index
    %46 = vector.load %arg5[%c658, %c0_31] : memref<3008x128xf32, #tpu.memory_space<vmem>>, vector<47x128xf32>
    %c705 = arith.constant 705 : index
    %c0_32 = arith.constant 0 : index
    %47 = vector.load %arg5[%c705, %c0_32] : memref<3008x128xf32, #tpu.memory_space<vmem>>, vector<47x128xf32>
    %48 = arith.maximumf %44, %45 : vector<47x128xf32>
    %49 = arith.maximumf %46, %47 : vector<47x128xf32>
    %50 = arith.maximumf %48, %49 : vector<47x128xf32>
    %51 = vector.broadcast %4 : vector<1x128xf32> to vector<47x128xf32>
    %52 = arith.addf %50, %51 : vector<47x128xf32>
    %cst_33 = arith.constant 0.000000e+00 : f32
    %53 = vector.broadcast %cst_33 : f32 to vector<47x128xf32>
    %54 = arith.maximumf %52, %53 : vector<47x128xf32>
    %55 = arith.truncf %54 : vector<47x128xf32> to vector<47x128xbf16>
    %c141_34 = arith.constant 141 : index
    %c0_35 = arith.constant 0 : index
    %56 = vector.load %arg4[%c141_34, %c0_35] : memref<752x128xbf16, #tpu.memory_space<vmem>>, vector<47x128xbf16>
    tpu.vector_store %arg4[%c141_34, %c0_35], %55 {strides = array<i32>} : memref<752x128xbf16, #tpu.memory_space<vmem>>, vector<47x128xbf16>,
    %c752 = arith.constant 752 : index
    %c0_36 = arith.constant 0 : index
    %57 = vector.load %arg5[%c752, %c0_36] : memref<3008x128xf32, #tpu.memory_space<vmem>>, vector<47x128xf32>
    %c799 = arith.constant 799 : index
    %c0_37 = arith.constant 0 : index
    %58 = vector.load %arg5[%c799, %c0_37] : memref<3008x128xf32, #tpu.memory_space<vmem>>, vector<47x128xf32>
    %c846 = arith.constant 846 : index
    %c0_38 = arith.constant 0 : index
    %59 = vector.load %arg5[%c846, %c0_38] : memref<3008x128xf32, #tpu.memory_space<vmem>>, vector<47x128xf32>
    %c893 = arith.constant 893 : index
    %c0_39 = arith.constant 0 : index
    %60 = vector.load %arg5[%c893, %c0_39] : memref<3008x128xf32, #tpu.memory_space<vmem>>, vector<47x128xf32>
    %61 = arith.maximumf %57, %58 : vector<47x128xf32>
    %62 = arith.maximumf %59, %60 : vector<47x128xf32>
    %63 = arith.maximumf %61, %62 : vector<47x128xf32>
    %64 = vector.broadcast %4 : vector<1x128xf32> to vector<47x128xf32>
    %65 = arith.addf %63, %64 : vector<47x128xf32>
    %cst_40 = arith.constant 0.000000e+00 : f32
    %66 = vector.broadcast %cst_40 : f32 to vector<47x128xf32>
    %67 = arith.maximumf %65, %66 : vector<47x128xf32>
    %68 = arith.truncf %67 : vector<47x128xf32> to vector<47x128xbf16>
    %c188_41 = arith.constant 188 : index
    %c0_42 = arith.constant 0 : index
    %69 = vector.load %arg4[%c188_41, %c0_42] : memref<752x128xbf16, #tpu.memory_space<vmem>>, vector<47x128xbf16>
    tpu.vector_store %arg4[%c188_41, %c0_42], %68 {strides = array<i32>} : memref<752x128xbf16, #tpu.memory_space<vmem>>, vector<47x128xbf16>,
    %c940 = arith.constant 940 : index
    %c0_43 = arith.constant 0 : index
    %70 = vector.load %arg5[%c940, %c0_43] : memref<3008x128xf32, #tpu.memory_space<vmem>>, vector<47x128xf32>
    %c987 = arith.constant 987 : index
    %c0_44 = arith.constant 0 : index
    %71 = vector.load %arg5[%c987, %c0_44] : memref<3008x128xf32, #tpu.memory_space<vmem>>, vector<47x128xf32>
    %c1034 = arith.constant 1034 : index
    %c0_45 = arith.constant 0 : index
    %72 = vector.load %arg5[%c1034, %c0_45] : memref<3008x128xf32, #tpu.memory_space<vmem>>, vector<47x128xf32>
    %c1081 = arith.constant 1081 : index
    %c0_46 = arith.constant 0 : index
    %73 = vector.load %arg5[%c1081, %c0_46] : memref<3008x128xf32, #tpu.memory_space<vmem>>, vector<47x128xf32>
    %74 = arith.maximumf %70, %71 : vector<47x128xf32>
    %75 = arith.maximumf %72, %73 : vector<47x128xf32>
    %76 = arith.maximumf %74, %75 : vector<47x128xf32>
    %77 = vector.broadcast %4 : vector<1x128xf32> to vector<47x128xf32>
    %78 = arith.addf %76, %77 : vector<47x128xf32>
    %cst_47 = arith.constant 0.000000e+00 : f32
    %79 = vector.broadcast %cst_47 : f32 to vector<47x128xf32>
    %80 = arith.maximumf %78, %79 : vector<47x128xf32>
    %81 = arith.truncf %80 : vector<47x128xf32> to vector<47x128xbf16>
    %c235_48 = arith.constant 235 : index
    %c0_49 = arith.constant 0 : index
    %82 = vector.load %arg4[%c235_48, %c0_49] : memref<752x128xbf16, #tpu.memory_space<vmem>>, vector<47x128xbf16>
    tpu.vector_store %arg4[%c235_48, %c0_49], %81 {strides = array<i32>} : memref<752x128xbf16, #tpu.memory_space<vmem>>, vector<47x128xbf16>,
    %c1128 = arith.constant 1128 : index
    %c0_50 = arith.constant 0 : index
    %83 = vector.load %arg5[%c1128, %c0_50] : memref<3008x128xf32, #tpu.memory_space<vmem>>, vector<47x128xf32>
    %c1175 = arith.constant 1175 : index
    %c0_51 = arith.constant 0 : index
    %84 = vector.load %arg5[%c1175, %c0_51] : memref<3008x128xf32, #tpu.memory_space<vmem>>, vector<47x128xf32>
    %c1222 = arith.constant 1222 : index
    %c0_52 = arith.constant 0 : index
    %85 = vector.load %arg5[%c1222, %c0_52] : memref<3008x128xf32, #tpu.memory_space<vmem>>, vector<47x128xf32>
    %c1269 = arith.constant 1269 : index
    %c0_53 = arith.constant 0 : index
    %86 = vector.load %arg5[%c1269, %c0_53] : memref<3008x128xf32, #tpu.memory_space<vmem>>, vector<47x128xf32>
    %87 = arith.maximumf %83, %84 : vector<47x128xf32>
    %88 = arith.maximumf %85, %86 : vector<47x128xf32>
    %89 = arith.maximumf %87, %88 : vector<47x128xf32>
    %90 = vector.broadcast %4 : vector<1x128xf32> to vector<47x128xf32>
    %91 = arith.addf %89, %90 : vector<47x128xf32>
    %cst_54 = arith.constant 0.000000e+00 : f32
    %92 = vector.broadcast %cst_54 : f32 to vector<47x128xf32>
    %93 = arith.maximumf %91, %92 : vector<47x128xf32>
    %94 = arith.truncf %93 : vector<47x128xf32> to vector<47x128xbf16>
    %c282_55 = arith.constant 282 : index
    %c0_56 = arith.constant 0 : index
    %95 = vector.load %arg4[%c282_55, %c0_56] : memref<752x128xbf16, #tpu.memory_space<vmem>>, vector<47x128xbf16>
    tpu.vector_store %arg4[%c282_55, %c0_56], %94 {strides = array<i32>} : memref<752x128xbf16, #tpu.memory_space<vmem>>, vector<47x128xbf16>,
    %c1316 = arith.constant 1316 : index
    %c0_57 = arith.constant 0 : index
    %96 = vector.load %arg5[%c1316, %c0_57] : memref<3008x128xf32, #tpu.memory_space<vmem>>, vector<47x128xf32>
    %c1363 = arith.constant 1363 : index
    %c0_58 = arith.constant 0 : index
    %97 = vector.load %arg5[%c1363, %c0_58] : memref<3008x128xf32, #tpu.memory_space<vmem>>, vector<47x128xf32>
    %c1410 = arith.constant 1410 : index
    %c0_59 = arith.constant 0 : index
    %98 = vector.load %arg5[%c1410, %c0_59] : memref<3008x128xf32, #tpu.memory_space<vmem>>, vector<47x128xf32>
    %c1457 = arith.constant 1457 : index
    %c0_60 = arith.constant 0 : index
    %99 = vector.load %arg5[%c1457, %c0_60] : memref<3008x128xf32, #tpu.memory_space<vmem>>, vector<47x128xf32>
    %100 = arith.maximumf %96, %97 : vector<47x128xf32>
    %101 = arith.maximumf %98, %99 : vector<47x128xf32>
    %102 = arith.maximumf %100, %101 : vector<47x128xf32>
    %103 = vector.broadcast %4 : vector<1x128xf32> to vector<47x128xf32>
    %104 = arith.addf %102, %103 : vector<47x128xf32>
    %cst_61 = arith.constant 0.000000e+00 : f32
    %105 = vector.broadcast %cst_61 : f32 to vector<47x128xf32>
    %106 = arith.maximumf %104, %105 : vector<47x128xf32>
    %107 = arith.truncf %106 : vector<47x128xf32> to vector<47x128xbf16>
    %c329_62 = arith.constant 329 : index
    %c0_63 = arith.constant 0 : index
    %108 = vector.load %arg4[%c329_62, %c0_63] : memref<752x128xbf16, #tpu.memory_space<vmem>>, vector<47x128xbf16>
    tpu.vector_store %arg4[%c329_62, %c0_63], %107 {strides = array<i32>} : memref<752x128xbf16, #tpu.memory_space<vmem>>, vector<47x128xbf16>,
    %c1504 = arith.constant 1504 : index
    %c0_64 = arith.constant 0 : index
    %109 = vector.load %arg5[%c1504, %c0_64] : memref<3008x128xf32, #tpu.memory_space<vmem>>, vector<47x128xf32>
    %c1551 = arith.constant 1551 : index
    %c0_65 = arith.constant 0 : index
    %110 = vector.load %arg5[%c1551, %c0_65] : memref<3008x128xf32, #tpu.memory_space<vmem>>, vector<47x128xf32>
    %c1598 = arith.constant 1598 : index
    %c0_66 = arith.constant 0 : index
    %111 = vector.load %arg5[%c1598, %c0_66] : memref<3008x128xf32, #tpu.memory_space<vmem>>, vector<47x128xf32>
    %c1645 = arith.constant 1645 : index
    %c0_67 = arith.constant 0 : index
    %112 = vector.load %arg5[%c1645, %c0_67] : memref<3008x128xf32, #tpu.memory_space<vmem>>, vector<47x128xf32>
    %113 = arith.maximumf %109, %110 : vector<47x128xf32>
    %114 = arith.maximumf %111, %112 : vector<47x128xf32>
    %115 = arith.maximumf %113, %114 : vector<47x128xf32>
    %116 = vector.broadcast %4 : vector<1x128xf32> to vector<47x128xf32>
    %117 = arith.addf %115, %116 : vector<47x128xf32>
    %cst_68 = arith.constant 0.000000e+00 : f32
    %118 = vector.broadcast %cst_68 : f32 to vector<47x128xf32>
    %119 = arith.maximumf %117, %118 : vector<47x128xf32>
    %120 = arith.truncf %119 : vector<47x128xf32> to vector<47x128xbf16>
    %c376_69 = arith.constant 376 : index
    %c0_70 = arith.constant 0 : index
    %121 = vector.load %arg4[%c376_69, %c0_70] : memref<752x128xbf16, #tpu.memory_space<vmem>>, vector<47x128xbf16>
    tpu.vector_store %arg4[%c376_69, %c0_70], %120 {strides = array<i32>} : memref<752x128xbf16, #tpu.memory_space<vmem>>, vector<47x128xbf16>,
    %c1692 = arith.constant 1692 : index
    %c0_71 = arith.constant 0 : index
    %122 = vector.load %arg5[%c1692, %c0_71] : memref<3008x128xf32, #tpu.memory_space<vmem>>, vector<47x128xf32>
    %c1739 = arith.constant 1739 : index
    %c0_72 = arith.constant 0 : index
    %123 = vector.load %arg5[%c1739, %c0_72] : memref<3008x128xf32, #tpu.memory_space<vmem>>, vector<47x128xf32>
    %c1786 = arith.constant 1786 : index
    %c0_73 = arith.constant 0 : index
    %124 = vector.load %arg5[%c1786, %c0_73] : memref<3008x128xf32, #tpu.memory_space<vmem>>, vector<47x128xf32>
    %c1833 = arith.constant 1833 : index
    %c0_74 = arith.constant 0 : index
    %125 = vector.load %arg5[%c1833, %c0_74] : memref<3008x128xf32, #tpu.memory_space<vmem>>, vector<47x128xf32>
    %126 = arith.maximumf %122, %123 : vector<47x128xf32>
    %127 = arith.maximumf %124, %125 : vector<47x128xf32>
    %128 = arith.maximumf %126, %127 : vector<47x128xf32>
    %129 = vector.broadcast %4 : vector<1x128xf32> to vector<47x128xf32>
    %130 = arith.addf %128, %129 : vector<47x128xf32>
    %cst_75 = arith.constant 0.000000e+00 : f32
    %131 = vector.broadcast %cst_75 : f32 to vector<47x128xf32>
    %132 = arith.maximumf %130, %131 : vector<47x128xf32>
    %133 = arith.truncf %132 : vector<47x128xf32> to vector<47x128xbf16>
    %c423_76 = arith.constant 423 : index
    %c0_77 = arith.constant 0 : index
    %134 = vector.load %arg4[%c423_76, %c0_77] : memref<752x128xbf16, #tpu.memory_space<vmem>>, vector<47x128xbf16>
    tpu.vector_store %arg4[%c423_76, %c0_77], %133 {strides = array<i32>} : memref<752x128xbf16, #tpu.memory_space<vmem>>, vector<47x128xbf16>,
    %c1880 = arith.constant 1880 : index
    %c0_78 = arith.constant 0 : index
    %135 = vector.load %arg5[%c1880, %c0_78] : memref<3008x128xf32, #tpu.memory_space<vmem>>, vector<47x128xf32>
    %c1927 = arith.constant 1927 : index
    %c0_79 = arith.constant 0 : index
    %136 = vector.load %arg5[%c1927, %c0_79] : memref<3008x128xf32, #tpu.memory_space<vmem>>, vector<47x128xf32>
    %c1974 = arith.constant 1974 : index
    %c0_80 = arith.constant 0 : index
    %137 = vector.load %arg5[%c1974, %c0_80] : memref<3008x128xf32, #tpu.memory_space<vmem>>, vector<47x128xf32>
    %c2021 = arith.constant 2021 : index
    %c0_81 = arith.constant 0 : index
    %138 = vector.load %arg5[%c2021, %c0_81] : memref<3008x128xf32, #tpu.memory_space<vmem>>, vector<47x128xf32>
    %139 = arith.maximumf %135, %136 : vector<47x128xf32>
    %140 = arith.maximumf %137, %138 : vector<47x128xf32>
    %141 = arith.maximumf %139, %140 : vector<47x128xf32>
    %142 = vector.broadcast %4 : vector<1x128xf32> to vector<47x128xf32>
    %143 = arith.addf %141, %142 : vector<47x128xf32>
    %cst_82 = arith.constant 0.000000e+00 : f32
    %144 = vector.broadcast %cst_82 : f32 to vector<47x128xf32>
    %145 = arith.maximumf %143, %144 : vector<47x128xf32>
    %146 = arith.truncf %145 : vector<47x128xf32> to vector<47x128xbf16>
    %c470_83 = arith.constant 470 : index
    %c0_84 = arith.constant 0 : index
    %147 = vector.load %arg4[%c470_83, %c0_84] : memref<752x128xbf16, #tpu.memory_space<vmem>>, vector<47x128xbf16>
    tpu.vector_store %arg4[%c470_83, %c0_84], %146 {strides = array<i32>} : memref<752x128xbf16, #tpu.memory_space<vmem>>, vector<47x128xbf16>,
    %c2068 = arith.constant 2068 : index
    %c0_85 = arith.constant 0 : index
    %148 = vector.load %arg5[%c2068, %c0_85] : memref<3008x128xf32, #tpu.memory_space<vmem>>, vector<47x128xf32>
    %c2115 = arith.constant 2115 : index
    %c0_86 = arith.constant 0 : index
    %149 = vector.load %arg5[%c2115, %c0_86] : memref<3008x128xf32, #tpu.memory_space<vmem>>, vector<47x128xf32>
    %c2162 = arith.constant 2162 : index
    %c0_87 = arith.constant 0 : index
    %150 = vector.load %arg5[%c2162, %c0_87] : memref<3008x128xf32, #tpu.memory_space<vmem>>, vector<47x128xf32>
    %c2209 = arith.constant 2209 : index
    %c0_88 = arith.constant 0 : index
    %151 = vector.load %arg5[%c2209, %c0_88] : memref<3008x128xf32, #tpu.memory_space<vmem>>, vector<47x128xf32>
    %152 = arith.maximumf %148, %149 : vector<47x128xf32>
    %153 = arith.maximumf %150, %151 : vector<47x128xf32>
    %154 = arith.maximumf %152, %153 : vector<47x128xf32>
    %155 = vector.broadcast %4 : vector<1x128xf32> to vector<47x128xf32>
    %156 = arith.addf %154, %155 : vector<47x128xf32>
    %cst_89 = arith.constant 0.000000e+00 : f32
    %157 = vector.broadcast %cst_89 : f32 to vector<47x128xf32>
    %158 = arith.maximumf %156, %157 : vector<47x128xf32>
    %159 = arith.truncf %158 : vector<47x128xf32> to vector<47x128xbf16>
    %c517_90 = arith.constant 517 : index
    %c0_91 = arith.constant 0 : index
    %160 = vector.load %arg4[%c517_90, %c0_91] : memref<752x128xbf16, #tpu.memory_space<vmem>>, vector<47x128xbf16>
    tpu.vector_store %arg4[%c517_90, %c0_91], %159 {strides = array<i32>} : memref<752x128xbf16, #tpu.memory_space<vmem>>, vector<47x128xbf16>,
    %c2256 = arith.constant 2256 : index
    %c0_92 = arith.constant 0 : index
    %161 = vector.load %arg5[%c2256, %c0_92] : memref<3008x128xf32, #tpu.memory_space<vmem>>, vector<47x128xf32>
    %c2303 = arith.constant 2303 : index
    %c0_93 = arith.constant 0 : index
    %162 = vector.load %arg5[%c2303, %c0_93] : memref<3008x128xf32, #tpu.memory_space<vmem>>, vector<47x128xf32>
    %c2350 = arith.constant 2350 : index
    %c0_94 = arith.constant 0 : index
    %163 = vector.load %arg5[%c2350, %c0_94] : memref<3008x128xf32, #tpu.memory_space<vmem>>, vector<47x128xf32>
    %c2397 = arith.constant 2397 : index
    %c0_95 = arith.constant 0 : index
    %164 = vector.load %arg5[%c2397, %c0_95] : memref<3008x128xf32, #tpu.memory_space<vmem>>, vector<47x128xf32>
    %165 = arith.maximumf %161, %162 : vector<47x128xf32>
    %166 = arith.maximumf %163, %164 : vector<47x128xf32>
    %167 = arith.maximumf %165, %166 : vector<47x128xf32>
    %168 = vector.broadcast %4 : vector<1x128xf32> to vector<47x128xf32>
    %169 = arith.addf %167, %168 : vector<47x128xf32>
    %cst_96 = arith.constant 0.000000e+00 : f32
    %170 = vector.broadcast %cst_96 : f32 to vector<47x128xf32>
    %171 = arith.maximumf %169, %170 : vector<47x128xf32>
    %172 = arith.truncf %171 : vector<47x128xf32> to vector<47x128xbf16>
    %c564_97 = arith.constant 564 : index
    %c0_98 = arith.constant 0 : index
    %173 = vector.load %arg4[%c564_97, %c0_98] : memref<752x128xbf16, #tpu.memory_space<vmem>>, vector<47x128xbf16>
    tpu.vector_store %arg4[%c564_97, %c0_98], %172 {strides = array<i32>} : memref<752x128xbf16, #tpu.memory_space<vmem>>, vector<47x128xbf16>,
    %c2444 = arith.constant 2444 : index
    %c0_99 = arith.constant 0 : index
    %174 = vector.load %arg5[%c2444, %c0_99] : memref<3008x128xf32, #tpu.memory_space<vmem>>, vector<47x128xf32>
    %c2491 = arith.constant 2491 : index
    %c0_100 = arith.constant 0 : index
    %175 = vector.load %arg5[%c2491, %c0_100] : memref<3008x128xf32, #tpu.memory_space<vmem>>, vector<47x128xf32>
    %c2538 = arith.constant 2538 : index
    %c0_101 = arith.constant 0 : index
    %176 = vector.load %arg5[%c2538, %c0_101] : memref<3008x128xf32, #tpu.memory_space<vmem>>, vector<47x128xf32>
    %c2585 = arith.constant 2585 : index
    %c0_102 = arith.constant 0 : index
    %177 = vector.load %arg5[%c2585, %c0_102] : memref<3008x128xf32, #tpu.memory_space<vmem>>, vector<47x128xf32>
    %178 = arith.maximumf %174, %175 : vector<47x128xf32>
    %179 = arith.maximumf %176, %177 : vector<47x128xf32>
    %180 = arith.maximumf %178, %179 : vector<47x128xf32>
    %181 = vector.broadcast %4 : vector<1x128xf32> to vector<47x128xf32>
    %182 = arith.addf %180, %181 : vector<47x128xf32>
    %cst_103 = arith.constant 0.000000e+00 : f32
    %183 = vector.broadcast %cst_103 : f32 to vector<47x128xf32>
    %184 = arith.maximumf %182, %183 : vector<47x128xf32>
    %185 = arith.truncf %184 : vector<47x128xf32> to vector<47x128xbf16>
    %c611_104 = arith.constant 611 : index
    %c0_105 = arith.constant 0 : index
    %186 = vector.load %arg4[%c611_104, %c0_105] : memref<752x128xbf16, #tpu.memory_space<vmem>>, vector<47x128xbf16>
    tpu.vector_store %arg4[%c611_104, %c0_105], %185 {strides = array<i32>} : memref<752x128xbf16, #tpu.memory_space<vmem>>, vector<47x128xbf16>,
    %c2632 = arith.constant 2632 : index
    %c0_106 = arith.constant 0 : index
    %187 = vector.load %arg5[%c2632, %c0_106] : memref<3008x128xf32, #tpu.memory_space<vmem>>, vector<47x128xf32>
    %c2679 = arith.constant 2679 : index
    %c0_107 = arith.constant 0 : index
    %188 = vector.load %arg5[%c2679, %c0_107] : memref<3008x128xf32, #tpu.memory_space<vmem>>, vector<47x128xf32>
    %c2726 = arith.constant 2726 : index
    %c0_108 = arith.constant 0 : index
    %189 = vector.load %arg5[%c2726, %c0_108] : memref<3008x128xf32, #tpu.memory_space<vmem>>, vector<47x128xf32>
    %c2773 = arith.constant 2773 : index
    %c0_109 = arith.constant 0 : index
    %190 = vector.load %arg5[%c2773, %c0_109] : memref<3008x128xf32, #tpu.memory_space<vmem>>, vector<47x128xf32>
    %191 = arith.maximumf %187, %188 : vector<47x128xf32>
    %192 = arith.maximumf %189, %190 : vector<47x128xf32>
    %193 = arith.maximumf %191, %192 : vector<47x128xf32>
    %194 = vector.broadcast %4 : vector<1x128xf32> to vector<47x128xf32>
    %195 = arith.addf %193, %194 : vector<47x128xf32>
    %cst_110 = arith.constant 0.000000e+00 : f32
    %196 = vector.broadcast %cst_110 : f32 to vector<47x128xf32>
    %197 = arith.maximumf %195, %196 : vector<47x128xf32>
    %198 = arith.truncf %197 : vector<47x128xf32> to vector<47x128xbf16>
    %c658_111 = arith.constant 658 : index
    %c0_112 = arith.constant 0 : index
    %199 = vector.load %arg4[%c658_111, %c0_112] : memref<752x128xbf16, #tpu.memory_space<vmem>>, vector<47x128xbf16>
    tpu.vector_store %arg4[%c658_111, %c0_112], %198 {strides = array<i32>} : memref<752x128xbf16, #tpu.memory_space<vmem>>, vector<47x128xbf16>,
    %c2820 = arith.constant 2820 : index
    %c0_113 = arith.constant 0 : index
    %200 = vector.load %arg5[%c2820, %c0_113] : memref<3008x128xf32, #tpu.memory_space<vmem>>, vector<47x128xf32>
    %c2867 = arith.constant 2867 : index
    %c0_114 = arith.constant 0 : index
    %201 = vector.load %arg5[%c2867, %c0_114] : memref<3008x128xf32, #tpu.memory_space<vmem>>, vector<47x128xf32>
    %c2914 = arith.constant 2914 : index
    %c0_115 = arith.constant 0 : index
    %202 = vector.load %arg5[%c2914, %c0_115] : memref<3008x128xf32, #tpu.memory_space<vmem>>, vector<47x128xf32>
    %c2961 = arith.constant 2961 : index
    %c0_116 = arith.constant 0 : index
    %203 = vector.load %arg5[%c2961, %c0_116] : memref<3008x128xf32, #tpu.memory_space<vmem>>, vector<47x128xf32>
    %204 = arith.maximumf %200, %201 : vector<47x128xf32>
    %205 = arith.maximumf %202, %203 : vector<47x128xf32>
    %206 = arith.maximumf %204, %205 : vector<47x128xf32>
    %207 = vector.broadcast %4 : vector<1x128xf32> to vector<47x128xf32>
    %208 = arith.addf %206, %207 : vector<47x128xf32>
    %cst_117 = arith.constant 0.000000e+00 : f32
    %209 = vector.broadcast %cst_117 : f32 to vector<47x128xf32>
    %210 = arith.maximumf %208, %209 : vector<47x128xf32>
    %211 = arith.truncf %210 : vector<47x128xf32> to vector<47x128xbf16>
    %c705_118 = arith.constant 705 : index
    %c0_119 = arith.constant 0 : index
    %212 = vector.load %arg4[%c705_118, %c0_119] : memref<752x128xbf16, #tpu.memory_space<vmem>>, vector<47x128xbf16>
    tpu.vector_store %arg4[%c705_118, %c0_119], %211 {strides = array<i32>} : memref<752x128xbf16, #tpu.memory_space<vmem>>, vector<47x128xbf16>,
    return
  }
  func.func @transform_0(%arg0: i32) -> (i32, i32) {
    %c0_i32 = arith.constant 0 : i32
    %c0_i32_0 = arith.constant 0 : i32
    return %arg0, %c0_i32 : i32, i32
  }
  func.func @transform_1(%arg0: i32) -> (i32, i32) {
    %c0_i32 = arith.constant 0 : i32
    %c0_i32_0 = arith.constant 0 : i32
    %c0_i32_1 = arith.constant 0 : i32
    return %c0_i32, %c0_i32_0 : i32, i32
  }
  func.func @transform_2(%arg0: i32) -> (i32, i32) {
    %c0_i32 = arith.constant 0 : i32
    %c0_i32_0 = arith.constant 0 : i32
    %c0_i32_1 = arith.constant 0 : i32
    return %c0_i32, %c0_i32_0 : i32, i32
  }
  func.func @transform_3(%arg0: i32) -> (i32, i32) {
    %c0_i32 = arith.constant 0 : i32
    %c0_i32_0 = arith.constant 0 : i32
    return %arg0, %c0_i32 : i32, i32
  }
}

module attributes {stable_mosaic.version = 11 : i64} {
  func.func @_conv_gemm_pool_kernel(%arg0: i32, %arg1: memref<704x72xbf16, #tpu.memory_space<vmem>>, %arg2: memref<72x128xbf16, #tpu.memory_space<vmem>>, %arg3: memref<1x128xf32, #tpu.memory_space<vmem>>, %arg4: memref<176x128xbf16, #tpu.memory_space<vmem>>, %arg5: memref<704x128xf32, #tpu.memory_space<vmem>>) attributes {dimension_semantics = [#tpu.dimension_semantics<parallel>], iteration_bounds = array<i64: 6>, scalar_prefetch = 0 : i64, scratch_operands = 1 : i64, tpu.core_type = #tpu.core_type<tc>, window_params = [{transform_indices = @transform_0, window_bounds = array<i64: 704, 72>}, {pipeline_mode = #tpu.pipeline_mode<synchronous>, transform_indices = @transform_1, window_bounds = array<i64: 72, 128>}, {pipeline_mode = #tpu.pipeline_mode<synchronous>, transform_indices = @transform_2, window_bounds = array<i64: 1, 128>}, {transform_indices = @transform_3, window_bounds = array<i64: 176, 128>}]} {
    %c0 = arith.constant 0 : index
    %c0_0 = arith.constant 0 : index
    %0 = vector.load %arg1[%c0, %c0_0] : memref<704x72xbf16, #tpu.memory_space<vmem>>, vector<704x72xbf16>
    %c0_1 = arith.constant 0 : index
    %c0_2 = arith.constant 0 : index
    %1 = vector.load %arg2[%c0_1, %c0_2] : memref<72x128xbf16, #tpu.memory_space<vmem>>, vector<72x128xbf16>
    %cst = arith.constant dense<0.000000e+00> : vector<704x128xf32>
    %2 = tpu.matmul %0, %1, %cst {dimension_numbers = #tpu.dot_dimension_numbers<[1], [0], [0], [1], [0, 0, 1, 1], [], []>} : vector<704x72xbf16>, vector<72x128xbf16>, vector<704x128xf32> -> vector<704x128xf32>
    %c0_3 = arith.constant 0 : index
    %c0_4 = arith.constant 0 : index
    %3 = vector.load %arg5[%c0_3, %c0_4] : memref<704x128xf32, #tpu.memory_space<vmem>>, vector<704x128xf32>
    tpu.vector_store %arg5[%c0_3, %c0_4], %2 {strides = array<i32>} : memref<704x128xf32, #tpu.memory_space<vmem>>, vector<704x128xf32>,
    %c0_5 = arith.constant 0 : index
    %c0_6 = arith.constant 0 : index
    %4 = vector.load %arg3[%c0_5, %c0_6] : memref<1x128xf32, #tpu.memory_space<vmem>>, vector<1x128xf32>
    %c0_7 = arith.constant 0 : index
    %c0_8 = arith.constant 0 : index
    %5 = vector.load %arg5[%c0_7, %c0_8] : memref<704x128xf32, #tpu.memory_space<vmem>>, vector<22x128xf32>
    %c22 = arith.constant 22 : index
    %c0_9 = arith.constant 0 : index
    %6 = vector.load %arg5[%c22, %c0_9] : memref<704x128xf32, #tpu.memory_space<vmem>>, vector<22x128xf32>
    %c44 = arith.constant 44 : index
    %c0_10 = arith.constant 0 : index
    %7 = vector.load %arg5[%c44, %c0_10] : memref<704x128xf32, #tpu.memory_space<vmem>>, vector<22x128xf32>
    %c66 = arith.constant 66 : index
    %c0_11 = arith.constant 0 : index
    %8 = vector.load %arg5[%c66, %c0_11] : memref<704x128xf32, #tpu.memory_space<vmem>>, vector<22x128xf32>
    %9 = arith.maximumf %5, %6 : vector<22x128xf32>
    %10 = arith.maximumf %7, %8 : vector<22x128xf32>
    %11 = arith.maximumf %9, %10 : vector<22x128xf32>
    %12 = vector.broadcast %4 : vector<1x128xf32> to vector<22x128xf32>
    %13 = arith.addf %11, %12 : vector<22x128xf32>
    %cst_12 = arith.constant 0.000000e+00 : f32
    %14 = vector.broadcast %cst_12 : f32 to vector<22x128xf32>
    %15 = arith.maximumf %13, %14 : vector<22x128xf32>
    %16 = arith.truncf %15 : vector<22x128xf32> to vector<22x128xbf16>
    %c0_13 = arith.constant 0 : index
    %c0_14 = arith.constant 0 : index
    %17 = vector.load %arg4[%c0_13, %c0_14] : memref<176x128xbf16, #tpu.memory_space<vmem>>, vector<22x128xbf16>
    tpu.vector_store %arg4[%c0_13, %c0_14], %16 {strides = array<i32>} : memref<176x128xbf16, #tpu.memory_space<vmem>>, vector<22x128xbf16>,
    %c88 = arith.constant 88 : index
    %c0_15 = arith.constant 0 : index
    %18 = vector.load %arg5[%c88, %c0_15] : memref<704x128xf32, #tpu.memory_space<vmem>>, vector<22x128xf32>
    %c110 = arith.constant 110 : index
    %c0_16 = arith.constant 0 : index
    %19 = vector.load %arg5[%c110, %c0_16] : memref<704x128xf32, #tpu.memory_space<vmem>>, vector<22x128xf32>
    %c132 = arith.constant 132 : index
    %c0_17 = arith.constant 0 : index
    %20 = vector.load %arg5[%c132, %c0_17] : memref<704x128xf32, #tpu.memory_space<vmem>>, vector<22x128xf32>
    %c154 = arith.constant 154 : index
    %c0_18 = arith.constant 0 : index
    %21 = vector.load %arg5[%c154, %c0_18] : memref<704x128xf32, #tpu.memory_space<vmem>>, vector<22x128xf32>
    %22 = arith.maximumf %18, %19 : vector<22x128xf32>
    %23 = arith.maximumf %20, %21 : vector<22x128xf32>
    %24 = arith.maximumf %22, %23 : vector<22x128xf32>
    %25 = vector.broadcast %4 : vector<1x128xf32> to vector<22x128xf32>
    %26 = arith.addf %24, %25 : vector<22x128xf32>
    %cst_19 = arith.constant 0.000000e+00 : f32
    %27 = vector.broadcast %cst_19 : f32 to vector<22x128xf32>
    %28 = arith.maximumf %26, %27 : vector<22x128xf32>
    %29 = arith.truncf %28 : vector<22x128xf32> to vector<22x128xbf16>
    %c22_20 = arith.constant 22 : index
    %c0_21 = arith.constant 0 : index
    %30 = vector.load %arg4[%c22_20, %c0_21] : memref<176x128xbf16, #tpu.memory_space<vmem>>, vector<22x128xbf16>
    tpu.vector_store %arg4[%c22_20, %c0_21], %29 {strides = array<i32>} : memref<176x128xbf16, #tpu.memory_space<vmem>>, vector<22x128xbf16>,
    %c176 = arith.constant 176 : index
    %c0_22 = arith.constant 0 : index
    %31 = vector.load %arg5[%c176, %c0_22] : memref<704x128xf32, #tpu.memory_space<vmem>>, vector<22x128xf32>
    %c198 = arith.constant 198 : index
    %c0_23 = arith.constant 0 : index
    %32 = vector.load %arg5[%c198, %c0_23] : memref<704x128xf32, #tpu.memory_space<vmem>>, vector<22x128xf32>
    %c220 = arith.constant 220 : index
    %c0_24 = arith.constant 0 : index
    %33 = vector.load %arg5[%c220, %c0_24] : memref<704x128xf32, #tpu.memory_space<vmem>>, vector<22x128xf32>
    %c242 = arith.constant 242 : index
    %c0_25 = arith.constant 0 : index
    %34 = vector.load %arg5[%c242, %c0_25] : memref<704x128xf32, #tpu.memory_space<vmem>>, vector<22x128xf32>
    %35 = arith.maximumf %31, %32 : vector<22x128xf32>
    %36 = arith.maximumf %33, %34 : vector<22x128xf32>
    %37 = arith.maximumf %35, %36 : vector<22x128xf32>
    %38 = vector.broadcast %4 : vector<1x128xf32> to vector<22x128xf32>
    %39 = arith.addf %37, %38 : vector<22x128xf32>
    %cst_26 = arith.constant 0.000000e+00 : f32
    %40 = vector.broadcast %cst_26 : f32 to vector<22x128xf32>
    %41 = arith.maximumf %39, %40 : vector<22x128xf32>
    %42 = arith.truncf %41 : vector<22x128xf32> to vector<22x128xbf16>
    %c44_27 = arith.constant 44 : index
    %c0_28 = arith.constant 0 : index
    %43 = vector.load %arg4[%c44_27, %c0_28] : memref<176x128xbf16, #tpu.memory_space<vmem>>, vector<22x128xbf16>
    tpu.vector_store %arg4[%c44_27, %c0_28], %42 {strides = array<i32>} : memref<176x128xbf16, #tpu.memory_space<vmem>>, vector<22x128xbf16>,
    %c264 = arith.constant 264 : index
    %c0_29 = arith.constant 0 : index
    %44 = vector.load %arg5[%c264, %c0_29] : memref<704x128xf32, #tpu.memory_space<vmem>>, vector<22x128xf32>
    %c286 = arith.constant 286 : index
    %c0_30 = arith.constant 0 : index
    %45 = vector.load %arg5[%c286, %c0_30] : memref<704x128xf32, #tpu.memory_space<vmem>>, vector<22x128xf32>
    %c308 = arith.constant 308 : index
    %c0_31 = arith.constant 0 : index
    %46 = vector.load %arg5[%c308, %c0_31] : memref<704x128xf32, #tpu.memory_space<vmem>>, vector<22x128xf32>
    %c330 = arith.constant 330 : index
    %c0_32 = arith.constant 0 : index
    %47 = vector.load %arg5[%c330, %c0_32] : memref<704x128xf32, #tpu.memory_space<vmem>>, vector<22x128xf32>
    %48 = arith.maximumf %44, %45 : vector<22x128xf32>
    %49 = arith.maximumf %46, %47 : vector<22x128xf32>
    %50 = arith.maximumf %48, %49 : vector<22x128xf32>
    %51 = vector.broadcast %4 : vector<1x128xf32> to vector<22x128xf32>
    %52 = arith.addf %50, %51 : vector<22x128xf32>
    %cst_33 = arith.constant 0.000000e+00 : f32
    %53 = vector.broadcast %cst_33 : f32 to vector<22x128xf32>
    %54 = arith.maximumf %52, %53 : vector<22x128xf32>
    %55 = arith.truncf %54 : vector<22x128xf32> to vector<22x128xbf16>
    %c66_34 = arith.constant 66 : index
    %c0_35 = arith.constant 0 : index
    %56 = vector.load %arg4[%c66_34, %c0_35] : memref<176x128xbf16, #tpu.memory_space<vmem>>, vector<22x128xbf16>
    tpu.vector_store %arg4[%c66_34, %c0_35], %55 {strides = array<i32>} : memref<176x128xbf16, #tpu.memory_space<vmem>>, vector<22x128xbf16>,
    %c352 = arith.constant 352 : index
    %c0_36 = arith.constant 0 : index
    %57 = vector.load %arg5[%c352, %c0_36] : memref<704x128xf32, #tpu.memory_space<vmem>>, vector<22x128xf32>
    %c374 = arith.constant 374 : index
    %c0_37 = arith.constant 0 : index
    %58 = vector.load %arg5[%c374, %c0_37] : memref<704x128xf32, #tpu.memory_space<vmem>>, vector<22x128xf32>
    %c396 = arith.constant 396 : index
    %c0_38 = arith.constant 0 : index
    %59 = vector.load %arg5[%c396, %c0_38] : memref<704x128xf32, #tpu.memory_space<vmem>>, vector<22x128xf32>
    %c418 = arith.constant 418 : index
    %c0_39 = arith.constant 0 : index
    %60 = vector.load %arg5[%c418, %c0_39] : memref<704x128xf32, #tpu.memory_space<vmem>>, vector<22x128xf32>
    %61 = arith.maximumf %57, %58 : vector<22x128xf32>
    %62 = arith.maximumf %59, %60 : vector<22x128xf32>
    %63 = arith.maximumf %61, %62 : vector<22x128xf32>
    %64 = vector.broadcast %4 : vector<1x128xf32> to vector<22x128xf32>
    %65 = arith.addf %63, %64 : vector<22x128xf32>
    %cst_40 = arith.constant 0.000000e+00 : f32
    %66 = vector.broadcast %cst_40 : f32 to vector<22x128xf32>
    %67 = arith.maximumf %65, %66 : vector<22x128xf32>
    %68 = arith.truncf %67 : vector<22x128xf32> to vector<22x128xbf16>
    %c88_41 = arith.constant 88 : index
    %c0_42 = arith.constant 0 : index
    %69 = vector.load %arg4[%c88_41, %c0_42] : memref<176x128xbf16, #tpu.memory_space<vmem>>, vector<22x128xbf16>
    tpu.vector_store %arg4[%c88_41, %c0_42], %68 {strides = array<i32>} : memref<176x128xbf16, #tpu.memory_space<vmem>>, vector<22x128xbf16>,
    %c440 = arith.constant 440 : index
    %c0_43 = arith.constant 0 : index
    %70 = vector.load %arg5[%c440, %c0_43] : memref<704x128xf32, #tpu.memory_space<vmem>>, vector<22x128xf32>
    %c462 = arith.constant 462 : index
    %c0_44 = arith.constant 0 : index
    %71 = vector.load %arg5[%c462, %c0_44] : memref<704x128xf32, #tpu.memory_space<vmem>>, vector<22x128xf32>
    %c484 = arith.constant 484 : index
    %c0_45 = arith.constant 0 : index
    %72 = vector.load %arg5[%c484, %c0_45] : memref<704x128xf32, #tpu.memory_space<vmem>>, vector<22x128xf32>
    %c506 = arith.constant 506 : index
    %c0_46 = arith.constant 0 : index
    %73 = vector.load %arg5[%c506, %c0_46] : memref<704x128xf32, #tpu.memory_space<vmem>>, vector<22x128xf32>
    %74 = arith.maximumf %70, %71 : vector<22x128xf32>
    %75 = arith.maximumf %72, %73 : vector<22x128xf32>
    %76 = arith.maximumf %74, %75 : vector<22x128xf32>
    %77 = vector.broadcast %4 : vector<1x128xf32> to vector<22x128xf32>
    %78 = arith.addf %76, %77 : vector<22x128xf32>
    %cst_47 = arith.constant 0.000000e+00 : f32
    %79 = vector.broadcast %cst_47 : f32 to vector<22x128xf32>
    %80 = arith.maximumf %78, %79 : vector<22x128xf32>
    %81 = arith.truncf %80 : vector<22x128xf32> to vector<22x128xbf16>
    %c110_48 = arith.constant 110 : index
    %c0_49 = arith.constant 0 : index
    %82 = vector.load %arg4[%c110_48, %c0_49] : memref<176x128xbf16, #tpu.memory_space<vmem>>, vector<22x128xbf16>
    tpu.vector_store %arg4[%c110_48, %c0_49], %81 {strides = array<i32>} : memref<176x128xbf16, #tpu.memory_space<vmem>>, vector<22x128xbf16>,
    %c528 = arith.constant 528 : index
    %c0_50 = arith.constant 0 : index
    %83 = vector.load %arg5[%c528, %c0_50] : memref<704x128xf32, #tpu.memory_space<vmem>>, vector<22x128xf32>
    %c550 = arith.constant 550 : index
    %c0_51 = arith.constant 0 : index
    %84 = vector.load %arg5[%c550, %c0_51] : memref<704x128xf32, #tpu.memory_space<vmem>>, vector<22x128xf32>
    %c572 = arith.constant 572 : index
    %c0_52 = arith.constant 0 : index
    %85 = vector.load %arg5[%c572, %c0_52] : memref<704x128xf32, #tpu.memory_space<vmem>>, vector<22x128xf32>
    %c594 = arith.constant 594 : index
    %c0_53 = arith.constant 0 : index
    %86 = vector.load %arg5[%c594, %c0_53] : memref<704x128xf32, #tpu.memory_space<vmem>>, vector<22x128xf32>
    %87 = arith.maximumf %83, %84 : vector<22x128xf32>
    %88 = arith.maximumf %85, %86 : vector<22x128xf32>
    %89 = arith.maximumf %87, %88 : vector<22x128xf32>
    %90 = vector.broadcast %4 : vector<1x128xf32> to vector<22x128xf32>
    %91 = arith.addf %89, %90 : vector<22x128xf32>
    %cst_54 = arith.constant 0.000000e+00 : f32
    %92 = vector.broadcast %cst_54 : f32 to vector<22x128xf32>
    %93 = arith.maximumf %91, %92 : vector<22x128xf32>
    %94 = arith.truncf %93 : vector<22x128xf32> to vector<22x128xbf16>
    %c132_55 = arith.constant 132 : index
    %c0_56 = arith.constant 0 : index
    %95 = vector.load %arg4[%c132_55, %c0_56] : memref<176x128xbf16, #tpu.memory_space<vmem>>, vector<22x128xbf16>
    tpu.vector_store %arg4[%c132_55, %c0_56], %94 {strides = array<i32>} : memref<176x128xbf16, #tpu.memory_space<vmem>>, vector<22x128xbf16>,
    %c616 = arith.constant 616 : index
    %c0_57 = arith.constant 0 : index
    %96 = vector.load %arg5[%c616, %c0_57] : memref<704x128xf32, #tpu.memory_space<vmem>>, vector<22x128xf32>
    %c638 = arith.constant 638 : index
    %c0_58 = arith.constant 0 : index
    %97 = vector.load %arg5[%c638, %c0_58] : memref<704x128xf32, #tpu.memory_space<vmem>>, vector<22x128xf32>
    %c660 = arith.constant 660 : index
    %c0_59 = arith.constant 0 : index
    %98 = vector.load %arg5[%c660, %c0_59] : memref<704x128xf32, #tpu.memory_space<vmem>>, vector<22x128xf32>
    %c682 = arith.constant 682 : index
    %c0_60 = arith.constant 0 : index
    %99 = vector.load %arg5[%c682, %c0_60] : memref<704x128xf32, #tpu.memory_space<vmem>>, vector<22x128xf32>
    %100 = arith.maximumf %96, %97 : vector<22x128xf32>
    %101 = arith.maximumf %98, %99 : vector<22x128xf32>
    %102 = arith.maximumf %100, %101 : vector<22x128xf32>
    %103 = vector.broadcast %4 : vector<1x128xf32> to vector<22x128xf32>
    %104 = arith.addf %102, %103 : vector<22x128xf32>
    %cst_61 = arith.constant 0.000000e+00 : f32
    %105 = vector.broadcast %cst_61 : f32 to vector<22x128xf32>
    %106 = arith.maximumf %104, %105 : vector<22x128xf32>
    %107 = arith.truncf %106 : vector<22x128xf32> to vector<22x128xbf16>
    %c154_62 = arith.constant 154 : index
    %c0_63 = arith.constant 0 : index
    %108 = vector.load %arg4[%c154_62, %c0_63] : memref<176x128xbf16, #tpu.memory_space<vmem>>, vector<22x128xbf16>
    tpu.vector_store %arg4[%c154_62, %c0_63], %107 {strides = array<i32>} : memref<176x128xbf16, #tpu.memory_space<vmem>>, vector<22x128xbf16>,
    return
  }
  func.func @transform_0(%arg0: i32) -> (i32, i32) {
    %c0_i32 = arith.constant 0 : i32
    %c0_i32_0 = arith.constant 0 : i32
    return %arg0, %c0_i32 : i32, i32
  }
  func.func @transform_1(%arg0: i32) -> (i32, i32) {
    %c0_i32 = arith.constant 0 : i32
    %c0_i32_0 = arith.constant 0 : i32
    %c0_i32_1 = arith.constant 0 : i32
    return %c0_i32, %c0_i32_0 : i32, i32
  }
  func.func @transform_2(%arg0: i32) -> (i32, i32) {
    %c0_i32 = arith.constant 0 : i32
    %c0_i32_0 = arith.constant 0 : i32
    %c0_i32_1 = arith.constant 0 : i32
    return %c0_i32, %c0_i32_0 : i32, i32
  }
  func.func @transform_3(%arg0: i32) -> (i32, i32) {
    %c0_i32 = arith.constant 0 : i32
    %c0_i32_0 = arith.constant 0 : i32
    return %arg0, %c0_i32 : i32, i32
  }
}

module attributes {stable_mosaic.version = 11 : i64} {
  func.func @_conv_gemm_pool_kernel(%arg0: i32, %arg1: memref<640x144xbf16, #tpu.memory_space<vmem>>, %arg2: memref<144x128xbf16, #tpu.memory_space<vmem>>, %arg3: memref<1x128xf32, #tpu.memory_space<vmem>>, %arg4: memref<160x128xbf16, #tpu.memory_space<vmem>>, %arg5: memref<640x128xf32, #tpu.memory_space<vmem>>) attributes {dimension_semantics = [#tpu.dimension_semantics<parallel>], iteration_bounds = array<i64: 2>, scalar_prefetch = 0 : i64, scratch_operands = 1 : i64, tpu.core_type = #tpu.core_type<tc>, window_params = [{transform_indices = @transform_0, window_bounds = array<i64: 640, 144>}, {pipeline_mode = #tpu.pipeline_mode<synchronous>, transform_indices = @transform_1, window_bounds = array<i64: 144, 128>}, {pipeline_mode = #tpu.pipeline_mode<synchronous>, transform_indices = @transform_2, window_bounds = array<i64: 1, 128>}, {transform_indices = @transform_3, window_bounds = array<i64: 160, 128>}]} {
    %c0 = arith.constant 0 : index
    %c0_0 = arith.constant 0 : index
    %0 = vector.load %arg1[%c0, %c0_0] : memref<640x144xbf16, #tpu.memory_space<vmem>>, vector<640x144xbf16>
    %c0_1 = arith.constant 0 : index
    %c0_2 = arith.constant 0 : index
    %1 = vector.load %arg2[%c0_1, %c0_2] : memref<144x128xbf16, #tpu.memory_space<vmem>>, vector<144x128xbf16>
    %cst = arith.constant dense<0.000000e+00> : vector<640x128xf32>
    %2 = tpu.matmul %0, %1, %cst {dimension_numbers = #tpu.dot_dimension_numbers<[1], [0], [0], [1], [0, 0, 1, 1], [], []>} : vector<640x144xbf16>, vector<144x128xbf16>, vector<640x128xf32> -> vector<640x128xf32>
    %c0_3 = arith.constant 0 : index
    %c0_4 = arith.constant 0 : index
    %3 = vector.load %arg5[%c0_3, %c0_4] : memref<640x128xf32, #tpu.memory_space<vmem>>, vector<640x128xf32>
    tpu.vector_store %arg5[%c0_3, %c0_4], %2 {strides = array<i32>} : memref<640x128xf32, #tpu.memory_space<vmem>>, vector<640x128xf32>,
    %c0_5 = arith.constant 0 : index
    %c0_6 = arith.constant 0 : index
    %4 = vector.load %arg3[%c0_5, %c0_6] : memref<1x128xf32, #tpu.memory_space<vmem>>, vector<1x128xf32>
    %c0_7 = arith.constant 0 : index
    %c0_8 = arith.constant 0 : index
    %5 = vector.load %arg5[%c0_7, %c0_8] : memref<640x128xf32, #tpu.memory_space<vmem>>, vector<10x128xf32>
    %c10 = arith.constant 10 : index
    %c0_9 = arith.constant 0 : index
    %6 = vector.load %arg5[%c10, %c0_9] : memref<640x128xf32, #tpu.memory_space<vmem>>, vector<10x128xf32>
    %c20 = arith.constant 20 : index
    %c0_10 = arith.constant 0 : index
    %7 = vector.load %arg5[%c20, %c0_10] : memref<640x128xf32, #tpu.memory_space<vmem>>, vector<10x128xf32>
    %c30 = arith.constant 30 : index
    %c0_11 = arith.constant 0 : index
    %8 = vector.load %arg5[%c30, %c0_11] : memref<640x128xf32, #tpu.memory_space<vmem>>, vector<10x128xf32>
    %9 = arith.maximumf %5, %6 : vector<10x128xf32>
    %10 = arith.maximumf %7, %8 : vector<10x128xf32>
    %11 = arith.maximumf %9, %10 : vector<10x128xf32>
    %12 = vector.broadcast %4 : vector<1x128xf32> to vector<10x128xf32>
    %13 = arith.addf %11, %12 : vector<10x128xf32>
    %cst_12 = arith.constant 0.000000e+00 : f32
    %14 = vector.broadcast %cst_12 : f32 to vector<10x128xf32>
    %15 = arith.maximumf %13, %14 : vector<10x128xf32>
    %16 = arith.truncf %15 : vector<10x128xf32> to vector<10x128xbf16>
    %c0_13 = arith.constant 0 : index
    %c0_14 = arith.constant 0 : index
    %17 = vector.load %arg4[%c0_13, %c0_14] : memref<160x128xbf16, #tpu.memory_space<vmem>>, vector<10x128xbf16>
    tpu.vector_store %arg4[%c0_13, %c0_14], %16 {strides = array<i32>} : memref<160x128xbf16, #tpu.memory_space<vmem>>, vector<10x128xbf16>,
    %c40 = arith.constant 40 : index
    %c0_15 = arith.constant 0 : index
    %18 = vector.load %arg5[%c40, %c0_15] : memref<640x128xf32, #tpu.memory_space<vmem>>, vector<10x128xf32>
    %c50 = arith.constant 50 : index
    %c0_16 = arith.constant 0 : index
    %19 = vector.load %arg5[%c50, %c0_16] : memref<640x128xf32, #tpu.memory_space<vmem>>, vector<10x128xf32>
    %c60 = arith.constant 60 : index
    %c0_17 = arith.constant 0 : index
    %20 = vector.load %arg5[%c60, %c0_17] : memref<640x128xf32, #tpu.memory_space<vmem>>, vector<10x128xf32>
    %c70 = arith.constant 70 : index
    %c0_18 = arith.constant 0 : index
    %21 = vector.load %arg5[%c70, %c0_18] : memref<640x128xf32, #tpu.memory_space<vmem>>, vector<10x128xf32>
    %22 = arith.maximumf %18, %19 : vector<10x128xf32>
    %23 = arith.maximumf %20, %21 : vector<10x128xf32>
    %24 = arith.maximumf %22, %23 : vector<10x128xf32>
    %25 = vector.broadcast %4 : vector<1x128xf32> to vector<10x128xf32>
    %26 = arith.addf %24, %25 : vector<10x128xf32>
    %cst_19 = arith.constant 0.000000e+00 : f32
    %27 = vector.broadcast %cst_19 : f32 to vector<10x128xf32>
    %28 = arith.maximumf %26, %27 : vector<10x128xf32>
    %29 = arith.truncf %28 : vector<10x128xf32> to vector<10x128xbf16>
    %c10_20 = arith.constant 10 : index
    %c0_21 = arith.constant 0 : index
    %30 = vector.load %arg4[%c10_20, %c0_21] : memref<160x128xbf16, #tpu.memory_space<vmem>>, vector<10x128xbf16>
    tpu.vector_store %arg4[%c10_20, %c0_21], %29 {strides = array<i32>} : memref<160x128xbf16, #tpu.memory_space<vmem>>, vector<10x128xbf16>,
    %c80 = arith.constant 80 : index
    %c0_22 = arith.constant 0 : index
    %31 = vector.load %arg5[%c80, %c0_22] : memref<640x128xf32, #tpu.memory_space<vmem>>, vector<10x128xf32>
    %c90 = arith.constant 90 : index
    %c0_23 = arith.constant 0 : index
    %32 = vector.load %arg5[%c90, %c0_23] : memref<640x128xf32, #tpu.memory_space<vmem>>, vector<10x128xf32>
    %c100 = arith.constant 100 : index
    %c0_24 = arith.constant 0 : index
    %33 = vector.load %arg5[%c100, %c0_24] : memref<640x128xf32, #tpu.memory_space<vmem>>, vector<10x128xf32>
    %c110 = arith.constant 110 : index
    %c0_25 = arith.constant 0 : index
    %34 = vector.load %arg5[%c110, %c0_25] : memref<640x128xf32, #tpu.memory_space<vmem>>, vector<10x128xf32>
    %35 = arith.maximumf %31, %32 : vector<10x128xf32>
    %36 = arith.maximumf %33, %34 : vector<10x128xf32>
    %37 = arith.maximumf %35, %36 : vector<10x128xf32>
    %38 = vector.broadcast %4 : vector<1x128xf32> to vector<10x128xf32>
    %39 = arith.addf %37, %38 : vector<10x128xf32>
    %cst_26 = arith.constant 0.000000e+00 : f32
    %40 = vector.broadcast %cst_26 : f32 to vector<10x128xf32>
    %41 = arith.maximumf %39, %40 : vector<10x128xf32>
    %42 = arith.truncf %41 : vector<10x128xf32> to vector<10x128xbf16>
    %c20_27 = arith.constant 20 : index
    %c0_28 = arith.constant 0 : index
    %43 = vector.load %arg4[%c20_27, %c0_28] : memref<160x128xbf16, #tpu.memory_space<vmem>>, vector<10x128xbf16>
    tpu.vector_store %arg4[%c20_27, %c0_28], %42 {strides = array<i32>} : memref<160x128xbf16, #tpu.memory_space<vmem>>, vector<10x128xbf16>,
    %c120 = arith.constant 120 : index
    %c0_29 = arith.constant 0 : index
    %44 = vector.load %arg5[%c120, %c0_29] : memref<640x128xf32, #tpu.memory_space<vmem>>, vector<10x128xf32>
    %c130 = arith.constant 130 : index
    %c0_30 = arith.constant 0 : index
    %45 = vector.load %arg5[%c130, %c0_30] : memref<640x128xf32, #tpu.memory_space<vmem>>, vector<10x128xf32>
    %c140 = arith.constant 140 : index
    %c0_31 = arith.constant 0 : index
    %46 = vector.load %arg5[%c140, %c0_31] : memref<640x128xf32, #tpu.memory_space<vmem>>, vector<10x128xf32>
    %c150 = arith.constant 150 : index
    %c0_32 = arith.constant 0 : index
    %47 = vector.load %arg5[%c150, %c0_32] : memref<640x128xf32, #tpu.memory_space<vmem>>, vector<10x128xf32>
    %48 = arith.maximumf %44, %45 : vector<10x128xf32>
    %49 = arith.maximumf %46, %47 : vector<10x128xf32>
    %50 = arith.maximumf %48, %49 : vector<10x128xf32>
    %51 = vector.broadcast %4 : vector<1x128xf32> to vector<10x128xf32>
    %52 = arith.addf %50, %51 : vector<10x128xf32>
    %cst_33 = arith.constant 0.000000e+00 : f32
    %53 = vector.broadcast %cst_33 : f32 to vector<10x128xf32>
    %54 = arith.maximumf %52, %53 : vector<10x128xf32>
    %55 = arith.truncf %54 : vector<10x128xf32> to vector<10x128xbf16>
    %c30_34 = arith.constant 30 : index
    %c0_35 = arith.constant 0 : index
    %56 = vector.load %arg4[%c30_34, %c0_35] : memref<160x128xbf16, #tpu.memory_space<vmem>>, vector<10x128xbf16>
    tpu.vector_store %arg4[%c30_34, %c0_35], %55 {strides = array<i32>} : memref<160x128xbf16, #tpu.memory_space<vmem>>, vector<10x128xbf16>,
    %c160 = arith.constant 160 : index
    %c0_36 = arith.constant 0 : index
    %57 = vector.load %arg5[%c160, %c0_36] : memref<640x128xf32, #tpu.memory_space<vmem>>, vector<10x128xf32>
    %c170 = arith.constant 170 : index
    %c0_37 = arith.constant 0 : index
    %58 = vector.load %arg5[%c170, %c0_37] : memref<640x128xf32, #tpu.memory_space<vmem>>, vector<10x128xf32>
    %c180 = arith.constant 180 : index
    %c0_38 = arith.constant 0 : index
    %59 = vector.load %arg5[%c180, %c0_38] : memref<640x128xf32, #tpu.memory_space<vmem>>, vector<10x128xf32>
    %c190 = arith.constant 190 : index
    %c0_39 = arith.constant 0 : index
    %60 = vector.load %arg5[%c190, %c0_39] : memref<640x128xf32, #tpu.memory_space<vmem>>, vector<10x128xf32>
    %61 = arith.maximumf %57, %58 : vector<10x128xf32>
    %62 = arith.maximumf %59, %60 : vector<10x128xf32>
    %63 = arith.maximumf %61, %62 : vector<10x128xf32>
    %64 = vector.broadcast %4 : vector<1x128xf32> to vector<10x128xf32>
    %65 = arith.addf %63, %64 : vector<10x128xf32>
    %cst_40 = arith.constant 0.000000e+00 : f32
    %66 = vector.broadcast %cst_40 : f32 to vector<10x128xf32>
    %67 = arith.maximumf %65, %66 : vector<10x128xf32>
    %68 = arith.truncf %67 : vector<10x128xf32> to vector<10x128xbf16>
    %c40_41 = arith.constant 40 : index
    %c0_42 = arith.constant 0 : index
    %69 = vector.load %arg4[%c40_41, %c0_42] : memref<160x128xbf16, #tpu.memory_space<vmem>>, vector<10x128xbf16>
    tpu.vector_store %arg4[%c40_41, %c0_42], %68 {strides = array<i32>} : memref<160x128xbf16, #tpu.memory_space<vmem>>, vector<10x128xbf16>,
    %c200 = arith.constant 200 : index
    %c0_43 = arith.constant 0 : index
    %70 = vector.load %arg5[%c200, %c0_43] : memref<640x128xf32, #tpu.memory_space<vmem>>, vector<10x128xf32>
    %c210 = arith.constant 210 : index
    %c0_44 = arith.constant 0 : index
    %71 = vector.load %arg5[%c210, %c0_44] : memref<640x128xf32, #tpu.memory_space<vmem>>, vector<10x128xf32>
    %c220 = arith.constant 220 : index
    %c0_45 = arith.constant 0 : index
    %72 = vector.load %arg5[%c220, %c0_45] : memref<640x128xf32, #tpu.memory_space<vmem>>, vector<10x128xf32>
    %c230 = arith.constant 230 : index
    %c0_46 = arith.constant 0 : index
    %73 = vector.load %arg5[%c230, %c0_46] : memref<640x128xf32, #tpu.memory_space<vmem>>, vector<10x128xf32>
    %74 = arith.maximumf %70, %71 : vector<10x128xf32>
    %75 = arith.maximumf %72, %73 : vector<10x128xf32>
    %76 = arith.maximumf %74, %75 : vector<10x128xf32>
    %77 = vector.broadcast %4 : vector<1x128xf32> to vector<10x128xf32>
    %78 = arith.addf %76, %77 : vector<10x128xf32>
    %cst_47 = arith.constant 0.000000e+00 : f32
    %79 = vector.broadcast %cst_47 : f32 to vector<10x128xf32>
    %80 = arith.maximumf %78, %79 : vector<10x128xf32>
    %81 = arith.truncf %80 : vector<10x128xf32> to vector<10x128xbf16>
    %c50_48 = arith.constant 50 : index
    %c0_49 = arith.constant 0 : index
    %82 = vector.load %arg4[%c50_48, %c0_49] : memref<160x128xbf16, #tpu.memory_space<vmem>>, vector<10x128xbf16>
    tpu.vector_store %arg4[%c50_48, %c0_49], %81 {strides = array<i32>} : memref<160x128xbf16, #tpu.memory_space<vmem>>, vector<10x128xbf16>,
    %c240 = arith.constant 240 : index
    %c0_50 = arith.constant 0 : index
    %83 = vector.load %arg5[%c240, %c0_50] : memref<640x128xf32, #tpu.memory_space<vmem>>, vector<10x128xf32>
    %c250 = arith.constant 250 : index
    %c0_51 = arith.constant 0 : index
    %84 = vector.load %arg5[%c250, %c0_51] : memref<640x128xf32, #tpu.memory_space<vmem>>, vector<10x128xf32>
    %c260 = arith.constant 260 : index
    %c0_52 = arith.constant 0 : index
    %85 = vector.load %arg5[%c260, %c0_52] : memref<640x128xf32, #tpu.memory_space<vmem>>, vector<10x128xf32>
    %c270 = arith.constant 270 : index
    %c0_53 = arith.constant 0 : index
    %86 = vector.load %arg5[%c270, %c0_53] : memref<640x128xf32, #tpu.memory_space<vmem>>, vector<10x128xf32>
    %87 = arith.maximumf %83, %84 : vector<10x128xf32>
    %88 = arith.maximumf %85, %86 : vector<10x128xf32>
    %89 = arith.maximumf %87, %88 : vector<10x128xf32>
    %90 = vector.broadcast %4 : vector<1x128xf32> to vector<10x128xf32>
    %91 = arith.addf %89, %90 : vector<10x128xf32>
    %cst_54 = arith.constant 0.000000e+00 : f32
    %92 = vector.broadcast %cst_54 : f32 to vector<10x128xf32>
    %93 = arith.maximumf %91, %92 : vector<10x128xf32>
    %94 = arith.truncf %93 : vector<10x128xf32> to vector<10x128xbf16>
    %c60_55 = arith.constant 60 : index
    %c0_56 = arith.constant 0 : index
    %95 = vector.load %arg4[%c60_55, %c0_56] : memref<160x128xbf16, #tpu.memory_space<vmem>>, vector<10x128xbf16>
    tpu.vector_store %arg4[%c60_55, %c0_56], %94 {strides = array<i32>} : memref<160x128xbf16, #tpu.memory_space<vmem>>, vector<10x128xbf16>,
    %c280 = arith.constant 280 : index
    %c0_57 = arith.constant 0 : index
    %96 = vector.load %arg5[%c280, %c0_57] : memref<640x128xf32, #tpu.memory_space<vmem>>, vector<10x128xf32>
    %c290 = arith.constant 290 : index
    %c0_58 = arith.constant 0 : index
    %97 = vector.load %arg5[%c290, %c0_58] : memref<640x128xf32, #tpu.memory_space<vmem>>, vector<10x128xf32>
    %c300 = arith.constant 300 : index
    %c0_59 = arith.constant 0 : index
    %98 = vector.load %arg5[%c300, %c0_59] : memref<640x128xf32, #tpu.memory_space<vmem>>, vector<10x128xf32>
    %c310 = arith.constant 310 : index
    %c0_60 = arith.constant 0 : index
    %99 = vector.load %arg5[%c310, %c0_60] : memref<640x128xf32, #tpu.memory_space<vmem>>, vector<10x128xf32>
    %100 = arith.maximumf %96, %97 : vector<10x128xf32>
    %101 = arith.maximumf %98, %99 : vector<10x128xf32>
    %102 = arith.maximumf %100, %101 : vector<10x128xf32>
    %103 = vector.broadcast %4 : vector<1x128xf32> to vector<10x128xf32>
    %104 = arith.addf %102, %103 : vector<10x128xf32>
    %cst_61 = arith.constant 0.000000e+00 : f32
    %105 = vector.broadcast %cst_61 : f32 to vector<10x128xf32>
    %106 = arith.maximumf %104, %105 : vector<10x128xf32>
    %107 = arith.truncf %106 : vector<10x128xf32> to vector<10x128xbf16>
    %c70_62 = arith.constant 70 : index
    %c0_63 = arith.constant 0 : index
    %108 = vector.load %arg4[%c70_62, %c0_63] : memref<160x128xbf16, #tpu.memory_space<vmem>>, vector<10x128xbf16>
    tpu.vector_store %arg4[%c70_62, %c0_63], %107 {strides = array<i32>} : memref<160x128xbf16, #tpu.memory_space<vmem>>, vector<10x128xbf16>,
    %c320 = arith.constant 320 : index
    %c0_64 = arith.constant 0 : index
    %109 = vector.load %arg5[%c320, %c0_64] : memref<640x128xf32, #tpu.memory_space<vmem>>, vector<10x128xf32>
    %c330 = arith.constant 330 : index
    %c0_65 = arith.constant 0 : index
    %110 = vector.load %arg5[%c330, %c0_65] : memref<640x128xf32, #tpu.memory_space<vmem>>, vector<10x128xf32>
    %c340 = arith.constant 340 : index
    %c0_66 = arith.constant 0 : index
    %111 = vector.load %arg5[%c340, %c0_66] : memref<640x128xf32, #tpu.memory_space<vmem>>, vector<10x128xf32>
    %c350 = arith.constant 350 : index
    %c0_67 = arith.constant 0 : index
    %112 = vector.load %arg5[%c350, %c0_67] : memref<640x128xf32, #tpu.memory_space<vmem>>, vector<10x128xf32>
    %113 = arith.maximumf %109, %110 : vector<10x128xf32>
    %114 = arith.maximumf %111, %112 : vector<10x128xf32>
    %115 = arith.maximumf %113, %114 : vector<10x128xf32>
    %116 = vector.broadcast %4 : vector<1x128xf32> to vector<10x128xf32>
    %117 = arith.addf %115, %116 : vector<10x128xf32>
    %cst_68 = arith.constant 0.000000e+00 : f32
    %118 = vector.broadcast %cst_68 : f32 to vector<10x128xf32>
    %119 = arith.maximumf %117, %118 : vector<10x128xf32>
    %120 = arith.truncf %119 : vector<10x128xf32> to vector<10x128xbf16>
    %c80_69 = arith.constant 80 : index
    %c0_70 = arith.constant 0 : index
    %121 = vector.load %arg4[%c80_69, %c0_70] : memref<160x128xbf16, #tpu.memory_space<vmem>>, vector<10x128xbf16>
    tpu.vector_store %arg4[%c80_69, %c0_70], %120 {strides = array<i32>} : memref<160x128xbf16, #tpu.memory_space<vmem>>, vector<10x128xbf16>,
    %c360 = arith.constant 360 : index
    %c0_71 = arith.constant 0 : index
    %122 = vector.load %arg5[%c360, %c0_71] : memref<640x128xf32, #tpu.memory_space<vmem>>, vector<10x128xf32>
    %c370 = arith.constant 370 : index
    %c0_72 = arith.constant 0 : index
    %123 = vector.load %arg5[%c370, %c0_72] : memref<640x128xf32, #tpu.memory_space<vmem>>, vector<10x128xf32>
    %c380 = arith.constant 380 : index
    %c0_73 = arith.constant 0 : index
    %124 = vector.load %arg5[%c380, %c0_73] : memref<640x128xf32, #tpu.memory_space<vmem>>, vector<10x128xf32>
    %c390 = arith.constant 390 : index
    %c0_74 = arith.constant 0 : index
    %125 = vector.load %arg5[%c390, %c0_74] : memref<640x128xf32, #tpu.memory_space<vmem>>, vector<10x128xf32>
    %126 = arith.maximumf %122, %123 : vector<10x128xf32>
    %127 = arith.maximumf %124, %125 : vector<10x128xf32>
    %128 = arith.maximumf %126, %127 : vector<10x128xf32>
    %129 = vector.broadcast %4 : vector<1x128xf32> to vector<10x128xf32>
    %130 = arith.addf %128, %129 : vector<10x128xf32>
    %cst_75 = arith.constant 0.000000e+00 : f32
    %131 = vector.broadcast %cst_75 : f32 to vector<10x128xf32>
    %132 = arith.maximumf %130, %131 : vector<10x128xf32>
    %133 = arith.truncf %132 : vector<10x128xf32> to vector<10x128xbf16>
    %c90_76 = arith.constant 90 : index
    %c0_77 = arith.constant 0 : index
    %134 = vector.load %arg4[%c90_76, %c0_77] : memref<160x128xbf16, #tpu.memory_space<vmem>>, vector<10x128xbf16>
    tpu.vector_store %arg4[%c90_76, %c0_77], %133 {strides = array<i32>} : memref<160x128xbf16, #tpu.memory_space<vmem>>, vector<10x128xbf16>,
    %c400 = arith.constant 400 : index
    %c0_78 = arith.constant 0 : index
    %135 = vector.load %arg5[%c400, %c0_78] : memref<640x128xf32, #tpu.memory_space<vmem>>, vector<10x128xf32>
    %c410 = arith.constant 410 : index
    %c0_79 = arith.constant 0 : index
    %136 = vector.load %arg5[%c410, %c0_79] : memref<640x128xf32, #tpu.memory_space<vmem>>, vector<10x128xf32>
    %c420 = arith.constant 420 : index
    %c0_80 = arith.constant 0 : index
    %137 = vector.load %arg5[%c420, %c0_80] : memref<640x128xf32, #tpu.memory_space<vmem>>, vector<10x128xf32>
    %c430 = arith.constant 430 : index
    %c0_81 = arith.constant 0 : index
    %138 = vector.load %arg5[%c430, %c0_81] : memref<640x128xf32, #tpu.memory_space<vmem>>, vector<10x128xf32>
    %139 = arith.maximumf %135, %136 : vector<10x128xf32>
    %140 = arith.maximumf %137, %138 : vector<10x128xf32>
    %141 = arith.maximumf %139, %140 : vector<10x128xf32>
    %142 = vector.broadcast %4 : vector<1x128xf32> to vector<10x128xf32>
    %143 = arith.addf %141, %142 : vector<10x128xf32>
    %cst_82 = arith.constant 0.000000e+00 : f32
    %144 = vector.broadcast %cst_82 : f32 to vector<10x128xf32>
    %145 = arith.maximumf %143, %144 : vector<10x128xf32>
    %146 = arith.truncf %145 : vector<10x128xf32> to vector<10x128xbf16>
    %c100_83 = arith.constant 100 : index
    %c0_84 = arith.constant 0 : index
    %147 = vector.load %arg4[%c100_83, %c0_84] : memref<160x128xbf16, #tpu.memory_space<vmem>>, vector<10x128xbf16>
    tpu.vector_store %arg4[%c100_83, %c0_84], %146 {strides = array<i32>} : memref<160x128xbf16, #tpu.memory_space<vmem>>, vector<10x128xbf16>,
    %c440 = arith.constant 440 : index
    %c0_85 = arith.constant 0 : index
    %148 = vector.load %arg5[%c440, %c0_85] : memref<640x128xf32, #tpu.memory_space<vmem>>, vector<10x128xf32>
    %c450 = arith.constant 450 : index
    %c0_86 = arith.constant 0 : index
    %149 = vector.load %arg5[%c450, %c0_86] : memref<640x128xf32, #tpu.memory_space<vmem>>, vector<10x128xf32>
    %c460 = arith.constant 460 : index
    %c0_87 = arith.constant 0 : index
    %150 = vector.load %arg5[%c460, %c0_87] : memref<640x128xf32, #tpu.memory_space<vmem>>, vector<10x128xf32>
    %c470 = arith.constant 470 : index
    %c0_88 = arith.constant 0 : index
    %151 = vector.load %arg5[%c470, %c0_88] : memref<640x128xf32, #tpu.memory_space<vmem>>, vector<10x128xf32>
    %152 = arith.maximumf %148, %149 : vector<10x128xf32>
    %153 = arith.maximumf %150, %151 : vector<10x128xf32>
    %154 = arith.maximumf %152, %153 : vector<10x128xf32>
    %155 = vector.broadcast %4 : vector<1x128xf32> to vector<10x128xf32>
    %156 = arith.addf %154, %155 : vector<10x128xf32>
    %cst_89 = arith.constant 0.000000e+00 : f32
    %157 = vector.broadcast %cst_89 : f32 to vector<10x128xf32>
    %158 = arith.maximumf %156, %157 : vector<10x128xf32>
    %159 = arith.truncf %158 : vector<10x128xf32> to vector<10x128xbf16>
    %c110_90 = arith.constant 110 : index
    %c0_91 = arith.constant 0 : index
    %160 = vector.load %arg4[%c110_90, %c0_91] : memref<160x128xbf16, #tpu.memory_space<vmem>>, vector<10x128xbf16>
    tpu.vector_store %arg4[%c110_90, %c0_91], %159 {strides = array<i32>} : memref<160x128xbf16, #tpu.memory_space<vmem>>, vector<10x128xbf16>,
    %c480 = arith.constant 480 : index
    %c0_92 = arith.constant 0 : index
    %161 = vector.load %arg5[%c480, %c0_92] : memref<640x128xf32, #tpu.memory_space<vmem>>, vector<10x128xf32>
    %c490 = arith.constant 490 : index
    %c0_93 = arith.constant 0 : index
    %162 = vector.load %arg5[%c490, %c0_93] : memref<640x128xf32, #tpu.memory_space<vmem>>, vector<10x128xf32>
    %c500 = arith.constant 500 : index
    %c0_94 = arith.constant 0 : index
    %163 = vector.load %arg5[%c500, %c0_94] : memref<640x128xf32, #tpu.memory_space<vmem>>, vector<10x128xf32>
    %c510 = arith.constant 510 : index
    %c0_95 = arith.constant 0 : index
    %164 = vector.load %arg5[%c510, %c0_95] : memref<640x128xf32, #tpu.memory_space<vmem>>, vector<10x128xf32>
    %165 = arith.maximumf %161, %162 : vector<10x128xf32>
    %166 = arith.maximumf %163, %164 : vector<10x128xf32>
    %167 = arith.maximumf %165, %166 : vector<10x128xf32>
    %168 = vector.broadcast %4 : vector<1x128xf32> to vector<10x128xf32>
    %169 = arith.addf %167, %168 : vector<10x128xf32>
    %cst_96 = arith.constant 0.000000e+00 : f32
    %170 = vector.broadcast %cst_96 : f32 to vector<10x128xf32>
    %171 = arith.maximumf %169, %170 : vector<10x128xf32>
    %172 = arith.truncf %171 : vector<10x128xf32> to vector<10x128xbf16>
    %c120_97 = arith.constant 120 : index
    %c0_98 = arith.constant 0 : index
    %173 = vector.load %arg4[%c120_97, %c0_98] : memref<160x128xbf16, #tpu.memory_space<vmem>>, vector<10x128xbf16>
    tpu.vector_store %arg4[%c120_97, %c0_98], %172 {strides = array<i32>} : memref<160x128xbf16, #tpu.memory_space<vmem>>, vector<10x128xbf16>,
    %c520 = arith.constant 520 : index
    %c0_99 = arith.constant 0 : index
    %174 = vector.load %arg5[%c520, %c0_99] : memref<640x128xf32, #tpu.memory_space<vmem>>, vector<10x128xf32>
    %c530 = arith.constant 530 : index
    %c0_100 = arith.constant 0 : index
    %175 = vector.load %arg5[%c530, %c0_100] : memref<640x128xf32, #tpu.memory_space<vmem>>, vector<10x128xf32>
    %c540 = arith.constant 540 : index
    %c0_101 = arith.constant 0 : index
    %176 = vector.load %arg5[%c540, %c0_101] : memref<640x128xf32, #tpu.memory_space<vmem>>, vector<10x128xf32>
    %c550 = arith.constant 550 : index
    %c0_102 = arith.constant 0 : index
    %177 = vector.load %arg5[%c550, %c0_102] : memref<640x128xf32, #tpu.memory_space<vmem>>, vector<10x128xf32>
    %178 = arith.maximumf %174, %175 : vector<10x128xf32>
    %179 = arith.maximumf %176, %177 : vector<10x128xf32>
    %180 = arith.maximumf %178, %179 : vector<10x128xf32>
    %181 = vector.broadcast %4 : vector<1x128xf32> to vector<10x128xf32>
    %182 = arith.addf %180, %181 : vector<10x128xf32>
    %cst_103 = arith.constant 0.000000e+00 : f32
    %183 = vector.broadcast %cst_103 : f32 to vector<10x128xf32>
    %184 = arith.maximumf %182, %183 : vector<10x128xf32>
    %185 = arith.truncf %184 : vector<10x128xf32> to vector<10x128xbf16>
    %c130_104 = arith.constant 130 : index
    %c0_105 = arith.constant 0 : index
    %186 = vector.load %arg4[%c130_104, %c0_105] : memref<160x128xbf16, #tpu.memory_space<vmem>>, vector<10x128xbf16>
    tpu.vector_store %arg4[%c130_104, %c0_105], %185 {strides = array<i32>} : memref<160x128xbf16, #tpu.memory_space<vmem>>, vector<10x128xbf16>,
    %c560 = arith.constant 560 : index
    %c0_106 = arith.constant 0 : index
    %187 = vector.load %arg5[%c560, %c0_106] : memref<640x128xf32, #tpu.memory_space<vmem>>, vector<10x128xf32>
    %c570 = arith.constant 570 : index
    %c0_107 = arith.constant 0 : index
    %188 = vector.load %arg5[%c570, %c0_107] : memref<640x128xf32, #tpu.memory_space<vmem>>, vector<10x128xf32>
    %c580 = arith.constant 580 : index
    %c0_108 = arith.constant 0 : index
    %189 = vector.load %arg5[%c580, %c0_108] : memref<640x128xf32, #tpu.memory_space<vmem>>, vector<10x128xf32>
    %c590 = arith.constant 590 : index
    %c0_109 = arith.constant 0 : index
    %190 = vector.load %arg5[%c590, %c0_109] : memref<640x128xf32, #tpu.memory_space<vmem>>, vector<10x128xf32>
    %191 = arith.maximumf %187, %188 : vector<10x128xf32>
    %192 = arith.maximumf %189, %190 : vector<10x128xf32>
    %193 = arith.maximumf %191, %192 : vector<10x128xf32>
    %194 = vector.broadcast %4 : vector<1x128xf32> to vector<10x128xf32>
    %195 = arith.addf %193, %194 : vector<10x128xf32>
    %cst_110 = arith.constant 0.000000e+00 : f32
    %196 = vector.broadcast %cst_110 : f32 to vector<10x128xf32>
    %197 = arith.maximumf %195, %196 : vector<10x128xf32>
    %198 = arith.truncf %197 : vector<10x128xf32> to vector<10x128xbf16>
    %c140_111 = arith.constant 140 : index
    %c0_112 = arith.constant 0 : index
    %199 = vector.load %arg4[%c140_111, %c0_112] : memref<160x128xbf16, #tpu.memory_space<vmem>>, vector<10x128xbf16>
    tpu.vector_store %arg4[%c140_111, %c0_112], %198 {strides = array<i32>} : memref<160x128xbf16, #tpu.memory_space<vmem>>, vector<10x128xbf16>,
    %c600 = arith.constant 600 : index
    %c0_113 = arith.constant 0 : index
    %200 = vector.load %arg5[%c600, %c0_113] : memref<640x128xf32, #tpu.memory_space<vmem>>, vector<10x128xf32>
    %c610 = arith.constant 610 : index
    %c0_114 = arith.constant 0 : index
    %201 = vector.load %arg5[%c610, %c0_114] : memref<640x128xf32, #tpu.memory_space<vmem>>, vector<10x128xf32>
    %c620 = arith.constant 620 : index
    %c0_115 = arith.constant 0 : index
    %202 = vector.load %arg5[%c620, %c0_115] : memref<640x128xf32, #tpu.memory_space<vmem>>, vector<10x128xf32>
    %c630 = arith.constant 630 : index
    %c0_116 = arith.constant 0 : index
    %203 = vector.load %arg5[%c630, %c0_116] : memref<640x128xf32, #tpu.memory_space<vmem>>, vector<10x128xf32>
    %204 = arith.maximumf %200, %201 : vector<10x128xf32>
    %205 = arith.maximumf %202, %203 : vector<10x128xf32>
    %206 = arith.maximumf %204, %205 : vector<10x128xf32>
    %207 = vector.broadcast %4 : vector<1x128xf32> to vector<10x128xf32>
    %208 = arith.addf %206, %207 : vector<10x128xf32>
    %cst_117 = arith.constant 0.000000e+00 : f32
    %209 = vector.broadcast %cst_117 : f32 to vector<10x128xf32>
    %210 = arith.maximumf %208, %209 : vector<10x128xf32>
    %211 = arith.truncf %210 : vector<10x128xf32> to vector<10x128xbf16>
    %c150_118 = arith.constant 150 : index
    %c0_119 = arith.constant 0 : index
    %212 = vector.load %arg4[%c150_118, %c0_119] : memref<160x128xbf16, #tpu.memory_space<vmem>>, vector<10x128xbf16>
    tpu.vector_store %arg4[%c150_118, %c0_119], %211 {strides = array<i32>} : memref<160x128xbf16, #tpu.memory_space<vmem>>, vector<10x128xbf16>,
    return
  }
  func.func @transform_0(%arg0: i32) -> (i32, i32) {
    %c0_i32 = arith.constant 0 : i32
    %c0_i32_0 = arith.constant 0 : i32
    return %arg0, %c0_i32 : i32, i32
  }
  func.func @transform_1(%arg0: i32) -> (i32, i32) {
    %c0_i32 = arith.constant 0 : i32
    %c0_i32_0 = arith.constant 0 : i32
    %c0_i32_1 = arith.constant 0 : i32
    return %c0_i32, %c0_i32_0 : i32, i32
  }
  func.func @transform_2(%arg0: i32) -> (i32, i32) {
    %c0_i32 = arith.constant 0 : i32
    %c0_i32_0 = arith.constant 0 : i32
    %c0_i32_1 = arith.constant 0 : i32
    return %c0_i32, %c0_i32_0 : i32, i32
  }
  func.func @transform_3(%arg0: i32) -> (i32, i32) {
    %c0_i32 = arith.constant 0 : i32
    %c0_i32_0 = arith.constant 0 : i32
    return %arg0, %c0_i32 : i32, i32
  }
}

module attributes {stable_mosaic.version = 11 : i64} {
  func.func @_conv_gemm_pool_kernel(%arg0: i32, %arg1: memref<128x288xbf16, #tpu.memory_space<vmem>>, %arg2: memref<288x128xbf16, #tpu.memory_space<vmem>>, %arg3: memref<1x128xf32, #tpu.memory_space<vmem>>, %arg4: memref<32x128xbf16, #tpu.memory_space<vmem>>, %arg5: memref<128x128xf32, #tpu.memory_space<vmem>>) attributes {dimension_semantics = [#tpu.dimension_semantics<parallel>], iteration_bounds = array<i64: 1>, scalar_prefetch = 0 : i64, scratch_operands = 1 : i64, tpu.core_type = #tpu.core_type<tc>, window_params = [{transform_indices = @transform_0, window_bounds = array<i64: 128, 288>}, {pipeline_mode = #tpu.pipeline_mode<synchronous>, transform_indices = @transform_1, window_bounds = array<i64: 288, 128>}, {pipeline_mode = #tpu.pipeline_mode<synchronous>, transform_indices = @transform_2, window_bounds = array<i64: 1, 128>}, {transform_indices = @transform_3, window_bounds = array<i64: 32, 128>}]} {
    %c0 = arith.constant 0 : index
    %c0_0 = arith.constant 0 : index
    %0 = vector.load %arg1[%c0, %c0_0] : memref<128x288xbf16, #tpu.memory_space<vmem>>, vector<128x288xbf16>
    %c0_1 = arith.constant 0 : index
    %c0_2 = arith.constant 0 : index
    %1 = vector.load %arg2[%c0_1, %c0_2] : memref<288x128xbf16, #tpu.memory_space<vmem>>, vector<288x128xbf16>
    %cst = arith.constant dense<0.000000e+00> : vector<128x128xf32>
    %2 = tpu.matmul %0, %1, %cst {dimension_numbers = #tpu.dot_dimension_numbers<[1], [0], [0], [1], [0, 0, 1, 1], [], []>} : vector<128x288xbf16>, vector<288x128xbf16>, vector<128x128xf32> -> vector<128x128xf32>
    %c0_3 = arith.constant 0 : index
    %c0_4 = arith.constant 0 : index
    %3 = vector.load %arg5[%c0_3, %c0_4] : memref<128x128xf32, #tpu.memory_space<vmem>>, vector<128x128xf32>
    tpu.vector_store %arg5[%c0_3, %c0_4], %2 {strides = array<i32>} : memref<128x128xf32, #tpu.memory_space<vmem>>, vector<128x128xf32>,
    %c0_5 = arith.constant 0 : index
    %c0_6 = arith.constant 0 : index
    %4 = vector.load %arg3[%c0_5, %c0_6] : memref<1x128xf32, #tpu.memory_space<vmem>>, vector<1x128xf32>
    %c0_7 = arith.constant 0 : index
    %c0_8 = arith.constant 0 : index
    %5 = vector.load %arg5[%c0_7, %c0_8] : memref<128x128xf32, #tpu.memory_space<vmem>>, vector<4x128xf32>
    %c4 = arith.constant 4 : index
    %c0_9 = arith.constant 0 : index
    %6 = vector.load %arg5[%c4, %c0_9] : memref<128x128xf32, #tpu.memory_space<vmem>>, vector<4x128xf32>
    %c8 = arith.constant 8 : index
    %c0_10 = arith.constant 0 : index
    %7 = vector.load %arg5[%c8, %c0_10] : memref<128x128xf32, #tpu.memory_space<vmem>>, vector<4x128xf32>
    %c12 = arith.constant 12 : index
    %c0_11 = arith.constant 0 : index
    %8 = vector.load %arg5[%c12, %c0_11] : memref<128x128xf32, #tpu.memory_space<vmem>>, vector<4x128xf32>
    %9 = arith.maximumf %5, %6 : vector<4x128xf32>
    %10 = arith.maximumf %7, %8 : vector<4x128xf32>
    %11 = arith.maximumf %9, %10 : vector<4x128xf32>
    %12 = vector.broadcast %4 : vector<1x128xf32> to vector<4x128xf32>
    %13 = arith.addf %11, %12 : vector<4x128xf32>
    %cst_12 = arith.constant 0.000000e+00 : f32
    %14 = vector.broadcast %cst_12 : f32 to vector<4x128xf32>
    %15 = arith.maximumf %13, %14 : vector<4x128xf32>
    %16 = arith.truncf %15 : vector<4x128xf32> to vector<4x128xbf16>
    %c0_13 = arith.constant 0 : index
    %c0_14 = arith.constant 0 : index
    %17 = vector.load %arg4[%c0_13, %c0_14] : memref<32x128xbf16, #tpu.memory_space<vmem>>, vector<4x128xbf16>
    tpu.vector_store %arg4[%c0_13, %c0_14], %16 {strides = array<i32>} : memref<32x128xbf16, #tpu.memory_space<vmem>>, vector<4x128xbf16>,
    %c16 = arith.constant 16 : index
    %c0_15 = arith.constant 0 : index
    %18 = vector.load %arg5[%c16, %c0_15] : memref<128x128xf32, #tpu.memory_space<vmem>>, vector<4x128xf32>
    %c20 = arith.constant 20 : index
    %c0_16 = arith.constant 0 : index
    %19 = vector.load %arg5[%c20, %c0_16] : memref<128x128xf32, #tpu.memory_space<vmem>>, vector<4x128xf32>
    %c24 = arith.constant 24 : index
    %c0_17 = arith.constant 0 : index
    %20 = vector.load %arg5[%c24, %c0_17] : memref<128x128xf32, #tpu.memory_space<vmem>>, vector<4x128xf32>
    %c28 = arith.constant 28 : index
    %c0_18 = arith.constant 0 : index
    %21 = vector.load %arg5[%c28, %c0_18] : memref<128x128xf32, #tpu.memory_space<vmem>>, vector<4x128xf32>
    %22 = arith.maximumf %18, %19 : vector<4x128xf32>
    %23 = arith.maximumf %20, %21 : vector<4x128xf32>
    %24 = arith.maximumf %22, %23 : vector<4x128xf32>
    %25 = vector.broadcast %4 : vector<1x128xf32> to vector<4x128xf32>
    %26 = arith.addf %24, %25 : vector<4x128xf32>
    %cst_19 = arith.constant 0.000000e+00 : f32
    %27 = vector.broadcast %cst_19 : f32 to vector<4x128xf32>
    %28 = arith.maximumf %26, %27 : vector<4x128xf32>
    %29 = arith.truncf %28 : vector<4x128xf32> to vector<4x128xbf16>
    %c4_20 = arith.constant 4 : index
    %c0_21 = arith.constant 0 : index
    %30 = vector.load %arg4[%c4_20, %c0_21] : memref<32x128xbf16, #tpu.memory_space<vmem>>, vector<4x128xbf16>
    tpu.vector_store %arg4[%c4_20, %c0_21], %29 {strides = array<i32>} : memref<32x128xbf16, #tpu.memory_space<vmem>>, vector<4x128xbf16>,
    %c32 = arith.constant 32 : index
    %c0_22 = arith.constant 0 : index
    %31 = vector.load %arg5[%c32, %c0_22] : memref<128x128xf32, #tpu.memory_space<vmem>>, vector<4x128xf32>
    %c36 = arith.constant 36 : index
    %c0_23 = arith.constant 0 : index
    %32 = vector.load %arg5[%c36, %c0_23] : memref<128x128xf32, #tpu.memory_space<vmem>>, vector<4x128xf32>
    %c40 = arith.constant 40 : index
    %c0_24 = arith.constant 0 : index
    %33 = vector.load %arg5[%c40, %c0_24] : memref<128x128xf32, #tpu.memory_space<vmem>>, vector<4x128xf32>
    %c44 = arith.constant 44 : index
    %c0_25 = arith.constant 0 : index
    %34 = vector.load %arg5[%c44, %c0_25] : memref<128x128xf32, #tpu.memory_space<vmem>>, vector<4x128xf32>
    %35 = arith.maximumf %31, %32 : vector<4x128xf32>
    %36 = arith.maximumf %33, %34 : vector<4x128xf32>
    %37 = arith.maximumf %35, %36 : vector<4x128xf32>
    %38 = vector.broadcast %4 : vector<1x128xf32> to vector<4x128xf32>
    %39 = arith.addf %37, %38 : vector<4x128xf32>
    %cst_26 = arith.constant 0.000000e+00 : f32
    %40 = vector.broadcast %cst_26 : f32 to vector<4x128xf32>
    %41 = arith.maximumf %39, %40 : vector<4x128xf32>
    %42 = arith.truncf %41 : vector<4x128xf32> to vector<4x128xbf16>
    %c8_27 = arith.constant 8 : index
    %c0_28 = arith.constant 0 : index
    %43 = vector.load %arg4[%c8_27, %c0_28] : memref<32x128xbf16, #tpu.memory_space<vmem>>, vector<4x128xbf16>
    tpu.vector_store %arg4[%c8_27, %c0_28], %42 {strides = array<i32>} : memref<32x128xbf16, #tpu.memory_space<vmem>>, vector<4x128xbf16>,
    %c48 = arith.constant 48 : index
    %c0_29 = arith.constant 0 : index
    %44 = vector.load %arg5[%c48, %c0_29] : memref<128x128xf32, #tpu.memory_space<vmem>>, vector<4x128xf32>
    %c52 = arith.constant 52 : index
    %c0_30 = arith.constant 0 : index
    %45 = vector.load %arg5[%c52, %c0_30] : memref<128x128xf32, #tpu.memory_space<vmem>>, vector<4x128xf32>
    %c56 = arith.constant 56 : index
    %c0_31 = arith.constant 0 : index
    %46 = vector.load %arg5[%c56, %c0_31] : memref<128x128xf32, #tpu.memory_space<vmem>>, vector<4x128xf32>
    %c60 = arith.constant 60 : index
    %c0_32 = arith.constant 0 : index
    %47 = vector.load %arg5[%c60, %c0_32] : memref<128x128xf32, #tpu.memory_space<vmem>>, vector<4x128xf32>
    %48 = arith.maximumf %44, %45 : vector<4x128xf32>
    %49 = arith.maximumf %46, %47 : vector<4x128xf32>
    %50 = arith.maximumf %48, %49 : vector<4x128xf32>
    %51 = vector.broadcast %4 : vector<1x128xf32> to vector<4x128xf32>
    %52 = arith.addf %50, %51 : vector<4x128xf32>
    %cst_33 = arith.constant 0.000000e+00 : f32
    %53 = vector.broadcast %cst_33 : f32 to vector<4x128xf32>
    %54 = arith.maximumf %52, %53 : vector<4x128xf32>
    %55 = arith.truncf %54 : vector<4x128xf32> to vector<4x128xbf16>
    %c12_34 = arith.constant 12 : index
    %c0_35 = arith.constant 0 : index
    %56 = vector.load %arg4[%c12_34, %c0_35] : memref<32x128xbf16, #tpu.memory_space<vmem>>, vector<4x128xbf16>
    tpu.vector_store %arg4[%c12_34, %c0_35], %55 {strides = array<i32>} : memref<32x128xbf16, #tpu.memory_space<vmem>>, vector<4x128xbf16>,
    %c64 = arith.constant 64 : index
    %c0_36 = arith.constant 0 : index
    %57 = vector.load %arg5[%c64, %c0_36] : memref<128x128xf32, #tpu.memory_space<vmem>>, vector<4x128xf32>
    %c68 = arith.constant 68 : index
    %c0_37 = arith.constant 0 : index
    %58 = vector.load %arg5[%c68, %c0_37] : memref<128x128xf32, #tpu.memory_space<vmem>>, vector<4x128xf32>
    %c72 = arith.constant 72 : index
    %c0_38 = arith.constant 0 : index
    %59 = vector.load %arg5[%c72, %c0_38] : memref<128x128xf32, #tpu.memory_space<vmem>>, vector<4x128xf32>
    %c76 = arith.constant 76 : index
    %c0_39 = arith.constant 0 : index
    %60 = vector.load %arg5[%c76, %c0_39] : memref<128x128xf32, #tpu.memory_space<vmem>>, vector<4x128xf32>
    %61 = arith.maximumf %57, %58 : vector<4x128xf32>
    %62 = arith.maximumf %59, %60 : vector<4x128xf32>
    %63 = arith.maximumf %61, %62 : vector<4x128xf32>
    %64 = vector.broadcast %4 : vector<1x128xf32> to vector<4x128xf32>
    %65 = arith.addf %63, %64 : vector<4x128xf32>
    %cst_40 = arith.constant 0.000000e+00 : f32
    %66 = vector.broadcast %cst_40 : f32 to vector<4x128xf32>
    %67 = arith.maximumf %65, %66 : vector<4x128xf32>
    %68 = arith.truncf %67 : vector<4x128xf32> to vector<4x128xbf16>
    %c16_41 = arith.constant 16 : index
    %c0_42 = arith.constant 0 : index
    %69 = vector.load %arg4[%c16_41, %c0_42] : memref<32x128xbf16, #tpu.memory_space<vmem>>, vector<4x128xbf16>
    tpu.vector_store %arg4[%c16_41, %c0_42], %68 {strides = array<i32>} : memref<32x128xbf16, #tpu.memory_space<vmem>>, vector<4x128xbf16>,
    %c80 = arith.constant 80 : index
    %c0_43 = arith.constant 0 : index
    %70 = vector.load %arg5[%c80, %c0_43] : memref<128x128xf32, #tpu.memory_space<vmem>>, vector<4x128xf32>
    %c84 = arith.constant 84 : index
    %c0_44 = arith.constant 0 : index
    %71 = vector.load %arg5[%c84, %c0_44] : memref<128x128xf32, #tpu.memory_space<vmem>>, vector<4x128xf32>
    %c88 = arith.constant 88 : index
    %c0_45 = arith.constant 0 : index
    %72 = vector.load %arg5[%c88, %c0_45] : memref<128x128xf32, #tpu.memory_space<vmem>>, vector<4x128xf32>
    %c92 = arith.constant 92 : index
    %c0_46 = arith.constant 0 : index
    %73 = vector.load %arg5[%c92, %c0_46] : memref<128x128xf32, #tpu.memory_space<vmem>>, vector<4x128xf32>
    %74 = arith.maximumf %70, %71 : vector<4x128xf32>
    %75 = arith.maximumf %72, %73 : vector<4x128xf32>
    %76 = arith.maximumf %74, %75 : vector<4x128xf32>
    %77 = vector.broadcast %4 : vector<1x128xf32> to vector<4x128xf32>
    %78 = arith.addf %76, %77 : vector<4x128xf32>
    %cst_47 = arith.constant 0.000000e+00 : f32
    %79 = vector.broadcast %cst_47 : f32 to vector<4x128xf32>
    %80 = arith.maximumf %78, %79 : vector<4x128xf32>
    %81 = arith.truncf %80 : vector<4x128xf32> to vector<4x128xbf16>
    %c20_48 = arith.constant 20 : index
    %c0_49 = arith.constant 0 : index
    %82 = vector.load %arg4[%c20_48, %c0_49] : memref<32x128xbf16, #tpu.memory_space<vmem>>, vector<4x128xbf16>
    tpu.vector_store %arg4[%c20_48, %c0_49], %81 {strides = array<i32>} : memref<32x128xbf16, #tpu.memory_space<vmem>>, vector<4x128xbf16>,
    %c96 = arith.constant 96 : index
    %c0_50 = arith.constant 0 : index
    %83 = vector.load %arg5[%c96, %c0_50] : memref<128x128xf32, #tpu.memory_space<vmem>>, vector<4x128xf32>
    %c100 = arith.constant 100 : index
    %c0_51 = arith.constant 0 : index
    %84 = vector.load %arg5[%c100, %c0_51] : memref<128x128xf32, #tpu.memory_space<vmem>>, vector<4x128xf32>
    %c104 = arith.constant 104 : index
    %c0_52 = arith.constant 0 : index
    %85 = vector.load %arg5[%c104, %c0_52] : memref<128x128xf32, #tpu.memory_space<vmem>>, vector<4x128xf32>
    %c108 = arith.constant 108 : index
    %c0_53 = arith.constant 0 : index
    %86 = vector.load %arg5[%c108, %c0_53] : memref<128x128xf32, #tpu.memory_space<vmem>>, vector<4x128xf32>
    %87 = arith.maximumf %83, %84 : vector<4x128xf32>
    %88 = arith.maximumf %85, %86 : vector<4x128xf32>
    %89 = arith.maximumf %87, %88 : vector<4x128xf32>
    %90 = vector.broadcast %4 : vector<1x128xf32> to vector<4x128xf32>
    %91 = arith.addf %89, %90 : vector<4x128xf32>
    %cst_54 = arith.constant 0.000000e+00 : f32
    %92 = vector.broadcast %cst_54 : f32 to vector<4x128xf32>
    %93 = arith.maximumf %91, %92 : vector<4x128xf32>
    %94 = arith.truncf %93 : vector<4x128xf32> to vector<4x128xbf16>
    %c24_55 = arith.constant 24 : index
    %c0_56 = arith.constant 0 : index
    %95 = vector.load %arg4[%c24_55, %c0_56] : memref<32x128xbf16, #tpu.memory_space<vmem>>, vector<4x128xbf16>
    tpu.vector_store %arg4[%c24_55, %c0_56], %94 {strides = array<i32>} : memref<32x128xbf16, #tpu.memory_space<vmem>>, vector<4x128xbf16>,
    %c112 = arith.constant 112 : index
    %c0_57 = arith.constant 0 : index
    %96 = vector.load %arg5[%c112, %c0_57] : memref<128x128xf32, #tpu.memory_space<vmem>>, vector<4x128xf32>
    %c116 = arith.constant 116 : index
    %c0_58 = arith.constant 0 : index
    %97 = vector.load %arg5[%c116, %c0_58] : memref<128x128xf32, #tpu.memory_space<vmem>>, vector<4x128xf32>
    %c120 = arith.constant 120 : index
    %c0_59 = arith.constant 0 : index
    %98 = vector.load %arg5[%c120, %c0_59] : memref<128x128xf32, #tpu.memory_space<vmem>>, vector<4x128xf32>
    %c124 = arith.constant 124 : index
    %c0_60 = arith.constant 0 : index
    %99 = vector.load %arg5[%c124, %c0_60] : memref<128x128xf32, #tpu.memory_space<vmem>>, vector<4x128xf32>
    %100 = arith.maximumf %96, %97 : vector<4x128xf32>
    %101 = arith.maximumf %98, %99 : vector<4x128xf32>
    %102 = arith.maximumf %100, %101 : vector<4x128xf32>
    %103 = vector.broadcast %4 : vector<1x128xf32> to vector<4x128xf32>
    %104 = arith.addf %102, %103 : vector<4x128xf32>
    %cst_61 = arith.constant 0.000000e+00 : f32
    %105 = vector.broadcast %cst_61 : f32 to vector<4x128xf32>
    %106 = arith.maximumf %104, %105 : vector<4x128xf32>
    %107 = arith.truncf %106 : vector<4x128xf32> to vector<4x128xbf16>
    %c28_62 = arith.constant 28 : index
    %c0_63 = arith.constant 0 : index
    %108 = vector.load %arg4[%c28_62, %c0_63] : memref<32x128xbf16, #tpu.memory_space<vmem>>, vector<4x128xbf16>
    tpu.vector_store %arg4[%c28_62, %c0_63], %107 {strides = array<i32>} : memref<32x128xbf16, #tpu.memory_space<vmem>>, vector<4x128xbf16>,
    return
  }
  func.func @transform_0(%arg0: i32) -> (i32, i32) {
    %c0_i32 = arith.constant 0 : i32
    %c0_i32_0 = arith.constant 0 : i32
    return %arg0, %c0_i32 : i32, i32
  }
  func.func @transform_1(%arg0: i32) -> (i32, i32) {
    %c0_i32 = arith.constant 0 : i32
    %c0_i32_0 = arith.constant 0 : i32
    %c0_i32_1 = arith.constant 0 : i32
    return %c0_i32, %c0_i32_0 : i32, i32
  }
  func.func @transform_2(%arg0: i32) -> (i32, i32) {
    %c0_i32 = arith.constant 0 : i32
    %c0_i32_0 = arith.constant 0 : i32
    %c0_i32_1 = arith.constant 0 : i32
    return %c0_i32, %c0_i32_0 : i32, i32
  }
  func.func @transform_3(%arg0: i32) -> (i32, i32) {
    %c0_i32 = arith.constant 0 : i32
    %c0_i32_0 = arith.constant 0 : i32
    return %arg0, %c0_i32 : i32, i32
  }
}

module attributes {stable_mosaic.version = 11 : i64} {
  func.func @_conv_gemm_pool_kernel(%arg0: i32, %arg1: memref<8x576xbf16, #tpu.memory_space<vmem>>, %arg2: memref<576x128xbf16, #tpu.memory_space<vmem>>, %arg3: memref<1x128xf32, #tpu.memory_space<vmem>>, %arg4: memref<2x128xbf16, #tpu.memory_space<vmem>>, %arg5: memref<8x128xf32, #tpu.memory_space<vmem>>) attributes {dimension_semantics = [#tpu.dimension_semantics<parallel>], iteration_bounds = array<i64: 1>, scalar_prefetch = 0 : i64, scratch_operands = 1 : i64, tpu.core_type = #tpu.core_type<tc>, window_params = [{transform_indices = @transform_0, window_bounds = array<i64: 8, 576>}, {pipeline_mode = #tpu.pipeline_mode<synchronous>, transform_indices = @transform_1, window_bounds = array<i64: 576, 128>}, {pipeline_mode = #tpu.pipeline_mode<synchronous>, transform_indices = @transform_2, window_bounds = array<i64: 1, 128>}, {transform_indices = @transform_3, window_bounds = array<i64: 2, 128>}]} {
    %c0 = arith.constant 0 : index
    %c0_0 = arith.constant 0 : index
    %0 = vector.load %arg1[%c0, %c0_0] : memref<8x576xbf16, #tpu.memory_space<vmem>>, vector<8x576xbf16>
    %c0_1 = arith.constant 0 : index
    %c0_2 = arith.constant 0 : index
    %1 = vector.load %arg2[%c0_1, %c0_2] : memref<576x128xbf16, #tpu.memory_space<vmem>>, vector<576x128xbf16>
    %cst = arith.constant dense<0.000000e+00> : vector<8x128xf32>
    %2 = tpu.matmul %0, %1, %cst {dimension_numbers = #tpu.dot_dimension_numbers<[1], [0], [0], [1], [0, 0, 1, 1], [], []>} : vector<8x576xbf16>, vector<576x128xbf16>, vector<8x128xf32> -> vector<8x128xf32>
    %c0_3 = arith.constant 0 : index
    %c0_4 = arith.constant 0 : index
    %3 = vector.load %arg5[%c0_3, %c0_4] : memref<8x128xf32, #tpu.memory_space<vmem>>, vector<8x128xf32>
    tpu.vector_store %arg5[%c0_3, %c0_4], %2 {strides = array<i32>} : memref<8x128xf32, #tpu.memory_space<vmem>>, vector<8x128xf32>,
    %c0_5 = arith.constant 0 : index
    %c0_6 = arith.constant 0 : index
    %4 = vector.load %arg3[%c0_5, %c0_6] : memref<1x128xf32, #tpu.memory_space<vmem>>, vector<1x128xf32>
    %c0_7 = arith.constant 0 : index
    %c0_8 = arith.constant 0 : index
    %5 = vector.load %arg5[%c0_7, %c0_8] : memref<8x128xf32, #tpu.memory_space<vmem>>, vector<1x128xf32>
    %c1 = arith.constant 1 : index
    %c0_9 = arith.constant 0 : index
    %6 = vector.load %arg5[%c1, %c0_9] : memref<8x128xf32, #tpu.memory_space<vmem>>, vector<1x128xf32>
    %c2 = arith.constant 2 : index
    %c0_10 = arith.constant 0 : index
    %7 = vector.load %arg5[%c2, %c0_10] : memref<8x128xf32, #tpu.memory_space<vmem>>, vector<1x128xf32>
    %c3 = arith.constant 3 : index
    %c0_11 = arith.constant 0 : index
    %8 = vector.load %arg5[%c3, %c0_11] : memref<8x128xf32, #tpu.memory_space<vmem>>, vector<1x128xf32>
    %9 = arith.maximumf %5, %6 : vector<1x128xf32>
    %10 = arith.maximumf %7, %8 : vector<1x128xf32>
    %11 = arith.maximumf %9, %10 : vector<1x128xf32>
    %12 = arith.addf %11, %4 : vector<1x128xf32>
    %cst_12 = arith.constant 0.000000e+00 : f32
    %13 = vector.broadcast %cst_12 : f32 to vector<1x128xf32>
    %14 = arith.maximumf %12, %13 : vector<1x128xf32>
    %15 = arith.truncf %14 : vector<1x128xf32> to vector<1x128xbf16>
    %c0_13 = arith.constant 0 : index
    %c0_14 = arith.constant 0 : index
    %16 = vector.load %arg4[%c0_13, %c0_14] : memref<2x128xbf16, #tpu.memory_space<vmem>>, vector<1x128xbf16>
    tpu.vector_store %arg4[%c0_13, %c0_14], %15 {strides = array<i32>} : memref<2x128xbf16, #tpu.memory_space<vmem>>, vector<1x128xbf16>,
    %c4 = arith.constant 4 : index
    %c0_15 = arith.constant 0 : index
    %17 = vector.load %arg5[%c4, %c0_15] : memref<8x128xf32, #tpu.memory_space<vmem>>, vector<1x128xf32>
    %c5 = arith.constant 5 : index
    %c0_16 = arith.constant 0 : index
    %18 = vector.load %arg5[%c5, %c0_16] : memref<8x128xf32, #tpu.memory_space<vmem>>, vector<1x128xf32>
    %c6 = arith.constant 6 : index
    %c0_17 = arith.constant 0 : index
    %19 = vector.load %arg5[%c6, %c0_17] : memref<8x128xf32, #tpu.memory_space<vmem>>, vector<1x128xf32>
    %c7 = arith.constant 7 : index
    %c0_18 = arith.constant 0 : index
    %20 = vector.load %arg5[%c7, %c0_18] : memref<8x128xf32, #tpu.memory_space<vmem>>, vector<1x128xf32>
    %21 = arith.maximumf %17, %18 : vector<1x128xf32>
    %22 = arith.maximumf %19, %20 : vector<1x128xf32>
    %23 = arith.maximumf %21, %22 : vector<1x128xf32>
    %24 = arith.addf %23, %4 : vector<1x128xf32>
    %cst_19 = arith.constant 0.000000e+00 : f32
    %25 = vector.broadcast %cst_19 : f32 to vector<1x128xf32>
    %26 = arith.maximumf %24, %25 : vector<1x128xf32>
    %27 = arith.truncf %26 : vector<1x128xf32> to vector<1x128xbf16>
    %c1_20 = arith.constant 1 : index
    %c0_21 = arith.constant 0 : index
    %28 = vector.load %arg4[%c1_20, %c0_21] : memref<2x128xbf16, #tpu.memory_space<vmem>>, vector<1x128xbf16>
    tpu.vector_store %arg4[%c1_20, %c0_21], %27 {strides = array<i32>} : memref<2x128xbf16, #tpu.memory_space<vmem>>, vector<1x128xbf16>,
    return
  }
  func.func @transform_0(%arg0: i32) -> (i32, i32) {
    %c0_i32 = arith.constant 0 : i32
    %c0_i32_0 = arith.constant 0 : i32
    return %arg0, %c0_i32 : i32, i32
  }
  func.func @transform_1(%arg0: i32) -> (i32, i32) {
    %c0_i32 = arith.constant 0 : i32
    %c0_i32_0 = arith.constant 0 : i32
    %c0_i32_1 = arith.constant 0 : i32
    return %c0_i32, %c0_i32_0 : i32, i32
  }
  func.func @transform_2(%arg0: i32) -> (i32, i32) {
    %c0_i32 = arith.constant 0 : i32
    %c0_i32_0 = arith.constant 0 : i32
    %c0_i32_1 = arith.constant 0 : i32
    return %c0_i32, %c0_i32_0 : i32, i32
  }
  func.func @transform_3(%arg0: i32) -> (i32, i32) {
    %c0_i32 = arith.constant 0 : i32
    %c0_i32_0 = arith.constant 0 : i32
    return %arg0, %c0_i32 : i32, i32
  }
}

module attributes {stable_mosaic.version = 11 : i64} {
  func.func @_matmul_bias_relu_kernel(%arg0: i32, %arg1: memref<2x128xbf16, #tpu.memory_space<vmem>>, %arg2: memref<128x64xbf16, #tpu.memory_space<vmem>>, %arg3: memref<1x64xf32, #tpu.memory_space<vmem>>, %arg4: memref<2x64xbf16, #tpu.memory_space<vmem>>) attributes {dimension_semantics = [#tpu.dimension_semantics<parallel>], iteration_bounds = array<i64: 1>, scalar_prefetch = 0 : i64, scratch_operands = 0 : i64, tpu.core_type = #tpu.core_type<tc>, window_params = [{transform_indices = @transform_0, window_bounds = array<i64: 2, 128>}, {pipeline_mode = #tpu.pipeline_mode<synchronous>, transform_indices = @transform_1, window_bounds = array<i64: 128, 64>}, {pipeline_mode = #tpu.pipeline_mode<synchronous>, transform_indices = @transform_2, window_bounds = array<i64: 1, 64>}, {transform_indices = @transform_3, window_bounds = array<i64: 2, 64>}]} {
    %c0 = arith.constant 0 : index
    %c0_0 = arith.constant 0 : index
    %0 = vector.load %arg1[%c0, %c0_0] : memref<2x128xbf16, #tpu.memory_space<vmem>>, vector<2x128xbf16>
    %c0_1 = arith.constant 0 : index
    %c0_2 = arith.constant 0 : index
    %1 = vector.load %arg2[%c0_1, %c0_2] : memref<128x64xbf16, #tpu.memory_space<vmem>>, vector<128x64xbf16>
    %cst = arith.constant dense<0.000000e+00> : vector<2x64xf32>
    %2 = tpu.matmul %0, %1, %cst {dimension_numbers = #tpu.dot_dimension_numbers<[1], [0], [0], [1], [0, 0, 1, 1], [], []>} : vector<2x128xbf16>, vector<128x64xbf16>, vector<2x64xf32> -> vector<2x64xf32>
    %c0_3 = arith.constant 0 : index
    %c0_4 = arith.constant 0 : index
    %3 = vector.load %arg3[%c0_3, %c0_4] : memref<1x64xf32, #tpu.memory_space<vmem>>, vector<1x64xf32>
    %4 = vector.broadcast %3 : vector<1x64xf32> to vector<2x64xf32>
    %5 = arith.addf %2, %4 : vector<2x64xf32>
    %cst_5 = arith.constant 0.000000e+00 : f32
    %6 = vector.broadcast %cst_5 : f32 to vector<2x64xf32>
    %7 = arith.maximumf %5, %6 : vector<2x64xf32>
    %8 = arith.truncf %7 : vector<2x64xf32> to vector<2x64xbf16>
    %c0_6 = arith.constant 0 : index
    %c0_7 = arith.constant 0 : index
    %9 = vector.load %arg4[%c0_6, %c0_7] : memref<2x64xbf16, #tpu.memory_space<vmem>>, vector<2x64xbf16>
    tpu.vector_store %arg4[%c0_6, %c0_7], %8 {strides = array<i32>} : memref<2x64xbf16, #tpu.memory_space<vmem>>, vector<2x64xbf16>,
    return
  }
  func.func @transform_0(%arg0: i32) -> (i32, i32) {
    %c0_i32 = arith.constant 0 : i32
    %c0_i32_0 = arith.constant 0 : i32
    return %arg0, %c0_i32 : i32, i32
  }
  func.func @transform_1(%arg0: i32) -> (i32, i32) {
    %c0_i32 = arith.constant 0 : i32
    %c0_i32_0 = arith.constant 0 : i32
    %c0_i32_1 = arith.constant 0 : i32
    return %c0_i32, %c0_i32_0 : i32, i32
  }
  func.func @transform_2(%arg0: i32) -> (i32, i32) {
    %c0_i32 = arith.constant 0 : i32
    %c0_i32_0 = arith.constant 0 : i32
    %c0_i32_1 = arith.constant 0 : i32
    return %c0_i32, %c0_i32_0 : i32, i32
  }
  func.func @transform_3(%arg0: i32) -> (i32, i32) {
    %c0_i32 = arith.constant 0 : i32
    %c0_i32_0 = arith.constant 0 : i32
    return %arg0, %c0_i32 : i32, i32
  }
}

module attributes {stable_mosaic.version = 11 : i64} {
  func.func @_fc_softmax_kernel(%arg0: i32, %arg1: memref<2x64xbf16, #tpu.memory_space<vmem>>, %arg2: memref<64x10xbf16, #tpu.memory_space<vmem>>, %arg3: memref<1x10xf32, #tpu.memory_space<vmem>>, %arg4: memref<2x10xf32, #tpu.memory_space<vmem>>) attributes {dimension_semantics = [#tpu.dimension_semantics<parallel>], iteration_bounds = array<i64: 1>, scalar_prefetch = 0 : i64, scratch_operands = 0 : i64, tpu.core_type = #tpu.core_type<tc>, window_params = [{transform_indices = @transform_0, window_bounds = array<i64: 2, 64>}, {pipeline_mode = #tpu.pipeline_mode<synchronous>, transform_indices = @transform_1, window_bounds = array<i64: 64, 10>}, {pipeline_mode = #tpu.pipeline_mode<synchronous>, transform_indices = @transform_2, window_bounds = array<i64: 1, 10>}, {transform_indices = @transform_3, window_bounds = array<i64: 2, 10>}]} {
    %c0 = arith.constant 0 : index
    %c0_0 = arith.constant 0 : index
    %0 = vector.load %arg1[%c0, %c0_0] : memref<2x64xbf16, #tpu.memory_space<vmem>>, vector<2x64xbf16>
    %c0_1 = arith.constant 0 : index
    %c0_2 = arith.constant 0 : index
    %1 = vector.load %arg2[%c0_1, %c0_2] : memref<64x10xbf16, #tpu.memory_space<vmem>>, vector<64x10xbf16>
    %cst = arith.constant dense<0.000000e+00> : vector<2x10xf32>
    %2 = tpu.matmul %0, %1, %cst {dimension_numbers = #tpu.dot_dimension_numbers<[1], [0], [0], [1], [0, 0, 1, 1], [], []>} : vector<2x64xbf16>, vector<64x10xbf16>, vector<2x10xf32> -> vector<2x10xf32>
    %c0_3 = arith.constant 0 : index
    %c0_4 = arith.constant 0 : index
    %3 = vector.load %arg3[%c0_3, %c0_4] : memref<1x10xf32, #tpu.memory_space<vmem>>, vector<1x10xf32>
    %4 = vector.broadcast %3 : vector<1x10xf32> to vector<2x10xf32>
    %5 = arith.addf %2, %4 : vector<2x10xf32>
    %cst_5 = arith.constant dense<0xFF800000> : vector<2xf32>
    %6 = vector.multi_reduction <maximumf>, %5, %cst_5 [1] : vector<2x10xf32> to vector<2xf32>
    %7 = vector.shape_cast %6 : vector<2xf32> to vector<2x1xf32>
    %8 = vector.broadcast %7 : vector<2x1xf32> to vector<2x10xf32>
    %9 = arith.subf %5, %8 : vector<2x10xf32>
    %10 = math.exp %9 : vector<2x10xf32>
    %cst_6 = arith.constant dense<0.000000e+00> : vector<2xf32>
    %11 = vector.multi_reduction <add>, %10, %cst_6 [1] : vector<2x10xf32> to vector<2xf32>
    %12 = vector.shape_cast %11 : vector<2xf32> to vector<2x1xf32>
    %13 = tpu.reciprocal %12 {approx = true} : vector<2x1xf32> -> vector<2x1xf32>
    %14 = vector.broadcast %13 : vector<2x1xf32> to vector<2x10xf32>
    %15 = arith.mulf %10, %14 : vector<2x10xf32>
    %c0_7 = arith.constant 0 : index
    %c0_8 = arith.constant 0 : index
    %16 = vector.load %arg4[%c0_7, %c0_8] : memref<2x10xf32, #tpu.memory_space<vmem>>, vector<2x10xf32>
    tpu.vector_store %arg4[%c0_7, %c0_8], %15 {strides = array<i32>} : memref<2x10xf32, #tpu.memory_space<vmem>>, vector<2x10xf32>,
    return
  }
  func.func @transform_0(%arg0: i32) -> (i32, i32) {
    %c0_i32 = arith.constant 0 : i32
    %c0_i32_0 = arith.constant 0 : i32
    return %arg0, %c0_i32 : i32, i32
  }
  func.func @transform_1(%arg0: i32) -> (i32, i32) {
    %c0_i32 = arith.constant 0 : i32
    %c0_i32_0 = arith.constant 0 : i32
    %c0_i32_1 = arith.constant 0 : i32
    return %c0_i32, %c0_i32_0 : i32, i32
  }
  func.func @transform_2(%arg0: i32) -> (i32, i32) {
    %c0_i32 = arith.constant 0 : i32
    %c0_i32_0 = arith.constant 0 : i32
    %c0_i32_1 = arith.constant 0 : i32
    return %c0_i32, %c0_i32_0 : i32, i32
  }
  func.func @transform_3(%arg0: i32) -> (i32, i32) {
    %c0_i32 = arith.constant 0 : i32
    %c0_i32_0 = arith.constant 0 : i32
    return %arg0, %c0_i32 : i32, i32
  }
}

</mosaic_0001>

<bundles_post_ra>
// kernel: species_cnn_forward.7
= control target key start
LH: loop header
LB: loop body
LE: loop exit
PB: predicated region body
PF: predicated region fallthrough
CT: control target
= control target key end

     0   :  { %s8063_s12 = smov 0   ;;  %s8065_s13 = smov 0   ;;  %s9731_s0 = inlined_call_operand.vmem [shape: bf16[17672,27], index: 0, kind: input, shape index: {}]   ;;  %s9732_s1 = inlined_call_operand.vmem [shape: bf16[27,128], index: 1, kind: input, shape index: {}]   ;;  %s9733_s2 = inlined_call_operand.vmem [shape: f32[1,128], index: 2, kind: input, shape index: {}]   ;;  %s9734_s3 = inlined_call_operand.vmem [shape: bf16[4418,128], index: 3, kind: output, shape index: {}]  }
   0x1   :  { %s8067_s14 = smov 0  }
   0x2 LB: > { %s8076_s15 = sadd.s32 4294967295, %s8008_s14   ;;  %s8078_s16 = sadd.s32 1, %s8008_s14   ;;  %s8008_s14 = sphi %s8067_s14, %s9771_s14   ;;  %s8004_s13 = sphi %s8065_s13, %s9770_s13   ;;  %s8000_s12 = sphi %s8063_s12, %s9769_s12  }
   0x3   : > { %s85_s17 = ssub.s32 %s8008_s14, %s8078_s16  ;;  %s88_s18 = sadd.s32 1, %s8004_s13 }
   0x4   : > { %p86_p0 = scmp.eq.s32.totalorder %s85_s17, 0  ;;  %p98_p1 = scmp.ne.s32.totalorder %s8004_s13, %s8000_s12 }
   0x5   : > { %p99_p2 = scmp.eq.s32.totalorder %s8076_s15, 5  ;;  %p6482_p3 = scmp.ge.s32.totalorder %s8008_s14, 1 }
   0x6   : > { %s8086_s19 = scalar_select %p86_p0, %s8004_s13, %s88_s18  }
   0x7   : > { %p8088_p4 = por %p99_p2, %p98_p1  ;;  %p146_p5 = scmp.lt.s32.totalorder %s8008_s14, 7 }
   0x9   : > { %p147_p6 = pnand %p6482_p3, %p146_p5 }
   0xa   : > { %v7760_v0 = vld [vmem:[%s9732_s1] sm:$0xff] (!%p147_p6)   ;;  %vm2089_vm0 = vcmask (!%p147_p6), 1044480   ;;  %v7761_v1 = vld [vmem:[%s9732_s1 + $0x8] sm:$0x3f] (!%p147_p6)   ;;  %vm2090_vm1 = vcmask (!%p147_p6), 1045504   ;;  %s8099_s25 = smul.u32 (!%p147_p6), 376, %s8076_s15 }
   0xb   : > { %150 = sbr.rel (%p147_p6) target bundleno = 742 (0x2e6), region = 32  ;;  %7286 = vmatprep.subr.bf16.mxu0 (!%p147_p6), %v7760_v0  ;;  %7666 = vmatprep.subr.bf16.mxu1 (!%p147_p6), %v7760_v0  ;;  %v8042_v2 = vmov (!%p147_p6), 65535   ;;  %vm1524_vm2 = vcmask (!%p147_p6), 220160   ;;  %s170_s4 = sand.u32 (!%p147_p6), 1, %s8000_s12   ;;  %vm4099_vm3 = vcmask (!%p147_p6), 1043456   ;;  %vm4245_vm6 = vcmask (!%p147_p6), 1043459  }
   0xc   : > { %7287 = vmatpush3.bf16.msra.mxu0 (!%p147_p6), %v7760_v0  ;;  %7668 = vmatpush3.bf16.msra.mxu1 (!%p147_p6), %v7760_v0  ;;  %v2091_v3 = vsel (!%p147_p6), %vm2089_vm0, 4294967295, %v8042_v2  ;;  %p178_p7 = scmp.lt.s32.totalorder (!%p147_p6), %s8099_s25, 2208  ;;  %s8402_s7 = smul.u32 (!%p147_p6), 376, %s170_s4  ;;  %vm4100_vm4 = vsmask.f32 (!%p147_p6), 3328  ;;  %vm4329_vm11 = vcmask (!%p147_p6), 1042432  }
   0xd   : > { %v2092_v4 = vsel (!%p147_p6), %vm2090_vm1, %v2091_v3, 0  ;;  %vm8478_vm5 = vmand (!%p147_p6), %vm4099_vm3, %vm4100_vm4  ;;  %vm4246_vm7 = vsmask.f32 (!%p147_p6), 7950  ;;  %vm4177_vm8 = vsmask.f32 (!%p147_p6), 7440  ;;  %vm4330_vm12 = vcmask (!%p147_p6), 1046532  }
   0xe   : > { %v2094_v5 = vand.u32 (!%p147_p6), %v7761_v1, %v2092_v4  ;;  %s8456_s8 = scalar_lea.vmem (!%p147_p6), [#allocation3], %s8402_s7   ;;  %vm8626_vm9 = vmand (!%p147_p6), %vm4245_vm6, %vm4246_vm7  ;;  %vm4362_vm14 = vsmask.f32 (!%p147_p6), 2304  ;;  %vm4507_vm0 = vcmask (!%p147_p6), 1043458   ;;  %vm4508_vm1 = vsmask.f32 (!%p147_p6), 7946 }
   0xf   : > { %vm8645_vm10 = vmor (!%p147_p6), %vm4100_vm4, %vm4177_vm8  ;;  %vm4591_vm6 = vcmask (!%p147_p6), 1041408   ;;  %vm4592_vm7 = vcmask (!%p147_p6), 1045508  }
  0x10   : > { %7288 = vmatprep.subr.bf16.mxu0 (!%p147_p6), %v2094_v5  ;;  %7667 = vmatprep.subr.bf16.mxu1 (!%p147_p6), %v2094_v5  ;;  %vm8820_vm13 = vmor (!%p147_p6), %vm4329_vm11, %vm4330_vm12  ;;  %vm4770_vm12 = vsmask.f32 (!%p147_p6), 7942 }
  0x11   : > { %7289 = vmatpush3.bf16.msra.mxu0 (!%p147_p6), %v2094_v5  ;;  %7669 = vmatpush3.bf16.msra.mxu1 (!%p147_p6), %v2094_v5  ;;  %vm8870_vm15 = vmand (!%p147_p6), %vm4329_vm11, %vm4362_vm14  ;;  %vm4769_vm11 = vcmask (!%p147_p6), 1043457  }
  0x12   : > { %s179_s26 = scalar_select %p178_p7, %s8099_s25, 2208  ;;  %vm8956_vm4 = vmand %vm4507_vm0, %vm4508_vm1  ;;  %vm4853_vm0 = vcmask 1040384   ;;  %vm4854_vm1 = vcmask 1044484  }
  0x13   : > { %vm9104_vm8 = vmor %vm4591_vm6, %vm4592_vm7  ;;  %s6020_s22 = smul.u32 (%p8088_p4), 94, %s8076_s15 }
  0x14   : > { %s6483_s27 = sshll.u32 %s179_s26, 2  ;;  %s9539_s26 = scalar_lea.vmem (%p8088_p4), %s9734_s3, %s8099_s25  }
  0x15   : > { %s8106_s30 = scalar_lea.vmem %s9731_s0, %s6483_s27  ;;  %s6021_s27 = ssub.s32 (%p8088_p4), 553, %s6020_s22 }
  0x16   : > { %v7762_v6 = vld [vmem:[%s8106_s30] sm:$0xff]   ;;  %v7763_v7 = vld [vmem:[%s8106_s30 + $0x2f0] sm:$0xff]   ;;  %v7764_v8 = vld [vmem:[%s8106_s30 + $0x8] sm:$0xff]   ;;  %p6022_p8 = scmp.lt.s32.totalorder (%p8088_p4), %s6021_s27, 94 }
  0x17   : > { %7290 = vmatprep.mubr.msk.bf16.mxu0 %vm1524_vm2, %v7762_v6  ;;  %7478 = vmatprep.mubr.msk.bf16.mxu1 %vm1524_vm2, %v7763_v7  ;;  %v7765_v9 = vld [vmem:[%s8106_s30 + $0x2f8] sm:$0xff]   ;;  %v7766_v10 = vld [vmem:[%s8106_s30 + $0x10] sm:$0xff]   ;;  %v7767_v11 = vld [vmem:[%s8106_s30 + $0x300] sm:$0xff]  }
  0x18   : > { %7291 = vmatmul.mubr.msk.bf16.vlgmr.msra.gmra.mrb[0].mxu0 %vm1524_vm2, %v7764_v8  ;;  %7479 = vmatmul.mubr.msk.bf16.vlgmr.msra.gmra.mrb[0].mxu1 %vm1524_vm2, %v7765_v9  ;;  %v7768_v12 = vld [vmem:[%s8106_s30 + $0x18] sm:$0xff]   ;;  %v7769_v13 = vld [vmem:[%s8106_s30 + $0x308] sm:$0xff]   ;;  %v7770_v14 = vld [vmem:[%s8106_s30 + $0x20] sm:$0xff]  }
  0x19   : > { %7294 = vmatprep.mubr.msk.bf16.mxu0 %vm1524_vm2, %v7766_v10  ;;  %7482 = vmatprep.mubr.msk.bf16.mxu1 %vm1524_vm2, %v7767_v11  ;;  %v7771_v15 = vld [vmem:[%s8106_s30 + $0x310] sm:$0xff]   ;;  %v7772_v16 = vld [vmem:[%s8106_s30 + $0x28] sm:$0xff]   ;;  %v7773_v17 = vld [vmem:[%s8106_s30 + $0x318] sm:$0xff]  }
  0x1a   : > { %v7774_v18 = vld [vmem:[%s8106_s30 + $0x30] sm:$0xff]   ;;  %v7775_v19 = vld [vmem:[%s8106_s30 + $0x320] sm:$0xff]   ;;  %v7776_v20 = vld [vmem:[%s8106_s30 + $0x38] sm:$0xff]  }
  0x1b   : > { %v7777_v21 = vld [vmem:[%s8106_s30 + $0x328] sm:$0xff]   ;;  %v7778_v22 = vld [vmem:[%s8106_s30 + $0x40] sm:$0xff]   ;;  %v7779_v23 = vld [vmem:[%s8106_s30 + $0x330] sm:$0xff]  }
  0x1c   : > { %v7780_v24 = vld [vmem:[%s8106_s30 + $0x48] sm:$0xff]   ;;  %v7781_v25 = vld [vmem:[%s8106_s30 + $0x338] sm:$0xff]   ;;  %v7782_v26 = vld [vmem:[%s8106_s30 + $0x50] sm:$0xff]  }
  0x1d   : > { %v7783_v27 = vld [vmem:[%s8106_s30 + $0x340] sm:$0xff]   ;;  %v7784_v28 = vld [vmem:[%s8106_s30 + $0x58] sm:$0xff]   ;;  %v7785_v29 = vld [vmem:[%s8106_s30 + $0x348] sm:$0xff]  }
  0x1e   : > { %v7786_v30 = vld [vmem:[%s8106_s30 + $0x60] sm:$0xff]   ;;  %v7787_v31 = vld [vmem:[%s8106_s30 + $0x350] sm:$0xff]   ;;  %v7788_v32 = vld [vmem:[%s8106_s30 + $0x68] sm:$0xff]  }
  0x1f   : > { %v7789_v33 = vld [vmem:[%s8106_s30 + $0x358] sm:$0xff]   ;;  %v7790_v34 = vld [vmem:[%s8106_s30 + $0x70] sm:$0xff]   ;;  %v7791_v35 = vld [vmem:[%s8106_s30 + $0x360] sm:$0xff]  }
  0x20   : > { %7295 = vmatmul.mubr.msk.bf16.gmra.mrb[4].mxu0 %vm1524_vm2, %v7768_v12  ;;  %7483 = vmatmul.mubr.msk.bf16.gmra.mrb[4].mxu1 %vm1524_vm2, %v7769_v13  ;;  %v7792_v36 = vld [vmem:[%s8106_s30 + $0x78] sm:$0xff]   ;;  %v7793_v37 = vld [vmem:[%s8106_s30 + $0x368] sm:$0xff]   ;;  %v7794_v38 = vld [vmem:[%s8106_s30 + $0x80] sm:$0xff]  }
  0x21   : > { %7298 = vmatprep.mubr.msk.bf16.mxu0 %vm1524_vm2, %v7770_v14  ;;  %7486 = vmatprep.mubr.msk.bf16.mxu1 %vm1524_vm2, %v7771_v15  ;;  %v7795_v39 = vld [vmem:[%s8106_s30 + $0x370] sm:$0xff]   ;;  %v7796_v40 = vld [vmem:[%s8106_s30 + $0x88] sm:$0xff]   ;;  %v7797_v41 = vld [vmem:[%s8106_s30 + $0x378] sm:$0xff]  }
  0x22   : > { %v7798_v42 = vld [vmem:[%s8106_s30 + $0x90] sm:$0xff]   ;;  %v7799_v43 = vld [vmem:[%s8106_s30 + $0x380] sm:$0xff]   ;;  %v7800_v44 = vld [vmem:[%s8106_s30 + $0x98] sm:$0xff]  }
  0x23   : > { %v7801_v45 = vld [vmem:[%s8106_s30 + $0x388] sm:$0xff]   ;;  %v7802_v46 = vld [vmem:[%s8106_s30 + $0xa0] sm:$0xff]   ;;  %v7803_v47 = vld [vmem:[%s8106_s30 + $0x390] sm:$0xff]  }
  0x24   : > { %v7804_v48 = vld [vmem:[%s8106_s30 + $0xa8] sm:$0xff]   ;;  %v7805_v49 = vld [vmem:[%s8106_s30 + $0x398] sm:$0xff]   ;;  %v7806_v50 = vld [vmem:[%s8106_s30 + $0xb0] sm:$0xff]  }
  0x25   : > { %v7807_v51 = vld [vmem:[%s8106_s30 + $0x3a0] sm:$0xff]   ;;  %v7808_v52 = vld [vmem:[%s8106_s30 + $0xb8] sm:$0xff]   ;;  %v7809_v53 = vld [vmem:[%s8106_s30 + $0x3a8] sm:$0xff]  }
  0x26   : > { %v7810_v54 = vld [vmem:[%s8106_s30 + $0xc0] sm:$0xff]   ;;  %v7811_v55 = vld [vmem:[%s8106_s30 + $0x3b0] sm:$0xff]   ;;  %v7812_v56 = vld [vmem:[%s8106_s30 + $0xc8] sm:$0xff]  }
  0x27   : > { %v7813_v57 = vld [vmem:[%s8106_s30 + $0x3b8] sm:$0xff]   ;;  %v7814_v58 = vld [vmem:[%s8106_s30 + $0xd0] sm:$0xff]   ;;  %v7815_v59 = vld [vmem:[%s8106_s30 + $0x3c0] sm:$0xff]  }
  0x28   : > { %7299 = vmatmul.mubr.msk.bf16.gmra.mrb[8].mxu0 %vm1524_vm2, %v7772_v16  ;;  %7487 = vmatmul.mubr.msk.bf16.gmra.mrb[8].mxu1 %vm1524_vm2, %v7773_v17  ;;  %v7816_v60 = vld [vmem:[%s8106_s30 + $0xd8] sm:$0xff]   ;;  %v7817_v61 = vld [vmem:[%s8106_s30 + $0x3c8] sm:$0xff]   ;;  %v7818_v62 = vld [vmem:[%s8106_s30 + $0xe0] sm:$0xff]  }
  0x29   : > { %7302 = vmatprep.mubr.msk.bf16.mxu0 %vm1524_vm2, %v7774_v18  ;;  %7490 = vmatprep.mubr.msk.bf16.mxu1 %vm1524_vm2, %v7775_v19  ;;  %v7819_v63 = vld [vmem:[%s8106_s30 + $0x3d0] sm:$0xff]   ;;  %v7820_v0 = vld [vmem:[%s8106_s30 + $0xe8] sm:$0xff]   ;;  %v7821_v1 = vld [vmem:[%s8106_s30 + $0x3d8] sm:$0xff]  }
  0x2a   : > { %v7822_v2 = vld [vmem:[%s8106_s30 + $0xf0] sm:$0xff]   ;;  %v7823_v3 = vld [vmem:[%s8106_s30 + $0x3e0] sm:$0xff]   ;;  %v7824_v4 = vld [vmem:[%s8106_s30 + $0xf8] sm:$0xff]  }
  0x2b   : > { %v7825_v5 = vld [vmem:[%s8106_s30 + $0x3e8] sm:$0xff]   ;;  %v7826_v6 = vld [vmem:[%s8106_s30 + $0x100] sm:$0xff]   ;;  %v7827_v7 = vld [vmem:[%s8106_s30 + $0x3f0] sm:$0xff]  }
  0x2c   : > { %v7828_v8 = vld [vmem:[%s8106_s30 + $0x108] sm:$0xff]   ;;  %v7829_v9 = vld [vmem:[%s8106_s30 + $0x3f8] sm:$0xff]   ;;  %v7830_v10 = vld [vmem:[%s8106_s30 + $0x110] sm:$0xff]  }
  0x2d   : > { %v7831_v11 = vld [vmem:[%s8106_s30 + $0x400] sm:$0xff]   ;;  %v7832_v12 = vld [vmem:[%s8106_s30 + $0x118] sm:$0xff]   ;;  %v7833_v13 = vld [vmem:[%s8106_s30 + $0x408] sm:$0xff]  }
  0x2e   : > { %v7834_v14 = vld [vmem:[%s8106_s30 + $0x120] sm:$0xff]   ;;  %v7835_v15 = vld [vmem:[%s8106_s30 + $0x410] sm:$0xff]   ;;  %v7836_v16 = vld [vmem:[%s8106_s30 + $0x128] sm:$0xff]  }
  0x2f   : > { %v7837_v17 = vld [vmem:[%s8106_s30 + $0x418] sm:$0xff]   ;;  %v7838_v18 = vld [vmem:[%s8106_s30 + $0x130] sm:$0xff]   ;;  %v7839_v19 = vld [vmem:[%s8106_s30 + $0x420] sm:$0xff]  }
  0x30   : > { %7303 = vmatmul.mubr.msk.bf16.gmra.mrb[12].mxu0 %vm1524_vm2, %v7776_v20  ;;  %7491 = vmatmul.mubr.msk.bf16.gmra.mrb[12].mxu1 %vm1524_vm2, %v7777_v21  ;;  %v7840_v20 = vld [vmem:[%s8106_s30 + $0x138] sm:$0xff]   ;;  %v7841_v21 = vld [vmem:[%s8106_s30 + $0x428] sm:$0xff]  }
  0x31   : > { %7306 = vmatprep.mubr.msk.bf16.mxu0 %vm1524_vm2, %v7778_v22  ;;  %7494 = vmatprep.mubr.msk.bf16.mxu1 %vm1524_vm2, %v7779_v23  ;;  %v7842_v22 = vld [vmem:[%s8106_s30 + $0x140] sm:$0xff]   ;;  %v7843_v23 = vld [vmem:[%s8106_s30 + $0x430] sm:$0xff]  }
  0x38   : > { %7307 = vmatmul.mubr.msk.bf16.gmra.mrb[16].mxu0 %vm1524_vm2, %v7780_v24  ;;  %7495 = vmatmul.mubr.msk.bf16.gmra.mrb[16].mxu1 %vm1524_vm2, %v7781_v25  ;;  %v7844_v24 = vld [vmem:[%s8106_s30 + $0x148] sm:$0xff]   ;;  %v7845_v25 = vld [vmem:[%s8106_s30 + $0x438] sm:$0xff]  }
  0x39   : > { %7310 = vmatprep.mubr.msk.bf16.mxu0 %vm1524_vm2, %v7782_v26  ;;  %7498 = vmatprep.mubr.msk.bf16.mxu1 %vm1524_vm2, %v7783_v27  ;;  %v7846_v26 = vld [vmem:[%s8106_s30 + $0x150] sm:$0xff]   ;;  %v7847_v27 = vld [vmem:[%s8106_s30 + $0x440] sm:$0xff]  }
  0x40   : > { %7311 = vmatmul.mubr.msk.bf16.gmra.mrb[20].mxu0 %vm1524_vm2, %v7784_v28  ;;  %7499 = vmatmul.mubr.msk.bf16.gmra.mrb[20].mxu1 %vm1524_vm2, %v7785_v29  ;;  %v7848_v28 = vld [vmem:[%s8106_s30 + $0x158] sm:$0xff]   ;;  %v7849_v29 = vld [vmem:[%s8106_s30 + $0x448] sm:$0xff]  }
  0x41   : > { %7314 = vmatprep.mubr.msk.bf16.mxu0 %vm1524_vm2, %v7786_v30  ;;  %7502 = vmatprep.mubr.msk.bf16.mxu1 %vm1524_vm2, %v7787_v31  ;;  %v7850_v30 = vld [vmem:[%s8106_s30 + $0x160] sm:$0xff]   ;;  %v7851_v31 = vld [vmem:[%s8106_s30 + $0x450] sm:$0xff]  }
  0x48   : > { %7315 = vmatmul.mubr.msk.bf16.gmra.mrb[24].mxu0 %vm1524_vm2, %v7788_v32  ;;  %7503 = vmatmul.mubr.msk.bf16.gmra.mrb[24].mxu1 %vm1524_vm2, %v7789_v33  ;;  %v7852_v32 = vld [vmem:[%s8106_s30 + $0x168] sm:$0xff]   ;;  %v7853_v33 = vld [vmem:[%s8106_s30 + $0x458] sm:$0xff]  }
  0x49   : > { %7318 = vmatprep.mubr.msk.bf16.mxu0 %vm1524_vm2, %v7790_v34  ;;  %7506 = vmatprep.mubr.msk.bf16.mxu1 %vm1524_vm2, %v7791_v35  ;;  %v7854_v34 = vld [vmem:[%s8106_s30 + $0x170] sm:$0xff]   ;;  %v7855_v35 = vld [vmem:[%s8106_s30 + $0x460] sm:$0xff]  }
  0x50   : > { %7319 = vmatmul.mubr.msk.bf16.gmra.mrb[28].mxu0 %vm1524_vm2, %v7792_v36  ;;  %7507 = vmatmul.mubr.msk.bf16.gmra.mrb[28].mxu1 %vm1524_vm2, %v7793_v37  ;;  %v7856_v36 = vld [vmem:[%s8106_s30 + $0x178] sm:$0xff]   ;;  %v7857_v37 = vld [vmem:[%s8106_s30 + $0x468] sm:$0xff]  }
  0x51   : > { %7322 = vmatprep.mubr.msk.bf16.mxu0 %vm1524_vm2, %v7794_v38  ;;  %7510 = vmatprep.mubr.msk.bf16.mxu1 %vm1524_vm2, %v7795_v39  ;;  %v7858_v38 = vld [vmem:[%s8106_s30 + $0x180] sm:$0xff]   ;;  %v7859_v39 = vld [vmem:[%s8106_s30 + $0x470] sm:$0xff]  }
  0x58   : > { %7323 = vmatmul.mubr.msk.bf16.gmra.mrb[32].mxu0 %vm1524_vm2, %v7796_v40  ;;  %7511 = vmatmul.mubr.msk.bf16.gmra.mrb[32].mxu1 %vm1524_vm2, %v7797_v41  ;;  %v7860_v40 = vld [vmem:[%s8106_s30 + $0x188] sm:$0xff]   ;;  %v7861_v41 = vld [vmem:[%s8106_s30 + $0x478] sm:$0xff]  }
  0x59   : > { %7326 = vmatprep.mubr.msk.bf16.mxu0 %vm1524_vm2, %v7798_v42  ;;  %7514 = vmatprep.mubr.msk.bf16.mxu1 %vm1524_vm2, %v7799_v43  ;;  %v7862_v42 = vld [vmem:[%s8106_s30 + $0x190] sm:$0xff]   ;;  %v7863_v43 = vld [vmem:[%s8106_s30 + $0x480] sm:$0xff]  }
  0x60   : > { %7327 = vmatmul.mubr.msk.bf16.gmra.mrb[36].mxu0 %vm1524_vm2, %v7800_v44  ;;  %7515 = vmatmul.mubr.msk.bf16.gmra.mrb[36].mxu1 %vm1524_vm2, %v7801_v45  ;;  %v7864_v44 = vld [vmem:[%s8106_s30 + $0x198] sm:$0xff]   ;;  %v7865_v45 = vld [vmem:[%s8106_s30 + $0x488] sm:$0xff]  }
  0x61   : > { %7330 = vmatprep.mubr.msk.bf16.mxu0 %vm1524_vm2, %v7802_v46  ;;  %7518 = vmatprep.mubr.msk.bf16.mxu1 %vm1524_vm2, %v7803_v47  ;;  %v7866_v46 = vld [vmem:[%s8106_s30 + $0x1a0] sm:$0xff]   ;;  %v7867_v47 = vld [vmem:[%s8106_s30 + $0x490] sm:$0xff]  }
  0x68   : > { %7331 = vmatmul.mubr.msk.bf16.gmra.mrb[40].mxu0 %vm1524_vm2, %v7804_v48  ;;  %7519 = vmatmul.mubr.msk.bf16.gmra.mrb[40].mxu1 %vm1524_vm2, %v7805_v49  ;;  %v7868_v48 = vld [vmem:[%s8106_s30 + $0x1a8] sm:$0xff]   ;;  %v7869_v49 = vld [vmem:[%s8106_s30 + $0x498] sm:$0xff]  }
  0x69   : > { %7334 = vmatprep.mubr.msk.bf16.mxu0 %vm1524_vm2, %v7806_v50  ;;  %7522 = vmatprep.mubr.msk.bf16.mxu1 %vm1524_vm2, %v7807_v51  ;;  %v7870_v50 = vld [vmem:[%s8106_s30 + $0x1b0] sm:$0xff]   ;;  %v7871_v51 = vld [vmem:[%s8106_s30 + $0x4a0] sm:$0xff]  }
  0x70   : > { %7335 = vmatmul.mubr.msk.bf16.gmra.mrb[44].mxu0 %vm1524_vm2, %v7808_v52  ;;  %7523 = vmatmul.mubr.msk.bf16.gmra.mrb[44].mxu1 %vm1524_vm2, %v7809_v53 }
  0x71   : > { %7338 = vmatprep.mubr.msk.bf16.mxu0 %vm1524_vm2, %v7810_v54  ;;  %7526 = vmatprep.mubr.msk.bf16.mxu1 %vm1524_vm2, %v7811_v55  ;;  %v7872_v55 = vld [vmem:[%s8106_s30 + $0x1b8] sm:$0xff]  }
  0x78   : > { %7339 = vmatmul.mubr.msk.bf16.gmra.mrb[48].mxu0 %vm1524_vm2, %v7812_v56  ;;  %7527 = vmatmul.mubr.msk.bf16.gmra.mrb[48].mxu1 %vm1524_vm2, %v7813_v57 }
  0x79   : > { %7342 = vmatprep.mubr.msk.bf16.mxu0 %vm1524_vm2, %v7814_v58  ;;  %7530 = vmatprep.mubr.msk.bf16.mxu1 %vm1524_vm2, %v7815_v59  ;;  %v7873_v58 = vld [vmem:[%s8106_s30 + $0x4a8] sm:$0xff]   ;;  %v7874_v59 = vld [vmem:[%s8106_s30 + $0x1c0] sm:$0xff]  }
  0x80   : > { %7343 = vmatmul.mubr.msk.bf16.gmra.mrb[52].mxu0 %vm1524_vm2, %v7816_v60  ;;  %7531 = vmatmul.mubr.msk.bf16.gmra.mrb[52].mxu1 %vm1524_vm2, %v7817_v61 }
  0x81   : > { %7346 = vmatprep.mubr.msk.bf16.mxu0 %vm1524_vm2, %v7818_v62  ;;  %7534 = vmatprep.mubr.msk.bf16.mxu1 %vm1524_vm2, %v7819_v63  ;;  %v7875_v62 = vld [vmem:[%s8106_s30 + $0x4b0] sm:$0xff]  }
  0x88   : > { %7347 = vmatmul.mubr.msk.bf16.gmra.mrb[56].mxu0 %vm1524_vm2, %v7820_v0  ;;  %7535 = vmatmul.mubr.msk.bf16.gmra.mrb[56].mxu1 %vm1524_vm2, %v7821_v1 }
  0x89   : > { %7350 = vmatprep.mubr.msk.bf16.mxu0 %vm1524_vm2, %v7822_v2  ;;  %7538 = vmatprep.mubr.msk.bf16.mxu1 %vm1524_vm2, %v7823_v3  ;;  %v7876_v3 = vld [vmem:[%s8106_s30 + $0x1c8] sm:$0xff]  }
  0x90   : > { %7351 = vmatmul.mubr.msk.bf16.gmra.mrb[60].mxu0 %vm1524_vm2, %v7824_v4  ;;  %7539 = vmatmul.mubr.msk.bf16.gmra.mrb[60].mxu1 %vm1524_vm2, %v7825_v5 }
  0x91   : > { %7354 = vmatprep.mubr.msk.bf16.mxu0 %vm1524_vm2, %v7826_v6  ;;  %7542 = vmatprep.mubr.msk.bf16.mxu1 %vm1524_vm2, %v7827_v7  ;;  %v7877_v6 = vld [vmem:[%s8106_s30 + $0x4b8] sm:$0xff]   ;;  %v7878_v7 = vld [vmem:[%s8106_s30 + $0x1d0] sm:$0xff]  }
  0x98   : > { %7355 = vmatmul.mubr.msk.bf16.gmra.mrb[64].mxu0 %vm1524_vm2, %v7828_v8  ;;  %7543 = vmatmul.mubr.msk.bf16.gmra.mrb[64].mxu1 %vm1524_vm2, %v7829_v9 }
  0x99   : > { %7358 = vmatprep.mubr.msk.bf16.mxu0 %vm1524_vm2, %v7830_v10  ;;  %7546 = vmatprep.mubr.msk.bf16.mxu1 %vm1524_vm2, %v7831_v11  ;;  %v7879_v10 = vld [vmem:[%s8106_s30 + $0x4c0] sm:$0xff]  }
  0xa0   : > { %7359 = vmatmul.mubr.msk.bf16.gmra.mrb[68].mxu0 %vm1524_vm2, %v7832_v12  ;;  %7547 = vmatmul.mubr.msk.bf16.gmra.mrb[68].mxu1 %vm1524_vm2, %v7833_v13 }
  0xa1   : > { %7362 = vmatprep.mubr.msk.bf16.mxu0 %vm1524_vm2, %v7834_v14  ;;  %7550 = vmatprep.mubr.msk.bf16.mxu1 %vm1524_vm2, %v7835_v15  ;;  %v7880_v15 = vld [vmem:[%s8106_s30 + $0x1d8] sm:$0xff]  }
  0xa8   : > { %7363 = vmatmul.mubr.msk.bf16.gmra.mrb[72].mxu0 %vm1524_vm2, %v7836_v16  ;;  %7551 = vmatmul.mubr.msk.bf16.gmra.mrb[72].mxu1 %vm1524_vm2, %v7837_v17 }
  0xa9   : > { %7366 = vmatprep.mubr.msk.bf16.mxu0 %vm1524_vm2, %v7838_v18  ;;  %7554 = vmatprep.mubr.msk.bf16.mxu1 %vm1524_vm2, %v7839_v19  ;;  %v7881_v18 = vld [vmem:[%s8106_s30 + $0x4c8] sm:$0xff]   ;;  %v7882_v19 = vld [vmem:[%s8106_s30 + $0x1e0] sm:$0xff]  }
  0xb0   : > { %7367 = vmatmul.mubr.msk.bf16.gmra.mrb[76].mxu0 %vm1524_vm2, %v7840_v20  ;;  %7555 = vmatmul.mubr.msk.bf16.gmra.mrb[76].mxu1 %vm1524_vm2, %v7841_v21 }
  0xb1   : > { %7370 = vmatprep.mubr.msk.bf16.mxu0 %vm1524_vm2, %v7842_v22  ;;  %7558 = vmatprep.mubr.msk.bf16.mxu1 %vm1524_vm2, %v7843_v23  ;;  %v7883_v22 = vld [vmem:[%s8106_s30 + $0x4d0] sm:$0xff]  }
  0xb8   : > { %7371 = vmatmul.mubr.msk.bf16.gmra.mrb[80].mxu0 %vm1524_vm2, %v7844_v24  ;;  %7559 = vmatmul.mubr.msk.bf16.gmra.mrb[80].mxu1 %vm1524_vm2, %v7845_v25 }
  0xb9   : > { %7374 = vmatprep.mubr.msk.bf16.mxu0 %vm1524_vm2, %v7846_v26  ;;  %7562 = vmatprep.mubr.msk.bf16.mxu1 %vm1524_vm2, %v7847_v27  ;;  %v7884_v27 = vld [vmem:[%s8106_s30 + $0x1e8] sm:$0xff]  }
  0xc0   : > { %7375 = vmatmul.mubr.msk.bf16.gmra.mrb[84].mxu0 %vm1524_vm2, %v7848_v28  ;;  %7563 = vmatmul.mubr.msk.bf16.gmra.mrb[84].mxu1 %vm1524_vm2, %v7849_v29 }
  0xc1   : > { %7378 = vmatprep.mubr.msk.bf16.mxu0 %vm1524_vm2, %v7850_v30  ;;  %7566 = vmatprep.mubr.msk.bf16.mxu1 %vm1524_vm2, %v7851_v31  ;;  %v7885_v30 = vld [vmem:[%s8106_s30 + $0x4d8] sm:$0xff]   ;;  %v7886_v31 = vld [vmem:[%s8106_s30 + $0x1f0] sm:$0xff]  }
  0xc8   : > { %7379 = vmatmul.mubr.msk.bf16.gmra.mrb[88].mxu0 %vm1524_vm2, %v7852_v32  ;;  %7567 = vmatmul.mubr.msk.bf16.gmra.mrb[88].mxu1 %vm1524_vm2, %v7853_v33 }
  0xc9   : > { %7382 = vmatprep.mubr.msk.bf16.mxu0 %vm1524_vm2, %v7854_v34  ;;  %7570 = vmatprep.mubr.msk.bf16.mxu1 %vm1524_vm2, %v7855_v35  ;;  %v7887_v34 = vld [vmem:[%s8106_s30 + $0x4e0] sm:$0xff]  }
  0xd0   : > { %7383 = vmatmul.mubr.msk.bf16.gmra.mrb[92].mxu0 %vm1524_vm2, %v7856_v36  ;;  %7571 = vmatmul.mubr.msk.bf16.gmra.mrb[92].mxu1 %vm1524_vm2, %v7857_v37 }
  0xd1   : > { %7386 = vmatprep.mubr.msk.bf16.mxu0 %vm1524_vm2, %v7858_v38  ;;  %7574 = vmatprep.mubr.msk.bf16.mxu1 %vm1524_vm2, %v7859_v39  ;;  %v7888_v39 = vld [vmem:[%s8106_s30 + $0x1f8] sm:$0xff]  }
  0xd8   : > { %7387 = vmatmul.mubr.msk.bf16.gmra.mrb[96].mxu0 %vm1524_vm2, %v7860_v40  ;;  %7575 = vmatmul.mubr.msk.bf16.gmra.mrb[96].mxu1 %vm1524_vm2, %v7861_v41 }
  0xd9   : > { %7390 = vmatprep.mubr.msk.bf16.mxu0 %vm1524_vm2, %v7862_v42  ;;  %7578 = vmatprep.mubr.msk.bf16.mxu1 %vm1524_vm2, %v7863_v43  ;;  %v7889_v42 = vld [vmem:[%s8106_s30 + $0x4e8] sm:$0xff]   ;;  %v7890_v43 = vld [vmem:[%s8106_s30 + $0x200] sm:$0xff]  }
  0xe0   : > { %7391 = vmatmul.mubr.msk.bf16.gmra.mrb[100].mxu0 %vm1524_vm2, %v7864_v44  ;;  %7579 = vmatmul.mubr.msk.bf16.gmra.mrb[100].mxu1 %vm1524_vm2, %v7865_v45 }
  0xe1   : > { %7394 = vmatprep.mubr.msk.bf16.mxu0 %vm1524_vm2, %v7866_v46  ;;  %7582 = vmatprep.mubr.msk.bf16.mxu1 %vm1524_vm2, %v7867_v47  ;;  %v7891_v46 = vld [vmem:[%s8106_s30 + $0x4f0] sm:$0xff]  }
  0xe8   : > { %7395 = vmatmul.mubr.msk.bf16.gmra.mrb[104].mxu0 %vm1524_vm2, %v7868_v48  ;;  %7583 = vmatmul.mubr.msk.bf16.gmra.mrb[104].mxu1 %vm1524_vm2, %v7869_v49  ;;  %v7892_v48 = vld [vmem:[%s8106_s30 + $0x208] sm:$0xff]  }
  0xe9   : > { %7398 = vmatprep.mubr.msk.bf16.mxu0 %vm1524_vm2, %v7870_v50  ;;  %7586 = vmatprep.mubr.msk.bf16.mxu1 %vm1524_vm2, %v7871_v51  ;;  %v7893_v51 = vld [vmem:[%s8106_s30 + $0x4f8] sm:$0xff]  }
  0xeb   : > { %v8328_v52 = vpop.f32.mrb[0].mxu0  ;;  %v8330_v53 = vpop.f32.mrb[0].mxu1 }
  0xec   : > { %v8332_v54 = vpop.f32.mrb[1].mxu0  ;;  %v8335_v56 = vpop.f32.mrb[1].mxu1 }
  0xed   : > { %v8337_v57 = vpop.f32.mrb[2].mxu0  ;;  %v8341_v60 = vpop.f32.mrb[2].mxu1 }
  0xee   : > { %v8343_v61 = vpop.f32.mrb[3].mxu0  ;;  %v8346_v63 = vpop.f32.mrb[3].mxu1 }
  0xf0   : > { %7399 = vmatmul.mubr.msk.bf16.gmra.mrb[108].mxu0 %vm1524_vm2, %v7872_v55  ;;  %7587 = vmatmul.mubr.msk.bf16.gmra.mrb[108].mxu1 %vm1524_vm2, %v7873_v58  ;;  %v7894_v55 = vld [vmem:[%s8106_s30 + $0x210] sm:$0xff]  }
  0xf1   : > { %7402 = vmatprep.mubr.msk.bf16.mxu0 %vm1524_vm2, %v7874_v59  ;;  %7590 = vmatprep.mubr.msk.bf16.mxu1 %vm1524_vm2, %v7875_v62 }
  0xf3   : > { %v7296_v0 = vpop.f32.mrb[4].mxu0  ;;  %v7484_v1 = vpop.f32.mrb[4].mxu1 }
  0xf4   : > { %3639 = vst [vmem:[#allocation2 + $0x30] sm:$0xff] %v7296_v0  ;;  %v8352_v2 = vpop.f32.mrb[5].mxu0  ;;  %3827 = vst [vmem:[#allocation2 + $0x610] sm:$0xff] %v7484_v1  ;;  %v8355_v4 = vpop.f32.mrb[5].mxu1 }
  0xf5   : > { %v7297_v5 = vpop.f32.mrb[6].mxu0  ;;  %v7485_v8 = vpop.f32.mrb[6].mxu1 }
  0xf6   : > { %3640 = vst [vmem:[#allocation2 + $0x38] sm:$0xff] %v7297_v5  ;;  %v2149_v9 = vpop.f32.mrb[7].mxu0  ;;  %3828 = vst [vmem:[#allocation2 + $0x618] sm:$0xff] %v7485_v8  ;;  %v2901_v11 = vpop.f32.mrb[7].mxu1 }
  0xf7   : > { %3638 = vst [vmem:[#allocation2 + $0x28] sm:$0xff] %v2149_v9  ;;  %3826 = vst [vmem:[#allocation2 + $0x608] sm:$0xff] %v2901_v11 }
  0xf8   : > { %7403 = vmatmul.mubr.msk.bf16.gmra.mrb[112].mxu0 %vm1524_vm2, %v7876_v3  ;;  %7591 = vmatmul.mubr.msk.bf16.gmra.mrb[112].mxu1 %vm1524_vm2, %v7877_v6  ;;  %v7895_v3 = vld [vmem:[%s8106_s30 + $0x500] sm:$0xff]  }
  0xf9   : > { %7406 = vmatprep.mubr.msk.bf16.mxu0 %vm1524_vm2, %v7878_v7  ;;  %7594 = vmatprep.mubr.msk.bf16.mxu1 %vm1524_vm2, %v7879_v10  ;;  %v8396_v7 = vld [vmem:[%s9733_s2] ss:$0 sm:$0xff] }
  0xfb   : > { %v7300_v12 = vpop.f32.mrb[8].mxu0  ;;  %v7488_v13 = vpop.f32.mrb[8].mxu1 }
  0xfc   : > { %3643 = vst [vmem:[#allocation2 + $0x50] sm:$0xff] %v7300_v12  ;;  %v2162_v14 = vpop.f32.mrb[9].mxu0  ;;  %3831 = vst [vmem:[#allocation2 + $0x630] sm:$0xff] %v7488_v13  ;;  %v2914_v16 = vpop.f32.mrb[9].mxu1 }
  0xfd   : > { %3641 = vst [vmem:[#allocation2 + $0x40] sm:$0xff] %v2162_v14  ;;  %v7301_v17 = vpop.f32.mrb[10].mxu0  ;;  %3829 = vst [vmem:[#allocation2 + $0x620] sm:$0xff] %v2914_v16  ;;  %v7489_v20 = vpop.f32.mrb[10].mxu1  ;;  %v4017_v49 = vld [vmem:[#allocation2 + $0x37] sm:$0xff] }
  0xfe   : > { %3644 = vst [vmem:[#allocation2 + $0x58] sm:$0xff] %v7301_v17  ;;  %v2165_v21 = vpop.f32.mrb[11].mxu0  ;;  %3832 = vst [vmem:[#allocation2 + $0x638] sm:$0xff] %v7489_v20  ;;  %v2917_v23 = vpop.f32.mrb[11].mxu1  ;;  %v5040_v58 = vld [vmem:[#allocation2 + $0x617] sm:$0xff]  ;;  %v4016_v59 = vld [vmem:[#allocation2 + $0x2f] sm:$0xff]  ;;  %v4035_v11 = vmax.f32 %v8343_v61, %v4017_v49 }
  0xff   : > { %3642 = vst [vmem:[#allocation2 + $0x48] sm:$0xff] %v2165_v21  ;;  %3830 = vst [vmem:[#allocation2 + $0x628] sm:$0xff] %v2917_v23  ;;  %v5039_v62 = vld [vmem:[#allocation2 + $0x60f] sm:$0xff] }
 0x100   : > { %7407 = vmatmul.mubr.msk.bf16.gmra.mrb[116].mxu0 %vm1524_vm2, %v7880_v15  ;;  %7595 = vmatmul.mubr.msk.bf16.gmra.mrb[116].mxu1 %vm1524_vm2, %v7881_v18  ;;  %v4034_v18 = vmax.f32 %v8332_v54, %v4016_v59 }
 0x101   : > { %7410 = vmatprep.mubr.msk.bf16.mxu0 %vm1524_vm2, %v7882_v19  ;;  %7598 = vmatprep.mubr.msk.bf16.mxu1 %vm1524_vm2, %v7883_v22 }
 0x103   : > { %v7304_v24 = vpop.f32.mrb[12].mxu0  ;;  %v7492_v25 = vpop.f32.mrb[12].mxu1 }
 0x104   : > { %3647 = vst [vmem:[#allocation2 + $0x70] sm:$0xff] %v7304_v24  ;;  %v2178_v26 = vpop.f32.mrb[13].mxu0  ;;  %3835 = vst [vmem:[#allocation2 + $0x650] sm:$0xff] %v7492_v25  ;;  %v2930_v28 = vpop.f32.mrb[13].mxu1  ;;  %v8400_v19 = vld [vmem:[#allocation2 + $0x3f] sm:$0xff]  ;;  %v5058_v24 = vmax.f32 %v8346_v63, %v5040_v58  ;;  %v5057_v25 = vmax.f32 %v8335_v56, %v5039_v62 }
 0x105   : > { %3645 = vst [vmem:[#allocation2 + $0x60] sm:$0xff] %v2178_v26  ;;  %v7305_v29 = vpop.f32.mrb[14].mxu0  ;;  %3833 = vst [vmem:[#allocation2 + $0x640] sm:$0xff] %v2930_v28  ;;  %v7493_v32 = vpop.f32.mrb[14].mxu1  ;;  %v8406_v26 = vld [vmem:[#allocation2 + $0x61f] sm:$0xff] }
 0x106   : > { %3648 = vst [vmem:[#allocation2 + $0x78] sm:$0xff] %v7305_v29  ;;  %v2181_v33 = vpop.f32.mrb[15].mxu0  ;;  %3836 = vst [vmem:[#allocation2 + $0x658] sm:$0xff] %v7493_v32  ;;  %v2933_v35 = vpop.f32.mrb[15].mxu1  ;;  %v8410_v54 = vld [vmem:[#allocation2 + $0x637] sm:$0x7f] }
 0x107   : > { %3646 = vst [vmem:[#allocation2 + $0x68] sm:$0xff] %v2181_v33  ;;  %3834 = vst [vmem:[#allocation2 + $0x648] sm:$0xff] %v2933_v35  ;;  %v8417_v32 = vld [vmem:[#allocation2 + $0x4f] sm:$0xff]  ;;  %v8421_v56 = vld [vmem:[#allocation2 + $0x608] sm:$0x7f]  ;;  %v4036_v33 = vmax.f32 %v8328_v52, %v8400_v19 }
 0x108   : > { %7411 = vmatmul.mubr.msk.bf16.gmra.mrb[120].mxu0 %vm1524_vm2, %v7884_v27  ;;  %7599 = vmatmul.mubr.msk.bf16.gmra.mrb[120].mxu1 %vm1524_vm2, %v7885_v30  ;;  %v8408_v27 = vld [vmem:[#allocation2 + $0x57] sm:$0x7f]  ;;  %v8413_v30 = vld [vmem:[#allocation2 + $0x28] sm:$0x7f]  ;;  %v8427_v35 = vld [vmem:[#allocation2 + $0x62f] sm:$0xff] }
 0x109   : > { %7414 = vmatprep.mubr.msk.bf16.mxu0 %vm1524_vm2, %v7886_v31  ;;  %7602 = vmatprep.mubr.msk.bf16.mxu1 %vm1524_vm2, %v7887_v34  ;;  %v8415_v31 = vld [vmem:[#allocation2 + $0x47] sm:$0xff]  ;;  %v4039_v52 = vmax.f32 %v8413_v30, %v8408_v27 }
 0x10a   : > { %v8425_v34 = vld [vmem:[#allocation2 + $0x627] sm:$0xff] }
 0x10b   : > { %v7308_v36 = vpop.f32.mrb[16].mxu0  ;;  %v7496_v37 = vpop.f32.mrb[16].mxu1  ;;  %v7898_v62 = vld [vmem:[%s8106_s30 + $0x220] sm:$0xff]  }
 0x10c   : > { %3651 = vst [vmem:[#allocation2 + $0x90] sm:$0xff] %v7308_v36  ;;  %v2194_v38 = vpop.f32.mrb[17].mxu0  ;;  %3839 = vst [vmem:[#allocation2 + $0x670] sm:$0xff] %v7496_v37  ;;  %v2946_v40 = vpop.f32.mrb[17].mxu1  ;;  %v4022_v5 = vld [vmem:[#allocation2 + $0x5e] sm:$0xff] }
 0x10d   : > { %3649 = vst [vmem:[#allocation2 + $0x80] sm:$0xff] %v2194_v38  ;;  %v7309_v41 = vpop.f32.mrb[18].mxu0  ;;  %3837 = vst [vmem:[#allocation2 + $0x660] sm:$0xff] %v2946_v40  ;;  %v7497_v44 = vpop.f32.mrb[18].mxu1  ;;  %v5045_v20 = vld [vmem:[#allocation2 + $0x63e] sm:$0xff]  ;;  %v5059_v40 = vmax.f32 %v8330_v53, %v8406_v26  ;;  %v4025_v53 = vld [vmem:[#allocation2 + $0x76] sm:$0xff] }
 0x10e   : > { %3652 = vst [vmem:[#allocation2 + $0x98] sm:$0xff] %v7309_v41  ;;  %v2197_v45 = vpop.f32.mrb[19].mxu0  ;;  %3840 = vst [vmem:[#allocation2 + $0x678] sm:$0xff] %v7497_v44  ;;  %v2949_v47 = vpop.f32.mrb[19].mxu1  ;;  %v4023_v6 = vld [vmem:[#allocation2 + $0x66] sm:$0xff]  ;;  %v5062_v41 = vmax.f32 %v8421_v56, %v8410_v54 }
 0x10f   : > { %3650 = vst [vmem:[#allocation2 + $0x88] sm:$0xff] %v2197_v45  ;;  %3838 = vst [vmem:[#allocation2 + $0x668] sm:$0xff] %v2949_v47  ;;  %v5046_v12 = vld [vmem:[#allocation2 + $0x646] sm:$0xff]  ;;  %v4037_v47 = vmax.f32 %v8337_v57, %v8415_v31  ;;  %v5061_v57 = vmax.f32 %v8355_v4, %v8427_v35 }
 0x110   : > { %7415 = vmatmul.mubr.msk.bf16.gmra.mrb[124].mxu0 %vm1524_vm2, %v7888_v39  ;;  %7603 = vmatmul.mubr.msk.bf16.gmra.mrb[124].mxu1 %vm1524_vm2, %v7889_v42  ;;  %v7896_v39 = vld [vmem:[%s8106_s30 + $0x218] sm:$0xff]   ;;  %v4024_v42 = vld [vmem:[#allocation2 + $0x6e] sm:$0xff] }
 0x111   : > { %7418 = vmatprep.mubr.msk.bf16.mxu0 %vm1524_vm2, %v7890_v43  ;;  %7606 = vmatprep.mubr.msk.bf16.mxu1 %vm1524_vm2, %v7891_v46  ;;  %v7897_v46 = vld [vmem:[%s8106_s30 + $0x508] sm:$0xff]  }
 0x113   : > { %v7312_v50 = vpop.f32.mrb[20].mxu0  ;;  %v7500_v0 = vpop.f32.mrb[20].mxu1 }
 0x114   : > { %3655 = vst [vmem:[#allocation2 + $0xb0] sm:$0xff] %v7312_v50  ;;  %v2210_v1 = vpop.f32.mrb[21].mxu0  ;;  %3843 = vst [vmem:[#allocation2 + $0x690] sm:$0xff] %v7500_v0  ;;  %v2962_v9 = vpop.f32.mrb[21].mxu1  ;;  %v5060_v0 = vmax.f32 %v8341_v60, %v8425_v34  ;;  %v5049_v30 = vld [vmem:[#allocation2 + $0x65e] sm:$0xff] }
 0x115   : > { %v4029_v8 = vld [vmem:[#allocation2 + $0x95] sm:$0xff]  ;;  %3653 = vst [vmem:[#allocation2 + $0xa0] sm:$0xff] %v2210_v1  ;;  %v7313_v10 = vpop.f32.mrb[22].mxu0  ;;  %3841 = vst [vmem:[#allocation2 + $0x680] sm:$0xff] %v2962_v9  ;;  %v7501_v16 = vpop.f32.mrb[22].mxu1 }
 0x116   : > { %v4041_v13 = vmax.f32 %v4023_v6, %v4029_v8  ;;  %v5052_v14 = vld [vmem:[#allocation2 + $0x675] sm:$0xff]  ;;  %v4028_v15 = vld [vmem:[#allocation2 + $0x8d] sm:$0xff]  ;;  %3656 = vst [vmem:[#allocation2 + $0xb8] sm:$0xff] %v7313_v10  ;;  %v2213_v17 = vpop.f32.mrb[23].mxu0  ;;  %3844 = vst [vmem:[#allocation2 + $0x698] sm:$0xff] %v7501_v16  ;;  %v2965_v61 = vpop.f32.mrb[23].mxu1 }
 0x117   : > { %v5064_v21 = vmax.f32 %v5046_v12, %v5052_v14  ;;  %v4040_v22 = vmax.f32 %v4022_v5, %v4028_v15  ;;  %v5051_v23 = vld [vmem:[#allocation2 + $0x66d] sm:$0xff]  ;;  %3654 = vst [vmem:[#allocation2 + $0xa8] sm:$0xff] %v2213_v17  ;;  %3842 = vst [vmem:[#allocation2 + $0x688] sm:$0xff] %v2965_v61  ;;  %v4027_v43 = vld [vmem:[#allocation2 + $0x86] sm:$0x7f] }
 0x118   : > { %v4047_v28 = vmax.f32 %v4035_v11, %v4041_v13  ;;  %v5063_v29 = vmax.f32 %v5045_v20, %v5051_v23  ;;  %7419 = vmatmul.mubr.msk.bf16.gmra.mrb[128].mxu0 %vm1524_vm2, %v7892_v48  ;;  %7607 = vmatmul.mubr.msk.bf16.gmra.mrb[128].mxu1 %vm1524_vm2, %v7893_v51  ;;  %v4038_v48 = vmax.f32 %v8352_v2, %v8417_v32  ;;  %v5050_v50 = vld [vmem:[#allocation2 + $0x666] sm:$0x7f]  ;;  %v5047_v1 = vld [vmem:[#allocation2 + $0x64e] sm:$0xff]  ;;  %v4026_v17 = vld [vmem:[#allocation2 + $0x7e] sm:$0xff] }
 0x119   : > { %v4046_v63 = vmax.f32 %v4034_v18, %v4040_v22  ;;  %7422 = vmatprep.mubr.msk.bf16.mxu0 %vm1524_vm2, %v7894_v55  ;;  %v5070_v37 = vmax.f32 %v5058_v24, %v5064_v21  ;;  %7610 = vmatprep.mubr.msk.bf16.mxu1 %vm1524_vm2, %v7895_v3  ;;  %v7899_v9 = vld [vmem:[%s8106_s30 + $0x510] sm:$0xff]  }
 0x11a   : > { %v4059_v36 = vadd.f32 %v8396_v7, %v4047_v28  ;;  %v5069_v38 = vmax.f32 %v5057_v25, %v5063_v29  ;;  %v5048_v25 = vld [vmem:[#allocation2 + $0x656] sm:$0xff] }
 0x11b   : > { %v4058_v44 = vadd.f32 %v8396_v7, %v4046_v63  ;;  %v7316_v45 = vpop.f32.mrb[24].mxu0  ;;  %v7504_v58 = vpop.f32.mrb[24].mxu1  ;;  %v8452_v10 = vadd.f32 %v8396_v7, %v5070_v37 }
 0x11c   : > { %v4065_v49 = vmax.f32 %v4059_v36, 0.0  ;;  %v5075_v51 = vadd.f32 %v8396_v7, %v5069_v38  ;;  %v4030_v55 = vld [vmem:[#allocation2 + $0x9d] sm:$0xff]  ;;  %3659 = vst [vmem:[#allocation2 + $0xd0] sm:$0xff] %v7316_v45  ;;  %v2226_v59 = vpop.f32.mrb[25].mxu0  ;;  %3847 = vst [vmem:[#allocation2 + $0x6b0] sm:$0xff] %v7504_v58  ;;  %v2978_v8 = vpop.f32.mrb[25].mxu1 }
 0x11d   : > { %v4064_v3 = vmax.f32 %v4058_v44, 0.0  ;;  %v4042_v2 = vmax.f32 %v4024_v42, %v4030_v55  ;;  %v5053_v5 = vld [vmem:[#allocation2 + $0x67d] sm:$0xff]  ;;  %v4033_v6 = vld [vmem:[#allocation2 + $0xb5] sm:$0x7f]  ;;  %3657 = vst [vmem:[#allocation2 + $0xc0] sm:$0xff] %v2226_v59  ;;  %3845 = vst [vmem:[#allocation2 + $0x6a0] sm:$0xff] %v2978_v8 }
 0x11e   : > { %v5081_v11 = vmax.f32 %v5075_v51, 0.0  ;;  %v5065_v12 = vmax.f32 %v5047_v1, %v5053_v5  ;;  %v4045_v13 = vmax.f32 %v4027_v43, %v4033_v6  ;;  %v5056_v14 = vld [vmem:[#allocation2 + $0x695] sm:$0x7f]  ;;  %v4031_v60 = vld [vmem:[#allocation2 + $0xa5] sm:$0xff]  ;;  %v4032_v15 = vld [vmem:[#allocation2 + $0xad] sm:$0xff]  ;;  %v7317_v16 = vpop.f32.mrb[26].mxu0 }
 0x11f   : > { %v7076_v18 = vpack.c.bf16 %v4065_v49, %v4064_v3  ;;  %v4048_v19 = vmax.f32 %v4036_v33, %v4042_v2  ;;  %v5068_v20 = vmax.f32 %v5050_v50, %v5056_v14  ;;  %v4043_v21 = vmax.f32 %v4025_v53, %v4031_v60  ;;  %v5054_v22 = vld [vmem:[#allocation2 + $0x685] sm:$0xff]  ;;  %v5055_v23 = vld [vmem:[#allocation2 + $0x68d] sm:$0xff]  ;;  %3660 = vst [vmem:[#allocation2 + $0xd8] sm:$0xff] %v7317_v16  ;;  %v7505_v61 = vpop.f32.mrb[26].mxu1  ;;  %v2229_v24 = vpop.f32.mrb[27].mxu0  ;;  %v7901_v49 = vld [vmem:[%s8106_s30 + $0x518] sm:$0xff]  }
 0x120   : > { %v7022_v26 = vpack.c.bf16 %v5081_v11, %v5081_v11  ;;  %v5071_v27 = vmax.f32 %v5059_v40, %v5065_v12  ;;  %v4051_v54 = vmax.f32 %v4039_v52, %v4045_v13  ;;  %v4044_v28 = vmax.f32 %v4026_v17, %v4032_v15  ;;  %3848 = vst [vmem:[#allocation2 + $0x6b8] sm:$0xff] %v7505_v61  ;;  %v2981_v29 = vpop.f32.mrb[27].mxu1  ;;  %v7900_v53 = vld [vmem:[%s8106_s30 + $0x228] sm:$0xff]   ;;  %v7903_v8 = vld [vmem:[%s8106_s30 + $0x520] sm:$0xff]  }
 0x121   : > { %3658 = vst [vmem:[#allocation2 + $0xc8] sm:$0xff] %v2229_v24  ;;  %7423 = vmatmul.mubr.msk.bf16.gmra.mrb[132].mxu0 %vm1524_vm2, %v7896_v39  ;;  %7077 = vst [vmem:[%s8456_s8] sm:$0xff] %v7076_v18   ;;  %v4060_v31 = vadd.f32 %v8396_v7, %v4048_v19  ;;  %v5074_v32 = vmax.f32 %v5062_v41, %v5068_v20  ;;  %v4049_v63 = vmax.f32 %v4037_v47, %v4043_v21  ;;  %v4102_v39 = vld [vmem:[%s8456_s8 + $0x14] sm:$0xf]  ;;  %v5116_v1 = vld [vmem:[%s8456_s8 + $0xd0] sm:$0xf] }
 0x122   : > { %v5066_v56 = vmax.f32 %v5048_v25, %v5054_v22  ;;  %3846 = vst [vmem:[#allocation2 + $0x6a8] sm:$0xff] %v2981_v29  ;;  %7611 = vmatmul.mubr.msk.bf16.gmra.mrb[132].mxu1 %vm1524_vm2, %v7897_v46  ;;  %5111 = vst [vmem:[%s8456_s8 + $0xbc] sm:$0xf] %v7022_v26  ;;  %v5077_v33 = vadd.f32 %v8396_v7, %v5071_v27  ;;  %v4063_v34 = vadd.f32 %v8396_v7, %v4051_v54  ;;  %v7904_v20 = vld [vmem:[%s8106_s30 + $0x238] sm:$0xff]   ;;  %v7906_v61 = vld [vmem:[%s8106_s30 + $0x240] sm:$0xff]  }
 0x123   : > { %v4050_v36 = vmax.f32 %v4038_v48, %v4044_v28  ;;  %v5067_v37 = vmax.f32 %v5049_v30, %v5055_v23  ;;  %7426 = vmatprep.mubr.msk.bf16.mxu0 %vm1524_vm2, %v7898_v62  ;;  %v5082_v38 = vmax.f32 %v8452_v10, 0.0  ;;  %v5080_v40 = vadd.f32 %v8396_v7, %v5074_v32  ;;  %v7320_v42 = vpop.f32.mrb[28].mxu0  ;;  %7614 = vmatprep.mubr.msk.bf16.mxu1 %vm1524_vm2, %v7899_v9  ;;  %v7508_v47 = vpop.f32.mrb[28].mxu1  ;;  %v7902_v62 = vld [vmem:[%s8106_s30 + $0x230] sm:$0xff]   ;;  %v7905_v23 = vld [vmem:[%s8106_s30 + $0x528] sm:$0xff]  }
 0x124   : > { %v4061_v52 = vadd.f32 %v8396_v7, %v4049_v63  ;;  %v5072_v41 = vmax.f32 %v5060_v0, %v5066_v56  ;;  %v5083_v43 = vmax.f32 %v5077_v33, 0.0  ;;  %v4069_v44 = vmax.f32 %v4063_v34, 0.0  ;;  %3663 = vst [vmem:[#allocation2 + $0xf0] sm:$0xff] %v7320_v42  ;;  %v2242_v48 = vpop.f32.mrb[29].mxu0  ;;  %3851 = vst [vmem:[#allocation2 + $0x6d0] sm:$0xff] %v7508_v47  ;;  %v2994_v35 = vpop.f32.mrb[29].mxu1 }
 0x125   : > { %v4062_v45 = vadd.f32 %v8396_v7, %v4050_v36  ;;  %v5073_v46 = vmax.f32 %v5061_v57, %v5067_v37  ;;  %v4066_v50 = vmax.f32 %v4060_v31, 0.0  ;;  %v5086_v55 = vmax.f32 %v5080_v40, 0.0  ;;  %3661 = vst [vmem:[#allocation2 + $0xe0] sm:$0xff] %v2242_v48  ;;  %v7321_v59 = vpop.f32.mrb[30].mxu0  ;;  %3849 = vst [vmem:[#allocation2 + $0x6c0] sm:$0xff] %v2994_v35  ;;  %v7509_v5 = vpop.f32.mrb[30].mxu1 }
 0x126   : > { %v4067_v58 = vmax.f32 %v4061_v52, 0.0  ;;  %v5078_v4 = vadd.f32 %v8396_v7, %v5072_v41  ;;  %v7086_v0 = vpack.c.bf16 %v5083_v43, %v5082_v38  ;;  %v6979_v57 = vpack.c.bf16 %v4069_v44, %v4069_v44  ;;  %3664 = vst [vmem:[#allocation2 + $0xf8] sm:$0xff] %v7321_v59  ;;  %v2245_v6 = vpop.f32.mrb[31].mxu0  ;;  %3852 = vst [vmem:[#allocation2 + $0x6d8] sm:$0xff] %v7509_v5  ;;  %v2997_v12 = vpop.f32.mrb[31].mxu1  ;;  %v7907_v26 = vld [vmem:[%s8106_s30 + $0x530] sm:$0xff]  }
 0x127   : > { %v4068_v3 = vmax.f32 %v4062_v45, 0.0  ;;  %v5079_v2 = vadd.f32 %v8396_v7, %v5073_v46  ;;  %v7027_v9 = vpack.c.bf16 %v5086_v55, %v5086_v55  ;;  %3662 = vst [vmem:[#allocation2 + $0xe8] sm:$0xff] %v2245_v6  ;;  %3850 = vst [vmem:[#allocation2 + $0x6c8] sm:$0xff] %v2997_v12  ;;  %v7908_v30 = vld [vmem:[%s8106_s30 + $0x248] sm:$0xff]   ;;  %v7909_v63 = vld [vmem:[%s8106_s30 + $0x538] sm:$0xff]  }
 0x128   : > { %v7081_v10 = vpack.c.bf16 %v4067_v58, %v4066_v50  ;;  %v5084_v11 = vmax.f32 %v5078_v4, 0.0  ;;  %7094 = vst [vmem:[%s8456_s8 + $0xc0] sm:$0xff] %v7086_v0   ;;  %v4103_v13 = vsel %vm8478_vm5, %v6979_v57, %v4102_v39  ;;  %v7910_v56 = vld [vmem:[%s8106_s30 + $0x250] sm:$0xff]   ;;  %v7911_v36 = vld [vmem:[%s8106_s30 + $0x540] sm:$0xff]   ;;  %v7912_v52 = vld [vmem:[%s8106_s30 + $0x258] sm:$0xff]  }
 0x129   : > { %v6978_v14 = vpack.c.bf16 %v4068_v3, %v4068_v3  ;;  %v5085_v60 = vmax.f32 %v5079_v2, 0.0  ;;  %7427 = vmatmul.mubr.msk.bf16.gmra.mrb[136].mxu0 %vm1524_vm2, %v7900_v53  ;;  %4104 = vst [vmem:[%s8456_s8 + $0x14] sm:$0xf] %v4103_v13  ;;  %v5117_v15 = vsel %vm8478_vm5, %v7027_v9, %v5116_v1  ;;  %v7913_v43 = vld [vmem:[%s8106_s30 + $0x548] sm:$0xff]   ;;  %v7914_v44 = vld [vmem:[%s8106_s30 + $0x260] sm:$0xff]   ;;  %v7915_v47 = vld [vmem:[%s8106_s30 + $0x550] sm:$0xff]  }
 0x12a   : > { %7093 = vst [vmem:[%s8456_s8 + $0x8] sm:$0xff] %v7081_v10   ;;  %7615 = vmatmul.mubr.msk.bf16.gmra.mrb[136].mxu1 %vm1524_vm2, %v7901_v49  ;;  %7430 = vmatprep.mubr.msk.bf16.mxu0 %vm1524_vm2, %v7902_v62  ;;  %5118 = vst [vmem:[%s8456_s8 + $0xd0] sm:$0xf] %v5117_v15  ;;  %v7916_v49 = vld [vmem:[%s8106_s30 + $0x268] sm:$0xff]   ;;  %v7917_v59 = vld [vmem:[%s8106_s30 + $0x558] sm:$0xff]  }
 0x12b   : > { %4098 = vst [vmem:[%s8456_s8 + $0x10] sm:$0xf] %v6978_v14  ;;  %v7091_v16 = vpack.c.bf16 %v5085_v60, %v5084_v11  ;;  %7618 = vmatprep.mubr.msk.bf16.mxu1 %vm1524_vm2, %v7903_v8  ;;  %v7324_v17 = vpop.f32.mrb[32].mxu0  ;;  %v7512_v18 = vpop.f32.mrb[32].mxu1  ;;  %v4106_v50 = vld [vmem:[#allocation2 + $0xc4] sm:$0xff]  ;;  %v7918_v62 = vld [vmem:[%s8106_s30 + $0x270] sm:$0xff]  }
 0x12c   : > { %3667 = vst [vmem:[#allocation2 + $0x110] sm:$0xff] %v7324_v17  ;;  %v2258_v19 = vpop.f32.mrb[33].mxu0  ;;  %3855 = vst [vmem:[#allocation2 + $0x6f0] sm:$0xff] %v7512_v18  ;;  %v3010_v21 = vpop.f32.mrb[33].mxu1  ;;  %v5120_v51 = vld [vmem:[#allocation2 + $0x6a4] sm:$0xff]  ;;  %v4105_v0 = vld [vmem:[#allocation2 + $0xbc] sm:$0xff] }
 0x12d   : > { %7095 = vst [vmem:[%s8456_s8 + $0xc8] sm:$0xff] %v7091_v16   ;;  %3665 = vst [vmem:[#allocation2 + $0x100] sm:$0xff] %v2258_v19  ;;  %v7325_v22 = vpop.f32.mrb[34].mxu0  ;;  %v7513_v24 = vpop.f32.mrb[34].mxu1  ;;  %v4112_v53 = vld [vmem:[#allocation2 + $0xf3] sm:$0xff]  ;;  %v8530_v57 = vld [vmem:[#allocation2 + $0x69c] sm:$0xff] }
 0x12e   : > { %3853 = vst [vmem:[#allocation2 + $0x6e0] sm:$0xff] %v3010_v21  ;;  %3668 = vst [vmem:[#allocation2 + $0x118] sm:$0xff] %v7325_v22  ;;  %v2261_v25 = vpop.f32.mrb[35].mxu0  ;;  %v3013_v27 = vpop.f32.mrb[35].mxu1  ;;  %v5126_v55 = vld [vmem:[#allocation2 + $0x6d3] sm:$0xff]  ;;  %v4111_v58 = vld [vmem:[#allocation2 + $0xeb] sm:$0xff]  ;;  %v4130_v16 = vmax.f32 %v4106_v50, %v4112_v53 }
 0x12f   : > { %3856 = vst [vmem:[#allocation2 + $0x6f8] sm:$0xff] %v7513_v24  ;;  %3666 = vst [vmem:[#allocation2 + $0x108] sm:$0xff] %v2261_v25  ;;  %v8526_v4 = vld [vmem:[#allocation2 + $0x6cb] sm:$0xff]  ;;  %v7919_v8 = vld [vmem:[%s8106_s30 + $0x560] sm:$0xff]   ;;  %v5144_v17 = vmax.f32 %v5120_v51, %v5126_v55  ;;  %v4129_v24 = vmax.f32 %v4105_v0, %v4111_v58 }
 0x130   : > { %3854 = vst [vmem:[#allocation2 + $0x6e8] sm:$0xff] %v3013_v27  ;;  %v8539_v9 = vld [vmem:[#allocation2 + $0xcc] sm:$0xff]  ;;  %v5143_v25 = vmax.f32 %v8530_v57, %v8526_v4  ;;  %v7920_v53 = vld [vmem:[%s8106_s30 + $0x278] sm:$0xff]   ;;  %v7922_v0 = vld [vmem:[%s8106_s30 + $0x280] sm:$0xff]  }
 0x131   : > { %7431 = vmatmul.mubr.msk.bf16.gmra.mrb[140].mxu0 %vm1524_vm2, %v7904_v20  ;;  %v8541_v10 = vld [vmem:[#allocation2 + $0x6ac] sm:$0xff] }
 0x132   : > { %7619 = vmatmul.mubr.msk.bf16.gmra.mrb[140].mxu1 %vm1524_vm2, %v7905_v23  ;;  %7434 = vmatprep.mubr.msk.bf16.mxu0 %vm1524_vm2, %v7906_v61  ;;  %v8549_v61 = vld [vmem:[#allocation2 + $0xd4] sm:$0xff] }
 0x133   : > { %7622 = vmatprep.mubr.msk.bf16.mxu1 %vm1524_vm2, %v7907_v26  ;;  %v7328_v54 = vpop.f32.mrb[36].mxu0  ;;  %v7516_v28 = vpop.f32.mrb[36].mxu1 }
 0x134   : > { %3671 = vst [vmem:[#allocation2 + $0x130] sm:$0xff] %v7328_v54  ;;  %v2274_v29 = vpop.f32.mrb[37].mxu0  ;;  %3859 = vst [vmem:[#allocation2 + $0x710] sm:$0xff] %v7516_v28  ;;  %v3026_v31 = vpop.f32.mrb[37].mxu1  ;;  %v8532_v1 = vld [vmem:[#allocation2 + $0xfb] sm:$0xff] }
 0x135   : > { %3669 = vst [vmem:[#allocation2 + $0x120] sm:$0xff] %v2274_v29  ;;  %v7329_v32 = vpop.f32.mrb[38].mxu0  ;;  %3857 = vst [vmem:[#allocation2 + $0x700] sm:$0xff] %v3026_v31  ;;  %v7517_v33 = vpop.f32.mrb[38].mxu1  ;;  %v8534_v3 = vld [vmem:[#allocation2 + $0x6db] sm:$0xff] }
 0x136   : > { %3672 = vst [vmem:[#allocation2 + $0x138] sm:$0xff] %v7329_v32  ;;  %v2277_v34 = vpop.f32.mrb[39].mxu0  ;;  %3860 = vst [vmem:[#allocation2 + $0x718] sm:$0xff] %v7517_v33  ;;  %v3029_v37 = vpop.f32.mrb[39].mxu1  ;;  %v8536_v2 = vld [vmem:[#allocation2 + $0x113] sm:$0x7f]  ;;  %v4131_v32 = vmax.f32 %v8539_v9, %v8532_v1 }
 0x137   : > { %3670 = vst [vmem:[#allocation2 + $0x128] sm:$0xff] %v2277_v34  ;;  %3858 = vst [vmem:[#allocation2 + $0x708] sm:$0xff] %v3029_v37  ;;  %v8543_v11 = vld [vmem:[#allocation2 + $0x6f3] sm:$0x7f]  ;;  %v8553_v26 = vld [vmem:[#allocation2 + $0x103] sm:$0xff] }
 0x138   : > { %v4110_v31 = vld [vmem:[#allocation2 + $0xe4] sm:$0x7f]  ;;  %v8564_v37 = vld [vmem:[#allocation2 + $0x6b4] sm:$0xff] }
 0x139   : > { %7435 = vmatmul.mubr.msk.bf16.gmra.mrb[144].mxu0 %vm1524_vm2, %v7908_v30  ;;  %v8561_v33 = vld [vmem:[#allocation2 + $0x6e3] sm:$0xff] }
 0x13a   : > { %7623 = vmatmul.mubr.msk.bf16.gmra.mrb[144].mxu1 %vm1524_vm2, %v7909_v63  ;;  %7438 = vmatprep.mubr.msk.bf16.mxu0 %vm1524_vm2, %v7910_v56  ;;  %v5145_v63 = vmax.f32 %v8541_v10, %v8534_v3  ;;  %v8559_v56 = vld [vmem:[#allocation2 + $0x10b] sm:$0xff]  ;;  %v5146_v50 = vmax.f32 %v8564_v37, %v8561_v33  ;;  %v8715_v37 = vld [vmem:[%s9733_s2] ss:$0 sm:$0xff] }
 0x13b   : > { %7626 = vmatprep.mubr.msk.bf16.mxu1 %vm1524_vm2, %v7911_v36  ;;  %v7332_v38 = vpop.f32.mrb[40].mxu0  ;;  %v7520_v39 = vpop.f32.mrb[40].mxu1 }
 0x13c   : > { %3675 = vst [vmem:[#allocation2 + $0x150] sm:$0xff] %v7332_v38  ;;  %v2290_v40 = vpop.f32.mrb[41].mxu0  ;;  %3863 = vst [vmem:[#allocation2 + $0x730] sm:$0xff] %v7520_v39  ;;  %v3042_v41 = vpop.f32.mrb[41].mxu1  ;;  %v4117_v12 = vld [vmem:[#allocation2 + $0x11a] sm:$0xff]  ;;  %v4134_v39 = vmax.f32 %v4110_v31, %v8536_v2 }
 0x13d   : > { %3673 = vst [vmem:[#allocation2 + $0x140] sm:$0xff] %v2290_v40  ;;  %v7333_v42 = vpop.f32.mrb[42].mxu0  ;;  %3861 = vst [vmem:[#allocation2 + $0x720] sm:$0xff] %v3042_v41  ;;  %v7521_v45 = vpop.f32.mrb[42].mxu1  ;;  %v5131_v27 = vld [vmem:[#allocation2 + $0x6fa] sm:$0xff]  ;;  %v8567_v40 = vld [vmem:[#allocation2 + $0x6eb] sm:$0xff] }
 0x13e   : > { %3676 = vst [vmem:[#allocation2 + $0x158] sm:$0xff] %v7333_v42  ;;  %v2293_v46 = vpop.f32.mrb[43].mxu0  ;;  %3864 = vst [vmem:[#allocation2 + $0x738] sm:$0xff] %v7521_v45  ;;  %v3045_v48 = vpop.f32.mrb[43].mxu1  ;;  %v4118_v13 = vld [vmem:[#allocation2 + $0x122] sm:$0xff]  ;;  %v4132_v45 = vmax.f32 %v8549_v61, %v8553_v26  ;;  %v4119_v51 = vld [vmem:[#allocation2 + $0x12a] sm:$0xff] }
 0x13f   : > { %3674 = vst [vmem:[#allocation2 + $0x148] sm:$0xff] %v2293_v46  ;;  %3862 = vst [vmem:[#allocation2 + $0x728] sm:$0xff] %v3045_v48  ;;  %v5132_v18 = vld [vmem:[#allocation2 + $0x702] sm:$0xff] }
 0x140   : > { %v5124_v38 = vld [vmem:[#allocation2 + $0x6c4] sm:$0x7f]  ;;  %v8571_v42 = vld [vmem:[#allocation2 + $0xdc] sm:$0xff] }
 0x141   : > { %7439 = vmatmul.mubr.msk.bf16.gmra.mrb[148].mxu0 %vm1524_vm2, %v7912_v52 }
 0x142   : > { %7627 = vmatmul.mubr.msk.bf16.gmra.mrb[148].mxu1 %vm1524_vm2, %v7913_v43  ;;  %7442 = vmatprep.mubr.msk.bf16.mxu0 %vm1524_vm2, %v7914_v44  ;;  %v8573_v43 = vld [vmem:[#allocation2 + $0x6bc] sm:$0xff]  ;;  %v5148_v44 = vmax.f32 %v5124_v38, %v8543_v11 }
 0x143   : > { %7630 = vmatprep.mubr.msk.bf16.mxu1 %vm1524_vm2, %v7915_v47  ;;  %v7336_v35 = vpop.f32.mrb[44].mxu0  ;;  %v7524_v5 = vpop.f32.mrb[44].mxu1  ;;  %v5147_v57 = vmax.f32 %v8573_v43, %v8567_v40 }
 0x144   : > { %3679 = vst [vmem:[#allocation2 + $0x170] sm:$0xff] %v7336_v35  ;;  %v2306_v6 = vpop.f32.mrb[45].mxu0  ;;  %3867 = vst [vmem:[#allocation2 + $0x750] sm:$0xff] %v7524_v5  ;;  %v3058_v60 = vpop.f32.mrb[45].mxu1 }
 0x145   : > { %v4124_v14 = vld [vmem:[#allocation2 + $0x151] sm:$0xff]  ;;  %3677 = vst [vmem:[#allocation2 + $0x160] sm:$0xff] %v2306_v6  ;;  %v8545_v15 = vpop.f32.mrb[46].mxu0  ;;  %3865 = vst [vmem:[#allocation2 + $0x740] sm:$0xff] %v3058_v60  ;;  %v8547_v22 = vpop.f32.mrb[46].mxu1 }
 0x146   : > { %v4136_v19 = vmax.f32 %v4118_v13, %v4124_v14  ;;  %v5138_v20 = vld [vmem:[#allocation2 + $0x731] sm:$0xff]  ;;  %v4123_v21 = vld [vmem:[#allocation2 + $0x149] sm:$0xff]  ;;  %v2309_v23 = vpop.f32.mrb[47].mxu0  ;;  %v3061_v30 = vpop.f32.mrb[47].mxu1  ;;  %v4122_v47 = vld [vmem:[#allocation2 + $0x142] sm:$0x7f] }
 0x147   : > { %v5150_v54 = vmax.f32 %v5132_v18, %v5138_v20  ;;  %v4135_v28 = vmax.f32 %v4117_v12, %v4123_v21  ;;  %v5137_v29 = vld [vmem:[#allocation2 + $0x729] sm:$0xff]  ;;  %3678 = vst [vmem:[#allocation2 + $0x168] sm:$0xff] %v2309_v23  ;;  %3866 = vst [vmem:[#allocation2 + $0x748] sm:$0xff] %v3061_v30  ;;  %v5136_v4 = vld [vmem:[#allocation2 + $0x722] sm:$0x7f] }
 0x148   : > { %v4142_v34 = vmax.f32 %v4130_v16, %v4136_v19  ;;  %v5149_v36 = vmax.f32 %v5131_v27, %v5137_v29  ;;  %v8598_v14 = vld [vmem:[#allocation2 + $0x70a] sm:$0xff] }
 0x149   : > { %7443 = vmatmul.mubr.msk.bf16.gmra.mrb[152].mxu0 %vm1524_vm2, %v7916_v49  ;;  %v5156_v52 = vmax.f32 %v5144_v17, %v5150_v54  ;;  %v4141_v41 = vmax.f32 %v4129_v24, %v4135_v28  ;;  %v4133_v49 = vmax.f32 %v8571_v42, %v8559_v56  ;;  %v7923_v29 = vld [vmem:[%s8106_s30 + $0x570] sm:$0xff]  }
 0x14a   : > { %7631 = vmatmul.mubr.msk.bf16.gmra.mrb[152].mxu1 %vm1524_vm2, %v7917_v59  ;;  %7446 = vmatprep.mubr.msk.bf16.mxu0 %vm1524_vm2, %v7918_v62  ;;  %v4148_v46 = vadd.f32 %v8396_v7, %v4142_v34  ;;  %v5155_v48 = vmax.f32 %v5143_v25, %v5149_v36  ;;  %v7921_v62 = vld [vmem:[%s8106_s30 + $0x568] sm:$0xff]  }
 0x14b   : > { %7634 = vmatprep.mubr.msk.bf16.mxu1 %vm1524_vm2, %v7919_v8  ;;  %v5162_v55 = vadd.f32 %v8396_v7, %v5156_v52  ;;  %v4147_v58 = vadd.f32 %v8396_v7, %v4141_v41  ;;  %v4128_v35 = vld [vmem:[#allocation2 + $0x171] sm:$0x7f]  ;;  %v8587_v59 = vpop.f32.mrb[48].mxu0  ;;  %v8594_v12 = vpop.f32.mrb[48].mxu1 }
 0x14c   : > { %v4154_v2 = vmax.f32 %v4148_v46, 0.0  ;;  %v5161_v5 = vadd.f32 %v8396_v7, %v5155_v48  ;;  %v4140_v6 = vmax.f32 %v4122_v47, %v4128_v35  ;;  %v5142_v8 = vld [vmem:[#allocation2 + $0x751] sm:$0x7f]  ;;  %v4125_v11 = vld [vmem:[#allocation2 + $0x159] sm:$0xff]  ;;  %v8596_v13 = vpop.f32.mrb[49].mxu0  ;;  %v8602_v20 = vpop.f32.mrb[49].mxu1 }
 0x14d   : > { %v5168_v60 = vmax.f32 %v5162_v55, 0.0  ;;  %v4153_v16 = vmax.f32 %v4147_v58, 0.0  ;;  %v5154_v17 = vmax.f32 %v5136_v4, %v5142_v8  ;;  %v4137_v18 = vmax.f32 %v4119_v51, %v4125_v11  ;;  %v8600_v19 = vld [vmem:[#allocation2 + $0x739] sm:$0xff]  ;;  %v8604_v21 = vpop.f32.mrb[50].mxu0  ;;  %v8608_v54 = vpop.f32.mrb[50].mxu1 }
 0x14e   : > { %v6981_v23 = vpack.c.bf16 %v4154_v2, %v4154_v2  ;;  %v5167_v24 = vmax.f32 %v5161_v5, 0.0  ;;  %v4146_v25 = vmax.f32 %v4134_v39, %v4140_v6  ;;  %v5151_v27 = vmax.f32 %v8598_v14, %v8600_v19  ;;  %v8610_v28 = vpop.f32.mrb[51].mxu0  ;;  %v8616_v38 = vpop.f32.mrb[51].mxu1  ;;  %v4121_v14 = vld [vmem:[#allocation2 + $0x13a] sm:$0xff] }
 0x14f   : > { %v7029_v30 = vpack.c.bf16 %v5168_v60, %v5168_v60  ;;  %v6980_v31 = vpack.c.bf16 %v4153_v16, %v4153_v16  ;;  %v5160_v34 = vmax.f32 %v5148_v44, %v5154_v17  ;;  %v4143_v36 = vmax.f32 %v4131_v32, %v4137_v18  ;;  %v4248_v44 = vld [vmem:[%s8456_s8 + $0x14] sm:$0x8] }
 0x150   : > { %v4189_v52 = vshll.u32 %v6981_v23, 16  ;;  %v4193_v39 = vshrl.u32 %v6981_v23, 16  ;;  %v7028_v41 = vpack.c.bf16 %v5167_v24, %v5167_v24  ;;  %v4152_v46 = vadd.f32 %v8396_v7, %v4146_v25  ;;  %v7924_v17 = vld [vmem:[%s8106_s30 + $0x288] sm:$0xff]  }
 0x151   : > { %7447 = vmatmul.mubr.msk.bf16.gmra.mrb[156].mxu0 %vm1524_vm2, %v7920_v53  ;;  %v5201_v47 = vshll.u32 %v7029_v30, 16  ;;  %v5205_v48 = vshrl.u32 %v7029_v30, 16  ;;  %v4180_v51 = vshll.u32 %v6980_v31, 16  ;;  %v4183_v55 = vshrl.u32 %v6980_v31, 16  ;;  %v5257_v25 = vld [vmem:[%s8456_s8 + $0xd0] sm:$0x8] }
 0x152   : > { %7635 = vmatmul.mubr.msk.bf16.gmra.mrb[156].mxu1 %vm1524_vm2, %v7921_v62  ;;  %7450 = vmatprep.mubr.msk.bf16.mxu0 %vm1524_vm2, %v7922_v0  ;;  %v8622_v1 = vrot.slane %v4189_v52, 5  ;;  %v4195_v9 = vrot.slane %v4193_v39, 4  ;;  %v5192_v53 = vshll.u32 %v7028_v41, 16  ;;  %v5195_v58 = vshrl.u32 %v7028_v41, 16  ;;  %v7925_v52 = vld [vmem:[%s8106_s30 + $0x578] sm:$0xff]   ;;  %v7926_v39 = vld [vmem:[%s8106_s30 + $0x290] sm:$0xff]  }
 0x153   : > { %7638 = vmatprep.mubr.msk.bf16.mxu1 %vm1524_vm2, %v7923_v29  ;;  %v8632_v4 = vrot.slane %v5201_v47, 5  ;;  %v5207_v35 = vrot.slane %v5205_v48, 4  ;;  %v4182_v62 = vrot.slane %v4180_v51, 5  ;;  %v4185_v0 = vrot.slane %v4183_v55, 4  ;;  %v7344_v2 = vpop.f32.mrb[52].mxu0  ;;  %v7532_v60 = vpop.f32.mrb[52].mxu1 }
 0x154   : > { %v4196_v5 = vor.u32 %v4195_v9, %v8622_v1  ;;  %v5194_v6 = vrot.slane %v5192_v53, 5  ;;  %v5197_v8 = vrot.slane %v5195_v58, 4  ;;  %v4158_v11 = vmax.f32 %v4152_v46, 0.0  ;;  %3687 = vst [vmem:[#allocation2 + $0x1b0] sm:$0xff] %v7344_v2  ;;  %v2338_v16 = vpop.f32.mrb[53].mxu0  ;;  %3875 = vst [vmem:[#allocation2 + $0x790] sm:$0xff] %v7532_v60 }
 0x155   : > { %v5208_v18 = vor.u32 %v5207_v35, %v8632_v4  ;;  %v4186_v23 = vor.u32 %v4185_v0, %v4182_v62  ;;  %v4249_v24 = vsel %vm8626_vm9, %v4182_v62, %v4248_v44  ;;  %v5166_v29 = vadd.f32 %v8396_v7, %v5160_v34  ;;  %3685 = vst [vmem:[#allocation2 + $0x1a0] sm:$0xff] %v2338_v16  ;;  %v3090_v30 = vpop.f32.mrb[53].mxu1  ;;  %v7345_v31 = vpop.f32.mrb[54].mxu0  ;;  %v4126_v51 = vld [vmem:[#allocation2 + $0x161] sm:$0xff]  ;;  %v4120_v2 = vld [vmem:[#allocation2 + $0x132] sm:$0xff] }
 0x156   : > { %v8649_v46 = vrot.slane %v4196_v5, 4  ;;  %4250 = vst [vmem:[%s8456_s8 + $0x14] sm:$0x8] %v4249_v24  ;;  %v5198_v47 = vor.u32 %v5197_v8, %v5194_v6  ;;  %v5258_v34 = vsel %vm8626_vm9, %v5194_v6, %v5257_v25  ;;  %v6985_v48 = vpack.c.bf16 %v4158_v11, %v4158_v11  ;;  %3873 = vst [vmem:[#allocation2 + $0x780] sm:$0xff] %v3090_v30  ;;  %v7533_v55 = vpop.f32.mrb[54].mxu1  ;;  %v2341_v9 = vpop.f32.mrb[55].mxu0 }
 0x157   : > { %3688 = vst [vmem:[#allocation2 + $0x1b8] sm:$0xff] %v7345_v31  ;;  %v7927_v44 = vld [vmem:[%s8106_s30 + $0x580] sm:$0xff]   ;;  %v8655_v53 = vrot.slane %v5208_v18, 4  ;;  %v4187_v58 = vrot.slane %v4186_v23, 4  ;;  %5259 = vst [vmem:[%s8456_s8 + $0xd0] sm:$0x8] %v5258_v34  ;;  %v4149_v62 = vadd.f32 %v8396_v7, %v4143_v36  ;;  %v5157_v8 = vmax.f32 %v5145_v63, %v5151_v27 }
 0x158   : > { %v5172_v35 = vmax.f32 %v5166_v29, 0.0  ;;  %3876 = vst [vmem:[#allocation2 + $0x798] sm:$0xff] %v7533_v55  ;;  %3686 = vst [vmem:[#allocation2 + $0x1a8] sm:$0xff] %v2341_v9  ;;  %v3093_v0 = vpop.f32.mrb[55].mxu1  ;;  %v5199_v32 = vrot.slane %v5198_v47, 4  ;;  %v4229_v5 = vshll.u32 %v6985_v48, 16  ;;  %v4138_v18 = vmax.f32 %v4120_v2, %v4126_v51 }
 0x159   : > { %v4233_v6 = vshrl.u32 %v6985_v48, 16  ;;  %v4127_v11 = vld [vmem:[#allocation2 + $0x169] sm:$0xff]  ;;  %3874 = vst [vmem:[#allocation2 + $0x788] sm:$0xff] %v3093_v0  ;;  %7451 = vmatmul.mubr.msk.bf16.gmra.mrb[160].mxu0 %vm1524_vm2, %v7924_v17  ;;  %v4192_v36 = vsel %vm8645_vm10, %v4187_v58, %v8622_v1  ;;  %v4155_v16 = vmax.f32 %v4149_v62, 0.0  ;;  %v5140_v23 = vld [vmem:[#allocation2 + $0x741] sm:$0xff]  ;;  %v5163_v19 = vadd.f32 %v8396_v7, %v5157_v8  ;;  %v5134_v27 = vld [vmem:[#allocation2 + $0x712] sm:$0xff] }
 0x15a   : > { %v7033_v60 = vpack.c.bf16 %v5172_v35, %v5172_v35  ;;  %7639 = vmatmul.mubr.msk.bf16.gmra.mrb[160].mxu1 %vm1524_vm2, %v7925_v52  ;;  %7454 = vmatprep.mubr.msk.bf16.mxu0 %vm1524_vm2, %v7926_v39  ;;  %4251 = vst [vmem:[%s8456_s8 + $0x18] sm:$0xf] %v4192_v36  ;;  %v5204_v3 = vsel %vm8645_vm10, %v5199_v32, %v8632_v4  ;;  %v8675_v10 = vrot.slane %v4229_v5, 5  ;;  %v5141_v52 = vld [vmem:[#allocation2 + $0x749] sm:$0xff]  ;;  %v7928_v48 = vld [vmem:[%s8106_s30 + $0x298] sm:$0xff]   ;;  %v7930_v35 = vld [vmem:[%s8106_s30 + $0x2a0] sm:$0xff]  }
 0x15b   : > { %v4235_v63 = vrot.slane %v4233_v6, 4  ;;  %7642 = vmatprep.mubr.msk.bf16.mxu1 %vm1524_vm2, %v7927_v44  ;;  %5260 = vst [vmem:[%s8456_s8 + $0xd4] sm:$0xf] %v5204_v3  ;;  %v6982_v24 = vpack.c.bf16 %v4155_v16, %v4155_v16  ;;  %v4139_v25 = vmax.f32 %v4121_v14, %v4127_v11  ;;  %v7348_v29 = vpop.f32.mrb[56].mxu0  ;;  %v5169_v4 = vmax.f32 %v5163_v19, 0.0  ;;  %v7536_v47 = vpop.f32.mrb[56].mxu1 }
 0x15c   : > { %v5241_v1 = vshll.u32 %v7033_v60, 16  ;;  %v5245_v17 = vshrl.u32 %v7033_v60, 16  ;;  %v4144_v31 = vmax.f32 %v4132_v45, %v4138_v18  ;;  %v5152_v39 = vmax.f32 %v5134_v27, %v5140_v23  ;;  %3691 = vst [vmem:[#allocation2 + $0x1d0] sm:$0xff] %v7348_v29  ;;  %v2354_v34 = vpop.f32.mrb[57].mxu0  ;;  %3879 = vst [vmem:[#allocation2 + $0x7b0] sm:$0xff] %v7536_v47  ;;  %v7929_v58 = vld [vmem:[%s8106_s30 + $0x588] sm:$0xff]  }
 0x15d   : > { %v4236_v30 = vor.u32 %v4235_v63, %v8675_v10  ;;  %v4199_v9 = vshll.u32 %v6982_v24, 16  ;;  %v4203_v44 = vshrl.u32 %v6982_v24, 16  ;;  %3689 = vst [vmem:[#allocation2 + $0x1c0] sm:$0xff] %v2354_v34  ;;  %v5135_v62 = vld [vmem:[#allocation2 + $0x71a] sm:$0xff]  ;;  %v7030_v26 = vpack.c.bf16 %v5169_v4, %v5169_v4  ;;  %v3106_v2 = vpop.f32.mrb[57].mxu1  ;;  %v7349_v32 = vpop.f32.mrb[58].mxu0 }
 0x15e   : > { %v8685_v51 = vrot.slane %v5241_v1, 5  ;;  %v5247_v55 = vrot.slane %v5245_v17, 4  ;;  %v4145_v45 = vmax.f32 %v4133_v49, %v4139_v25  ;;  %v4150_v0 = vadd.f32 %v8396_v7, %v4144_v31  ;;  %v7931_v5 = vld [vmem:[%s8106_s30 + $0x590] sm:$0xff]   ;;  %3877 = vst [vmem:[#allocation2 + $0x7a0] sm:$0xff] %v3106_v2  ;;  %3692 = vst [vmem:[#allocation2 + $0x1d8] sm:$0xff] %v7349_v32  ;;  %v7537_v60 = vpop.f32.mrb[58].mxu1 }
 0x15f   : > { %v4237_v61 = vrot.slane %v4236_v30, 4  ;;  %v4201_v8 = vrot.slane %v4199_v9, 5  ;;  %v4205_v11 = vrot.slane %v4203_v44, 4  ;;  %v5153_v36 = vmax.f32 %v5135_v62, %v5141_v52  ;;  %3880 = vst [vmem:[#allocation2 + $0x7b8] sm:$0xff] %v7537_v60  ;;  %v2357_v49 = vpop.f32.mrb[59].mxu0  ;;  %v3109_v23 = vpop.f32.mrb[59].mxu1 }
 0x160   : > { %v5248_v6 = vor.u32 %v5247_v55, %v8685_v51  ;;  %v5211_v16 = vshll.u32 %v7030_v26, 16  ;;  %v5215_v18 = vshrl.u32 %v7030_v26, 16  ;;  %v4151_v56 = vadd.f32 %v8396_v7, %v4145_v45  ;;  %3690 = vst [vmem:[#allocation2 + $0x1c8] sm:$0xff] %v2357_v49  ;;  %3878 = vst [vmem:[#allocation2 + $0x7a8] sm:$0xff] %v3109_v23 }
 0x161   : > { %4256 = vst [vmem:[%s8456_s8 + $0x2c] sm:$0x7] %v4237_v61  ;;  %v4156_v42 = vmax.f32 %v4150_v0, 0.0  ;;  %7455 = vmatmul.mubr.msk.bf16.gmra.mrb[164].mxu0 %vm1524_vm2, %v7928_v48  ;;  %v4202_v3 = vsel %vm8645_vm10, %v8649_v46, %v4201_v8  ;;  %v4206_v63 = vor.u32 %v4205_v11, %v4201_v8  ;;  %v5158_v19 = vmax.f32 %v5146_v50, %v5152_v39  ;;  %v7934_v48 = vld [vmem:[%s8106_s30 + $0x2b0] sm:$0xff]  }
 0x162   : > { %v5249_v14 = vrot.slane %v5248_v6, 4  ;;  %7643 = vmatmul.mubr.msk.bf16.gmra.mrb[164].mxu1 %vm1524_vm2, %v7929_v58  ;;  %7458 = vmatprep.mubr.msk.bf16.mxu0 %vm1524_vm2, %v7930_v35  ;;  %4252 = vst [vmem:[%s8456_s8 + $0x1c] sm:$0xf] %v4202_v3  ;;  %v5213_v7 = vrot.slane %v5211_v16, 5  ;;  %v5217_v27 = vrot.slane %v5215_v18, 4  ;;  %v4157_v1 = vmax.f32 %v4151_v56, 0.0 }
 0x163   : > { %v6983_v17 = vpack.c.bf16 %v4156_v42, %v4156_v42  ;;  %7646 = vmatprep.mubr.msk.bf16.mxu1 %vm1524_vm2, %v7931_v5  ;;  %v4207_v46 = vrot.slane %v4206_v63, 4  ;;  %v5159_v33 = vmax.f32 %v5147_v57, %v5153_v36  ;;  %v5164_v50 = vadd.f32 %v8715_v37, %v5158_v19  ;;  %v7352_v24 = vpop.f32.mrb[60].mxu0  ;;  %v7540_v40 = vpop.f32.mrb[60].mxu1  ;;  %v7932_v57 = vld [vmem:[%s8106_s30 + $0x2a8] sm:$0xff]   ;;  %v7935_v58 = vld [vmem:[%s8106_s30 + $0x5a0] sm:$0xff]  }
 0x164   : > { %5265 = vst [vmem:[%s8456_s8 + $0xe8] sm:$0x7] %v5249_v14  ;;  %v5214_v25 = vsel %vm8645_vm10, %v8655_v53, %v5213_v7  ;;  %v5218_v29 = vor.u32 %v5217_v27, %v5213_v7  ;;  %v6984_v30 = vpack.c.bf16 %v4157_v1, %v4157_v1  ;;  %3695 = vst [vmem:[#allocation2 + $0x1f0] sm:$0xff] %v7352_v24  ;;  %v2370_v43 = vpop.f32.mrb[61].mxu0  ;;  %v3122_v47 = vpop.f32.mrb[61].mxu1  ;;  %v7933_v53 = vld [vmem:[%s8106_s30 + $0x598] sm:$0xff]  }
 0x165   : > { %v4209_v4 = vshll.u32 %v6983_v17, 16  ;;  %5261 = vst [vmem:[%s8456_s8 + $0xd8] sm:$0xf] %v5214_v25  ;;  %v4213_v31 = vshrl.u32 %v6983_v17, 16  ;;  %v5165_v52 = vadd.f32 %v8715_v37, %v5159_v33  ;;  %v5170_v39 = vmax.f32 %v5164_v50, 0.0  ;;  %3883 = vst [vmem:[#allocation2 + $0x7d0] sm:$0xff] %v7540_v40 }
 0x166   : > { %3693 = vst [vmem:[#allocation2 + $0x1e0] sm:$0xff] %v2370_v43  ;;  %v7353_v34 = vpop.f32.mrb[62].mxu0  ;;  %v4219_v9 = vshll.u32 %v6984_v30, 16  ;;  %v4223_v44 = vshrl.u32 %v6984_v30, 16  ;;  %3881 = vst [vmem:[#allocation2 + $0x7c0] sm:$0xff] %v3122_v47  ;;  %v7541_v26 = vpop.f32.mrb[62].mxu1 }
 0x167   : > { %v4211_v55 = vrot.slane %v4209_v4, 5  ;;  %3696 = vst [vmem:[#allocation2 + $0x1f8] sm:$0xff] %v7353_v34  ;;  %v4215_v35 = vrot.slane %v4213_v31, 4  ;;  %v5171_v62 = vmax.f32 %v5165_v52, 0.0  ;;  %v7031_v61 = vpack.c.bf16 %v5170_v39, %v5170_v39  ;;  %v2373_v45 = vpop.f32.mrb[63].mxu0  ;;  %3884 = vst [vmem:[#allocation2 + $0x7d8] sm:$0xff] %v7541_v26 }
 0x168   : > { %v5219_v0 = vrot.slane %v5218_v29, 4  ;;  %v4221_v32 = vrot.slane %v4219_v9, 5  ;;  %v4225_v5 = vrot.slane %v4223_v44, 4  ;;  %3694 = vst [vmem:[#allocation2 + $0x1e8] sm:$0xff] %v2373_v45  ;;  %v3125_v60 = vpop.f32.mrb[63].mxu1  ;;  %v7936_v7 = vld [vmem:[%s8106_s30 + $0x2b8] sm:$0xff]  }
 0x169   : > { %v4212_v2 = vsel %vm8645_vm10, %v4207_v46, %v4211_v55  ;;  %7459 = vmatmul.mubr.msk.bf16.gmra.mrb[168].mxu0 %vm1524_vm2, %v7932_v57  ;;  %v4216_v6 = vor.u32 %v4215_v35, %v4211_v55  ;;  %v7032_v8 = vpack.c.bf16 %v5171_v62, %v5171_v62  ;;  %v5221_v11 = vshll.u32 %v7031_v61, 16  ;;  %3882 = vst [vmem:[#allocation2 + $0x7c8] sm:$0xff] %v3125_v60  ;;  %v7937_v24 = vld [vmem:[%s8106_s30 + $0x5a8] sm:$0xff]   ;;  %v7938_v25 = vld [vmem:[%s8106_s30 + $0x2c0] sm:$0xff]   ;;  %v7939_v43 = vld [vmem:[%s8106_s30 + $0x5b0] sm:$0xff]  }
 0x16a   : > { %4253 = vst [vmem:[%s8456_s8 + $0x20] sm:$0xf] %v4212_v2  ;;  %v5225_v36 = vshrl.u32 %v7031_v61, 16  ;;  %7647 = vmatmul.mubr.msk.bf16.gmra.mrb[168].mxu1 %vm1524_vm2, %v7933_v53  ;;  %7462 = vmatprep.mubr.msk.bf16.mxu0 %vm1524_vm2, %v7934_v48  ;;  %v4226_v16 = vor.u32 %v4225_v5, %v4221_v32  ;;  %v4265_v47 = vld [vmem:[#allocation2 + $0x1b7] sm:$0xff]  ;;  %v4263_v53 = vld [vmem:[#allocation2 + $0x1a7] sm:$0xff]  ;;  %v4264_v55 = vld [vmem:[#allocation2 + $0x1af] sm:$0xff] }
 0x16b   : > { %7650 = vmatprep.mubr.msk.bf16.mxu1 %vm1524_vm2, %v7935_v58  ;;  %v4217_v18 = vrot.slane %v4216_v6, 4  ;;  %v5223_v56 = vrot.slane %v5221_v11, 5  ;;  %v5231_v49 = vshll.u32 %v7032_v8, 16  ;;  %v7356_v23 = vpop.f32.mrb[64].mxu0  ;;  %v5235_v3 = vshrl.u32 %v7032_v8, 16  ;;  %v7544_v63 = vpop.f32.mrb[64].mxu1 }
 0x16c   : > { %v5227_v42 = vrot.slane %v5225_v36, 4  ;;  %v4227_v14 = vrot.slane %v4226_v16, 4  ;;  %3699 = vst [vmem:[#allocation2 + $0x210] sm:$0xff] %v7356_v23  ;;  %v2386_v19 = vpop.f32.mrb[65].mxu0  ;;  %3887 = vst [vmem:[#allocation2 + $0x7f0] sm:$0xff] %v7544_v63  ;;  %v3138_v33 = vpop.f32.mrb[65].mxu1  ;;  %v4283_v6 = vmax.f32 %v8610_v28, %v4265_v47 }
 0x16d   : > { %v4222_v27 = vsel %vm8645_vm10, %v4217_v18, %v4221_v32  ;;  %v5224_v1 = vsel %vm8645_vm10, %v5219_v0, %v5223_v56  ;;  %v5233_v46 = vrot.slane %v5231_v49, 5  ;;  %3697 = vst [vmem:[#allocation2 + $0x200] sm:$0xff] %v2386_v19  ;;  %v7357_v50 = vpop.f32.mrb[66].mxu0  ;;  %v5237_v30 = vrot.slane %v5235_v3, 4  ;;  %3885 = vst [vmem:[#allocation2 + $0x7e0] sm:$0xff] %v3138_v33  ;;  %v7545_v4 = vpop.f32.mrb[66].mxu1 }
 0x16e   : > { %v5228_v17 = vor.u32 %v5227_v42, %v5223_v56  ;;  %v4232_v29 = vsel %vm8645_vm10, %v4227_v14, %v8675_v10  ;;  %4254 = vst [vmem:[%s8456_s8 + $0x24] sm:$0xf] %v4222_v27  ;;  %5262 = vst [vmem:[%s8456_s8 + $0xdc] sm:$0xf] %v5224_v1  ;;  %v2389_v40 = vpop.f32.mrb[67].mxu0  ;;  %v3141_v31 = vpop.f32.mrb[67].mxu1  ;;  %v4281_v56 = vmax.f32 %v8545_v15, %v4263_v53 }
 0x16f   : > { %3700 = vst [vmem:[#allocation2 + $0x218] sm:$0xff] %v7357_v50  ;;  %4255 = vst [vmem:[%s8456_s8 + $0x28] sm:$0xf] %v4232_v29  ;;  %v5238_v52 = vor.u32 %v5237_v30, %v5233_v46  ;;  %v5274_v34 = vld [vmem:[#allocation2 + $0x797] sm:$0xff]  ;;  %v7940_v48 = vld [vmem:[%s8106_s30 + $0x2c8] sm:$0xff]   ;;  %v4282_v42 = vmax.f32 %v8596_v13, %v4264_v55 }
 0x170   : > { %v5229_v57 = vrot.slane %v5228_v17, 4  ;;  %3888 = vst [vmem:[#allocation2 + $0x7f8] sm:$0xff] %v7545_v4  ;;  %3698 = vst [vmem:[#allocation2 + $0x208] sm:$0xff] %v2389_v40  ;;  %v8756_v9 = vld [vmem:[#allocation2 + $0x787] sm:$0xff]  ;;  %v8758_v44 = vld [vmem:[#allocation2 + $0x78f] sm:$0xff]  ;;  %v5292_v8 = vmax.f32 %v8616_v38, %v5274_v34 }
 0x171   : > { %3886 = vst [vmem:[#allocation2 + $0x7e8] sm:$0xff] %v3141_v31  ;;  %7463 = vmatmul.mubr.msk.bf16.gmra.mrb[172].mxu0 %vm1524_vm2, %v7936_v7  ;;  %v5239_v39 = vrot.slane %v5238_v52, 4  ;;  %v7941_v35 = vld [vmem:[%s8106_s30 + $0x5b8] sm:$0xff]   ;;  %v7942_v62 = vld [vmem:[%s8106_s30 + $0x2d0] sm:$0xff]   ;;  %v7943_v5 = vld [vmem:[%s8106_s30 + $0x5c0] sm:$0xff]   ;;  %v5290_v49 = vmax.f32 %v8547_v22, %v8756_v9  ;;  %v5291_v19 = vmax.f32 %v8602_v20, %v8758_v44 }
 0x172   : > { %v5234_v10 = vsel %vm8645_vm10, %v5229_v57, %v5233_v46  ;;  %7651 = vmatmul.mubr.msk.bf16.gmra.mrb[172].mxu1 %vm1524_vm2, %v7937_v24  ;;  %7466 = vmatprep.mubr.msk.bf16.mxu0 %vm1524_vm2, %v7938_v25  ;;  %v8765_v26 = vld [vmem:[#allocation2 + $0x1bf] sm:$0xff]  ;;  %v4269_v45 = vld [vmem:[#allocation2 + $0x1d6] sm:$0xff]  ;;  %v8781_v33 = vld [vmem:[#allocation2 + $0x1c7] sm:$0xff]  ;;  %vm4624_vm9 = vsmask.f32 1280 }
 0x173   : > { %5263 = vst [vmem:[%s8456_s8 + $0xe0] sm:$0xf] %v5234_v10  ;;  %7654 = vmatprep.mubr.msk.bf16.mxu1 %vm1524_vm2, %v7939_v43  ;;  %v7360_v58 = vpop.f32.mrb[68].mxu0  ;;  %v5244_v61 = vsel %vm8645_vm10, %v5239_v39, %v8685_v51  ;;  %v4270_v0 = vld [vmem:[#allocation2 + $0x1de] sm:$0xff]  ;;  %v7548_v2 = vpop.f32.mrb[68].mxu1  ;;  %v5278_v36 = vld [vmem:[#allocation2 + $0x7b6] sm:$0xff]  ;;  %v4284_v46 = vmax.f32 %v8587_v59, %v8765_v26  ;;  %v4285_v52 = vmax.f32 %v8604_v21, %v8781_v33  ;;  %vm9157_vm10 = vmand %vm4591_vm6, %vm4624_vm9 }
 0x174   : > { %3703 = vst [vmem:[#allocation2 + $0x230] sm:$0xff] %v7360_v58  ;;  %v2402_v32 = vpop.f32.mrb[69].mxu0  ;;  %5264 = vst [vmem:[%s8456_s8 + $0xe4] sm:$0xf] %v5244_v61  ;;  %v8771_v11 = vld [vmem:[#allocation2 + $0x79f] sm:$0xff]  ;;  %v3154_v51 = vpop.f32.mrb[69].mxu1 }
 0x175   : > { %v4271_v60 = vld [vmem:[#allocation2 + $0x1e6] sm:$0xff]  ;;  %3891 = vst [vmem:[#allocation2 + $0x810] sm:$0xff] %v7548_v2  ;;  %3701 = vst [vmem:[#allocation2 + $0x220] sm:$0xff] %v2402_v32  ;;  %v7361_v18 = vpop.f32.mrb[70].mxu0  ;;  %v7549_v3 = vpop.f32.mrb[70].mxu1  ;;  %v5279_v7 = vld [vmem:[#allocation2 + $0x7be] sm:$0xff]  ;;  %v5293_v59 = vmax.f32 %v8594_v12, %v8771_v11 }
 0x176   : > { %v5280_v16 = vld [vmem:[#allocation2 + $0x7c6] sm:$0xff]  ;;  %v4277_v41 = vld [vmem:[#allocation2 + $0x215] sm:$0xff]  ;;  %3889 = vst [vmem:[#allocation2 + $0x800] sm:$0xff] %v3154_v51  ;;  %3704 = vst [vmem:[#allocation2 + $0x238] sm:$0xff] %v7361_v18  ;;  %v2405_v63 = vpop.f32.mrb[71].mxu0  ;;  %v3157_v22 = vpop.f32.mrb[71].mxu1 }
 0x177   : > { %v4289_v28 = vmax.f32 %v4271_v60, %v4277_v41  ;;  %v5286_v23 = vld [vmem:[#allocation2 + $0x7f5] sm:$0xff]  ;;  %v4275_v38 = vld [vmem:[#allocation2 + $0x205] sm:$0xff]  ;;  %v4276_v14 = vld [vmem:[#allocation2 + $0x20d] sm:$0xff]  ;;  %3892 = vst [vmem:[#allocation2 + $0x818] sm:$0xff] %v7549_v3  ;;  %vm5023_vm6 = vsmask.f32 7938 }
 0x178   : > { %v5298_v27 = vmax.f32 %v5280_v16, %v5286_v23  ;;  %v4287_v1 = vmax.f32 %v4269_v45, %v4275_v38  ;;  %v4288_v15 = vmax.f32 %v4270_v0, %v4276_v14  ;;  %v5284_v13 = vld [vmem:[#allocation2 + $0x7e5] sm:$0xff]  ;;  %v5285_v17 = vld [vmem:[#allocation2 + $0x7ed] sm:$0xff]  ;;  %3702 = vst [vmem:[#allocation2 + $0x228] sm:$0xff] %v2405_v63  ;;  %3890 = vst [vmem:[#allocation2 + $0x808] sm:$0xff] %v3157_v22 }
 0x179   : > { %v4295_v50 = vmax.f32 %v4283_v6, %v4289_v28  ;;  %v5296_v24 = vmax.f32 %v5278_v36, %v5284_v13  ;;  %v5297_v25 = vmax.f32 %v5279_v7, %v5285_v17  ;;  %7467 = vmatmul.mubr.msk.bf16.gmra.mrb[176].mxu0 %vm1524_vm2, %v7940_v48  ;;  %v8784_v20 = vld [vmem:[#allocation2 + $0x1cf] sm:$0x7f]  ;;  %v8792_v31 = vld [vmem:[#allocation2 + $0x1a0] sm:$0x7f]  ;;  %v7944_v12 = vld [vmem:[%s8106_s30 + $0x2d8] sm:$0xff]  }
 0x17a   : > { %v5304_v29 = vmax.f32 %v5292_v8, %v5298_v27  ;;  %v4293_v30 = vmax.f32 %v4281_v56, %v4287_v1  ;;  %v4294_v4 = vmax.f32 %v4282_v42, %v4288_v15  ;;  %7655 = vmatmul.mubr.msk.bf16.gmra.mrb[176].mxu1 %vm1524_vm2, %v7941_v35  ;;  %7470 = vmatprep.mubr.msk.bf16.mxu0 %vm1524_vm2, %v7942_v62  ;;  %v7945_v53 = vld [vmem:[%s8106_s30 + $0x5c8] sm:$0xff]   ;;  %v7946_v26 = vld [vmem:[%s8106_s30 + $0x2e0] sm:$0xff]   ;;  %v7947_v51 = vld [vmem:[%s8106_s30 + $0x5d0] sm:$0xff]  }
 0x17b   : > { %v4301_v40 = vadd.f32 %v8715_v37, %v4295_v50  ;;  %v5302_v43 = vmax.f32 %v5290_v49, %v5296_v24  ;;  %v5303_v57 = vmax.f32 %v5291_v19, %v5297_v25  ;;  %7658 = vmatprep.mubr.msk.bf16.mxu1 %vm1524_vm2, %v7943_v5  ;;  %v7364_v34 = vpop.f32.mrb[72].mxu0  ;;  %v4286_v48 = vmax.f32 %v8792_v31, %v8784_v20  ;;  %v4272_v55 = vld [vmem:[#allocation2 + $0x1ee] sm:$0xff]  ;;  %v7552_v62 = vpop.f32.mrb[72].mxu1  ;;  %vm9455_vm7 = vmand %vm4099_vm3, %vm5023_vm6 }
 0x17c   : > { %v5310_v10 = vadd.f32 %v8715_v37, %v5304_v29  ;;  %v4299_v39 = vadd.f32 %v8715_v37, %v4293_v30  ;;  %v4300_v47 = vadd.f32 %v8715_v37, %v4294_v4  ;;  %v4278_v35 = vld [vmem:[#allocation2 + $0x21d] sm:$0xff]  ;;  %3707 = vst [vmem:[#allocation2 + $0x250] sm:$0xff] %v7364_v34  ;;  %v2418_v61 = vpop.f32.mrb[73].mxu0  ;;  %v5281_v45 = vld [vmem:[#allocation2 + $0x7ce] sm:$0xff]  ;;  %3895 = vst [vmem:[#allocation2 + $0x830] sm:$0xff] %v7552_v62  ;;  %v3170_v8 = vpop.f32.mrb[73].mxu1 }
 0x17d   : > { %v4307_v9 = vmax.f32 %v4301_v40, 0.0  ;;  %v5308_v44 = vadd.f32 %v8715_v37, %v5302_v43  ;;  %v5309_v58 = vadd.f32 %v8715_v37, %v5303_v57  ;;  %v4290_v5 = vmax.f32 %v4272_v55, %v4278_v35  ;;  %v5287_v6 = vld [vmem:[#allocation2 + $0x7fd] sm:$0xff]  ;;  %3705 = vst [vmem:[#allocation2 + $0x240] sm:$0xff] %v2418_v61  ;;  %v8806_v11 = vld [vmem:[#allocation2 + $0x7a7] sm:$0xff]  ;;  %3893 = vst [vmem:[#allocation2 + $0x820] sm:$0xff] %v3170_v8  ;;  %v7365_v28 = vpop.f32.mrb[74].mxu0 }
 0x17e   : > { %v5316_v0 = vmax.f32 %v5310_v10, 0.0  ;;  %v4305_v2 = vmax.f32 %v4299_v39, 0.0  ;;  %v4306_v32 = vmax.f32 %v4300_v47, 0.0  ;;  %v5299_v41 = vmax.f32 %v5281_v45, %v5287_v6  ;;  %v7553_v23 = vpop.f32.mrb[74].mxu1  ;;  %3708 = vst [vmem:[#allocation2 + $0x258] sm:$0xff] %v7365_v28  ;;  %v2421_v19 = vpop.f32.mrb[75].mxu0 }
 0x17f   : > { %v6988_v36 = vpack.c.bf16 %v4307_v9, %v4307_v9  ;;  %v5314_v60 = vmax.f32 %v5308_v44, 0.0  ;;  %v5315_v16 = vmax.f32 %v5309_v58, 0.0  ;;  %v4296_v49 = vmax.f32 %v4284_v46, %v4290_v5  ;;  %3896 = vst [vmem:[#allocation2 + $0x838] sm:$0xff] %v7553_v23  ;;  %v3173_v7 = vpop.f32.mrb[75].mxu1  ;;  %v4279_v17 = vld [vmem:[#allocation2 + $0x225] sm:$0xff]  ;;  %3706 = vst [vmem:[#allocation2 + $0x248] sm:$0xff] %v2421_v19 }
 0x180   : > { %v8809_v18 = vpack.c.bf16 %v5316_v0, %v5316_v0  ;;  %v6986_v56 = vpack.c.bf16 %v4305_v2, %v4305_v2  ;;  %v6987_v42 = vpack.c.bf16 %v4306_v32, %v4306_v32  ;;  %v5305_v63 = vmax.f32 %v5293_v59, %v5299_v41  ;;  %v4280_v22 = vld [vmem:[#allocation2 + $0x22d] sm:$0x7f]  ;;  %3894 = vst [vmem:[#allocation2 + $0x828] sm:$0xff] %v3173_v7  ;;  %v4274_v46 = vld [vmem:[#allocation2 + $0x1fe] sm:$0x7f]  ;;  %v4273_v40 = vld [vmem:[#allocation2 + $0x1f6] sm:$0xff] }
 0x181   : > { %v4337_v38 = vrot.slane %v6988_v36, 5  ;;  %v7034_v14 = vpack.c.bf16 %v5314_v60, %v5314_v60  ;;  %v7035_v3 = vpack.c.bf16 %v5315_v16, %v5315_v16  ;;  %7471 = vmatmul.mubr.msk.bf16.gmra.mrb[180].mxu0 %vm1524_vm2, %v7944_v12  ;;  %v5294_v27 = vmax.f32 %v8608_v54, %v8806_v11  ;;  %v8825_v4 = vld [vmem:[#allocation2 + $0x80d] sm:$0x7f]  ;;  %v5288_v9 = vld [vmem:[#allocation2 + $0x805] sm:$0xff]  ;;  %v7949_v32 = vld [vmem:[%s8106_s30 + $0x5d8] sm:$0xff]  }
 0x182   : > { %v4332_v1 = vrot.slane %v6986_v56, 5  ;;  %v4334_v15 = vrot.slane %v6987_v42, 5  ;;  %v4302_v13 = vadd.f32 %v8715_v37, %v4296_v49  ;;  %7659 = vmatmul.mubr.msk.bf16.gmra.mrb[180].mxu1 %vm1524_vm2, %v7945_v53  ;;  %7474 = vmatprep.mubr.msk.bf16.mxu0 %vm1524_vm2, %v7946_v26  ;;  %v5343_v50 = vrot.slane %v8809_v18, 5  ;;  %v7948_v59 = vld [vmem:[%s8106_s30 + $0x2e8] sm:$0xff]   ;;  %v5282_v5 = vld [vmem:[#allocation2 + $0x7d6] sm:$0xff] }
 0x183   : > { %v5338_v25 = vrot.slane %v7034_v14, 5  ;;  %v5340_v29 = vrot.slane %v7035_v3, 5  ;;  %v5311_v30 = vadd.f32 %v8715_v37, %v5305_v63  ;;  %7662 = vmatprep.mubr.msk.bf16.mxu1 %vm1524_vm2, %v7947_v51  ;;  %v4339_v43 = vrot.slane %v4337_v38, 4  ;;  %v7368_v47 = vpop.f32.mrb[76].mxu0  ;;  %v7556_v44 = vpop.f32.mrb[76].mxu1 }
 0x184   : > { %v4333_v57 = vrot.slane %v4332_v1, 4  ;;  %v4336_v10 = vrot.slane %v4334_v15, 4  ;;  %4356 = vst [vmem:[%s8456_s8 + $0x2c] sm:$0x8] %v4332_v1  ;;  %v4308_v39 = vmax.f32 %v4302_v13, 0.0  ;;  %v4291_v55 = vmax.f32 %v4273_v40, %v4279_v17  ;;  %3711 = vst [vmem:[#allocation2 + $0x270] sm:$0xff] %v7368_v47 }
 0x185   : > { %v5339_v34 = vrot.slane %v5338_v25, 4  ;;  %v5342_v12 = vrot.slane %v5340_v29, 4  ;;  %5362 = vst [vmem:[%s8456_s8 + $0xe8] sm:$0x8] %v5338_v25  ;;  %v5317_v53 = vmax.f32 %v5311_v30, 0.0  ;;  %v2434_v58 = vpop.f32.mrb[77].mxu0  ;;  %v4292_v45 = vmax.f32 %v4274_v46, %v4280_v22 }
 0x186   : > { %v5277_v35 = vld [vmem:[#allocation2 + $0x7af] sm:$0x7f]  ;;  %v4335_v62 = vsel %vm8820_vm13, %v4333_v57, %v4334_v15  ;;  %v4338_v61 = vsel %vm8820_vm13, %v4336_v10, %v4337_v38  ;;  %v6989_v26 = vpack.c.bf16 %v4308_v39, %v4308_v39  ;;  %3899 = vst [vmem:[#allocation2 + $0x850] sm:$0xff] %v7556_v44  ;;  %3709 = vst [vmem:[#allocation2 + $0x260] sm:$0xff] %v2434_v58  ;;  %v3186_v0 = vpop.f32.mrb[77].mxu1  ;;  %v7369_v2 = vpop.f32.mrb[78].mxu0 }
 0x187   : > { %v5283_v6 = vld [vmem:[#allocation2 + $0x7de] sm:$0x7f]  ;;  %4357 = vst [vmem:[%s8456_s8 + $0x30] sm:$0xf] %v4335_v62  ;;  %4358 = vst [vmem:[%s8456_s8 + $0x34] sm:$0xf] %v4338_v61  ;;  %v5341_v8 = vsel %vm8820_vm13, %v5339_v34, %v5340_v29  ;;  %v5344_v36 = vsel %vm8820_vm13, %v5342_v12, %v5343_v50  ;;  %v7037_v60 = vpack.c.bf16 %v5317_v53, %v5317_v53 }
 0x188   : > { %v4297_v16 = vmax.f32 %v4285_v52, %v4291_v55  ;;  %3897 = vst [vmem:[#allocation2 + $0x840] sm:$0xff] %v3186_v0  ;;  %3712 = vst [vmem:[#allocation2 + $0x278] sm:$0xff] %v7369_v2  ;;  %v7557_v41 = vpop.f32.mrb[78].mxu1  ;;  %v2437_v51 = vpop.f32.mrb[79].mxu0  ;;  %v5271_v18 = vld [vmem:[#allocation2 + $0x780] sm:$0x7f]  ;;  %v4298_v42 = vmax.f32 %v4286_v48, %v4292_v45  ;;  %v5300_v49 = vmax.f32 %v5282_v5, %v5288_v9 }
 0x189   : > { %5363 = vst [vmem:[%s8456_s8 + $0xec] sm:$0xf] %v5341_v8  ;;  %5364 = vst [vmem:[%s8456_s8 + $0xf0] sm:$0xf] %v5344_v36  ;;  %v4340_v56 = vrot.slane %v6989_v26, 5  ;;  %v5301_v28 = vmax.f32 %v5283_v6, %v8825_v4  ;;  %v3189_v21 = vpop.f32.mrb[79].mxu1  ;;  %v5295_v33 = vmax.f32 %v5271_v18, %v5277_v35  ;;  %7475 = vmatmul.mubr.msk.bf16.gmra.mrb[184].mxu0 %vm1524_vm2, %v7948_v59 }
 0x18a   : > { %3900 = vst [vmem:[#allocation2 + $0x858] sm:$0xff] %v7557_v41  ;;  %3710 = vst [vmem:[#allocation2 + $0x268] sm:$0xff] %v2437_v51  ;;  %v5345_v52 = vrot.slane %v5343_v50, 4  ;;  %v5346_v23 = vrot.slane %v7037_v60, 5  ;;  %v4303_v38 = vadd.f32 %v8715_v37, %v4297_v16  ;;  %v4304_v31 = vadd.f32 %v8715_v37, %v4298_v42  ;;  %7663 = vmatmul.mubr.msk.bf16.gmra.mrb[184].mxu1 %vm1524_vm2, %v7949_v32  ;;  %v4364_v34 = vld [vmem:[%s8456_s8 + $0x44] sm:$0x7] }
 0x18b   : > { %3898 = vst [vmem:[#allocation2 + $0x848] sm:$0xff] %v3189_v21  ;;  %v4341_v20 = vsel %vm8820_vm13, %v4339_v43, %v4340_v56  ;;  %v5306_v48 = vmax.f32 %v5294_v27, %v5300_v49  ;;  %v5307_v63 = vmax.f32 %v5295_v33, %v5301_v28  ;;  %v7372_v1 = vpop.f32.mrb[80].mxu0  ;;  %v4342_v15 = vrot.slane %v4340_v56, 4  ;;  %v7560_v54 = vpop.f32.mrb[80].mxu1  ;;  %v5368_v61 = vld [vmem:[%s8456_s8 + $0x100] sm:$0x7] }
 0x18c   : > { %4359 = vst [vmem:[%s8456_s8 + $0x38] sm:$0xf] %v4341_v20  ;;  %v5347_v14 = vsel %vm8820_vm13, %v5345_v52, %v5346_v23  ;;  %v4309_v3 = vmax.f32 %v4303_v38, 0.0  ;;  %v4310_v19 = vmax.f32 %v4304_v31, 0.0  ;;  %3715 = vst [vmem:[#allocation2 + $0x290] sm:$0xff] %v7372_v1  ;;  %v2450_v11 = vpop.f32.mrb[81].mxu0 }
 0x18d   : > { %5365 = vst [vmem:[%s8456_s8 + $0xf4] sm:$0xf] %v5347_v14  ;;  %v5312_v7 = vadd.f32 %v8715_v37, %v5306_v48  ;;  %v5313_v17 = vadd.f32 %v8715_v37, %v5307_v63  ;;  %3903 = vst [vmem:[#allocation2 + $0x870] sm:$0xff] %v7560_v54  ;;  %v3202_v46 = vpop.f32.mrb[81].mxu1  ;;  %v7373_v50 = vpop.f32.mrb[82].mxu0  ;;  %v5348_v4 = vrot.slane %v5346_v23, 4 }
 0x18e   : > { %v6990_v13 = vpack.c.bf16 %v4309_v3, %v4309_v3  ;;  %v6991_v27 = vpack.c.bf16 %v4310_v19, %v4310_v19  ;;  %3713 = vst [vmem:[#allocation2 + $0x280] sm:$0xff] %v2450_v11  ;;  %3901 = vst [vmem:[#allocation2 + $0x860] sm:$0xff] %v3202_v46  ;;  %v7561_v30 = vpop.f32.mrb[82].mxu1  ;;  %v2453_v43 = vpop.f32.mrb[83].mxu0  ;;  %v4369_v21 = vld [vmem:[#allocation2 + $0x244] sm:$0xff]  ;;  %v4367_v38 = vld [vmem:[#allocation2 + $0x234] sm:$0xff] }
 0x18f   : > { %v5318_v22 = vmax.f32 %v5312_v7, 0.0  ;;  %v5319_v29 = vmax.f32 %v5313_v17, 0.0  ;;  %3716 = vst [vmem:[#allocation2 + $0x298] sm:$0xff] %v7373_v50  ;;  %3904 = vst [vmem:[#allocation2 + $0x878] sm:$0xff] %v7561_v30  ;;  %v3205_v57 = vpop.f32.mrb[83].mxu1  ;;  %v4375_v33 = vld [vmem:[#allocation2 + $0x273] sm:$0xff] }
 0x190   : > { %v4343_v25 = vrot.slane %v6990_v13, 5  ;;  %v4346_v59 = vrot.slane %v6991_v27, 5  ;;  %3714 = vst [vmem:[#allocation2 + $0x288] sm:$0xff] %v2453_v43  ;;  %3902 = vst [vmem:[#allocation2 + $0x868] sm:$0xff] %v3205_v57  ;;  %v4368_v20 = vld [vmem:[#allocation2 + $0x23c] sm:$0xff]  ;;  %v5373_v31 = vld [vmem:[#allocation2 + $0x824] sm:$0xff]  ;;  %v4393_v11 = vmax.f32 %v4369_v21, %v4375_v33 }
 0x191   : > { %v7038_v40 = vpack.c.bf16 %v5318_v22, %v5318_v22  ;;  %v7039_v12 = vpack.c.bf16 %v5319_v29, %v5319_v29  ;;  %v5379_v52 = vld [vmem:[#allocation2 + $0x853] sm:$0xff]  ;;  %v4373_v23 = vld [vmem:[#allocation2 + $0x263] sm:$0xff]  ;;  %v4374_v48 = vld [vmem:[#allocation2 + $0x26b] sm:$0xff]  ;;  %vm4439_vm2 = vsmask.f32 6416 }
 0x192   : > { %v4344_v10 = vsel %vm8820_vm13, %v4342_v15, %v4343_v25  ;;  %v4345_v39 = vrot.slane %v4343_v25, 4  ;;  %v4348_v53 = vrot.slane %v4346_v59, 4  ;;  %v5377_v14 = vld [vmem:[#allocation2 + $0x843] sm:$0xff]  ;;  %v5378_v3 = vld [vmem:[#allocation2 + $0x84b] sm:$0xff]  ;;  %v5371_v19 = vld [vmem:[#allocation2 + $0x814] sm:$0xff] }
 0x193   : > { %4360 = vst [vmem:[%s8456_s8 + $0x3c] sm:$0xf] %v4344_v10  ;;  %v5349_v55 = vrot.slane %v7038_v40, 5  ;;  %v5352_v44 = vrot.slane %v7039_v12, 5  ;;  %v7376_v26 = vpop.f32.mrb[84].mxu0  ;;  %v7564_v0 = vpop.f32.mrb[84].mxu1  ;;  %v4392_v40 = vmax.f32 %v4368_v20, %v4374_v48  ;;  %v5395_v12 = vmax.f32 %v5371_v19, %v5377_v14  ;;  %vm8965_vm5 = vmor %vm4362_vm14, %vm4439_vm2 }
 0x194   : > { %v4347_v9 = vsel %vm8820_vm13, %v4345_v39, %v4346_v59  ;;  %v4365_v58 = vsel %vm8870_vm15, %v4348_v53, %v4364_v34  ;;  %3719 = vst [vmem:[#allocation2 + $0x2b0] sm:$0xff] %v7376_v26  ;;  %v2466_v2 = vpop.f32.mrb[85].mxu0  ;;  %3907 = vst [vmem:[#allocation2 + $0x890] sm:$0xff] %v7564_v0  ;;  %v3218_v5 = vpop.f32.mrb[85].mxu1  ;;  %v5372_v54 = vld [vmem:[#allocation2 + $0x81c] sm:$0xff]  ;;  %v4391_v59 = vmax.f32 %v4367_v38, %v4373_v23 }
 0x195   : > { %4361 = vst [vmem:[%s8456_s8 + $0x40] sm:$0xf] %v4347_v9  ;;  %v5350_v35 = vsel %vm8820_vm13, %v5348_v4, %v5349_v55  ;;  %v5351_v62 = vrot.slane %v5349_v55, 4  ;;  %4366 = vst [vmem:[%s8456_s8 + $0x44] sm:$0x7] %v4365_v58  ;;  %v5354_v45 = vrot.slane %v5352_v44, 4  ;;  %v5397_v4 = vmax.f32 %v5373_v31, %v5379_v52 }
 0x196   : > { %5366 = vst [vmem:[%s8456_s8 + $0xf8] sm:$0xf] %v5350_v35  ;;  %3717 = vst [vmem:[#allocation2 + $0x2a0] sm:$0xff] %v2466_v2  ;;  %v7377_v6 = vpop.f32.mrb[86].mxu0  ;;  %v7565_v36 = vpop.f32.mrb[86].mxu1  ;;  %v8894_v7 = vld [vmem:[#allocation2 + $0x27b] sm:$0xff]  ;;  %v5396_v26 = vmax.f32 %v5372_v54, %v5378_v3 }
 0x197   : > { %v5353_v32 = vsel %vm8820_vm13, %v5351_v62, %v5352_v44  ;;  %v5369_v8 = vsel %vm8870_vm15, %v5354_v45, %v5368_v61  ;;  %3905 = vst [vmem:[#allocation2 + $0x880] sm:$0xff] %v3218_v5  ;;  %3720 = vst [vmem:[#allocation2 + $0x2b8] sm:$0xff] %v7377_v6  ;;  %v2469_v60 = vpop.f32.mrb[87].mxu0  ;;  %v3221_v16 = vpop.f32.mrb[87].mxu1  ;;  %v4379_v1 = vld [vmem:[#allocation2 + $0x292] sm:$0xff]  ;;  %v8898_v27 = vld [vmem:[#allocation2 + $0x85b] sm:$0xff] }
 0x198   : > { %5367 = vst [vmem:[%s8456_s8 + $0xfc] sm:$0xf] %v5353_v32  ;;  %5370 = vst [vmem:[%s8456_s8 + $0x100] sm:$0x7] %v5369_v8  ;;  %v5383_v22 = vld [vmem:[#allocation2 + $0x872] sm:$0xff]  ;;  %v8906_v45 = vld [vmem:[#allocation2 + $0x283] sm:$0xff] }
 0x199   : > { %3908 = vst [vmem:[#allocation2 + $0x898] sm:$0xff] %v7565_v36  ;;  %3718 = vst [vmem:[#allocation2 + $0x2a8] sm:$0xff] %v2469_v60  ;;  %v8904_v61 = vld [vmem:[#allocation2 + $0x24c] sm:$0xff]  ;;  %v8934_v31 = vld [vmem:[#allocation2 + $0x83c] sm:$0x7f] }
 0x19a   : > { %3906 = vst [vmem:[#allocation2 + $0x888] sm:$0xff] %v3221_v16  ;;  %v8908_v5 = vld [vmem:[#allocation2 + $0x82c] sm:$0xff]  ;;  %v4394_v6 = vmax.f32 %v8904_v61, %v8894_v7  ;;  %vm4701_vm13 = vsmask.f32 5392  ;;  %vm9255_vm14 = vmand %vm4769_vm11, %vm4770_vm12 }
 0x19b   : > { %v7380_v41 = vpop.f32.mrb[88].mxu0  ;;  %v7568_v24 = vpop.f32.mrb[88].mxu1  ;;  %v8912_v8 = vld [vmem:[#allocation2 + $0x28b] sm:$0x7f]  ;;  %vm9287_vm15 = vmor %vm4624_vm9, %vm4701_vm13 }
 0x19c   : > { %3723 = vst [vmem:[#allocation2 + $0x2d0] sm:$0xff] %v7380_v41  ;;  %v2482_v51 = vpop.f32.mrb[89].mxu0  ;;  %3911 = vst [vmem:[#allocation2 + $0x8b0] sm:$0xff] %v7568_v24  ;;  %v3234_v18 = vpop.f32.mrb[89].mxu1  ;;  %v8914_v41 = vld [vmem:[#allocation2 + $0x254] sm:$0xff]  ;;  %v5398_v24 = vmax.f32 %v8908_v5, %v8898_v27 }
 0x19d   : > { %3721 = vst [vmem:[#allocation2 + $0x2c0] sm:$0xff] %v2482_v51  ;;  %v7381_v56 = vpop.f32.mrb[90].mxu0  ;;  %3909 = vst [vmem:[#allocation2 + $0x8a0] sm:$0xff] %v3234_v18  ;;  %v7569_v42 = vpop.f32.mrb[90].mxu1  ;;  %v4380_v15 = vld [vmem:[#allocation2 + $0x29a] sm:$0xff]  ;;  %v8918_v51 = vld [vmem:[#allocation2 + $0x863] sm:$0xff]  ;;  %v4395_v21 = vmax.f32 %v8914_v41, %v8906_v45 }
 0x19e   : > { %3724 = vst [vmem:[#allocation2 + $0x2d8] sm:$0xff] %v7381_v56  ;;  %v2485_v49 = vpop.f32.mrb[91].mxu0  ;;  %3912 = vst [vmem:[#allocation2 + $0x8b8] sm:$0xff] %v7569_v42  ;;  %v3237_v28 = vpop.f32.mrb[91].mxu1  ;;  %v5384_v53 = vld [vmem:[#allocation2 + $0x87a] sm:$0xff] }
 0x19f   : > { %3722 = vst [vmem:[#allocation2 + $0x2c8] sm:$0xff] %v2485_v49  ;;  %3910 = vst [vmem:[#allocation2 + $0x8a8] sm:$0xff] %v3237_v28  ;;  %v8921_v49 = vld [vmem:[#allocation2 + $0x834] sm:$0xff]  ;;  %v8923_v28 = vld [vmem:[#allocation2 + $0x25c] sm:$0x7f] }
 0x1a0   : > { %v4381_v46 = vld [vmem:[#allocation2 + $0x2a2] sm:$0xff]  ;;  %v8927_v33 = vld [vmem:[#allocation2 + $0x86b] sm:$0x7f]  ;;  %v4396_v48 = vmax.f32 %v8923_v28, %v8912_v8  ;;  %v5399_v54 = vmax.f32 %v8921_v49, %v8918_v51  ;;  %vm9381_vm2 = vmor %vm4853_vm0, %vm4854_vm1 }
 0x1a1   : > { %v5385_v50 = vld [vmem:[#allocation2 + $0x882] sm:$0xff] }
 0x1a3   : > { %v8892_v63 = vpop.f32.mrb[92].mxu0  ;;  %v8896_v13 = vpop.f32.mrb[92].mxu1 }
 0x1a4   : > { %v2498_v17 = vpop.f32.mrb[93].mxu0  ;;  %v3250_v29 = vpop.f32.mrb[93].mxu1 }
 0x1a5   : > { %v4387_v25 = vld [vmem:[#allocation2 + $0x2d1] sm:$0xff]  ;;  %3725 = vst [vmem:[#allocation2 + $0x2e0] sm:$0xff] %v2498_v17  ;;  %v8900_v30 = vpop.f32.mrb[94].mxu0  ;;  %3913 = vst [vmem:[#allocation2 + $0x8c0] sm:$0xff] %v3250_v29  ;;  %v8902_v47 = vpop.f32.mrb[94].mxu1  ;;  %v5400_v29 = vmax.f32 %v8934_v31, %v8927_v33 }
 0x1a6   : > { %v4399_v43 = vmax.f32 %v4381_v46, %v4387_v25  ;;  %v5391_v57 = vld [vmem:[#allocation2 + $0x8b1] sm:$0xff]  ;;  %v4385_v10 = vld [vmem:[#allocation2 + $0x2c1] sm:$0xff]  ;;  %v4386_v39 = vld [vmem:[#allocation2 + $0x2c9] sm:$0xff]  ;;  %v2501_v34 = vpop.f32.mrb[95].mxu0  ;;  %v3253_v62 = vpop.f32.mrb[95].mxu1 }
 0x1a7   : > { %v5403_v55 = vmax.f32 %v5385_v50, %v5391_v57  ;;  %v4397_v9 = vmax.f32 %v4379_v1, %v4385_v10  ;;  %v4398_v44 = vmax.f32 %v4380_v15, %v4386_v39  ;;  %v5389_v58 = vld [vmem:[#allocation2 + $0x8a1] sm:$0xff]  ;;  %v5390_v35 = vld [vmem:[#allocation2 + $0x8a9] sm:$0xff]  ;;  %3726 = vst [vmem:[#allocation2 + $0x2e8] sm:$0xff] %v2501_v34  ;;  %3914 = vst [vmem:[#allocation2 + $0x8c8] sm:$0xff] %v3253_v62 }
 0x1a8   : > { %v4405_v0 = vmax.f32 %v4393_v11, %v4399_v43  ;;  %v5401_v2 = vmax.f32 %v5383_v22, %v5389_v58  ;;  %v5402_v32 = vmax.f32 %v5384_v53, %v5390_v35 }
 0x1a9   : > { %v5409_v36 = vmax.f32 %v5397_v4, %v5403_v55  ;;  %v4403_v60 = vmax.f32 %v4391_v59, %v4397_v9  ;;  %v4404_v16 = vmax.f32 %v4392_v40, %v4398_v44  ;;  %v4382_v4 = vld [vmem:[#allocation2 + $0x2aa] sm:$0xff] }
 0x1aa   : > { %v4411_v18 = vadd.f32 %v8715_v37, %v4405_v0  ;;  %v5407_v56 = vmax.f32 %v5395_v12, %v5401_v2  ;;  %v5408_v42 = vmax.f32 %v5396_v26, %v5402_v32 }
 0x1ab   : > { %v5415_v52 = vadd.f32 %v8715_v37, %v5409_v36  ;;  %v4409_v23 = vadd.f32 %v8715_v37, %v4403_v60  ;;  %v4410_v38 = vadd.f32 %v8715_v37, %v4404_v16  ;;  %v8932_v20 = vpop.f32.mrb[96].mxu0  ;;  %v8940_v15 = vpop.f32.mrb[96].mxu1 }
 0x1ac   : > { %v4417_v14 = vmax.f32 %v4411_v18, 0.0  ;;  %v5413_v3 = vadd.f32 %v8715_v37, %v5407_v56  ;;  %v5414_v19 = vadd.f32 %v8715_v37, %v5408_v42  ;;  %v4388_v1 = vld [vmem:[#allocation2 + $0x2d9] sm:$0xff]  ;;  %v8942_v17 = vpop.f32.mrb[97].mxu0  ;;  %v8946_v50 = vpop.f32.mrb[97].mxu1 }
 0x1ad   : > { %v5421_v11 = vmax.f32 %v5415_v52, 0.0  ;;  %v4415_v22 = vmax.f32 %v4409_v23, 0.0  ;;  %v4416_v46 = vmax.f32 %v4410_v38, 0.0  ;;  %v7389_v25 = vpop.f32.mrb[98].mxu0  ;;  %v7577_v43 = vpop.f32.mrb[98].mxu1  ;;  %v4400_v34 = vmax.f32 %v4382_v4, %v4388_v1  ;;  %v5392_v16 = vld [vmem:[#allocation2 + $0x8b9] sm:$0xff] }
 0x1ae   : > { %v6994_v59 = vpack.c.bf16 %v4417_v14, %v4417_v14  ;;  %v5419_v37 = vmax.f32 %v5413_v3, 0.0  ;;  %v5420_v40 = vmax.f32 %v5414_v19, 0.0  ;;  %3732 = vst [vmem:[#allocation2 + $0x318] sm:$0xff] %v7389_v25  ;;  %3920 = vst [vmem:[#allocation2 + $0x8f8] sm:$0xff] %v7577_v43  ;;  %v8950_v12 = vpop.f32.mrb[99].mxu0  ;;  %v8952_v53 = vpop.f32.mrb[99].mxu1 }
 0x1af   : > { %v7042_v57 = vpack.c.bf16 %v5421_v11, %v5421_v11  ;;  %v6992_v10 = vpack.c.bf16 %v4415_v22, %v4415_v22  ;;  %v6993_v39 = vpack.c.bf16 %v4416_v46, %v4416_v46  ;;  %v5386_v38 = vld [vmem:[#allocation2 + $0x88a] sm:$0xff]  ;;  %v4406_v11 = vmax.f32 %v4394_v6, %v4400_v34  ;;  %v4510_v6 = vld [vmem:[%s8456_s8 + $0x44] sm:$0xc] }
 0x1b0   : > { %v4461_v55 = vshrl.u32 %v6994_v59, 16  ;;  %v4464_v9 = vshll.u32 %v6994_v59, 16  ;;  %v7040_v44 = vpack.c.bf16 %v5419_v37, %v5419_v37  ;;  %v7041_v58 = vpack.c.bf16 %v5420_v40, %v5420_v40  ;;  %v4389_v34 = vld [vmem:[#allocation2 + $0x2e1] sm:$0xff] }
 0x1b1   : > { %v5463_v35 = vshrl.u32 %v7042_v57, 16  ;;  %v5466_v62 = vshll.u32 %v7042_v57, 16  ;;  %v4442_v26 = vshrl.u32 %v6992_v10, 16  ;;  %v4445_v0 = vshll.u32 %v6992_v10, 16 }
 0x1b2   : > { %v4463_v2 = vrot.slane %v4461_v55, 5  ;;  %v4466_v32 = vrot.slane %v4464_v9, 6  ;;  %v4451_v36 = vshrl.u32 %v6993_v39, 16  ;;  %v4454_v60 = vshll.u32 %v6993_v39, 16 }
 0x1b3   : > { %v5465_v18 = vrot.slane %v5463_v35, 5  ;;  %v5468_v56 = vrot.slane %v5466_v62, 6  ;;  %v4444_v42 = vrot.slane %v4442_v26, 5  ;;  %v4447_v52 = vrot.slane %v4445_v0, 6  ;;  %v7392_v23 = vpop.f32.mrb[100].mxu0  ;;  %v7580_v22 = vpop.f32.mrb[100].mxu1 }
 0x1b4   : > { %v4453_v14 = vrot.slane %v4451_v36, 5  ;;  %v4456_v3 = vrot.slane %v4454_v60, 6  ;;  %v5444_v1 = vshrl.u32 %v7040_v44, 16  ;;  %3735 = vst [vmem:[#allocation2 + $0x330] sm:$0xff] %v7392_v23  ;;  %v2530_v46 = vpop.f32.mrb[101].mxu0  ;;  %v5447_v4 = vshll.u32 %v7040_v44, 16 }
 0x1b5   : > { %v4448_v25 = vor.u32 %v4447_v52, %v4444_v42  ;;  %v5453_v59 = vshrl.u32 %v7041_v58, 16  ;;  %v5404_v37 = vmax.f32 %v5386_v38, %v5392_v16  ;;  %3923 = vst [vmem:[#allocation2 + $0x910] sm:$0xff] %v7580_v22  ;;  %3733 = vst [vmem:[#allocation2 + $0x320] sm:$0xff] %v2530_v46  ;;  %v3282_v40 = vpop.f32.mrb[101].mxu1  ;;  %v7393_v43 = vpop.f32.mrb[102].mxu0  ;;  %v8969_v7 = vor.u32 %v4466_v32, %v4463_v2  ;;  %v4383_v32 = vld [vmem:[#allocation2 + $0x2b2] sm:$0xff] }
 0x1b6   : > { %v4457_v61 = vor.u32 %v4456_v3, %v4453_v14  ;;  %v5446_v10 = vrot.slane %v5444_v1, 5  ;;  %v5456_v39 = vshll.u32 %v7041_v58, 16  ;;  %3921 = vst [vmem:[#allocation2 + $0x900] sm:$0xff] %v3282_v40  ;;  %3736 = vst [vmem:[#allocation2 + $0x338] sm:$0xff] %v7393_v43  ;;  %v7581_v55 = vpop.f32.mrb[102].mxu1  ;;  %v8972_v9 = vor.u32 %v5468_v56, %v5465_v18  ;;  %v2533_v0 = vpop.f32.mrb[103].mxu0 }
 0x1b7   : > { %v4449_v44 = vrot.slane %v4448_v25, 4  ;;  %v4511_v35 = vsel %vm8956_vm4, %v4448_v25, %v4510_v6  ;;  %v5449_v62 = vrot.slane %v5447_v4, 6  ;;  %v4390_v26 = vld [vmem:[#allocation2 + $0x2e9] sm:$0x7f]  ;;  %3924 = vst [vmem:[#allocation2 + $0x918] sm:$0xff] %v7581_v55  ;;  %v3285_v2 = vpop.f32.mrb[103].mxu1  ;;  %v5410_v23 = vmax.f32 %v5398_v24, %v5404_v37 }
 0x1b8   : > { %v4459_v36 = vrot.slane %v4457_v61, 4  ;;  %4512 = vst [vmem:[%s8456_s8 + $0x44] sm:$0xc] %v4511_v35  ;;  %v5455_v58 = vrot.slane %v5453_v59, 5  ;;  %v5458_v60 = vrot.slane %v5456_v39, 6  ;;  %3734 = vst [vmem:[#allocation2 + $0x328] sm:$0xff] %v2533_v0  ;;  %v4401_v38 = vmax.f32 %v4383_v32, %v4389_v34 }
 0x1b9   : > { %v8980_v16 = vld [vmem:[%s9733_s2] ss:$0 sm:$0xff]  ;;  %3922 = vst [vmem:[#allocation2 + $0x908] sm:$0xff] %v3285_v2  ;;  %v4458_v42 = vsel %vm8965_vm5, %v4449_v44, %v4457_v61  ;;  %v5450_v52 = vor.u32 %v5449_v62, %v5446_v10  ;;  %v5393_v14 = vld [vmem:[#allocation2 + $0x8c1] sm:$0xff]  ;;  %v5394_v25 = vld [vmem:[#allocation2 + $0x8c9] sm:$0x7f] }
 0x1ba   : > { %v4412_v18 = vadd.f32 %v8980_v16, %v4406_v11  ;;  %v4384_v56 = vld [vmem:[#allocation2 + $0x2ba] sm:$0x7f]  ;;  %v4468_v3 = vsel %vm8965_vm5, %v4459_v36, %v8969_v7  ;;  %4513 = vst [vmem:[%s8456_s8 + $0x48] sm:$0xf] %v4458_v42  ;;  %v5459_v1 = vor.u32 %v5458_v60, %v5455_v58  ;;  %v5387_v4 = vld [vmem:[#allocation2 + $0x892] sm:$0xff]  ;;  %v5416_v5 = vadd.f32 %v8980_v16, %v5410_v23 }
 0x1bb   : > { %v5509_v11 = vld [vmem:[%s8456_s8 + $0x100] sm:$0xc]  ;;  %v4402_v46 = vmax.f32 %v4384_v56, %v4390_v26  ;;  %4514 = vst [vmem:[%s8456_s8 + $0x4c] sm:$0xf] %v4468_v3  ;;  %v5451_v59 = vrot.slane %v5450_v52, 4  ;;  %v4407_v24 = vmax.f32 %v4395_v21, %v4401_v38  ;;  %v7396_v37 = vpop.f32.mrb[104].mxu0  ;;  %v5405_v10 = vmax.f32 %v5387_v4, %v5393_v14 }
 0x1bc   : > { %v4418_v22 = vmax.f32 %v4412_v18, 0.0  ;;  %v5510_v27 = vsel %vm8956_vm4, %v5450_v52, %v5509_v11  ;;  %v5388_v40 = vld [vmem:[#allocation2 + $0x89a] sm:$0x7f]  ;;  %v5461_v43 = vrot.slane %v5459_v1, 4  ;;  %3739 = vst [vmem:[#allocation2 + $0x350] sm:$0xff] %v7396_v37  ;;  %v7584_v19 = vpop.f32.mrb[104].mxu1 }
 0x1bd   : > { %5511 = vst [vmem:[%s8456_s8 + $0x100] sm:$0xc] %v5510_v27  ;;  %v4408_v6 = vmax.f32 %v4396_v48, %v4402_v46  ;;  %v2546_v39 = vpop.f32.mrb[105].mxu0  ;;  %v5460_v34 = vsel %vm8965_vm5, %v5451_v59, %v5459_v1  ;;  %v5422_v55 = vmax.f32 %v5416_v5, 0.0  ;;  %v4413_v45 = vadd.f32 %v8980_v16, %v4407_v24  ;;  %3927 = vst [vmem:[#allocation2 + $0x930] sm:$0xff] %v7584_v19  ;;  %v3298_v21 = vpop.f32.mrb[105].mxu1 }
 0x1be   : > { %v6995_v61 = vpack.c.bf16 %v4418_v22, %v4418_v22  ;;  %v5406_v41 = vmax.f32 %v5388_v40, %v5394_v25  ;;  %3737 = vst [vmem:[#allocation2 + $0x340] sm:$0xff] %v2546_v39  ;;  %v7397_v44 = vpop.f32.mrb[106].mxu0  ;;  %v5470_v8 = vsel %vm8965_vm5, %v5461_v43, %v8972_v9  ;;  %5512 = vst [vmem:[%s8456_s8 + $0x104] sm:$0xf] %v5460_v34  ;;  %v7585_v62 = vpop.f32.mrb[106].mxu1  ;;  %v4469_v60 = vrot.slane %v8969_v7, 4 }
 0x1bf   : > { %v4414_v35 = vadd.f32 %v8980_v16, %v4408_v6  ;;  %3925 = vst [vmem:[#allocation2 + $0x920] sm:$0xff] %v3298_v21  ;;  %3740 = vst [vmem:[#allocation2 + $0x358] sm:$0xff] %v7397_v44  ;;  %v2549_v26 = vpop.f32.mrb[107].mxu0  ;;  %v7043_v0 = vpack.c.bf16 %v5422_v55, %v5422_v55  ;;  %v4419_v2 = vmax.f32 %v4413_v45, 0.0  ;;  %v5411_v32 = vmax.f32 %v5399_v54, %v5405_v10  ;;  %v3301_v58 = vpop.f32.mrb[107].mxu1 }
 0x1c0   : > { %v4471_v28 = vshrl.u32 %v6995_v61, 16  ;;  %v4474_v48 = vshll.u32 %v6995_v61, 16  ;;  %5513 = vst [vmem:[%s8456_s8 + $0x108] sm:$0xf] %v5470_v8  ;;  %v5412_v36 = vmax.f32 %v5400_v29, %v5406_v41  ;;  %3928 = vst [vmem:[#allocation2 + $0x938] sm:$0xff] %v7585_v62  ;;  %v5471_v51 = vrot.slane %v8972_v9, 4 }
 0x1c1   : > { %3738 = vst [vmem:[#allocation2 + $0x348] sm:$0xff] %v2549_v26  ;;  %v4420_v42 = vmax.f32 %v4414_v35, 0.0  ;;  %3926 = vst [vmem:[#allocation2 + $0x928] sm:$0xff] %v3301_v58  ;;  %v5473_v52 = vshrl.u32 %v7043_v0, 16  ;;  %v5476_v23 = vshll.u32 %v7043_v0, 16  ;;  %v6996_v38 = vpack.c.bf16 %v4419_v2, %v4419_v2 }
 0x1c2   : > { %v4473_v18 = vrot.slane %v4471_v28, 5  ;;  %v4476_v56 = vrot.slane %v4474_v48, 6  ;;  %v5417_v14 = vadd.f32 %v8980_v16, %v5411_v32  ;;  %v5418_v31 = vadd.f32 %v8980_v16, %v5412_v36 }
 0x1c3   : > { %v6997_v33 = vpack.c.bf16 %v4420_v42, %v4420_v42  ;;  %v5475_v54 = vrot.slane %v5473_v52, 5  ;;  %v5478_v29 = vrot.slane %v5476_v23, 6  ;;  %v4481_v3 = vshrl.u32 %v6996_v38, 16  ;;  %v7400_v1 = vpop.f32.mrb[108].mxu0  ;;  %v7588_v4 = vpop.f32.mrb[108].mxu1 }
 0x1c4   : > { %v4477_v49 = vor.u32 %v4476_v56, %v4473_v18  ;;  %v4484_v7 = vshll.u32 %v6996_v38, 16  ;;  %3743 = vst [vmem:[#allocation2 + $0x370] sm:$0xff] %v7400_v1  ;;  %v2562_v59 = vpop.f32.mrb[109].mxu0  ;;  %v5423_v24 = vmax.f32 %v5417_v14, 0.0  ;;  %3931 = vst [vmem:[#allocation2 + $0x950] sm:$0xff] %v7588_v4  ;;  %v3314_v37 = vpop.f32.mrb[109].mxu1 }
 0x1c5   : > { %v4491_v46 = vshrl.u32 %v6997_v33, 16  ;;  %v4494_v25 = vshll.u32 %v6997_v33, 16  ;;  %v5479_v9 = vor.u32 %v5478_v29, %v5475_v54  ;;  %v4483_v27 = vrot.slane %v4481_v3, 5  ;;  %3741 = vst [vmem:[#allocation2 + $0x360] sm:$0xff] %v2562_v59  ;;  %3929 = vst [vmem:[#allocation2 + $0x940] sm:$0xff] %v3314_v37  ;;  %v7401_v39 = vpop.f32.mrb[110].mxu0 }
 0x1c6   : > { %v4478_v11 = vsel %vm8965_vm5, %v4469_v60, %v4477_v49  ;;  %v4479_v22 = vrot.slane %v4477_v49, 4  ;;  %v4486_v5 = vrot.slane %v4484_v7, 6  ;;  %v5424_v61 = vmax.f32 %v5418_v31, 0.0  ;;  %3744 = vst [vmem:[#allocation2 + $0x378] sm:$0xff] %v7401_v39  ;;  %v7589_v45 = vpop.f32.mrb[110].mxu1  ;;  %v2565_v41 = vpop.f32.mrb[111].mxu0 }
 0x1c7   : > { %4515 = vst [vmem:[%s8456_s8 + $0x50] sm:$0xf] %v4478_v11  ;;  %v4493_v40 = vrot.slane %v4491_v46, 5  ;;  %v4496_v43 = vrot.slane %v4494_v25, 6  ;;  %v5480_v6 = vsel %vm8965_vm5, %v5471_v51, %v5479_v9  ;;  %v7044_v19 = vpack.c.bf16 %v5423_v24, %v5423_v24  ;;  %3932 = vst [vmem:[#allocation2 + $0x958] sm:$0xff] %v7589_v45  ;;  %v3317_v48 = vpop.f32.mrb[111].mxu1 }
 0x1c8   : > { %v4487_v10 = vor.u32 %v4486_v5, %v4483_v27  ;;  %5514 = vst [vmem:[%s8456_s8 + $0x10c] sm:$0xf] %v5480_v6  ;;  %v7045_v55 = vpack.c.bf16 %v5424_v61, %v5424_v61  ;;  %3742 = vst [vmem:[#allocation2 + $0x368] sm:$0xff] %v2565_v41  ;;  %v5481_v0 = vrot.slane %v5479_v9, 4  ;;  %v4525_v3 = vld [vmem:[#allocation2 + $0x31f] sm:$0xff]  ;;  %v9041_v1 = vld [vmem:[#allocation2 + $0x337] sm:$0xff] }
 0x1c9   : > { %v4497_v34 = vor.u32 %v4496_v43, %v4493_v40  ;;  %v5483_v8 = vshrl.u32 %v7044_v19, 16  ;;  %v5486_v28 = vshll.u32 %v7044_v19, 16  ;;  %3930 = vst [vmem:[#allocation2 + $0x948] sm:$0xff] %v3317_v48  ;;  %v9039_v7 = vld [vmem:[#allocation2 + $0x8ff] sm:$0xff]  ;;  %v9047_v46 = vld [vmem:[#allocation2 + $0x327] sm:$0xff]  ;;  %v9049_v25 = vld [vmem:[#allocation2 + $0x32f] sm:$0xff]  ;;  %v4543_v27 = vmax.f32 %v8892_v63, %v4525_v3 }
 0x1ca   : > { %v4488_v21 = vsel %vm8965_vm5, %v4479_v22, %v4487_v10  ;;  %v4489_v44 = vrot.slane %v4487_v10, 4  ;;  %v5493_v62 = vshrl.u32 %v7045_v55, 16  ;;  %v5496_v26 = vshll.u32 %v7045_v55, 16  ;;  %v9045_v22 = vld [vmem:[#allocation2 + $0x917] sm:$0xff]  ;;  %v9053_v4 = vld [vmem:[#allocation2 + $0x907] sm:$0xff]  ;;  %v9055_v59 = vld [vmem:[#allocation2 + $0x90f] sm:$0xff] }
 0x1cb   : > { %v4499_v35 = vrot.slane %v4497_v34, 4  ;;  %4516 = vst [vmem:[%s8456_s8 + $0x54] sm:$0xf] %v4488_v21  ;;  %v5485_v32 = vrot.slane %v5483_v8, 5  ;;  %v5488_v36 = vrot.slane %v5486_v28, 6  ;;  %v7404_v58 = vpop.f32.mrb[112].mxu0  ;;  %v5542_v40 = vmax.f32 %v8896_v13, %v9039_v7 }
 0x1cc   : > { %v4498_v2 = vsel %vm8965_vm5, %v4489_v44, %v4497_v34  ;;  %v5495_v60 = vrot.slane %v5493_v62, 5  ;;  %v5498_v18 = vrot.slane %v5496_v26, 6  ;;  %3747 = vst [vmem:[#allocation2 + $0x390] sm:$0xff] %v7404_v58  ;;  %v7592_v56 = vpop.f32.mrb[112].mxu1  ;;  %v2578_v42 = vpop.f32.mrb[113].mxu0  ;;  %v9057_v9 = vld [vmem:[#allocation2 + $0x33f] sm:$0xff]  ;;  %v4546_v43 = vmax.f32 %v8950_v12, %v9041_v1 }
 0x1cd   : > { %4517 = vst [vmem:[%s8456_s8 + $0x58] sm:$0xf] %v4498_v2  ;;  %4518 = vst [vmem:[%s8456_s8 + $0x5c] sm:$0x3] %v4499_v35  ;;  %v5489_v52 = vor.u32 %v5488_v36, %v5485_v32  ;;  %v3330_v23 = vpop.f32.mrb[113].mxu1  ;;  %v7405_v38 = vpop.f32.mrb[114].mxu0  ;;  %v5545_v61 = vmax.f32 %v8952_v53, %v9045_v22  ;;  %v4544_v6 = vmax.f32 %v8900_v30, %v9047_v46 }
 0x1ce   : > { %3935 = vst [vmem:[#allocation2 + $0x970] sm:$0xff] %v7592_v56  ;;  %3745 = vst [vmem:[#allocation2 + $0x380] sm:$0xff] %v2578_v42  ;;  %v5499_v14 = vor.u32 %v5498_v18, %v5495_v60  ;;  %v7593_v51 = vpop.f32.mrb[114].mxu1  ;;  %v2581_v49 = vpop.f32.mrb[115].mxu0  ;;  %v9060_v5 = vld [vmem:[#allocation2 + $0x91f] sm:$0xff]  ;;  %v4531_v57 = vld [vmem:[#allocation2 + $0x34e] sm:$0xff]  ;;  %v4545_v45 = vmax.f32 %v8942_v17, %v9049_v25  ;;  %v5543_v13 = vmax.f32 %v8902_v47, %v9053_v4 }
 0x1cf   : > { %3933 = vst [vmem:[#allocation2 + $0x960] sm:$0xff] %v3330_v23  ;;  %3748 = vst [vmem:[#allocation2 + $0x398] sm:$0xff] %v7405_v38  ;;  %v5490_v33 = vsel %vm8965_vm5, %v5481_v0, %v5489_v52  ;;  %v5491_v31 = vrot.slane %v5489_v52, 4  ;;  %v3333_v54 = vpop.f32.mrb[115].mxu1  ;;  %v5530_v24 = vld [vmem:[#allocation2 + $0x92e] sm:$0xff]  ;;  %v4532_v10 = vld [vmem:[#allocation2 + $0x356] sm:$0xff]  ;;  %v5544_v12 = vmax.f32 %v8946_v50, %v9055_v59  ;;  %v4547_v17 = vmax.f32 %v8932_v20, %v9057_v9 }
 0x1d0   : > { %3936 = vst [vmem:[#allocation2 + $0x978] sm:$0xff] %v7593_v51  ;;  %3746 = vst [vmem:[#allocation2 + $0x388] sm:$0xff] %v2581_v49  ;;  %v5501_v29 = vrot.slane %v5499_v14, 4  ;;  %v4533_v19 = vld [vmem:[#allocation2 + $0x35e] sm:$0xff]  ;;  %v4534_v63 = vld [vmem:[#allocation2 + $0x366] sm:$0xff]  ;;  %v5546_v47 = vmax.f32 %v8940_v15, %v9060_v5 }
 0x1d1   : > { %5515 = vst [vmem:[%s8456_s8 + $0x110] sm:$0xf] %v5490_v33  ;;  %3934 = vst [vmem:[#allocation2 + $0x968] sm:$0xff] %v3333_v54  ;;  %v5500_v11 = vsel %vm8965_vm5, %v5491_v31, %v5499_v14  ;;  %v5531_v53 = vld [vmem:[#allocation2 + $0x936] sm:$0xff]  ;;  %v5533_v41 = vld [vmem:[#allocation2 + $0x946] sm:$0xff] }
 0x1d2   : > { %5516 = vst [vmem:[%s8456_s8 + $0x114] sm:$0xf] %v5500_v11  ;;  %5517 = vst [vmem:[%s8456_s8 + $0x118] sm:$0x3] %v5501_v29  ;;  %v5532_v32 = vld [vmem:[#allocation2 + $0x93e] sm:$0xff] }
 0x1d3   : > { %v7408_v37 = vpop.f32.mrb[116].mxu0  ;;  %v7596_v34 = vpop.f32.mrb[116].mxu1  ;;  %vm4886_vm4 = vsmask.f32 256 }
 0x1d4   : > { %3751 = vst [vmem:[#allocation2 + $0x3b0] sm:$0xff] %v7408_v37  ;;  %v2594_v55 = vpop.f32.mrb[117].mxu0  ;;  %3939 = vst [vmem:[#allocation2 + $0x990] sm:$0xff] %v7596_v34  ;;  %v3346_v8 = vpop.f32.mrb[117].mxu1 }
 0x1d5   : > { %v4537_v39 = vld [vmem:[#allocation2 + $0x37d] sm:$0xff]  ;;  %3749 = vst [vmem:[#allocation2 + $0x3a0] sm:$0xff] %v2594_v55  ;;  %v7409_v28 = vpop.f32.mrb[118].mxu0  ;;  %3937 = vst [vmem:[#allocation2 + $0x980] sm:$0xff] %v3346_v8  ;;  %v7597_v0 = vpop.f32.mrb[118].mxu1 }
 0x1d6   : > { %v4549_v21 = vmax.f32 %v4531_v57, %v4537_v39  ;;  %v5536_v30 = vld [vmem:[#allocation2 + $0x95d] sm:$0xff]  ;;  %v4540_v44 = vld [vmem:[#allocation2 + $0x395] sm:$0xff]  ;;  %3752 = vst [vmem:[#allocation2 + $0x3b8] sm:$0xff] %v7409_v28  ;;  %v2597_v2 = vpop.f32.mrb[119].mxu0  ;;  %3940 = vst [vmem:[#allocation2 + $0x998] sm:$0xff] %v7597_v0  ;;  %v3349_v52 = vpop.f32.mrb[119].mxu1 }
 0x1d7   : > { %v5548_v48 = vmax.f32 %v5530_v24, %v5536_v30  ;;  %v4552_v35 = vmax.f32 %v4534_v63, %v4540_v44  ;;  %v5539_v50 = vld [vmem:[#allocation2 + $0x975] sm:$0xff]  ;;  %v4538_v62 = vld [vmem:[#allocation2 + $0x385] sm:$0xff]  ;;  %v4539_v26 = vld [vmem:[#allocation2 + $0x38d] sm:$0xff]  ;;  %3750 = vst [vmem:[#allocation2 + $0x3a8] sm:$0xff] %v2597_v2 }
 0x1d8   : > { %v4555_v36 = vmax.f32 %v4543_v27, %v4549_v21  ;;  %v5551_v58 = vmax.f32 %v5533_v41, %v5539_v50  ;;  %v4550_v60 = vmax.f32 %v4532_v10, %v4538_v62  ;;  %v4551_v18 = vmax.f32 %v4533_v19, %v4539_v26  ;;  %v5537_v56 = vld [vmem:[#allocation2 + $0x965] sm:$0xff]  ;;  %v5538_v42 = vld [vmem:[#allocation2 + $0x96d] sm:$0xff]  ;;  %3938 = vst [vmem:[#allocation2 + $0x988] sm:$0xff] %v3349_v52  ;;  %v9098_v28 = vld [vmem:[#allocation2 + $0x8f8] sm:$0x7f] }
 0x1d9   : > { %v5554_v23 = vmax.f32 %v5542_v40, %v5548_v48  ;;  %v4558_v38 = vmax.f32 %v4546_v43, %v4552_v35  ;;  %v5549_v14 = vmax.f32 %v5531_v53, %v5537_v56  ;;  %v5550_v51 = vmax.f32 %v5532_v32, %v5538_v42  ;;  %v9088_v43 = vld [vmem:[#allocation2 + $0x347] sm:$0x7f]  ;;  %v4536_v52 = vld [vmem:[#allocation2 + $0x376] sm:$0x7f]  ;;  %vm9419_vm5 = vmand %vm4853_vm0, %vm4886_vm4 }
 0x1da   : > { %v4561_v49 = vadd.f32 %v8980_v16, %v4555_v36  ;;  %v5557_v33 = vmax.f32 %v5545_v61, %v5551_v58  ;;  %v4556_v31 = vmax.f32 %v4544_v6, %v4550_v60  ;;  %v4557_v54 = vmax.f32 %v4545_v45, %v4551_v18  ;;  %v9090_v39 = vld [vmem:[#allocation2 + $0x927] sm:$0x7f]  ;;  %v4535_v36 = vld [vmem:[#allocation2 + $0x36e] sm:$0xff] }
 0x1db   : > { %v5560_v29 = vadd.f32 %v8980_v16, %v5554_v23  ;;  %v4564_v3 = vadd.f32 %v8980_v16, %v4558_v38  ;;  %v5555_v7 = vmax.f32 %v5543_v13, %v5549_v14  ;;  %v5556_v1 = vmax.f32 %v5544_v12, %v5550_v51  ;;  %v7412_v4 = vpop.f32.mrb[120].mxu0  ;;  %v7600_v37 = vpop.f32.mrb[120].mxu1  ;;  %v9094_v12 = vld [vmem:[#allocation2 + $0x318] sm:$0x7f] }
 0x1dc   : > { %v4567_v11 = vmax.f32 %v4561_v49, 0.0  ;;  %v5563_v22 = vadd.f32 %v8980_v16, %v5557_v33  ;;  %v4562_v46 = vadd.f32 %v8980_v16, %v4556_v31  ;;  %v4563_v25 = vadd.f32 %v8980_v16, %v4557_v54  ;;  %3755 = vst [vmem:[#allocation2 + $0x3d0] sm:$0xff] %v7412_v4  ;;  %v2610_v40 = vpop.f32.mrb[121].mxu0  ;;  %3943 = vst [vmem:[#allocation2 + $0x9b0] sm:$0xff] %v7600_v37  ;;  %v3362_v63 = vpop.f32.mrb[121].mxu1  ;;  %v4541_v56 = vld [vmem:[#allocation2 + $0x39d] sm:$0xff] }
 0x1dd   : > { %v5566_v59 = vmax.f32 %v5560_v29, 0.0  ;;  %v4570_v27 = vmax.f32 %v4564_v3, 0.0  ;;  %v5561_v57 = vadd.f32 %v8980_v16, %v5555_v7  ;;  %v5562_v24 = vadd.f32 %v8980_v16, %v5556_v1  ;;  %3753 = vst [vmem:[#allocation2 + $0x3c0] sm:$0xff] %v2610_v40  ;;  %3941 = vst [vmem:[#allocation2 + $0x9a0] sm:$0xff] %v3362_v63  ;;  %v7413_v44 = vpop.f32.mrb[122].mxu0  ;;  %v7601_v8 = vpop.f32.mrb[122].mxu1 }
 0x1de   : > { %v6998_v61 = vpack.c.bf16 %v4567_v11, %v4567_v11  ;;  %v5569_v6 = vmax.f32 %v5563_v22, 0.0  ;;  %v4568_v10 = vmax.f32 %v4562_v46, 0.0  ;;  %v4569_v19 = vmax.f32 %v4563_v25, 0.0  ;;  %3756 = vst [vmem:[#allocation2 + $0x3d8] sm:$0xff] %v7413_v44  ;;  %3944 = vst [vmem:[#allocation2 + $0x9b8] sm:$0xff] %v7601_v8  ;;  %v2613_v0 = vpop.f32.mrb[123].mxu0 }
 0x1df   : > { %v7046_v34 = vpack.c.bf16 %v5566_v59, %v5566_v59  ;;  %v9092_v55 = vpack.c.bf16 %v4570_v27, %v4570_v27  ;;  %v5567_v45 = vmax.f32 %v5561_v57, 0.0  ;;  %v5568_v13 = vmax.f32 %v5562_v24, 0.0  ;;  %v3365_v2 = vpop.f32.mrb[123].mxu1  ;;  %v5540_v42 = vld [vmem:[#allocation2 + $0x97d] sm:$0xff]  ;;  %3754 = vst [vmem:[#allocation2 + $0x3c8] sm:$0xff] %v2613_v0  ;;  %v5534_v1 = vld [vmem:[#allocation2 + $0x94e] sm:$0xff] }
 0x1e0   : > { %v4594_v53 = vrot.slane %v6998_v61, 6  ;;  %v9096_v41 = vpack.c.bf16 %v5569_v6, %v5569_v6  ;;  %v6999_v21 = vpack.c.bf16 %v4568_v10, %v4568_v10  ;;  %v7000_v30 = vpack.c.bf16 %v4569_v19, %v4569_v19  ;;  %3942 = vst [vmem:[#allocation2 + $0x9a8] sm:$0xff] %v3365_v2  ;;  %v4542_v49 = vld [vmem:[#allocation2 + $0x3a5] sm:$0x7f]  ;;  %v5535_v27 = vld [vmem:[#allocation2 + $0x956] sm:$0x7f] }
 0x1e1   : > { %v4548_v48 = vmax.f32 %v9094_v12, %v9088_v43  ;;  %v5590_v35 = vrot.slane %v7046_v34, 6  ;;  %v7047_v62 = vpack.c.bf16 %v5567_v45, %v5567_v45  ;;  %v7048_v26 = vpack.c.bf16 %v5568_v13, %v5568_v13  ;;  %v5541_v3 = vld [vmem:[#allocation2 + $0x985] sm:$0x7f] }
 0x1e2   : > { %v5547_v32 = vmax.f32 %v9098_v28, %v9090_v39  ;;  %v4595_v58 = vrot.slane %v4594_v53, 4  ;;  %4618 = vst [vmem:[%s8456_s8 + $0x5c] sm:$0xc] %v4594_v53  ;;  %v4596_v60 = vrot.slane %v6999_v21, 6  ;;  %v4599_v18 = vrot.slane %v7000_v30, 6 }
 0x1e3   : > { %v5591_v23 = vrot.slane %v5590_v35, 4  ;;  %5614 = vst [vmem:[%s8456_s8 + $0x118] sm:$0xc] %v5590_v35  ;;  %v4602_v38 = vrot.slane %v9092_v55, 6  ;;  %v5592_v14 = vrot.slane %v7047_v62, 6  ;;  %v5595_v51 = vrot.slane %v7048_v26, 6 }
 0x1e4   : > { %v5598_v33 = vrot.slane %v9096_v41, 6  ;;  %v4597_v31 = vsel %vm9104_vm8, %v4595_v58, %v4596_v60  ;;  %v4598_v54 = vrot.slane %v4596_v60, 4  ;;  %v4601_v29 = vrot.slane %v4599_v18, 4  ;;  %v7416_v7 = vpop.f32.mrb[124].mxu0  ;;  %v7604_v4 = vpop.f32.mrb[124].mxu1 }
 0x1e5   : > { %4619 = vst [vmem:[%s8456_s8 + $0x60] sm:$0xf] %v4597_v31  ;;  %v5593_v11 = vsel %vm9104_vm8, %v5591_v23, %v5592_v14  ;;  %v5594_v22 = vrot.slane %v5592_v14, 4  ;;  %v5597_v46 = vrot.slane %v5595_v51, 4  ;;  %v4553_v25 = vmax.f32 %v4535_v36, %v4541_v56  ;;  %3759 = vst [vmem:[#allocation2 + $0x3f0] sm:$0xff] %v7416_v7  ;;  %v2626_v59 = vpop.f32.mrb[125].mxu0 }
 0x1e6   : > { %v4600_v57 = vsel %vm9104_vm8, %v4598_v54, %v4599_v18  ;;  %v4603_v24 = vsel %vm9104_vm8, %v4601_v29, %v4602_v38  ;;  %5615 = vst [vmem:[%s8456_s8 + $0x11c] sm:$0xf] %v5593_v11  ;;  %v5552_v37 = vmax.f32 %v5534_v1, %v5540_v42  ;;  %v4554_v40 = vmax.f32 %v4536_v52, %v4542_v49  ;;  %v3378_v61 = vpop.f32.mrb[125].mxu1  ;;  %v7417_v6 = vpop.f32.mrb[126].mxu0  ;;  %v4626_v41 = vld [vmem:[%s8456_s8 + $0x74] sm:$0x3] }
 0x1e7   : > { %3947 = vst [vmem:[#allocation2 + $0x9d0] sm:$0xff] %v7604_v4  ;;  %3757 = vst [vmem:[#allocation2 + $0x3e0] sm:$0xff] %v2626_v59  ;;  %v5596_v10 = vsel %vm9104_vm8, %v5594_v22, %v5595_v51  ;;  %v5599_v19 = vsel %vm9104_vm8, %v5597_v46, %v5598_v33  ;;  %v4559_v63 = vmax.f32 %v4547_v17, %v4553_v25  ;;  %v7605_v34 = vpop.f32.mrb[126].mxu1  ;;  %v2629_v45 = vpop.f32.mrb[127].mxu0  ;;  %v4604_v2 = vrot.slane %v4602_v38, 4 }
 0x1e8   : > { %4620 = vst [vmem:[%s8456_s8 + $0x64] sm:$0xf] %v4600_v57  ;;  %4621 = vst [vmem:[%s8456_s8 + $0x68] sm:$0xf] %v4603_v24  ;;  %v5553_v39 = vmax.f32 %v5535_v27, %v5541_v3  ;;  %v5558_v13 = vmax.f32 %v5546_v47, %v5552_v37  ;;  %v4560_v53 = vmax.f32 %v4548_v48, %v4554_v40  ;;  %v3381_v21 = vpop.f32.mrb[127].mxu1  ;;  %v5600_v18 = vrot.slane %v5598_v33, 4 }
 0x1e9   : > { %3945 = vst [vmem:[#allocation2 + $0x9c0] sm:$0xff] %v3378_v61  ;;  %3760 = vst [vmem:[#allocation2 + $0x3f8] sm:$0xff] %v7417_v6  ;;  %v4565_v20 = vadd.f32 %v8980_v16, %v4559_v63  ;;  %v5620_v31 = vld [vmem:[%s8456_s8 + $0x130] sm:$0x3] }
 0x1ea   : > { %5616 = vst [vmem:[%s8456_s8 + $0x120] sm:$0xf] %v5596_v10  ;;  %5617 = vst [vmem:[%s8456_s8 + $0x124] sm:$0xf] %v5599_v19  ;;  %v5559_v9 = vmax.f32 %v5547_v32, %v5553_v39  ;;  %v5564_v17 = vadd.f32 %v8980_v16, %v5558_v13  ;;  %v4566_v30 = vadd.f32 %v8980_v16, %v4560_v53  ;;  %v4632_v13 = vld [vmem:[#allocation2 + $0x3c4] sm:$0xff] }
 0x1eb   : > { %3948 = vst [vmem:[#allocation2 + $0x9d8] sm:$0xff] %v7605_v34  ;;  %3758 = vst [vmem:[#allocation2 + $0x3e8] sm:$0xff] %v2629_v45  ;;  %v4571_v44 = vmax.f32 %v4565_v20, 0.0  ;;  %v7420_v47 = vpop.f32.mrb[128].mxu0  ;;  %v7608_v12 = vpop.f32.mrb[128].mxu1  ;;  %v4629_v34 = vld [vmem:[#allocation2 + $0x3ac] sm:$0xff] }
 0x1ec   : > { %3946 = vst [vmem:[#allocation2 + $0x9c8] sm:$0xff] %v3381_v21  ;;  %v5565_v8 = vadd.f32 %v8980_v16, %v5559_v9  ;;  %v5570_v15 = vmax.f32 %v5564_v17, 0.0  ;;  %v4572_v5 = vmax.f32 %v4566_v30, 0.0  ;;  %3763 = vst [vmem:[#allocation2 + $0x410] sm:$0xff] %v7420_v47  ;;  %v2642_v48 = vpop.f32.mrb[129].mxu0  ;;  %v3394_v26 = vpop.f32.mrb[129].mxu1 }
 0x1ed   : > { %v7002_v28 = vpack.c.bf16 %v4571_v44, %v4571_v44  ;;  %3951 = vst [vmem:[#allocation2 + $0x9f0] sm:$0xff] %v7608_v12  ;;  %3761 = vst [vmem:[#allocation2 + $0x400] sm:$0xff] %v2642_v48  ;;  %v7421_v0 = vpop.f32.mrb[130].mxu0  ;;  %v7609_v58 = vpop.f32.mrb[130].mxu1  ;;  %v5623_v45 = vld [vmem:[#allocation2 + $0x98c] sm:$0xff]  ;;  %v9181_v53 = vld [vmem:[#allocation2 + $0x9a4] sm:$0xff] }
 0x1ee   : > { %v5571_v43 = vmax.f32 %v5565_v8, 0.0  ;;  %v7050_v35 = vpack.c.bf16 %v5570_v15, %v5570_v15  ;;  %v7003_v62 = vpack.c.bf16 %v4572_v5, %v4572_v5  ;;  %3949 = vst [vmem:[#allocation2 + $0x9e0] sm:$0xff] %v3394_v26  ;;  %3764 = vst [vmem:[#allocation2 + $0x418] sm:$0xff] %v7421_v0  ;;  %v2645_v60 = vpop.f32.mrb[131].mxu0  ;;  %v3397_v55 = vpop.f32.mrb[131].mxu1  ;;  %v4635_v63 = vld [vmem:[#allocation2 + $0x3db] sm:$0xff] }
 0x1ef   : > { %v4605_v32 = vrot.slane %v7002_v28, 6  ;;  %3952 = vst [vmem:[#allocation2 + $0x9f8] sm:$0xff] %v7609_v58  ;;  %3762 = vst [vmem:[#allocation2 + $0x408] sm:$0xff] %v2645_v60  ;;  %v4630_v17 = vld [vmem:[#allocation2 + $0x3b4] sm:$0xff]  ;;  %v4631_v44 = vld [vmem:[#allocation2 + $0x3bc] sm:$0xff] }
 0x1f0   : > { %v7051_v36 = vpack.c.bf16 %v5571_v43, %v5571_v43  ;;  %v5601_v56 = vrot.slane %v7050_v35, 6  ;;  %v4608_v42 = vrot.slane %v7003_v62, 6  ;;  %3950 = vst [vmem:[#allocation2 + $0x9e8] sm:$0xff] %v3397_v55  ;;  %v9179_v39 = vld [vmem:[#allocation2 + $0x9bb] sm:$0xff]  ;;  %v4638_v21 = vld [vmem:[#allocation2 + $0x3f3] sm:$0xff]  ;;  %v4653_v62 = vmax.f32 %v4629_v34, %v4635_v63 }
 0x1f1   : > { %v4606_v52 = vsel %vm9104_vm8, %v4604_v2, %v4605_v32  ;;  %v4607_v23 = vrot.slane %v4605_v32, 4  ;;  %v9187_v30 = vld [vmem:[#allocation2 + $0x994] sm:$0xff]  ;;  %v5625_v47 = vld [vmem:[#allocation2 + $0x99c] sm:$0xff]  ;;  %v9189_v28 = vld [vmem:[#allocation2 + $0x3cc] sm:$0xff]  ;;  %v5647_v26 = vmax.f32 %v5623_v45, %v9179_v39  ;;  %v4656_v0 = vmax.f32 %v4632_v13, %v4638_v21 }
 0x1f2   : > { %v5604_v14 = vrot.slane %v7051_v36, 6  ;;  %4622 = vst [vmem:[%s8456_s8 + $0x6c] sm:$0xf] %v4606_v52  ;;  %v5602_v51 = vsel %vm9104_vm8, %v5600_v18, %v5601_v56  ;;  %v5603_v49 = vrot.slane %v5601_v56, 4  ;;  %v4610_v33 = vrot.slane %v4608_v42, 4  ;;  %v9183_v20 = vld [vmem:[#allocation2 + $0x9d3] sm:$0xff] }
 0x1f3   : > { %5618 = vst [vmem:[%s8456_s8 + $0x128] sm:$0xf] %v5602_v51  ;;  %v4609_v54 = vsel %vm9104_vm8, %v4607_v23, %v4608_v42  ;;  %v9185_v9 = vld [vmem:[#allocation2 + $0x3e3] sm:$0xff]  ;;  %v4637_v8 = vld [vmem:[#allocation2 + $0x3eb] sm:$0xff]  ;;  %v5650_v2 = vmax.f32 %v9181_v53, %v9183_v20 }
 0x1f4   : > { %v5606_v29 = vrot.slane %v5604_v14, 4  ;;  %4623 = vst [vmem:[%s8456_s8 + $0x70] sm:$0xf] %v4609_v54  ;;  %v4627_v3 = vsel %vm9157_vm10, %v4610_v33, %v4626_v41  ;;  %v5605_v7 = vsel %vm9104_vm8, %v5603_v49, %v5604_v14  ;;  %v7424_v1 = vpop.f32.mrb[132].mxu0  ;;  %v5630_v15 = vld [vmem:[#allocation2 + $0x9c3] sm:$0xff]  ;;  %v5631_v5 = vld [vmem:[#allocation2 + $0x9cb] sm:$0xff]  ;;  %v4654_v42 = vmax.f32 %v4630_v17, %v9185_v9 }
 0x1f5   : > { %4628 = vst [vmem:[%s8456_s8 + $0x74] sm:$0x3] %v4627_v3  ;;  %5619 = vst [vmem:[%s8456_s8 + $0x12c] sm:$0xf] %v5605_v7  ;;  %v7612_v22 = vpop.f32.mrb[132].mxu1  ;;  %v2658_v46 = vpop.f32.mrb[133].mxu0  ;;  %v4655_v55 = vmax.f32 %v4631_v44, %v4637_v8  ;;  %v5648_v52 = vmax.f32 %v9187_v30, %v5630_v15 }
 0x1f6   : > { %v5621_v11 = vsel %vm9157_vm10, %v5606_v29, %v5620_v31  ;;  %3767 = vst [vmem:[#allocation2 + $0x430] sm:$0xff] %v7424_v1  ;;  %3955 = vst [vmem:[#allocation2 + $0xa10] sm:$0xff] %v7612_v22  ;;  %v3410_v25 = vpop.f32.mrb[133].mxu1  ;;  %v7425_v4 = vpop.f32.mrb[134].mxu0  ;;  %v9191_v43 = vld [vmem:[#allocation2 + $0x3fb] sm:$0xff]  ;;  %v4641_v12 = vld [vmem:[#allocation2 + $0x40a] sm:$0xff]  ;;  %v5649_v31 = vmax.f32 %v5625_v47, %v5631_v5 }
 0x1f7   : > { %5622 = vst [vmem:[%s8456_s8 + $0x130] sm:$0x3] %v5621_v11  ;;  %3765 = vst [vmem:[#allocation2 + $0x420] sm:$0xff] %v2658_v46  ;;  %v7613_v59 = vpop.f32.mrb[134].mxu1  ;;  %v2661_v27 = vpop.f32.mrb[135].mxu0  ;;  %v5635_v48 = vld [vmem:[#allocation2 + $0x9ea] sm:$0xff]  ;;  %v4657_v54 = vmax.f32 %v9189_v28, %v9191_v43 }
 0x1f8   : > { %3953 = vst [vmem:[#allocation2 + $0xa00] sm:$0xff] %v3410_v25  ;;  %3768 = vst [vmem:[#allocation2 + $0x438] sm:$0xff] %v7425_v4  ;;  %v3413_v50 = vpop.f32.mrb[135].mxu1  ;;  %v4642_v32 = vld [vmem:[#allocation2 + $0x412] sm:$0xff]  ;;  %v9214_v63 = vld [vmem:[#allocation2 + $0x403] sm:$0x7f] }
 0x1f9   : > { %3956 = vst [vmem:[#allocation2 + $0xa18] sm:$0xff] %v7613_v59  ;;  %3766 = vst [vmem:[#allocation2 + $0x428] sm:$0xff] %v2661_v27  ;;  %v5636_v23 = vld [vmem:[#allocation2 + $0x9f2] sm:$0xff]  ;;  %vm4963_vm8 = vsmask.f32 4368 }
 0x1fa   : > { %3954 = vst [vmem:[#allocation2 + $0xa08] sm:$0xff] %v3413_v50  ;;  %v9219_v17 = vld [vmem:[#allocation2 + $0x3d4] sm:$0x7f]  ;;  %v9221_v30 = vld [vmem:[#allocation2 + $0x9ac] sm:$0xff]  ;;  %vm9482_vm3 = vmor %vm4886_vm4, %vm4963_vm8 }
 0x1fc   : > { %v7428_v57 = vpop.f32.mrb[136].mxu0 }
 0x1fd   : > { %3771 = vst [vmem:[#allocation2 + $0x450] sm:$0xff] %v7428_v57  ;;  %v7616_v24 = vpop.f32.mrb[136].mxu1  ;;  %v2674_v37 = vpop.f32.mrb[137].mxu0 }
 0x1fe   : > { %3959 = vst [vmem:[#allocation2 + $0xa30] sm:$0xff] %v7616_v24  ;;  %3769 = vst [vmem:[#allocation2 + $0x440] sm:$0xff] %v2674_v37  ;;  %v3426_v40 = vpop.f32.mrb[137].mxu1  ;;  %v7429_v61 = vpop.f32.mrb[138].mxu0  ;;  %v4643_v36 = vld [vmem:[#allocation2 + $0x41a] sm:$0xff] }
 0x1ff   : > { %3957 = vst [vmem:[#allocation2 + $0xa20] sm:$0xff] %v3426_v40  ;;  %3772 = vst [vmem:[#allocation2 + $0x458] sm:$0xff] %v7429_v61  ;;  %v7617_v6 = vpop.f32.mrb[138].mxu1  ;;  %v2677_v10 = vpop.f32.mrb[139].mxu0  ;;  %v5637_v25 = vld [vmem:[#allocation2 + $0x9fa] sm:$0xff] }
 0x200   : > { %3960 = vst [vmem:[#allocation2 + $0xa38] sm:$0xff] %v7617_v6  ;;  %3770 = vst [vmem:[#allocation2 + $0x448] sm:$0xff] %v2677_v10  ;;  %v3429_v19 = vpop.f32.mrb[139].mxu1  ;;  %v4644_v58 = vld [vmem:[#allocation2 + $0x422] sm:$0xff] }
 0x201   : > { %3958 = vst [vmem:[#allocation2 + $0xa28] sm:$0xff] %v3429_v19  ;;  %v5638_v38 = vld [vmem:[#allocation2 + $0xa02] sm:$0xff] }
 0x202   : > { %v9212_v19 = vld [vmem:[#allocation2 + $0x9db] sm:$0xff] }
 0x204   : > { %v9193_v35 = vpop.f32.mrb[140].mxu0 }
 0x205   : > { %v4647_v60 = vld [vmem:[#allocation2 + $0x439] sm:$0xff]  ;;  %v9198_v18 = vpop.f32.mrb[140].mxu1  ;;  %v2690_v56 = vpop.f32.mrb[141].mxu0 }
 0x206   : > { %v4659_v41 = vmax.f32 %v4641_v12, %v4647_v60  ;;  %v5641_v14 = vld [vmem:[#allocation2 + $0xa19] sm:$0xff]  ;;  %v4650_v51 = vld [vmem:[#allocation2 + $0x451] sm:$0xff]  ;;  %3773 = vst [vmem:[#allocation2 + $0x460] sm:$0xff] %v2690_v56  ;;  %v3442_v49 = vpop.f32.mrb[141].mxu1  ;;  %v9202_v33 = vpop.f32.mrb[142].mxu0  ;;  %v5651_v12 = vmax.f32 %v9221_v30, %v9212_v19 }
 0x207   : > { %v5653_v29 = vmax.f32 %v5635_v48, %v5641_v14  ;;  %v4662_v3 = vmax.f32 %v4644_v58, %v4650_v51  ;;  %v5644_v7 = vld [vmem:[#allocation2 + $0xa31] sm:$0xff]  ;;  %v4648_v1 = vld [vmem:[#allocation2 + $0x441] sm:$0xff]  ;;  %v4649_v11 = vld [vmem:[#allocation2 + $0x449] sm:$0xff]  ;;  %3961 = vst [vmem:[#allocation2 + $0xa40] sm:$0xff] %v3442_v49  ;;  %v9206_v22 = vpop.f32.mrb[142].mxu1  ;;  %v9208_v46 = vpop.f32.mrb[143].mxu0  ;;  %v4658_v48 = vmax.f32 %v9219_v17, %v9214_v63 }
 0x208   : > { %v4665_v4 = vmax.f32 %v4653_v62, %v4659_v41  ;;  %v5656_v59 = vmax.f32 %v5638_v38, %v5644_v7  ;;  %v4660_v27 = vmax.f32 %v4642_v32, %v4648_v1  ;;  %v4661_v50 = vmax.f32 %v4643_v36, %v4649_v11  ;;  %v5642_v57 = vld [vmem:[#allocation2 + $0xa21] sm:$0xff]  ;;  %v5643_v24 = vld [vmem:[#allocation2 + $0xa29] sm:$0xff]  ;;  %v9210_v37 = vpop.f32.mrb[143].mxu1 }
 0x209   : > { %v5659_v40 = vmax.f32 %v5647_v26, %v5653_v29  ;;  %v4668_v61 = vmax.f32 %v4656_v0, %v4662_v3  ;;  %v5654_v6 = vmax.f32 %v5636_v23, %v5642_v57  ;;  %v5655_v10 = vmax.f32 %v5637_v25, %v5643_v24  ;;  %v9245_v41 = vld [vmem:[#allocation2 + $0x9e3] sm:$0x7f] }
 0x20a   : > { %v4671_v39 = vadd.f32 %v8980_v16, %v4665_v4  ;;  %v5662_v34 = vmax.f32 %v5650_v2, %v5656_v59  ;;  %v4666_v45 = vmax.f32 %v4654_v42, %v4660_v27  ;;  %v4667_v13 = vmax.f32 %v4655_v55, %v4661_v50  ;;  %v9236_v55 = vld [vmem:[%s9733_s2] ss:$0 sm:$0xff]  ;;  %v9251_v59 = vld [vmem:[#allocation2 + $0x9b4] sm:$0x7f] }
 0x20b   : > { %v5665_v53 = vadd.f32 %v8980_v16, %v5659_v40  ;;  %v4674_v21 = vadd.f32 %v8980_v16, %v4668_v61  ;;  %v5660_v20 = vmax.f32 %v5648_v52, %v5654_v6  ;;  %v5661_v9 = vmax.f32 %v5649_v31, %v5655_v10  ;;  %v4772_v61 = vld [vmem:[%s8456_s8 + $0x74] sm:$0xe] }
 0x20c   : > { %v4677_v44 = vmax.f32 %v4671_v39, 0.0  ;;  %v5668_v8 = vadd.f32 %v8980_v16, %v5662_v34  ;;  %v4672_v15 = vadd.f32 %v8980_v16, %v4666_v45  ;;  %v4673_v5 = vadd.f32 %v8980_v16, %v4667_v13  ;;  %v7436_v47 = vpop.f32.mrb[144].mxu0  ;;  %v5639_v40 = vld [vmem:[#allocation2 + $0xa0a] sm:$0xff] }
 0x20d   : > { %v5671_v62 = vmax.f32 %v5665_v53, 0.0  ;;  %v4680_v26 = vmax.f32 %v4674_v21, 0.0  ;;  %3779 = vst [vmem:[#allocation2 + $0x490] sm:$0xff] %v7436_v47  ;;  %v7624_v0 = vpop.f32.mrb[144].mxu1  ;;  %v9231_v58 = vadd.f32 %v8980_v16, %v5660_v20  ;;  %v9239_v52 = vadd.f32 %v9236_v55, %v5661_v9  ;;  %v9241_v23 = vpop.f32.mrb[145].mxu0 }
 0x20e   : > { %v7004_v2 = vpack.c.bf16 %v4677_v44, %v4677_v44  ;;  %v5674_v32 = vmax.f32 %v5668_v8, 0.0  ;;  %v4678_v36 = vmax.f32 %v4672_v15, 0.0  ;;  %3967 = vst [vmem:[#allocation2 + $0xa70] sm:$0xff] %v7624_v0  ;;  %v4679_v42 = vmax.f32 %v4673_v5, 0.0  ;;  %v9243_v38 = vpop.f32.mrb[145].mxu1  ;;  %v7437_v31 = vpop.f32.mrb[146].mxu0 }
 0x20f   : > { %v7052_v60 = vpack.c.bf16 %v5671_v62, %v5671_v62  ;;  %v7007_v56 = vpack.c.bf16 %v4680_v26, %v4680_v26  ;;  %v7625_v29 = vpop.f32.mrb[146].mxu1  ;;  %3780 = vst [vmem:[#allocation2 + $0x498] sm:$0xff] %v7437_v31  ;;  %v9247_v25 = vpop.f32.mrb[147].mxu0  ;;  %v5652_v45 = vmax.f32 %v9251_v59, %v9245_v41  ;;  %v5761_v53 = vld [vmem:[%s8456_s8 + $0x130] sm:$0xe]  ;;  %v5672_v20 = vmax.f32 %v9231_v58, 0.0 }
 0x210   : > { %v4704_v16 = vshrl.u32 %v7004_v2, 16  ;;  %v4707_v14 = vshll.u32 %v7004_v2, 16  ;;  %v7055_v51 = vpack.c.bf16 %v5674_v32, %v5674_v32  ;;  %v7005_v49 = vpack.c.bf16 %v4678_v36, %v4678_v36  ;;  %3968 = vst [vmem:[#allocation2 + $0xa78] sm:$0xff] %v7625_v29  ;;  %v9249_v4 = vpop.f32.mrb[147].mxu1  ;;  %v9264_v9 = vld [vmem:[#allocation2 + $0x461] sm:$0x7f] }
 0x211   : > { %v5696_v3 = vshrl.u32 %v7052_v60, 16  ;;  %v5699_v7 = vshll.u32 %v7052_v60, 16  ;;  %v4733_v1 = vshrl.u32 %v7007_v56, 16  ;;  %v4736_v11 = vshll.u32 %v7007_v56, 16  ;;  %v4651_v62 = vld [vmem:[#allocation2 + $0x459] sm:$0xff] }
 0x212   : > { %v4706_v27 = vrot.slane %v4704_v16, 6  ;;  %v4709_v50 = vrot.slane %v4707_v14, 7  ;;  %v5725_v57 = vshrl.u32 %v7055_v51, 16  ;;  %v5728_v24 = vshll.u32 %v7055_v51, 16  ;;  %v4646_v2 = vld [vmem:[#allocation2 + $0x432] sm:$0x7f] }
 0x213   : > { %v5698_v6 = vrot.slane %v5696_v3, 6  ;;  %v5701_v10 = vrot.slane %v5699_v7, 7  ;;  %v4735_v39 = vrot.slane %v4733_v1, 6  ;;  %v4738_v34 = vrot.slane %v4736_v11, 7  ;;  %v9275_v56 = vld [vmem:[#allocation2 + $0xa39] sm:$0xff]  ;;  %v4645_v7 = vld [vmem:[#allocation2 + $0x42a] sm:$0xff] }
 0x214   : > { %v4710_v13 = vor.u32 %v4709_v50, %v4706_v27  ;;  %v7006_v21 = vpack.c.bf16 %v4679_v42, %v4679_v42  ;;  %v7440_v44 = vpop.f32.mrb[148].mxu0  ;;  %v4713_v15 = vshrl.u32 %v7005_v49, 16  ;;  %v4716_v5 = vshll.u32 %v7005_v49, 16  ;;  %v5646_v31 = vld [vmem:[#allocation2 + $0xa41] sm:$0x7f] }
 0x215   : > { %v9266_v8 = vor.u32 %v5701_v10, %v5698_v6  ;;  %v5673_v47 = vmax.f32 %v9239_v52, 0.0  ;;  %3783 = vst [vmem:[#allocation2 + $0x4b0] sm:$0xff] %v7440_v44  ;;  %v7628_v26 = vpop.f32.mrb[148].mxu1  ;;  %v2722_v0 = vpop.f32.mrb[149].mxu0  ;;  %v9271_v36 = vrot.slane %v5725_v57, 6  ;;  %v9273_v58 = vrot.slane %v5728_v24, 7 }
 0x216   : > { %v4773_v32 = vsel %vm9255_vm14, %v4710_v13, %v4772_v61  ;;  %v4723_v60 = vshrl.u32 %v7006_v21, 16  ;;  %3971 = vst [vmem:[#allocation2 + $0xa90] sm:$0xff] %v7628_v26  ;;  %3781 = vst [vmem:[#allocation2 + $0x4a0] sm:$0xff] %v2722_v0  ;;  %v3474_v42 = vpop.f32.mrb[149].mxu1  ;;  %v7441_v52 = vpop.f32.mrb[150].mxu0  ;;  %v4711_v16 = vrot.slane %v4710_v13, 4  ;;  %v9281_v51 = vor.u32 %v4738_v34, %v4735_v39 }
 0x217   : > { %4774 = vst [vmem:[%s8456_s8 + $0x74] sm:$0xe] %v4773_v32  ;;  %v5762_v14 = vsel %vm9255_vm14, %v9266_v8, %v5761_v53  ;;  %v4715_v49 = vrot.slane %v4713_v15, 6  ;;  %3969 = vst [vmem:[#allocation2 + $0xa80] sm:$0xff] %v3474_v42  ;;  %v7629_v29 = vpop.f32.mrb[150].mxu1  ;;  %v2725_v3 = vpop.f32.mrb[151].mxu0  ;;  %v7053_v61 = vpack.c.bf16 %v5672_v20, %v5672_v20  ;;  %v7054_v6 = vpack.c.bf16 %v5673_v47, %v5673_v47 }
 0x218   : > { %3784 = vst [vmem:[#allocation2 + $0x4b8] sm:$0xff] %v7441_v52  ;;  %v5703_v1 = vrot.slane %v9266_v8, 4  ;;  %5763 = vst [vmem:[%s8456_s8 + $0x130] sm:$0xe] %v5762_v14  ;;  %v4718_v11 = vrot.slane %v4716_v5, 7  ;;  %v4725_v27 = vrot.slane %v4723_v60, 6  ;;  %v4663_v10 = vmax.f32 %v4645_v7, %v4651_v62 }
 0x219   : > { %v4726_v50 = vshll.u32 %v7006_v21, 16  ;;  %3972 = vst [vmem:[#allocation2 + $0xa98] sm:$0xff] %v7629_v29  ;;  %3782 = vst [vmem:[#allocation2 + $0x4a8] sm:$0xff] %v2725_v3  ;;  %v5640_v24 = vld [vmem:[#allocation2 + $0xa12] sm:$0x7f]  ;;  %v4664_v39 = vmax.f32 %v4646_v2, %v9264_v9  ;;  %v3477_v34 = vpop.f32.mrb[151].mxu1  ;;  %v5657_v21 = vmax.f32 %v5639_v40, %v9275_v56 }
 0x21a   : > { %v4719_v13 = vor.u32 %v4718_v11, %v4715_v49  ;;  %v5658_v44 = vmax.f32 %v5640_v24, %v5646_v31  ;;  %3970 = vst [vmem:[#allocation2 + $0xa88] sm:$0xff] %v3477_v34  ;;  %v5705_v8 = vshrl.u32 %v7053_v61, 16  ;;  %v5708_v15 = vshll.u32 %v7053_v61, 16 }
 0x21b   : > { %v4728_v53 = vrot.slane %v4726_v50, 7  ;;  %v5715_v5 = vshrl.u32 %v7054_v6, 16  ;;  %v5718_v26 = vshll.u32 %v7054_v6, 16  ;;  %v4669_v9 = vmax.f32 %v4657_v54, %v4663_v10 }
 0x21c   : > { %v4720_v0 = vsel %vm9287_vm15, %v4711_v16, %v4719_v13  ;;  %v4721_v20 = vrot.slane %v4719_v13, 4  ;;  %v7444_v62 = vpop.f32.mrb[152].mxu0  ;;  %v5707_v2 = vrot.slane %v5705_v8, 6  ;;  %v5710_v32 = vrot.slane %v5708_v15, 7 }
 0x21d   : > { %v4729_v47 = vor.u32 %v4728_v53, %v4725_v27  ;;  %4775 = vst [vmem:[%s8456_s8 + $0x78] sm:$0xf] %v4720_v0  ;;  %v5717_v60 = vrot.slane %v5715_v5, 6  ;;  %v5720_v56 = vrot.slane %v5718_v26, 7  ;;  %3787 = vst [vmem:[#allocation2 + $0x4d0] sm:$0xff] %v7444_v62  ;;  %v7632_v42 = vpop.f32.mrb[152].mxu1  ;;  %v4670_v16 = vmax.f32 %v4658_v48, %v4664_v39 }
 0x21e   : > { %v4675_v28 = vadd.f32 %v9236_v55, %v4669_v9  ;;  %3975 = vst [vmem:[#allocation2 + $0xab0] sm:$0xff] %v7632_v42  ;;  %v2738_v43 = vpop.f32.mrb[153].mxu0  ;;  %v3490_v54 = vpop.f32.mrb[153].mxu1  ;;  %v5711_v49 = vor.u32 %v5710_v32, %v5707_v2  ;;  %v5663_v29 = vmax.f32 %v5651_v12, %v5657_v21  ;;  %v5664_v3 = vmax.f32 %v5652_v45, %v5658_v44 }
 0x21f   : > { %v4730_v52 = vsel %vm9287_vm15, %v4721_v20, %v4729_v47  ;;  %v4731_v14 = vrot.slane %v4729_v47, 4  ;;  %v5721_v31 = vor.u32 %v5720_v56, %v5717_v60  ;;  %3785 = vst [vmem:[#allocation2 + $0x4c0] sm:$0xff] %v2738_v43  ;;  %3973 = vst [vmem:[#allocation2 + $0xaa0] sm:$0xff] %v3490_v54  ;;  %v7445_v63 = vpop.f32.mrb[154].mxu0  ;;  %v7633_v17 = vpop.f32.mrb[154].mxu1  ;;  %v9314_v48 = vor.u32 %v9273_v58, %v9271_v36 }
 0x220   : > { %4776 = vst [vmem:[%s8456_s8 + $0x7c] sm:$0xf] %v4730_v52  ;;  %v4676_v19 = vadd.f32 %v9236_v55, %v4670_v16  ;;  %v4681_v30 = vmax.f32 %v4675_v28, 0.0  ;;  %3788 = vst [vmem:[#allocation2 + $0x4d8] sm:$0xff] %v7445_v63  ;;  %v2741_v12 = vpop.f32.mrb[155].mxu0  ;;  %v3493_v41 = vpop.f32.mrb[155].mxu1  ;;  %v5712_v59 = vsel %vm9287_vm15, %v5703_v1, %v5711_v49  ;;  %v5669_v58 = vadd.f32 %v9236_v55, %v5663_v29 }
 0x221   : > { %v4740_v7 = vsel %vm9287_vm15, %v4731_v14, %v9281_v51  ;;  %3976 = vst [vmem:[#allocation2 + $0xab8] sm:$0xff] %v7633_v17  ;;  %v5713_v45 = vrot.slane %v5711_v49, 4  ;;  %v5723_v36 = vrot.slane %v5721_v31, 4  ;;  %3786 = vst [vmem:[#allocation2 + $0x4c8] sm:$0xff] %v2741_v12  ;;  %v5670_v50 = vadd.f32 %v9236_v55, %v5664_v3 }
 0x222   : > { %4777 = vst [vmem:[%s8456_s8 + $0x80] sm:$0xf] %v4740_v7  ;;  %3974 = vst [vmem:[#allocation2 + $0xaa8] sm:$0xff] %v3493_v41  ;;  %v4682_v11 = vmax.f32 %v4676_v19, 0.0  ;;  %v7008_v27 = vpack.c.bf16 %v4681_v30, %v4681_v30  ;;  %v5675_v61 = vmax.f32 %v5669_v58, 0.0  ;;  %v4741_v47 = vrot.slane %v9281_v51, 4 }
 0x223   : > { %5764 = vst [vmem:[%s8456_s8 + $0x134] sm:$0xf] %v5712_v59  ;;  %v5722_v24 = vsel %vm9287_vm15, %v5713_v45, %v5721_v31  ;;  %v5732_v40 = vsel %vm9287_vm15, %v5723_v36, %v9314_v48  ;;  %v5676_v39 = vmax.f32 %v5670_v50, 0.0  ;;  %v5733_v49 = vrot.slane %v9314_v48, 4 }
 0x224   : > { %5765 = vst [vmem:[%s8456_s8 + $0x138] sm:$0xf] %v5722_v24  ;;  %5766 = vst [vmem:[%s8456_s8 + $0x13c] sm:$0xf] %v5732_v40  ;;  %v7009_v1 = vpack.c.bf16 %v4682_v11, %v4682_v11  ;;  %v4743_v6 = vshrl.u32 %v7008_v27, 16  ;;  %v4746_v10 = vshll.u32 %v7008_v27, 16  ;;  %v7056_v13 = vpack.c.bf16 %v5675_v61, %v5675_v61 }
 0x225   : > { %v7448_v34 = vpop.f32.mrb[156].mxu0  ;;  %v7636_v53 = vpop.f32.mrb[156].mxu1  ;;  %v7057_v26 = vpack.c.bf16 %v5676_v39, %v5676_v39  ;;  %v4787_v27 = vld [vmem:[#allocation2 + $0x497] sm:$0xff]  ;;  %v4788_v61 = vld [vmem:[#allocation2 + $0x49f] sm:$0xff] }
 0x226   : > { %3791 = vst [vmem:[#allocation2 + $0x4f0] sm:$0xff] %v7448_v34  ;;  %v2754_v21 = vpop.f32.mrb[157].mxu0  ;;  %v4745_v44 = vrot.slane %v4743_v6, 6  ;;  %v4748_v8 = vrot.slane %v4746_v10, 7  ;;  %v4753_v15 = vshrl.u32 %v7009_v1, 16  ;;  %v4756_v5 = vshll.u32 %v7009_v1, 16 }
 0x227   : > { %3979 = vst [vmem:[#allocation2 + $0xad0] sm:$0xff] %v7636_v53  ;;  %3789 = vst [vmem:[#allocation2 + $0x4e0] sm:$0xff] %v2754_v21  ;;  %v5735_v0 = vshrl.u32 %v7056_v13, 16  ;;  %v5738_v20 = vshll.u32 %v7056_v13, 16  ;;  %v3506_v32 = vpop.f32.mrb[157].mxu1  ;;  %v5745_v42 = vshrl.u32 %v7057_v26, 16  ;;  %v4805_v57 = vmax.f32 %v9208_v46, %v4787_v27 }
 0x228   : > { %v4749_v9 = vor.u32 %v4748_v8, %v4745_v44  ;;  %v4755_v62 = vrot.slane %v4753_v15, 6  ;;  %v4758_v2 = vrot.slane %v4756_v5, 7  ;;  %v5748_v52 = vshll.u32 %v7057_v26, 16  ;;  %3977 = vst [vmem:[#allocation2 + $0xac0] sm:$0xff] %v3506_v32  ;;  %v7449_v14 = vpop.f32.mrb[158].mxu0  ;;  %v7637_v54 = vpop.f32.mrb[158].mxu1 }
 0x229   : > { %v5737_v60 = vrot.slane %v5735_v0, 6  ;;  %v5740_v56 = vrot.slane %v5738_v20, 7  ;;  %3792 = vst [vmem:[#allocation2 + $0x4f8] sm:$0xff] %v7449_v14  ;;  %v2757_v51 = vpop.f32.mrb[159].mxu0  ;;  %v5747_v29 = vrot.slane %v5745_v42, 6  ;;  %3980 = vst [vmem:[#allocation2 + $0xad8] sm:$0xff] %v7637_v54 }
 0x22a   : > { %v4750_v16 = vsel %vm9287_vm15, %v4741_v47, %v4749_v9  ;;  %v4751_v28 = vrot.slane %v4749_v9, 4  ;;  %v4759_v43 = vor.u32 %v4758_v2, %v4755_v62  ;;  %v5750_v3 = vrot.slane %v5748_v52, 7  ;;  %3790 = vst [vmem:[#allocation2 + $0x4e8] sm:$0xff] %v2757_v51  ;;  %v3509_v63 = vpop.f32.mrb[159].mxu1  ;;  %v5776_v40 = vld [vmem:[#allocation2 + $0xa77] sm:$0xff]  ;;  %v5777_v6 = vld [vmem:[#allocation2 + $0xa7f] sm:$0xff] }
 0x22b   : > { %4778 = vst [vmem:[%s8456_s8 + $0x84] sm:$0xf] %v4750_v16  ;;  %v5741_v31 = vor.u32 %v5740_v56, %v5737_v60  ;;  %3978 = vst [vmem:[#allocation2 + $0xac8] sm:$0xff] %v3509_v63  ;;  %v4793_v10 = vld [vmem:[#allocation2 + $0x4c6] sm:$0xff]  ;;  %v4791_v34 = vld [vmem:[#allocation2 + $0x4b7] sm:$0xff]  ;;  %v5794_v44 = vmax.f32 %v9210_v37, %v5776_v40  ;;  %v4806_v9 = vmax.f32 %v9193_v35, %v4788_v61 }
 0x22c   : > { %v4760_v17 = vsel %vm9287_vm15, %v4751_v28, %v4759_v43  ;;  %v4761_v7 = vrot.slane %v4759_v43, 4  ;;  %v7452_v19 = vpop.f32.mrb[160].mxu0  ;;  %v5751_v12 = vor.u32 %v5750_v3, %v5747_v29  ;;  %v5782_v13 = vld [vmem:[#allocation2 + $0xaa6] sm:$0xff]  ;;  %v5780_v8 = vld [vmem:[#allocation2 + $0xa97] sm:$0xff]  ;;  %v4790_v26 = vld [vmem:[#allocation2 + $0x4af] sm:$0xff]  ;;  %v5795_v62 = vmax.f32 %v9198_v18, %v5777_v6 }
 0x22d   : > { %4779 = vst [vmem:[%s8456_s8 + $0x88] sm:$0xf] %v4760_v17  ;;  %v5742_v30 = vsel %vm9287_vm15, %v5733_v49, %v5741_v31  ;;  %v5743_v48 = vrot.slane %v5741_v31, 4  ;;  %3795 = vst [vmem:[#allocation2 + $0x510] sm:$0xff] %v7452_v19  ;;  %v7640_v41 = vpop.f32.mrb[160].mxu1  ;;  %v2770_v59 = vpop.f32.mrb[161].mxu0  ;;  %v4809_v46 = vmax.f32 %v9247_v25, %v4791_v34  ;;  %v5798_v14 = vmax.f32 %v9249_v4, %v5780_v8 }
 0x22e   : > { %4780 = vst [vmem:[%s8456_s8 + $0x8c] sm:$0x1] %v4761_v7  ;;  %5767 = vst [vmem:[%s8456_s8 + $0x140] sm:$0xf] %v5742_v30  ;;  %v3522_v45 = vpop.f32.mrb[161].mxu1  ;;  %v7453_v36 = vpop.f32.mrb[162].mxu0  ;;  %v4808_v49 = vmax.f32 %v9241_v23, %v4790_v26 }
 0x22f   : > { %3983 = vst [vmem:[#allocation2 + $0xaf0] sm:$0xff] %v7640_v41  ;;  %3793 = vst [vmem:[#allocation2 + $0x500] sm:$0xff] %v2770_v59  ;;  %v5752_v58 = vsel %vm9287_vm15, %v5743_v48, %v5751_v12  ;;  %v5753_v11 = vrot.slane %v5751_v12, 4  ;;  %v7641_v50 = vpop.f32.mrb[162].mxu1  ;;  %v2773_v24 = vpop.f32.mrb[163].mxu0  ;;  %v4789_v15 = vld [vmem:[#allocation2 + $0x4a7] sm:$0xff] }
 0x230   : > { %3981 = vst [vmem:[#allocation2 + $0xae0] sm:$0xff] %v3522_v45  ;;  %3796 = vst [vmem:[#allocation2 + $0x518] sm:$0xff] %v7453_v36  ;;  %v3525_v1 = vpop.f32.mrb[163].mxu1  ;;  %v4799_v39 = vld [vmem:[#allocation2 + $0x4f5] sm:$0xff]  ;;  %v4807_v16 = vmax.f32 %v9202_v33, %v4789_v15  ;;  %v4796_v19 = vld [vmem:[#allocation2 + $0x4de] sm:$0xff] }
 0x231   : > { %5768 = vst [vmem:[%s8456_s8 + $0x144] sm:$0xf] %v5752_v58  ;;  %3984 = vst [vmem:[#allocation2 + $0xaf8] sm:$0xff] %v7641_v50  ;;  %v4811_v53 = vmax.f32 %v4793_v10, %v4799_v39  ;;  %v5788_v21 = vld [vmem:[#allocation2 + $0xad5] sm:$0xff]  ;;  %v4797_v56 = vld [vmem:[#allocation2 + $0x4e6] sm:$0xff] }
 0x232   : > { %3794 = vst [vmem:[#allocation2 + $0x508] sm:$0xff] %v2773_v24  ;;  %5769 = vst [vmem:[%s8456_s8 + $0x148] sm:$0x1] %v5753_v11  ;;  %v5800_v5 = vmax.f32 %v5782_v13, %v5788_v21  ;;  %v4794_v0 = vld [vmem:[#allocation2 + $0x4ce] sm:$0xff]  ;;  %v4795_v2 = vld [vmem:[#allocation2 + $0x4d6] sm:$0xff] }
 0x233   : > { %3982 = vst [vmem:[#allocation2 + $0xae8] sm:$0xff] %v3525_v1  ;;  %v4817_v20 = vmax.f32 %v4805_v57, %v4811_v53  ;;  %v5783_v32 = vld [vmem:[#allocation2 + $0xaae] sm:$0xff]  ;;  %v5786_v43 = vld [vmem:[#allocation2 + $0xac6] sm:$0xff] }
 0x234   : > { %v7456_v47 = vpop.f32.mrb[164].mxu0  ;;  %v5806_v60 = vmax.f32 %v5794_v44, %v5800_v5  ;;  %v9360_v40 = vld [vmem:[#allocation2 + $0xa87] sm:$0xff]  ;;  %v9364_v39 = vld [vmem:[#allocation2 + $0xa8f] sm:$0xff] }
 0x235   : > { %3799 = vst [vmem:[#allocation2 + $0x530] sm:$0xff] %v7456_v47  ;;  %v7644_v37 = vpop.f32.mrb[164].mxu1  ;;  %v2786_v52 = vpop.f32.mrb[165].mxu0  ;;  %v4823_v28 = vadd.f32 %v9236_v55, %v4817_v20 }
 0x236   : > { %v4800_v42 = vld [vmem:[#allocation2 + $0x4fd] sm:$0xff]  ;;  %3987 = vst [vmem:[#allocation2 + $0xb10] sm:$0xff] %v7644_v37  ;;  %3797 = vst [vmem:[#allocation2 + $0x520] sm:$0xff] %v2786_v52  ;;  %v3538_v25 = vpop.f32.mrb[165].mxu1  ;;  %v7457_v51 = vpop.f32.mrb[166].mxu0  ;;  %v5812_v31 = vadd.f32 %v9236_v55, %v5806_v60 }
 0x237   : > { %v4812_v35 = vmax.f32 %v4794_v0, %v4800_v42  ;;  %v5789_v54 = vld [vmem:[#allocation2 + $0xadd] sm:$0xff]  ;;  %v4803_v18 = vld [vmem:[#allocation2 + $0x515] sm:$0xff]  ;;  %3985 = vst [vmem:[#allocation2 + $0xb00] sm:$0xff] %v3538_v25  ;;  %3800 = vst [vmem:[#allocation2 + $0x538] sm:$0xff] %v7457_v51  ;;  %v7645_v33 = vpop.f32.mrb[166].mxu1  ;;  %v2789_v7 = vpop.f32.mrb[167].mxu0  ;;  %v5796_v0 = vmax.f32 %v9206_v22, %v9360_v40 }
 0x238   : > { %v5801_v29 = vmax.f32 %v5783_v32, %v5789_v54  ;;  %v4815_v3 = vmax.f32 %v4797_v56, %v4803_v18  ;;  %v5792_v63 = vld [vmem:[#allocation2 + $0xaf5] sm:$0xff]  ;;  %v4829_v30 = vmax.f32 %v4823_v28, 0.0  ;;  %3988 = vst [vmem:[#allocation2 + $0xb18] sm:$0xff] %v7645_v33  ;;  %3798 = vst [vmem:[#allocation2 + $0x528] sm:$0xff] %v2789_v7  ;;  %v3541_v59 = vpop.f32.mrb[167].mxu1  ;;  %v5818_v23 = vmax.f32 %v5812_v31, 0.0 }
 0x239   : > { %v4801_v4 = vld [vmem:[#allocation2 + $0x505] sm:$0xff]  ;;  %v4802_v17 = vld [vmem:[#allocation2 + $0x50d] sm:$0xff]  ;;  %v4818_v48 = vmax.f32 %v4806_v9, %v4812_v35  ;;  %v5804_v12 = vmax.f32 %v5786_v43, %v5792_v63  ;;  %3986 = vst [vmem:[#allocation2 + $0xb08] sm:$0xff] %v3541_v59  ;;  %v5784_v32 = vld [vmem:[#allocation2 + $0xab6] sm:$0xff] }
 0x23a   : > { %v4813_v41 = vmax.f32 %v4795_v2, %v4801_v4  ;;  %v5807_v45 = vmax.f32 %v5795_v62, %v5801_v29  ;;  %v4821_v36 = vmax.f32 %v4809_v46, %v4815_v3  ;;  %v4814_v58 = vmax.f32 %v4796_v19, %v4802_v17  ;;  %v5790_v5 = vld [vmem:[#allocation2 + $0xae5] sm:$0xff]  ;;  %v5791_v62 = vld [vmem:[#allocation2 + $0xaed] sm:$0xff] }
 0x23b   : > { %v7010_v11 = vpack.c.bf16 %v4829_v30, %v4829_v30  ;;  %v4824_v27 = vadd.f32 %v9236_v55, %v4818_v48  ;;  %v5810_v50 = vmax.f32 %v5798_v14, %v5804_v12  ;;  %v7058_v61 = vpack.c.bf16 %v5818_v23, %v5818_v23  ;;  %v9376_v2 = vld [vmem:[#allocation2 + $0x4bf] sm:$0x7f]  ;;  %v4786_v52 = vld [vmem:[#allocation2 + $0x490] sm:$0x7f] }
 0x23c   : > { %v4819_v24 = vmax.f32 %v4807_v16, %v4813_v41  ;;  %v5813_v1 = vadd.f32 %v9236_v55, %v5807_v45  ;;  %v4827_v6 = vadd.f32 %v9236_v55, %v4821_v36  ;;  %v4820_v10 = vmax.f32 %v4808_v49, %v4814_v58  ;;  %v7460_v53 = vpop.f32.mrb[168].mxu0  ;;  %v5775_v14 = vld [vmem:[#allocation2 + $0xa70] sm:$0x7f]  ;;  %v5781_v16 = vld [vmem:[#allocation2 + $0xa9f] sm:$0x7f] }
 0x23d   : > { %v4856_v57 = vrot.slane %v7010_v11, 7  ;;  %v4830_v34 = vmax.f32 %v4824_v27, 0.0  ;;  %v5842_v21 = vrot.slane %v7058_v61, 7  ;;  %3803 = vst [vmem:[#allocation2 + $0x550] sm:$0xff] %v7460_v53  ;;  %v7648_v26 = vpop.f32.mrb[168].mxu1  ;;  %v9372_v47 = vadd.f32 %v9236_v55, %v5810_v50  ;;  %v2802_v37 = vpop.f32.mrb[169].mxu0 }
 0x23e   : > { %v4825_v13 = vadd.f32 %v9236_v55, %v4819_v24  ;;  %v5819_v44 = vmax.f32 %v5813_v1, 0.0  ;;  %v4833_v8 = vmax.f32 %v4827_v6, 0.0  ;;  %v4826_v15 = vadd.f32 %v9236_v55, %v4820_v10  ;;  %3991 = vst [vmem:[#allocation2 + $0xb30] sm:$0xff] %v7648_v26  ;;  %v5785_v28 = vld [vmem:[#allocation2 + $0xabe] sm:$0xff]  ;;  %3801 = vst [vmem:[#allocation2 + $0x540] sm:$0xff] %v2802_v37  ;;  %v3554_v18 = vpop.f32.mrb[169].mxu1 }
 0x23f   : > { %4880 = vst [vmem:[%s8456_s8 + $0x8c] sm:$0xe] %v4856_v57  ;;  %v7011_v20 = vpack.c.bf16 %v4830_v34, %v4830_v34  ;;  %v5797_v46 = vmax.f32 %v9243_v38, %v9364_v39  ;;  %v4857_v60 = vrot.slane %v4856_v57, 4  ;;  %5866 = vst [vmem:[%s8456_s8 + $0x148] sm:$0xe] %v5842_v21  ;;  %v5802_v54 = vmax.f32 %v5784_v32, %v5790_v5  ;;  %v7461_v25 = vpop.f32.mrb[170].mxu0 }
 0x240   : > { %v4831_v9 = vmax.f32 %v4825_v13, 0.0  ;;  %v9385_v56 = vpack.c.bf16 %v5819_v44, %v5819_v44  ;;  %v4832_v42 = vmax.f32 %v4826_v15, 0.0  ;;  %v9387_v43 = vpack.c.bf16 %v4833_v8, %v4833_v8  ;;  %v4804_v3 = vld [vmem:[#allocation2 + $0x51d] sm:$0x7f]  ;;  %3989 = vst [vmem:[#allocation2 + $0xb20] sm:$0xff] %v3554_v18  ;;  %3804 = vst [vmem:[#allocation2 + $0x558] sm:$0xff] %v7461_v25 }
 0x241   : > { %v4858_v38 = vrot.slane %v7011_v20, 7  ;;  %v5843_v51 = vrot.slane %v5842_v21, 4  ;;  %v5803_v29 = vmax.f32 %v5785_v28, %v5791_v62  ;;  %v7649_v63 = vpop.f32.mrb[170].mxu1  ;;  %v2805_v4 = vpop.f32.mrb[171].mxu0  ;;  %v5822_v7 = vmax.f32 %v9372_v47, 0.0 }
 0x242   : > { %v7012_v35 = vpack.c.bf16 %v4831_v9, %v4831_v9  ;;  %v5844_v49 = vrot.slane %v9385_v56, 7  ;;  %v7013_v31 = vpack.c.bf16 %v4832_v42, %v4832_v42  ;;  %v5793_v30 = vld [vmem:[#allocation2 + $0xafd] sm:$0x7f]  ;;  %3992 = vst [vmem:[#allocation2 + $0xb38] sm:$0xff] %v7649_v63  ;;  %3802 = vst [vmem:[#allocation2 + $0x548] sm:$0xff] %v2805_v4  ;;  %v3557_v48 = vpop.f32.mrb[171].mxu1  ;;  %v4810_v12 = vmax.f32 %v4786_v52, %v9376_v2 }
 0x243   : > { %v4859_v17 = vsel %vm9381_vm2, %v4857_v60, %v4858_v38  ;;  %v4860_v33 = vrot.slane %v4858_v38, 4  ;;  %v5799_v41 = vmax.f32 %v5775_v14, %v5781_v16  ;;  %v4798_v59 = vld [vmem:[#allocation2 + $0x4ee] sm:$0x7f]  ;;  %3990 = vst [vmem:[#allocation2 + $0xb28] sm:$0xff] %v3557_v48  ;;  %v4867_v58 = vrot.slane %v9387_v43, 7 }
 0x244   : > { %v4861_v19 = vrot.slane %v7012_v35, 7  ;;  %4881 = vst [vmem:[%s8456_s8 + $0x90] sm:$0xf] %v4859_v17  ;;  %v5845_v23 = vsel %vm9381_vm2, %v5843_v51, %v5844_v49  ;;  %v4864_v45 = vrot.slane %v7013_v31, 7  ;;  %v5787_v36 = vld [vmem:[#allocation2 + $0xace] sm:$0x7f]  ;;  %v5808_v50 = vmax.f32 %v5796_v0, %v5802_v54 }
 0x245   : > { %5867 = vst [vmem:[%s8456_s8 + $0x14c] sm:$0xf] %v5845_v23  ;;  %v7464_v24 = vpop.f32.mrb[172].mxu0  ;;  %v5809_v61 = vmax.f32 %v5797_v46, %v5803_v29  ;;  %v4816_v1 = vmax.f32 %v4798_v59, %v4804_v3  ;;  %v5805_v6 = vmax.f32 %v5787_v36, %v5793_v30  ;;  %v7652_v10 = vpop.f32.mrb[172].mxu1  ;;  %v7062_v57 = vpack.c.bf16 %v5822_v7, %v5822_v7  ;;  %v5872_v59 = vld [vmem:[%s8456_s8 + $0x160] sm:$0x1] }
 0x246   : > { %v4862_v11 = vsel %vm9381_vm2, %v4860_v33, %v4861_v19  ;;  %v4863_v27 = vrot.slane %v4861_v19, 4  ;;  %v4866_v40 = vrot.slane %v4864_v45, 4  ;;  %3807 = vst [vmem:[#allocation2 + $0x570] sm:$0xff] %v7464_v24  ;;  %v2818_v39 = vpop.f32.mrb[173].mxu0  ;;  %v5814_v13 = vadd.f32 %v9236_v55, %v5808_v50  ;;  %3995 = vst [vmem:[#allocation2 + $0xb50] sm:$0xff] %v7652_v10  ;;  %v3570_v53 = vpop.f32.mrb[173].mxu1 }
 0x247   : > { %4882 = vst [vmem:[%s8456_s8 + $0x94] sm:$0xf] %v4862_v11  ;;  %3805 = vst [vmem:[#allocation2 + $0x560] sm:$0xff] %v2818_v39  ;;  %v7465_v21 = vpop.f32.mrb[174].mxu0  ;;  %v5815_v8 = vadd.f32 %v9236_v55, %v5809_v61  ;;  %v4822_v15 = vmax.f32 %v4810_v12, %v4816_v1  ;;  %v5811_v5 = vmax.f32 %v5799_v41, %v5805_v6  ;;  %v7653_v26 = vpop.f32.mrb[174].mxu1  ;;  %v5846_v2 = vrot.slane %v5844_v49, 4 }
 0x248   : > { %v4865_v34 = vsel %vm9381_vm2, %v4863_v27, %v4864_v45  ;;  %v4868_v44 = vsel %vm9381_vm2, %v4866_v40, %v4867_v58  ;;  %3993 = vst [vmem:[#allocation2 + $0xb40] sm:$0xff] %v3570_v53  ;;  %3808 = vst [vmem:[#allocation2 + $0x578] sm:$0xff] %v7465_v21  ;;  %v2821_v0 = vpop.f32.mrb[175].mxu0  ;;  %v5820_v20 = vmax.f32 %v5814_v13, 0.0  ;;  %v3573_v47 = vpop.f32.mrb[175].mxu1  ;;  %v5853_v60 = vrot.slane %v7062_v57, 7 }
 0x249   : > { %4883 = vst [vmem:[%s8456_s8 + $0x98] sm:$0xf] %v4865_v34  ;;  %4884 = vst [vmem:[%s8456_s8 + $0x9c] sm:$0xf] %v4868_v44  ;;  %v5821_v9 = vmax.f32 %v5815_v8, 0.0  ;;  %v4828_v62 = vadd.f32 %v9236_v55, %v4822_v15  ;;  %v5817_v46 = vadd.f32 %v9236_v55, %v5811_v5  ;;  %v4869_v54 = vrot.slane %v4867_v58, 4 }
 0x24a   : > { %3996 = vst [vmem:[#allocation2 + $0xb58] sm:$0xff] %v7653_v26  ;;  %3806 = vst [vmem:[#allocation2 + $0x568] sm:$0xff] %v2821_v0  ;;  %v7060_v32 = vpack.c.bf16 %v5820_v20, %v5820_v20  ;;  %v5855_v31 = vrot.slane %v5853_v60, 4  ;;  %v4888_v33 = vld [vmem:[%s8456_s8 + $0xa4] sm:$0x1]  ;;  %v4897_v6 = vld [vmem:[#allocation2 + $0x553] sm:$0xff] }
 0x24b   : > { %3994 = vst [vmem:[#allocation2 + $0xb48] sm:$0xff] %v3573_v47  ;;  %v7061_v56 = vpack.c.bf16 %v5821_v9, %v5821_v9  ;;  %v4834_v42 = vmax.f32 %v4828_v62, 0.0  ;;  %v5823_v37 = vmax.f32 %v5817_v46, 0.0  ;;  %v5881_v39 = vld [vmem:[#allocation2 + $0xb33] sm:$0xff]  ;;  %v4891_v13 = vld [vmem:[#allocation2 + $0x524] sm:$0xff] }
 0x24c   : > { %v5847_v52 = vrot.slane %v7060_v32, 7  ;;  %v7468_v14 = vpop.f32.mrb[176].mxu0  ;;  %v5875_v15 = vld [vmem:[#allocation2 + $0xb04] sm:$0xff]  ;;  %v4915_v5 = vmax.f32 %v4891_v13, %v4897_v6 }
 0x24d   : > { %v5850_v16 = vrot.slane %v7061_v56, 7  ;;  %v7015_v28 = vpack.c.bf16 %v4834_v42, %v4834_v42  ;;  %v7063_v38 = vpack.c.bf16 %v5823_v37, %v5823_v37  ;;  %3811 = vst [vmem:[#allocation2 + $0x590] sm:$0xff] %v7468_v14  ;;  %v7656_v43 = vpop.f32.mrb[176].mxu1  ;;  %v2834_v35 = vpop.f32.mrb[177].mxu0  ;;  %v5899_v62 = vmax.f32 %v5875_v15, %v5881_v39  ;;  %v5876_v56 = vld [vmem:[#allocation2 + $0xb0c] sm:$0xff]  ;;  %v4895_v42 = vld [vmem:[#allocation2 + $0x544] sm:$0xff] }
 0x24e   : > { %v5848_v18 = vsel %vm9381_vm2, %v5846_v2, %v5847_v52  ;;  %v5849_v25 = vrot.slane %v5847_v52, 4  ;;  %3999 = vst [vmem:[#allocation2 + $0xb70] sm:$0xff] %v7656_v43  ;;  %3809 = vst [vmem:[#allocation2 + $0x580] sm:$0xff] %v2834_v35  ;;  %v3586_v51 = vpop.f32.mrb[177].mxu1  ;;  %v7469_v49 = vpop.f32.mrb[178].mxu0  ;;  %v4898_v37 = vld [vmem:[#allocation2 + $0x55b] sm:$0xff] }
 0x24f   : > { %v5852_v29 = vrot.slane %v5850_v16, 4  ;;  %5868 = vst [vmem:[%s8456_s8 + $0x150] sm:$0xf] %v5848_v18  ;;  %v4870_v3 = vrot.slane %v7015_v28, 7  ;;  %v5856_v63 = vrot.slane %v7063_v38, 7  ;;  %3997 = vst [vmem:[#allocation2 + $0xb60] sm:$0xff] %v3586_v51 }
 0x250   : > { %3812 = vst [vmem:[#allocation2 + $0x598] sm:$0xff] %v7469_v49  ;;  %v5851_v4 = vsel %vm9381_vm2, %v5849_v25, %v5850_v16  ;;  %v7657_v7 = vpop.f32.mrb[178].mxu1  ;;  %v2837_v19 = vpop.f32.mrb[179].mxu0  ;;  %v5882_v52 = vld [vmem:[#allocation2 + $0xb3b] sm:$0xff]  ;;  %v4901_v14 = vld [vmem:[#allocation2 + $0x573] sm:$0xff]  ;;  %v5879_v38 = vld [vmem:[#allocation2 + $0xb24] sm:$0xff] }
 0x251   : > { %v5854_v30 = vsel %vm9381_vm2, %v5852_v29, %v5853_v60  ;;  %5869 = vst [vmem:[%s8456_s8 + $0x154] sm:$0xf] %v5851_v4  ;;  %v4871_v48 = vsel %vm9381_vm2, %v4869_v54, %v4870_v3  ;;  %v4872_v12 = vrot.slane %v4870_v3, 4  ;;  %v5857_v41 = vsel %vm9381_vm2, %v5855_v31, %v5856_v63  ;;  %4000 = vst [vmem:[#allocation2 + $0xb78] sm:$0xff] %v7657_v7  ;;  %v3589_v23 = vpop.f32.mrb[179].mxu1  ;;  %v4892_v60 = vld [vmem:[#allocation2 + $0x52c] sm:$0xff] }
 0x252   : > { %3810 = vst [vmem:[#allocation2 + $0x588] sm:$0xff] %v2837_v19  ;;  %5870 = vst [vmem:[%s8456_s8 + $0x158] sm:$0xf] %v5854_v30  ;;  %v5858_v45 = vrot.slane %v5856_v63, 4  ;;  %v4896_v28 = vld [vmem:[#allocation2 + $0x54c] sm:$0x7f]  ;;  %v4916_v29 = vmax.f32 %v4892_v60, %v4898_v37  ;;  %v5900_v3 = vmax.f32 %v5876_v56, %v5882_v52  ;;  %v4919_v63 = vmax.f32 %v4895_v42, %v4901_v14 }
 0x253   : > { %4885 = vst [vmem:[%s8456_s8 + $0xa0] sm:$0xf] %v4871_v48  ;;  %5871 = vst [vmem:[%s8456_s8 + $0x15c] sm:$0xf] %v5857_v41  ;;  %v4889_v36 = vsel %vm9419_vm5, %v4872_v12, %v4888_v33  ;;  %v5885_v43 = vld [vmem:[#allocation2 + $0xb53] sm:$0xff] }
 0x254   : > { %3998 = vst [vmem:[#allocation2 + $0xb68] sm:$0xff] %v3589_v23  ;;  %4890 = vst [vmem:[%s8456_s8 + $0xa4] sm:$0x1] %v4889_v36  ;;  %v5873_v58 = vsel %vm9419_vm5, %v5858_v45, %v5872_v59  ;;  %v7472_v11 = vpop.f32.mrb[180].mxu0  ;;  %v5880_v31 = vld [vmem:[#allocation2 + $0xb2c] sm:$0x7f]  ;;  %v5903_v19 = vmax.f32 %v5879_v38, %v5885_v43 }
 0x255   : > { %5874 = vst [vmem:[%s8456_s8 + $0x160] sm:$0x1] %v5873_v58  ;;  %3815 = vst [vmem:[#allocation2 + $0x5b0] sm:$0xff] %v7472_v11  ;;  %v7660_v22 = vpop.f32.mrb[180].mxu1  ;;  %v2850_v27 = vpop.f32.mrb[181].mxu0 }
 0x256   : > { %4003 = vst [vmem:[#allocation2 + $0xb90] sm:$0xff] %v7660_v22  ;;  %3813 = vst [vmem:[#allocation2 + $0x5a0] sm:$0xff] %v2850_v27  ;;  %v3602_v50 = vpop.f32.mrb[181].mxu1  ;;  %v7473_v24 = vpop.f32.mrb[182].mxu0  ;;  %v4902_v35 = vld [vmem:[#allocation2 + $0x57b] sm:$0x7f] }
 0x257   : > { %4001 = vst [vmem:[#allocation2 + $0xb80] sm:$0xff] %v3602_v50  ;;  %3816 = vst [vmem:[#allocation2 + $0x5b8] sm:$0xff] %v7473_v24  ;;  %v7661_v40 = vpop.f32.mrb[182].mxu1  ;;  %v2853_v61 = vpop.f32.mrb[183].mxu0  ;;  %v5886_v18 = vld [vmem:[#allocation2 + $0xb5b] sm:$0x7f]  ;;  %v4920_v30 = vmax.f32 %v4896_v28, %v4902_v35 }
 0x258   : > { %4004 = vst [vmem:[#allocation2 + $0xb98] sm:$0xff] %v7661_v40  ;;  %3814 = vst [vmem:[#allocation2 + $0x5a8] sm:$0xff] %v2853_v61  ;;  %v3605_v1 = vpop.f32.mrb[183].mxu1  ;;  %v5904_v50 = vmax.f32 %v5880_v31, %v5886_v18 }
 0x259   : > { %4002 = vst [vmem:[#allocation2 + $0xb88] sm:$0xff] %v3605_v1  ;;  %v4903_v53 = vld [vmem:[#allocation2 + $0x582] sm:$0xff]  ;;  %v4904_v25 = vld [vmem:[#allocation2 + $0x58a] sm:$0xff] }
 0x25b   : > { %v5887_v26 = vld [vmem:[#allocation2 + $0xb62] sm:$0xff]  ;;  %v5888_v51 = vld [vmem:[#allocation2 + $0xb6a] sm:$0xff] }
 0x25c   : > { %v7476_v10 = vpop.f32.mrb[184].mxu0  ;;  %v5025_v56 = vld [vmem:[%s8456_s8 + $0xa4] sm:$0xf]  ;;  %v6005_v38 = vld [vmem:[%s8456_s8 + $0x160] sm:$0xf] }
 0x25d   : > { %3819 = vst [vmem:[#allocation2 + $0x5d0] sm:$0xff] %v7476_v10  ;;  %v7664_v57 = vpop.f32.mrb[184].mxu1  ;;  %v2866_v34 = vpop.f32.mrb[185].mxu0 }
 0x25e   : > { %v4909_v21 = vld [vmem:[#allocation2 + $0x5b1] sm:$0xff]  ;;  %4007 = vst [vmem:[#allocation2 + $0xbb0] sm:$0xff] %v7664_v57  ;;  %3817 = vst [vmem:[#allocation2 + $0x5c0] sm:$0xff] %v2866_v34  ;;  %v3618_v44 = vpop.f32.mrb[185].mxu1  ;;  %v7477_v8 = vpop.f32.mrb[186].mxu0 }
 0x25f   : > { %v4921_v0 = vmax.f32 %v4903_v53, %v4909_v21  ;;  %v5893_v20 = vld [vmem:[#allocation2 + $0xb91] sm:$0xff]  ;;  %4005 = vst [vmem:[#allocation2 + $0xba0] sm:$0xff] %v3618_v44  ;;  %3820 = vst [vmem:[#allocation2 + $0x5d8] sm:$0xff] %v7477_v8  ;;  %v7665_v47 = vpop.f32.mrb[186].mxu1  ;;  %v2869_v9 = vpop.f32.mrb[187].mxu0  ;;  %v4907_v17 = vld [vmem:[#allocation2 + $0x5a2] sm:$0xff] }
 0x260   : > { %v5905_v46 = vmax.f32 %v5887_v26, %v5893_v20  ;;  %4008 = vst [vmem:[#allocation2 + $0xbb8] sm:$0xff] %v7665_v47  ;;  %3818 = vst [vmem:[#allocation2 + $0x5c8] sm:$0xff] %v2869_v9  ;;  %v3621_v2 = vpop.f32.mrb[187].mxu1  ;;  %v4908_v33 = vld [vmem:[#allocation2 + $0x5aa] sm:$0x7f]  ;;  %v5891_v36 = vld [vmem:[#allocation2 + $0xb82] sm:$0xff] }
 0x261   : > { %v4927_v32 = vmax.f32 %v4915_v5, %v4921_v0  ;;  %4006 = vst [vmem:[#allocation2 + $0xba8] sm:$0xff] %v3621_v2  ;;  %v5892_v40 = vld [vmem:[#allocation2 + $0xb8a] sm:$0x7f]  ;;  %v9446_v53 = vld [vmem:[%s9733_s2] ss:$0 sm:$0xff] }
 0x262   : > { %v5911_v16 = vmax.f32 %v5899_v62, %v5905_v46  ;;  %v4899_v46 = vld [vmem:[#allocation2 + $0x563] sm:$0xff] }
 0x263   : > { %v4933_v54 = vadd.f32 %v9236_v55, %v4927_v32 }
 0x264   : > { %v5917_v49 = vadd.f32 %v9236_v55, %v5911_v16  ;;  %v4893_v16 = vld [vmem:[#allocation2 + $0x534] sm:$0xff] }
 0x265   : > { %v4939_v4 = vmax.f32 %v4933_v54, 0.0  ;;  %v4910_v7 = vld [vmem:[#allocation2 + $0x5b9] sm:$0xff]  ;;  %v4917_v18 = vmax.f32 %v4893_v16, %v4899_v46 }
 0x266   : > { %v5923_v48 = vmax.f32 %v5917_v49, 0.0  ;;  %v4922_v12 = vmax.f32 %v4904_v25, %v4910_v7  ;;  %v5894_v41 = vld [vmem:[#allocation2 + $0xb99] sm:$0xff]  ;;  %v4913_v59 = vld [vmem:[#allocation2 + $0x5d1] sm:$0xff] }
 0x267   : > { %v4914_v23 = vld [vmem:[#allocation2 + $0x5d9] sm:$0x7f]  ;;  %v7016_v45 = vpack.c.bf16 %v4939_v4, %v4939_v4  ;;  %v5906_v58 = vmax.f32 %v5888_v51, %v5894_v41  ;;  %v4925_v11 = vmax.f32 %v4907_v17, %v4913_v59  ;;  %v5897_v22 = vld [vmem:[#allocation2 + $0xbb1] sm:$0xff]  ;;  %v4911_v31 = vld [vmem:[#allocation2 + $0x5c1] sm:$0xff] }
 0x268   : > { %v4926_v55 = vmax.f32 %v4908_v33, %v4914_v23  ;;  %v5898_v27 = vld [vmem:[#allocation2 + $0xbb9] sm:$0x7f]  ;;  %v7064_v24 = vpack.c.bf16 %v5923_v48, %v5923_v48  ;;  %v4928_v61 = vmax.f32 %v4916_v29, %v4922_v12  ;;  %v5909_v1 = vmax.f32 %v5891_v36, %v5897_v22  ;;  %v4900_v17 = vld [vmem:[#allocation2 + $0x56b] sm:$0xff] }
 0x269   : > { %v4966_v6 = vshrl.u32 %v7016_v45, 16  ;;  %v5912_v10 = vmax.f32 %v5900_v3, %v5906_v58  ;;  %v4931_v39 = vmax.f32 %v4919_v63, %v4925_v11  ;;  %v5910_v57 = vmax.f32 %v5892_v40, %v5898_v27  ;;  %v4905_v33 = vld [vmem:[#allocation2 + $0x592] sm:$0xff]  ;;  %v4894_v36 = vld [vmem:[#allocation2 + $0x53c] sm:$0xff]  ;;  %v4912_v27 = vld [vmem:[#allocation2 + $0x5c9] sm:$0xff] }
 0x26a   : > { %v4969_v34 = vshll.u32 %v7016_v45, 16  ;;  %v5948_v13 = vshrl.u32 %v7064_v24, 16  ;;  %v4934_v21 = vadd.f32 %v9446_v53, %v4928_v61  ;;  %v4932_v44 = vmax.f32 %v4920_v30, %v4926_v55  ;;  %v5883_v40 = vld [vmem:[#allocation2 + $0xb43] sm:$0xff]  ;;  %v5884_v61 = vld [vmem:[#allocation2 + $0xb4b] sm:$0xff] }
 0x26b   : > { %v9449_v8 = vrot.slane %v4966_v6, 7  ;;  %v5918_v15 = vadd.f32 %v9446_v53, %v5912_v10  ;;  %v4937_v5 = vadd.f32 %v9446_v53, %v4931_v39  ;;  %v5915_v26 = vmax.f32 %v5903_v19, %v5909_v1  ;;  %v5889_v39 = vld [vmem:[#allocation2 + $0xb72] sm:$0xff] }
 0x26c   : > { %v9459_v20 = vrot.slane %v5948_v13, 7  ;;  %v5951_v47 = vshll.u32 %v7064_v24, 16  ;;  %v4940_v9 = vmax.f32 %v4934_v21, 0.0  ;;  %v4938_v62 = vadd.f32 %v9446_v53, %v4932_v44 }
 0x26d   : > { %v4971_v2 = vor.u32 %v4969_v34, %v9449_v8  ;;  %v5924_v32 = vmax.f32 %v5918_v15, 0.0  ;;  %v4943_v60 = vmax.f32 %v4937_v5, 0.0  ;;  %v5916_v14 = vmax.f32 %v5904_v50, %v5910_v57  ;;  %v5895_v50 = vld [vmem:[#allocation2 + $0xba1] sm:$0xff]  ;;  %v5877_v15 = vld [vmem:[#allocation2 + $0xb14] sm:$0xff] }
 0x26e   : > { %v5953_v42 = vor.u32 %v5951_v47, %v9459_v20  ;;  %v7017_v37 = vpack.c.bf16 %v4940_v9, %v4940_v9  ;;  %v4944_v52 = vmax.f32 %v4938_v62, 0.0  ;;  %v5921_v54 = vadd.f32 %v9446_v53, %v5915_v26  ;;  %v4906_v57 = vld [vmem:[#allocation2 + $0x59a] sm:$0xff] }
 0x26f   : > { %v5026_v28 = vsel %vm9455_vm7, %v4971_v2, %v5025_v56  ;;  %v7065_v43 = vpack.c.bf16 %v5924_v32, %v5924_v32  ;;  %v9468_v35 = vpack.c.bf16 %v4943_v60, %v4943_v60  ;;  %v4972_v29 = vrot.slane %v9449_v8, 4  ;;  %v5896_v8 = vld [vmem:[#allocation2 + $0xba9] sm:$0xff]  ;;  %v5878_v47 = vld [vmem:[#allocation2 + $0xb1c] sm:$0xff] }
 0x270   : > { %5027 = vst [vmem:[%s8456_s8 + $0xa4] sm:$0xf] %v5026_v28  ;;  %v6006_v25 = vsel %vm9455_vm7, %v5953_v42, %v6005_v38  ;;  %v4974_v51 = vshrl.u32 %v7017_v37, 16  ;;  %v7021_v49 = vpack.c.bf16 %v4944_v52, %v4944_v52  ;;  %v4977_v3 = vshll.u32 %v7017_v37, 16  ;;  %v5890_v62 = vld [vmem:[#allocation2 + $0xb7a] sm:$0xff] }
 0x271   : > { %6007 = vst [vmem:[%s8456_s8 + $0x160] sm:$0xf] %v6006_v25  ;;  %v5956_v63 = vshrl.u32 %v7065_v43, 16  ;;  %v5001_v4 = vshrl.u32 %v9468_v35, 16  ;;  %v5959_v19 = vshll.u32 %v7065_v43, 16  ;;  %v5922_v48 = vadd.f32 %v9446_v53, %v5916_v14 }
 0x272   : > { %v9477_v7 = vrot.slane %v4974_v51, 7  ;;  %v5010_v30 = vshrl.u32 %v7021_v49, 16  ;;  %v5927_v23 = vmax.f32 %v5921_v54, 0.0  ;;  %v4923_v45 = vmax.f32 %v4905_v33, %v4911_v31 }
 0x273   : > { %v9486_v41 = vrot.slane %v5956_v63, 7  ;;  %v9488_v59 = vrot.slane %v5001_v4, 7  ;;  %v5013_v55 = vshll.u32 %v7021_v49, 16  ;;  %v5928_v22 = vmax.f32 %v5922_v48, 0.0 }
 0x274   : > { %v4979_v58 = vor.u32 %v4977_v3, %v9477_v7  ;;  %v5012_v11 = vrot.slane %v5010_v30, 7  ;;  %v4918_v24 = vmax.f32 %v4894_v36, %v4900_v17  ;;  %v5954_v1 = vrot.slane %v9459_v20, 4 }
 0x275   : > { %v5961_v6 = vor.u32 %v5959_v19, %v9486_v41  ;;  %v5008_v10 = vrot.slane %v9488_v59, 4  ;;  %v7068_v21 = vpack.c.bf16 %v5927_v23, %v5927_v23  ;;  %v7069_v44 = vpack.c.bf16 %v5928_v22, %v5928_v22 }
 0x276   : > { %v4980_v34 = vsel %vm9482_vm3, %v4972_v29, %v4979_v58  ;;  %v5015_v13 = vor.u32 %v5013_v55, %v5012_v11  ;;  %v4924_v26 = vmax.f32 %v4906_v57, %v4912_v27  ;;  %v4929_v0 = vmax.f32 %v4917_v18, %v4923_v45 }
 0x277   : > { %5028 = vst [vmem:[%s8456_s8 + $0xa8] sm:$0xf] %v4980_v34  ;;  %v5962_v5 = vsel %vm9482_vm3, %v5954_v1, %v5961_v6  ;;  %v5907_v20 = vmax.f32 %v5889_v39, %v5895_v50  ;;  %v5901_v9 = vmax.f32 %v5877_v15, %v5883_v40  ;;  %v5983_v2 = vshrl.u32 %v7068_v21, 16 }
 0x278   : > { %6008 = vst [vmem:[%s8456_s8 + $0x164] sm:$0xf] %v5962_v5  ;;  %v5016_v46 = vsel %vm9482_vm3, %v5008_v10, %v5015_v13  ;;  %v5992_v32 = vshrl.u32 %v7069_v44, 16  ;;  %v5902_v60 = vmax.f32 %v5878_v47, %v5884_v61  ;;  %v4930_v56 = vmax.f32 %v4918_v24, %v4924_v26 }
 0x279   : > { %5032 = vst [vmem:[%s8456_s8 + $0xb8] sm:$0xf] %v5016_v46  ;;  %v4935_v42 = vadd.f32 %v9446_v53, %v4929_v0  ;;  %v5908_v37 = vmax.f32 %v5890_v62, %v5896_v8  ;;  %v5985_v52 = vrot.slane %v5983_v2, 7  ;;  %v5995_v16 = vshll.u32 %v7069_v44, 16 }
 0x27a   : > { %v5994_v14 = vrot.slane %v5992_v32, 7  ;;  %v5913_v28 = vmax.f32 %v5901_v9, %v5907_v20  ;;  %v4936_v38 = vadd.f32 %v9446_v53, %v4930_v56  ;;  %v4981_v19 = vrot.slane %v9477_v7, 4 }
 0x27b   : > { %v4941_v43 = vmax.f32 %v4935_v42, 0.0  ;;  %v5914_v54 = vmax.f32 %v5902_v60, %v5908_v37  ;;  %v5990_v18 = vrot.slane %v5985_v52, 4  ;;  %v5004_v30 = vshll.u32 %v9468_v35, 16 }
 0x27c   : > { %v5997_v25 = vor.u32 %v5995_v16, %v5994_v14  ;;  %v5919_v51 = vadd.f32 %v9446_v53, %v5913_v28  ;;  %v4942_v49 = vmax.f32 %v4936_v38, 0.0  ;;  %v5963_v57 = vrot.slane %v9486_v41, 4 }
 0x27d   : > { %v7018_v31 = vpack.c.bf16 %v4941_v43, %v4941_v43  ;;  %v5920_v29 = vadd.f32 %v9446_v53, %v5914_v54  ;;  %v5006_v11 = vor.u32 %v5004_v30, %v9488_v59  ;;  %v5986_v53 = vshll.u32 %v7068_v21, 16 }
 0x27e   : > { %v5998_v3 = vsel %vm9482_vm3, %v5990_v18, %v5997_v25  ;;  %v5925_v63 = vmax.f32 %v5919_v51, 0.0  ;;  %v7019_v4 = vpack.c.bf16 %v4942_v49, %v4942_v49 }
 0x27f   : > { %6012 = vst [vmem:[%s8456_s8 + $0x174] sm:$0xf] %v5998_v3  ;;  %v4983_v17 = vshrl.u32 %v7018_v31, 16  ;;  %v5926_v33 = vmax.f32 %v5920_v29, 0.0  ;;  %v4986_v45 = vshll.u32 %v7018_v31, 16  ;;  %v5988_v61 = vor.u32 %v5986_v53, %v5985_v52 }
 0x280   : > { %v7066_v48 = vpack.c.bf16 %v5925_v63, %v5925_v63  ;;  %v4992_v36 = vshrl.u32 %v7019_v4, 16  ;;  %v4995_v55 = vshll.u32 %v7019_v4, 16 }
 0x281   : > { %v4985_v23 = vrot.slane %v4983_v17, 7  ;;  %v7067_v58 = vpack.c.bf16 %v5926_v33, %v5926_v33 }
 0x282   : > { %v5965_v22 = vshrl.u32 %v7066_v48, 16  ;;  %v4994_v24 = vrot.slane %v4992_v36, 7  ;;  %v5968_v35 = vshll.u32 %v7066_v48, 16 }
 0x283   : > { %v4988_v27 = vor.u32 %v4986_v45, %v4985_v23  ;;  %v4990_v50 = vrot.slane %v4985_v23, 4  ;;  %v5974_v40 = vshrl.u32 %v7067_v58, 16  ;;  %v5977_v1 = vshll.u32 %v7067_v58, 16 }
 0x284   : > { %v5967_v7 = vrot.slane %v5965_v22, 7  ;;  %v4997_v10 = vor.u32 %v4995_v55, %v4994_v24  ;;  %v4999_v59 = vrot.slane %v4994_v24, 4  ;;  %6019 = sbr.rel (!%p8088_p4) target bundleno = 742 (0x2e6), region = 36 }
 0x285   : > { %v4989_v6 = vsel %vm9482_vm3, %v4981_v19, %v4988_v27  ;;  %v5976_v39 = vrot.slane %v5974_v40, 7 }
 0x286   : > { %5029 = vst [vmem:[%s8456_s8 + $0xac] sm:$0xf] %v4989_v6  ;;  %v5970_v34 = vor.u32 %v5968_v35, %v5967_v7  ;;  %v5972_v13 = vrot.slane %v5967_v7, 4  ;;  %v4998_v21 = vsel %vm9482_vm3, %v4990_v50, %v4997_v10  ;;  %v5007_v44 = vsel %vm9482_vm3, %v4999_v59, %v5006_v11 }
 0x287   : > { %v5979_v8 = vor.u32 %v5977_v1, %v5976_v39  ;;  %v5981_v15 = vrot.slane %v5976_v39, 4  ;;  %5030 = vst [vmem:[%s8456_s8 + $0xb0] sm:$0xf] %v4998_v21  ;;  %5031 = vst [vmem:[%s8456_s8 + $0xb4] sm:$0xf] %v5007_v44 }
 0x288   : > { %v5971_v5 = vsel %vm9482_vm3, %v5963_v57, %v5970_v34 }
 0x289   : > { %v5980_v26 = vsel %vm9482_vm3, %v5972_v13, %v5979_v8  ;;  %v5989_v41 = vsel %vm9482_vm3, %v5981_v15, %v5988_v61  ;;  %6009 = vst [vmem:[%s8456_s8 + $0x168] sm:$0xf] %v5971_v5 }
 0x28a   : > { %6010 = vst [vmem:[%s8456_s8 + $0x16c] sm:$0xf] %v5980_v26  ;;  %6011 = vst [vmem:[%s8456_s8 + $0x170] sm:$0xf] %v5989_v41 }
 0x28b   : > { %s9773_s27 = smov (!%p6022_p8, %s6021_s27), 94 }
 0x28c   : > { %s6959_s28 = sshll.u32 %s9773_s27, 6 }
 0x28d   : > { %p6962_p9 = scmp.eq.s32.totalorder %s6959_s28, 0 }
 0x28e   : > { %s9545_s29 = sshrl.u32 (!%p6962_p9), %s9773_s27, 6 }
 0x28f   : > { %6030 = sbr.rel (%p6962_p9) target bundleno = 742 (0x2e6), region = 40  ;;  %p6963_p10 = scmp.le.s32.totalorder (!%p6962_p9), %s9545_s29, 0 }
 0x296   : > { %6435 = sbr.rel (%p6963_p10) target bundleno = 721 (0x2d1), region = 112  ;;  %s9766_s15 = smov (!%p6963_p10), %s9539_s26 }
 0x297   : > { %s9767_s20 = smov (!%p6963_p10), %s8456_s8  ;;  %s9554_s25 = smov (!%p6963_p10), 0  }
 0x298   : > { %s9556_s30 = smov (!%p6963_p10), 0  }
 0x29d LB: >> { %v6046_v12 = vld [vmem:[%s8016_s20] sm:$0xf]  ;;  %v6048_v0 = vld [vmem:[%s8016_s20 + $0x4] sm:$0xf]  ;;  %v6050_v20 = vld [vmem:[%s8016_s20 + $0x8] sm:$0xf]  ;;  %s8024_s30 = sphi %s9556_s30, %s6040_s30   ;;  %s8020_s25 = sphi %s9554_s25, %s9768_s25   ;;  %s8016_s20 = sphi %s9767_s20, %s6179_s20   ;;  %s8012_s15 = sphi %s9766_s15, %s6180_s15  }
 0x29e   : >> { %6047 = vst [vmem:[%s8012_s15] sm:$0xf] %v6046_v12  ;;  %6049 = vst [vmem:[%s8012_s15 + $0x4] sm:$0xf] %v6048_v0  ;;  %v6052_v47 = vld [vmem:[%s8016_s20 + $0xc] sm:$0xf]  ;;  %s6174_s4 = sadd.s32 1, %s8020_s25 }
 0x29f   : >> { %6051 = vst [vmem:[%s8012_s15 + $0x8] sm:$0xf] %v6050_v20  ;;  %v6054_v9 = vld [vmem:[%s8016_s20 + $0x10] sm:$0xf]  ;;  %v6056_v62 = vld [vmem:[%s8016_s20 + $0x14] sm:$0xf]  ;;  %p6175_p11 = scmp.ge.s32.totalorder %s6174_s4, %s9545_s29 }
 0x2a0   : >> { %6053 = vst [vmem:[%s8012_s15 + $0xc] sm:$0xf] %v6052_v47  ;;  %6055 = vst [vmem:[%s8012_s15 + $0x10] sm:$0xf] %v6054_v9  ;;  %v6058_v46 = vld [vmem:[%s8016_s20 + $0x18] sm:$0xf] }
 0x2a1   : >> { %6057 = vst [vmem:[%s8012_s15 + $0x14] sm:$0xf] %v6056_v62  ;;  %v6060_v2 = vld [vmem:[%s8016_s20 + $0x1c] sm:$0xf]  ;;  %v6062_v32 = vld [vmem:[%s8016_s20 + $0x20] sm:$0xf] }
 0x2a2   : >> { %6059 = vst [vmem:[%s8012_s15 + $0x18] sm:$0xf] %v6058_v46  ;;  %6061 = vst [vmem:[%s8012_s15 + $0x1c] sm:$0xf] %v6060_v2  ;;  %v6064_v60 = vld [vmem:[%s8016_s20 + $0x24] sm:$0xf] }
 0x2a3   : >> { %6063 = vst [vmem:[%s8012_s15 + $0x20] sm:$0xf] %v6062_v32  ;;  %v6066_v56 = vld [vmem:[%s8016_s20 + $0x28] sm:$0xf]  ;;  %v6068_v42 = vld [vmem:[%s8016_s20 + $0x2c] sm:$0xf] }
 0x2a4   : >> { %6065 = vst [vmem:[%s8012_s15 + $0x24] sm:$0xf] %v6064_v60  ;;  %6067 = vst [vmem:[%s8012_s15 + $0x28] sm:$0xf] %v6066_v56  ;;  %v6070_v37 = vld [vmem:[%s8016_s20 + $0x30] sm:$0xf] }
 0x2a5   : >> { %6069 = vst [vmem:[%s8012_s15 + $0x2c] sm:$0xf] %v6068_v42  ;;  %v6072_v52 = vld [vmem:[%s8016_s20 + $0x34] sm:$0xf]  ;;  %v6074_v14 = vld [vmem:[%s8016_s20 + $0x38] sm:$0xf] }
 0x2a6   : >> { %6071 = vst [vmem:[%s8012_s15 + $0x30] sm:$0xf] %v6070_v37  ;;  %6073 = vst [vmem:[%s8012_s15 + $0x34] sm:$0xf] %v6072_v52  ;;  %v6076_v16 = vld [vmem:[%s8016_s20 + $0x3c] sm:$0xf] }
 0x2a7   : >> { %6075 = vst [vmem:[%s8012_s15 + $0x38] sm:$0xf] %v6074_v14  ;;  %v6078_v28 = vld [vmem:[%s8016_s20 + $0x40] sm:$0xf]  ;;  %v6080_v38 = vld [vmem:[%s8016_s20 + $0x44] sm:$0xf] }
 0x2a8   : >> { %6077 = vst [vmem:[%s8012_s15 + $0x3c] sm:$0xf] %v6076_v16  ;;  %6079 = vst [vmem:[%s8012_s15 + $0x40] sm:$0xf] %v6078_v28  ;;  %v6082_v43 = vld [vmem:[%s8016_s20 + $0x48] sm:$0xf] }
 0x2a9   : >> { %6081 = vst [vmem:[%s8012_s15 + $0x44] sm:$0xf] %v6080_v38  ;;  %v6084_v54 = vld [vmem:[%s8016_s20 + $0x4c] sm:$0xf]  ;;  %v6086_v18 = vld [vmem:[%s8016_s20 + $0x50] sm:$0xf] }
 0x2aa   : >> { %6083 = vst [vmem:[%s8012_s15 + $0x48] sm:$0xf] %v6082_v43  ;;  %6085 = vst [vmem:[%s8012_s15 + $0x4c] sm:$0xf] %v6084_v54  ;;  %v6088_v25 = vld [vmem:[%s8016_s20 + $0x54] sm:$0xf] }
 0x2ab   : >> { %6087 = vst [vmem:[%s8012_s15 + $0x50] sm:$0xf] %v6086_v18  ;;  %v6090_v51 = vld [vmem:[%s8016_s20 + $0x58] sm:$0xf]  ;;  %v6092_v49 = vld [vmem:[%s8016_s20 + $0x5c] sm:$0xf] }
 0x2ac   : >> { %6089 = vst [vmem:[%s8012_s15 + $0x54] sm:$0xf] %v6088_v25  ;;  %6091 = vst [vmem:[%s8012_s15 + $0x58] sm:$0xf] %v6090_v51  ;;  %v6094_v31 = vld [vmem:[%s8016_s20 + $0x60] sm:$0xf] }
 0x2ad   : >> { %6093 = vst [vmem:[%s8012_s15 + $0x5c] sm:$0xf] %v6092_v49  ;;  %v6096_v29 = vld [vmem:[%s8016_s20 + $0x64] sm:$0xf]  ;;  %v6098_v3 = vld [vmem:[%s8016_s20 + $0x68] sm:$0xf] }
 0x2ae   : >> { %6095 = vst [vmem:[%s8012_s15 + $0x60] sm:$0xf] %v6094_v31  ;;  %6097 = vst [vmem:[%s8012_s15 + $0x64] sm:$0xf] %v6096_v29  ;;  %v6100_v63 = vld [vmem:[%s8016_s20 + $0x6c] sm:$0xf] }
 0x2af   : >> { %6099 = vst [vmem:[%s8012_s15 + $0x68] sm:$0xf] %v6098_v3  ;;  %v6102_v4 = vld [vmem:[%s8016_s20 + $0x70] sm:$0xf]  ;;  %v6104_v17 = vld [vmem:[%s8016_s20 + $0x74] sm:$0xf] }
 0x2b0   : >> { %6101 = vst [vmem:[%s8012_s15 + $0x6c] sm:$0xf] %v6100_v63  ;;  %6103 = vst [vmem:[%s8012_s15 + $0x70] sm:$0xf] %v6102_v4  ;;  %v6106_v33 = vld [vmem:[%s8016_s20 + $0x78] sm:$0xf] }
 0x2b1   : >> { %6105 = vst [vmem:[%s8012_s15 + $0x74] sm:$0xf] %v6104_v17  ;;  %v6108_v19 = vld [vmem:[%s8016_s20 + $0x7c] sm:$0xf]  ;;  %v6110_v30 = vld [vmem:[%s8016_s20 + $0x80] sm:$0xf] }
 0x2b2   : >> { %6107 = vst [vmem:[%s8012_s15 + $0x78] sm:$0xf] %v6106_v33  ;;  %6109 = vst [vmem:[%s8012_s15 + $0x7c] sm:$0xf] %v6108_v19  ;;  %v6112_v48 = vld [vmem:[%s8016_s20 + $0x84] sm:$0xf] }
 0x2b3   : >> { %6111 = vst [vmem:[%s8012_s15 + $0x80] sm:$0xf] %v6110_v30  ;;  %v6114_v23 = vld [vmem:[%s8016_s20 + $0x88] sm:$0xf]  ;;  %v6116_v45 = vld [vmem:[%s8016_s20 + $0x8c] sm:$0xf] }
 0x2b4   : >> { %6113 = vst [vmem:[%s8012_s15 + $0x84] sm:$0xf] %v6112_v48  ;;  %6115 = vst [vmem:[%s8012_s15 + $0x88] sm:$0xf] %v6114_v23  ;;  %v6118_v36 = vld [vmem:[%s8016_s20 + $0x90] sm:$0xf] }
 0x2b5   : >> { %6117 = vst [vmem:[%s8012_s15 + $0x8c] sm:$0xf] %v6116_v45  ;;  %v6120_v58 = vld [vmem:[%s8016_s20 + $0x94] sm:$0xf]  ;;  %v6122_v11 = vld [vmem:[%s8016_s20 + $0x98] sm:$0xf] }
 0x2b6   : >> { %6119 = vst [vmem:[%s8012_s15 + $0x90] sm:$0xf] %v6118_v36  ;;  %6121 = vst [vmem:[%s8012_s15 + $0x94] sm:$0xf] %v6120_v58  ;;  %v6124_v53 = vld [vmem:[%s8016_s20 + $0x9c] sm:$0xf] }
 0x2b7   : >> { %6123 = vst [vmem:[%s8012_s15 + $0x98] sm:$0xf] %v6122_v11  ;;  %v6126_v55 = vld [vmem:[%s8016_s20 + $0xa0] sm:$0xf]  ;;  %v6128_v22 = vld [vmem:[%s8016_s20 + $0xa4] sm:$0xf] }
 0x2b8   : >> { %6125 = vst [vmem:[%s8012_s15 + $0x9c] sm:$0xf] %v6124_v53  ;;  %6127 = vst [vmem:[%s8012_s15 + $0xa0] sm:$0xf] %v6126_v55  ;;  %v6130_v27 = vld [vmem:[%s8016_s20 + $0xa8] sm:$0xf] }
 0x2b9   : >> { %6129 = vst [vmem:[%s8012_s15 + $0xa4] sm:$0xf] %v6128_v22  ;;  %v6132_v50 = vld [vmem:[%s8016_s20 + $0xac] sm:$0xf]  ;;  %v6134_v24 = vld [vmem:[%s8016_s20 + $0xb0] sm:$0xf] }
 0x2ba   : >> { %6131 = vst [vmem:[%s8012_s15 + $0xa8] sm:$0xf] %v6130_v27  ;;  %6133 = vst [vmem:[%s8012_s15 + $0xac] sm:$0xf] %v6132_v50  ;;  %v6136_v40 = vld [vmem:[%s8016_s20 + $0xb4] sm:$0xf] }
 0x2bb   : >> { %6135 = vst [vmem:[%s8012_s15 + $0xb0] sm:$0xf] %v6134_v24  ;;  %v6138_v61 = vld [vmem:[%s8016_s20 + $0xb8] sm:$0xf]  ;;  %v6140_v7 = vld [vmem:[%s8016_s20 + $0xbc] sm:$0xf] }
 0x2bc   : >> { %6137 = vst [vmem:[%s8012_s15 + $0xb4] sm:$0xf] %v6136_v40  ;;  %6139 = vst [vmem:[%s8012_s15 + $0xb8] sm:$0xf] %v6138_v61  ;;  %v6142_v35 = vld [vmem:[%s8016_s20 + $0xc0] sm:$0xf] }
 0x2bd   : >> { %6141 = vst [vmem:[%s8012_s15 + $0xbc] sm:$0xf] %v6140_v7  ;;  %v6144_v1 = vld [vmem:[%s8016_s20 + $0xc4] sm:$0xf]  ;;  %v6146_v6 = vld [vmem:[%s8016_s20 + $0xc8] sm:$0xf] }
 0x2be   : >> { %6143 = vst [vmem:[%s8012_s15 + $0xc0] sm:$0xf] %v6142_v35  ;;  %6145 = vst [vmem:[%s8012_s15 + $0xc4] sm:$0xf] %v6144_v1  ;;  %v6148_v10 = vld [vmem:[%s8016_s20 + $0xcc] sm:$0xf] }
 0x2bf   : >> { %6147 = vst [vmem:[%s8012_s15 + $0xc8] sm:$0xf] %v6146_v6  ;;  %v6150_v59 = vld [vmem:[%s8016_s20 + $0xd0] sm:$0xf]  ;;  %v6152_v39 = vld [vmem:[%s8016_s20 + $0xd4] sm:$0xf] }
 0x2c0   : >> { %6149 = vst [vmem:[%s8012_s15 + $0xcc] sm:$0xf] %v6148_v10  ;;  %6151 = vst [vmem:[%s8012_s15 + $0xd0] sm:$0xf] %v6150_v59  ;;  %v6154_v57 = vld [vmem:[%s8016_s20 + $0xd8] sm:$0xf] }
 0x2c1   : >> { %6153 = vst [vmem:[%s8012_s15 + $0xd4] sm:$0xf] %v6152_v39  ;;  %v6156_v34 = vld [vmem:[%s8016_s20 + $0xdc] sm:$0xf]  ;;  %v6158_v13 = vld [vmem:[%s8016_s20 + $0xe0] sm:$0xf] }
 0x2c2   : >> { %6155 = vst [vmem:[%s8012_s15 + $0xd8] sm:$0xf] %v6154_v57  ;;  %6157 = vst [vmem:[%s8012_s15 + $0xdc] sm:$0xf] %v6156_v34  ;;  %v6160_v21 = vld [vmem:[%s8016_s20 + $0xe4] sm:$0xf] }
 0x2c3   : >> { %6159 = vst [vmem:[%s8012_s15 + $0xe0] sm:$0xf] %v6158_v13  ;;  %v6162_v44 = vld [vmem:[%s8016_s20 + $0xe8] sm:$0xf]  ;;  %v6164_v8 = vld [vmem:[%s8016_s20 + $0xec] sm:$0xf] }
 0x2c4   : >> { %6161 = vst [vmem:[%s8012_s15 + $0xe4] sm:$0xf] %v6160_v21  ;;  %6163 = vst [vmem:[%s8012_s15 + $0xe8] sm:$0xf] %v6162_v44  ;;  %v6166_v15 = vld [vmem:[%s8016_s20 + $0xf0] sm:$0xf] }
 0x2c5   : >> { %6165 = vst [vmem:[%s8012_s15 + $0xec] sm:$0xf] %v6164_v8  ;;  %v6168_v5 = vld [vmem:[%s8016_s20 + $0xf4] sm:$0xf]  ;;  %v6170_v26 = vld [vmem:[%s8016_s20 + $0xf8] sm:$0xf] }
 0x2c6   : >> { %6167 = vst [vmem:[%s8012_s15 + $0xf0] sm:$0xf] %v6166_v15  ;;  %6169 = vst [vmem:[%s8012_s15 + $0xf4] sm:$0xf] %v6168_v5  ;;  %v6172_v41 = vld [vmem:[%s8016_s20 + $0xfc] sm:$0xf] }
 0x2c7   : >> { %6171 = vst [vmem:[%s8012_s15 + $0xf8] sm:$0xf] %v6170_v26  ;;  %6173 = vst [vmem:[%s8012_s15 + $0xfc] sm:$0xf] %v6172_v41  ;;  %s9775_s4 = smov (%p6175_p11, %s6174_s4), 0  ;;  %s6040_s30 = sadd.s32 1, %s8024_s30  }
 0x2c8   : >> { %s6964_s5 = sshll.u32 %s9775_s4, 8  ;;  %p6039_p12 = scmp.ge.s32.totalorder %s6040_s30, %s9545_s29 }
 0x2c9   : >> { %s6179_s20 = scalar_lea.vmem %s8456_s8, %s6964_s5 [#allocation3]   ;;  %s6180_s15 = scalar_lea.vmem %s9539_s26, %s6964_s5  }
 0x2ca   : >> { %s9768_s25 = smov %s9775_s4  ;;  %6042 = sbr.rel (!%p6039_p12) target bundleno = 669 (0x29d), region = 118 }
 0x2d1 PF: > { %s9713_s6 = sand.u32 63, %s9773_s27   ;;  %s7071_s7 = sshll.u32 %s9545_s29, 8 }
 0x2d2   : > { %s6185_s9 = scalar_lea.vmem %s8456_s8, %s7071_s7 [#allocation3]   ;;  %s6187_s10 = scalar_lea.vmem %s9539_s26, %s7071_s7  }
 0x2d3   : > { %p6969_p13 = scmp.le.s32.totalorder %s9713_s6, 0 }
 0x2d4   : > { %s8026_s11 = smov (!%p6969_p13), %s6187_s10   ;;  %s8030_s12 = smov (!%p6969_p13), %s6185_s9  }
 0x2d5   : > { %6449 = sbr.rel (%p6969_p13) target bundleno = 742 (0x2e6), region = 123  ;;  %s8034_s14 = smov (!%p6969_p13), 0  }
 0x2d6   : > { %s8038_s17 = smov (!%p6969_p13), 0  }
 0x2dc LB: >> { %v6197_v12 = vld [vmem:[%s8032_s12] sm:$0xf]  ;;  %s6199_s18 = sadd.s32 1, %s8036_s14  ;;  %s6191_s17 = sadd.s32 1, %s8040_s17   ;;  %s8040_s17 = sphi %s8038_s17, %s6191_s17   ;;  %s8036_s14 = sphi %s8034_s14, %s8035_s14   ;;  %s8032_s12 = sphi %s8030_s12, %s6204_s12   ;;  %s8028_s11 = sphi %s8026_s11, %s6205_s11  }
 0x2dd   : >> { %6198 = vst [vmem:[%s8028_s11] sm:$0xf] %v6197_v12  ;;  %p6200_p0 = scmp.ge.s32.totalorder %s6199_s18, %s9713_s6  ;;  %p6190_p1 = scmp.ge.s32.totalorder %s6191_s17, %s9713_s6 }
 0x2df   : >> { %s9777_s18 = smov (%p6200_p0, %s6199_s18), 0  ;;  %6193 = sbr.rel (!%p6190_p1) target bundleno = 732 (0x2dc), region = 129 }
 0x2e0   : >> { %s6970_s8 = sshll.u32 %s9777_s18, 2  ;;  %s8035_s14 = smov %s9777_s18  }
 0x2e1   : >> { %s6204_s12 = scalar_lea.vmem %s6185_s9, %s6970_s8 [#allocation3]   ;;  %s6205_s11 = scalar_lea.vmem %s6187_s10, %s6970_s8  }
 0x2e6 PF: > { %p10_p2 = scmp.ge.s32.totalorder %s8078_s16, 8   ;;  %s9769_s12 = smov %s8004_s13 }
 0x2e7   : > { %s9770_s13 = smov %s8086_s19  ;;  %s9771_s14 = smov %s8078_s16 }
 0x2e8   :  { %12 = sbr.rel (!%p10_p2) target bundleno = 2 (0x2), region = 140 }

// kernel: species_cnn_forward.8
= control target key start
LH: loop header
LB: loop body
LE: loop exit
PB: predicated region body
PF: predicated region fallthrough
CT: control target
= control target key end

     0   :  { %s2436_s12 = smov 0   ;;  %s2438_s13 = smov 0   ;;  %s2838_s0 = inlined_call_operand.vmem [shape: bf16[3872,72], index: 0, kind: input, shape index: {}]   ;;  %s2839_s1 = inlined_call_operand.vmem [shape: bf16[72,128], index: 1, kind: input, shape index: {}]   ;;  %s2840_s2 = inlined_call_operand.vmem [shape: f32[1,128], index: 2, kind: input, shape index: {}]   ;;  %s2841_s3 = inlined_call_operand.vmem [shape: bf16[968,128], index: 3, kind: output, shape index: {}]  }
   0x1   :  { %s2440_s14 = smov 0  }
   0x2 LB: > { %s2449_s15 = sadd.s32 4294967295, %s2382_s14   ;;  %s2451_s16 = sadd.s32 1, %s2382_s14   ;;  %s2382_s14 = sphi %s2440_s14, %s2854_s14   ;;  %s2378_s13 = sphi %s2438_s13, %s2853_s13   ;;  %s2374_s12 = sphi %s2436_s12, %s2852_s12  }
   0x3   : > { %s85_s17 = ssub.s32 %s2382_s14, %s2451_s16  ;;  %s88_s18 = sadd.s32 1, %s2378_s13 }
   0x4   : > { %p86_p0 = scmp.eq.s32.totalorder %s85_s17, 0  ;;  %p98_p1 = scmp.ne.s32.totalorder %s2378_s13, %s2374_s12 }
   0x5   : > { %p99_p2 = scmp.eq.s32.totalorder %s2449_s15, 5  ;;  %p1864_p3 = scmp.ge.s32.totalorder %s2382_s14, 1 }
   0x6   : > { %s2459_s19 = scalar_select %p86_p0, %s2378_s13, %s88_s18  }
   0x7   : > { %p2461_p4 = por %p99_p2, %p98_p1  ;;  %p146_p5 = scmp.lt.s32.totalorder %s2382_s14, 7 }
   0x9   : > { %p147_p6 = pnand %p1864_p3, %p146_p5 }
   0xa   : > { %v2275_v0 = vld [vmem:[%s2839_s1] sm:$0xff] (!%p147_p6)   ;;  %v2276_v1 = vld [vmem:[%s2839_s1 + $0x8] sm:$0xff] (!%p147_p6)   ;;  %s2472_s25 = smul.u32 (!%p147_p6), 88, %s2449_s15  ;;  %v2277_v2 = vld [vmem:[%s2839_s1 + $0x10] sm:$0xff] (!%p147_p6)   ;;  %vm537_vm0 = vcmask (!%p147_p6), 588800   ;;  %vm670_vm1 = vcmask (!%p147_p6), 1043456  }
   0xb   : > { %150 = sbr.rel (%p147_p6) target bundleno = 427 (0x1ab), region = 32  ;;  %2075 = vmatprep.subr.bf16.mxu0 (!%p147_p6), %v2275_v0  ;;  %2173 = vmatprep.subr.bf16.mxu1 (!%p147_p6), %v2275_v0  ;;  %v2278_v3 = vld [vmem:[%s2839_s1 + $0x18] sm:$0xff] (!%p147_p6)   ;;  %v2279_v6 = vld [vmem:[%s2839_s1 + $0x20] ss:$0 sps:$4 sm:$0xff] (!%p147_p6)   ;;  %s170_s14 = sand.u32 (!%p147_p6), 1, %s2374_s12   ;;  %vm1234_vm2 = vcmask (!%p147_p6), 1042432  }
   0xc   : > { %2076 = vmatpush3.bf16.msra.mxu0 (!%p147_p6), %v2275_v0  ;;  %2178 = vmatpush3.bf16.msra.mxu1 (!%p147_p6), %v2275_v0  ;;  %p178_p7 = scmp.lt.s32.totalorder (!%p147_p6), %s2472_s25, 483  ;;  %v672_v7 = vsel (!%p147_p6), %vm670_vm1, %v2279_v6, 0  ;;  %s2604_s12 = smul.u32 (!%p147_p6), 88, %s170_s14  ;;  %vm1235_vm3 = vcmask (!%p147_p6), 1046532   ;;  %vm1290_vm5 = vcmask (!%p147_p6), 1041408   ;;  %vm1291_vm6 = vcmask (!%p147_p6), 1045508  }
   0xd   : > { %2077 = vmatprep.subr.bf16.mxu0 (!%p147_p6), %v2276_v1  ;;  %2174 = vmatprep.subr.bf16.mxu1 (!%p147_p6), %v2276_v1  ;;  %vm2640_vm4 = vmor (!%p147_p6), %vm1234_vm2, %vm1235_vm3  ;;  %vm1346_vm8 = vcmask (!%p147_p6), 1040384   ;;  %vm1347_vm9 = vcmask (!%p147_p6), 1044484  }
   0xe   : > { %s2613_s17 = scalar_lea.vmem (!%p147_p6), [#allocation3], %s2604_s12   ;;  %vm2682_vm7 = vmor (!%p147_p6), %vm1290_vm5, %vm1291_vm6 }
   0xf   : > { %vm2710_vm10 = vmor (!%p147_p6), %vm1346_vm8, %vm1347_vm9 }
  0x10   : > { %2078 = vmatpush3.bf16.msra.mxu0 (!%p147_p6), %v2276_v1  ;;  %2179 = vmatpush3.bf16.msra.mxu1 (!%p147_p6), %v2276_v1 }
  0x11   : > { %2079 = vmatprep.subr.bf16.mxu0 (!%p147_p6), %v2277_v2  ;;  %2175 = vmatprep.subr.bf16.mxu1 (!%p147_p6), %v2277_v2 }
  0x12   : > { %s179_s28 = scalar_select %p178_p7, %s2472_s25, 483 }
  0x13   : > { %s1568_s18 = smul.u32 (%p2461_p4), 22, %s2449_s15  ;;  %s2735_s23 = scalar_lea.vmem (%p2461_p4), %s2841_s3, %s2472_s25  }
  0x14   : > { %s1865_s29 = sshll.u32 %s179_s28, 2  ;;  %2080 = vmatpush3.bf16.msra.mxu0 %v2277_v2  ;;  %2180 = vmatpush3.bf16.msra.mxu1 %v2277_v2 }
  0x15   : > { %s2485_s7 = scalar_lea.vmem %s2838_s0, %s1865_s29  ;;  %2081 = vmatprep.subr.bf16.mxu0 %v2278_v3  ;;  %2176 = vmatprep.subr.bf16.mxu1 %v2278_v3  ;;  %s1569_s24 = ssub.s32 (%p2461_p4), 121, %s1568_s18 }
  0x16   : > { %v2280_v4 = vld [vmem:[%s2485_s7] sm:$0xff]   ;;  %v2281_v5 = vld [vmem:[%s2485_s7 + $0xb0] sm:$0xff]   ;;  %v2282_v8 = vld [vmem:[%s2485_s7 + $0x8] sm:$0xff]   ;;  %p1570_p8 = scmp.lt.s32.totalorder (%p2461_p4), %s1569_s24, 22 }
  0x17   : > { %2085 = vmatprep.mubr.msk.bf16.mxu0 %vm537_vm0, %v2280_v4  ;;  %2129 = vmatprep.mubr.msk.bf16.mxu1 %vm537_vm0, %v2281_v5  ;;  %v2283_v9 = vld [vmem:[%s2485_s7 + $0xb8] sm:$0xff]   ;;  %v2284_v10 = vld [vmem:[%s2485_s7 + $0x10] sm:$0xff]   ;;  %v2285_v11 = vld [vmem:[%s2485_s7 + $0xc0] sm:$0xff]  }
  0x18   : > { %2082 = vmatpush3.bf16.msra.mxu0 %v2278_v3  ;;  %2181 = vmatpush3.bf16.msra.mxu1 %v2278_v3  ;;  %v2286_v12 = vld [vmem:[%s2485_s7 + $0x18] sm:$0xff]   ;;  %v2287_v13 = vld [vmem:[%s2485_s7 + $0xc8] sm:$0xff]   ;;  %v2288_v14 = vld [vmem:[%s2485_s7 + $0x20] sm:$0xff]  }
  0x19   : > { %2183 = vmatprep.subr.msk.bf16.mxu0 %vm670_vm1, %v2279_v6  ;;  %2184 = vmatprep.subr.msk.bf16.mxu1 %vm670_vm1, %v2279_v6  ;;  %v2289_v15 = vld [vmem:[%s2485_s7 + $0xd0] sm:$0xff]   ;;  %v2290_v16 = vld [vmem:[%s2485_s7 + $0x28] sm:$0xff]   ;;  %v2291_v17 = vld [vmem:[%s2485_s7 + $0xd8] sm:$0xff]  }
  0x1a   : > { %v2292_v18 = vld [vmem:[%s2485_s7 + $0x30] sm:$0xff]   ;;  %v2293_v19 = vld [vmem:[%s2485_s7 + $0xe0] sm:$0xff]   ;;  %v2294_v20 = vld [vmem:[%s2485_s7 + $0x38] sm:$0xff]  }
  0x1b   : > { %v2295_v21 = vld [vmem:[%s2485_s7 + $0xe8] sm:$0xff]   ;;  %v2296_v22 = vld [vmem:[%s2485_s7 + $0x40] sm:$0xff]   ;;  %v2297_v23 = vld [vmem:[%s2485_s7 + $0xf0] sm:$0xff]  }
  0x1c   : > { %2084 = vmatpush3.bf16.msra.mxu0 %v672_v7  ;;  %2182 = vmatpush3.bf16.msra.mxu1 %v672_v7  ;;  %v2298_v24 = vld [vmem:[%s2485_s7 + $0x48] sm:$0xff]   ;;  %v2299_v25 = vld [vmem:[%s2485_s7 + $0xf8] sm:$0xff]   ;;  %v2300_v26 = vld [vmem:[%s2485_s7 + $0x50] sm:$0xff]  }
  0x1d   : > { %v2301_v27 = vld [vmem:[%s2485_s7 + $0x100] sm:$0xff]   ;;  %v2302_v28 = vld [vmem:[%s2485_s7 + $0x58] sm:$0xff]   ;;  %v2303_v29 = vld [vmem:[%s2485_s7 + $0x108] sm:$0xff]  }
  0x1e   : > { %v2304_v30 = vld [vmem:[%s2485_s7 + $0x60] sm:$0xff]   ;;  %v2305_v31 = vld [vmem:[%s2485_s7 + $0x110] sm:$0xff]   ;;  %v2306_v32 = vld [vmem:[%s2485_s7 + $0x68] sm:$0xff]  }
  0x1f   : > { %2086 = vmatmul.mubr.msk.bf16.vlgmr.msra.gmra.mrb[0].mxu0 %vm537_vm0, %v2282_v8  ;;  %2130 = vmatmul.mubr.msk.bf16.vlgmr.msra.gmra.mrb[0].mxu1 %vm537_vm0, %v2283_v9  ;;  %v2307_v33 = vld [vmem:[%s2485_s7 + $0x118] sm:$0xff]   ;;  %v2308_v34 = vld [vmem:[%s2485_s7 + $0x70] sm:$0xff]   ;;  %v2309_v35 = vld [vmem:[%s2485_s7 + $0x120] sm:$0xff]  }
  0x20   : > { %2089 = vmatprep.mubr.msk.bf16.mxu0 %vm537_vm0, %v2284_v10  ;;  %2133 = vmatprep.mubr.msk.bf16.mxu1 %vm537_vm0, %v2285_v11  ;;  %v2310_v36 = vld [vmem:[%s2485_s7 + $0x78] sm:$0xff]   ;;  %v2311_v37 = vld [vmem:[%s2485_s7 + $0x128] sm:$0xff]   ;;  %v2312_v38 = vld [vmem:[%s2485_s7 + $0x80] sm:$0xff]  }
  0x21   : > { %v2313_v39 = vld [vmem:[%s2485_s7 + $0x130] sm:$0xff]   ;;  %v2314_v40 = vld [vmem:[%s2485_s7 + $0x88] sm:$0xff]   ;;  %v2315_v41 = vld [vmem:[%s2485_s7 + $0x138] sm:$0xff]  }
  0x22   : > { %v2316_v42 = vld [vmem:[%s2485_s7 + $0x90] sm:$0xff]   ;;  %v2317_v43 = vld [vmem:[%s2485_s7 + $0x140] sm:$0xff]   ;;  %v2318_v44 = vld [vmem:[%s2485_s7 + $0x98] sm:$0xff]  }
  0x23   : > { %v2319_v45 = vld [vmem:[%s2485_s7 + $0x148] sm:$0xff]   ;;  %v2320_v46 = vld [vmem:[%s2485_s7 + $0xa0] sm:$0xff]   ;;  %v2321_v47 = vld [vmem:[%s2485_s7 + $0x150] sm:$0xff]  }
  0x24   : > { %v2322_v48 = vld [vmem:[%s2485_s7 + $0xa8] sm:$0xff]   ;;  %v2323_v49 = vld [vmem:[%s2485_s7 + $0x158] sm:$0xff]  }
  0x27   : > { %2090 = vmatmul.mubr.msk.bf16.gmra.mrb[4].mxu0 %vm537_vm0, %v2286_v12  ;;  %2134 = vmatmul.mubr.msk.bf16.gmra.mrb[4].mxu1 %vm537_vm0, %v2287_v13 }
  0x28   : > { %2093 = vmatprep.mubr.msk.bf16.mxu0 %vm537_vm0, %v2288_v14  ;;  %2137 = vmatprep.mubr.msk.bf16.mxu1 %vm537_vm0, %v2289_v15 }
  0x2f   : > { %2094 = vmatmul.mubr.msk.bf16.gmra.mrb[8].mxu0 %vm537_vm0, %v2290_v16  ;;  %2138 = vmatmul.mubr.msk.bf16.gmra.mrb[8].mxu1 %vm537_vm0, %v2291_v17 }
  0x30   : > { %2097 = vmatprep.mubr.msk.bf16.mxu0 %vm537_vm0, %v2292_v18  ;;  %2141 = vmatprep.mubr.msk.bf16.mxu1 %vm537_vm0, %v2293_v19 }
  0x37   : > { %2098 = vmatmul.mubr.msk.bf16.gmra.mrb[12].mxu0 %vm537_vm0, %v2294_v20  ;;  %2142 = vmatmul.mubr.msk.bf16.gmra.mrb[12].mxu1 %vm537_vm0, %v2295_v21  ;;  %v2593_v21 = vld [vmem:[%s2840_s2] ss:$0 sm:$0xff] }
  0x38   : > { %2101 = vmatprep.mubr.msk.bf16.mxu0 %vm537_vm0, %v2296_v22  ;;  %2145 = vmatprep.mubr.msk.bf16.mxu1 %vm537_vm0, %v2297_v23 }
  0x3f   : > { %2102 = vmatmul.mubr.msk.bf16.gmra.mrb[16].mxu0 %vm537_vm0, %v2298_v24  ;;  %2146 = vmatmul.mubr.msk.bf16.gmra.mrb[16].mxu1 %vm537_vm0, %v2299_v25 }
  0x40   : > { %2105 = vmatprep.mubr.msk.bf16.mxu0 %vm537_vm0, %v2300_v26  ;;  %2149 = vmatprep.mubr.msk.bf16.mxu1 %vm537_vm0, %v2301_v27 }
  0x47   : > { %2106 = vmatmul.mubr.msk.bf16.gmra.mrb[20].mxu0 %vm537_vm0, %v2302_v28  ;;  %2150 = vmatmul.mubr.msk.bf16.gmra.mrb[20].mxu1 %vm537_vm0, %v2303_v29 }
  0x48   : > { %2109 = vmatprep.mubr.msk.bf16.mxu0 %vm537_vm0, %v2304_v30  ;;  %2153 = vmatprep.mubr.msk.bf16.mxu1 %vm537_vm0, %v2305_v31 }
  0x4f   : > { %2110 = vmatmul.mubr.msk.bf16.gmra.mrb[24].mxu0 %vm537_vm0, %v2306_v32  ;;  %2154 = vmatmul.mubr.msk.bf16.gmra.mrb[24].mxu1 %vm537_vm0, %v2307_v33 }
  0x50   : > { %2113 = vmatprep.mubr.msk.bf16.mxu0 %vm537_vm0, %v2308_v34  ;;  %2157 = vmatprep.mubr.msk.bf16.mxu1 %vm537_vm0, %v2309_v35 }
  0x57   : > { %2114 = vmatmul.mubr.msk.bf16.gmra.mrb[28].mxu0 %vm537_vm0, %v2310_v36  ;;  %2158 = vmatmul.mubr.msk.bf16.gmra.mrb[28].mxu1 %vm537_vm0, %v2311_v37 }
  0x58   : > { %2117 = vmatprep.mubr.msk.bf16.mxu0 %vm537_vm0, %v2312_v38  ;;  %2161 = vmatprep.mubr.msk.bf16.mxu1 %vm537_vm0, %v2313_v39 }
  0x5f   : > { %2118 = vmatmul.mubr.msk.bf16.gmra.mrb[32].mxu0 %vm537_vm0, %v2314_v40  ;;  %2162 = vmatmul.mubr.msk.bf16.gmra.mrb[32].mxu1 %vm537_vm0, %v2315_v41 }
  0x60   : > { %2121 = vmatprep.mubr.msk.bf16.mxu0 %vm537_vm0, %v2316_v42  ;;  %2165 = vmatprep.mubr.msk.bf16.mxu1 %vm537_vm0, %v2317_v43 }
  0x67   : > { %2122 = vmatmul.mubr.msk.bf16.gmra.mrb[36].mxu0 %vm537_vm0, %v2318_v44  ;;  %2166 = vmatmul.mubr.msk.bf16.gmra.mrb[36].mxu1 %vm537_vm0, %v2319_v45 }
  0x68   : > { %2125 = vmatprep.mubr.msk.bf16.mxu0 %vm537_vm0, %v2320_v46  ;;  %2169 = vmatprep.mubr.msk.bf16.mxu1 %vm537_vm0, %v2321_v47 }
  0x6f   : > { %2126 = vmatmul.mubr.msk.bf16.gmra.mrb[40].mxu0 %vm537_vm0, %v2322_v48  ;;  %2170 = vmatmul.mubr.msk.bf16.gmra.mrb[40].mxu1 %vm537_vm0, %v2323_v49 }
  0xf2   : > { %v2087_v50 = vpop.f32.mrb[0].mxu0  ;;  %v2131_v51 = vpop.f32.mrb[0].mxu1 }
  0xf3   : > { %1061 = vst [vmem:[#allocation2 + $0x10] sm:$0xff] %v2087_v50  ;;  %1105 = vst [vmem:[#allocation2 + $0x170] sm:$0xff] %v2131_v51  ;;  %v2578_v52 = vpop.f32.mrb[1].mxu0  ;;  %v2580_v53 = vpop.f32.mrb[1].mxu1 }
  0xf4   : > { %v2088_v54 = vpop.f32.mrb[2].mxu0  ;;  %v2132_v55 = vpop.f32.mrb[2].mxu1 }
  0xf5   : > { %1062 = vst [vmem:[#allocation2 + $0x18] sm:$0xff] %v2088_v54  ;;  %1106 = vst [vmem:[#allocation2 + $0x178] sm:$0xff] %v2132_v55  ;;  %v2582_v56 = vpop.f32.mrb[3].mxu0  ;;  %v2584_v57 = vpop.f32.mrb[3].mxu1 }
  0xfa   : > { %v2091_v58 = vpop.f32.mrb[4].mxu0  ;;  %v2135_v59 = vpop.f32.mrb[4].mxu1  ;;  %v1150_v11 = vld [vmem:[#allocation2 + $0x10] sm:$0x3f] }
  0xfb   : > { %1065 = vst [vmem:[#allocation2 + $0x30] sm:$0xff] %v2091_v58  ;;  %1109 = vst [vmem:[#allocation2 + $0x190] sm:$0xff] %v2135_v59  ;;  %v724_v60 = vpop.f32.mrb[5].mxu0  ;;  %v900_v61 = vpop.f32.mrb[5].mxu1  ;;  %v1364_v12 = vld [vmem:[#allocation2 + $0x170] sm:$0x3f] }
  0xfc   : > { %1063 = vst [vmem:[#allocation2 + $0x20] sm:$0xff] %v724_v60  ;;  %1107 = vst [vmem:[#allocation2 + $0x180] sm:$0xff] %v900_v61  ;;  %v2092_v62 = vpop.f32.mrb[6].mxu0  ;;  %v2136_v63 = vpop.f32.mrb[6].mxu1  ;;  %v1151_v10 = vld [vmem:[#allocation2 + $0x16] sm:$0xff] }
  0xfd   : > { %1066 = vst [vmem:[#allocation2 + $0x38] sm:$0xff] %v2092_v62  ;;  %1110 = vst [vmem:[#allocation2 + $0x198] sm:$0xff] %v2136_v63  ;;  %v727_v0 = vpop.f32.mrb[7].mxu0  ;;  %v903_v1 = vpop.f32.mrb[7].mxu1  ;;  %v1365_v16 = vld [vmem:[#allocation2 + $0x176] sm:$0xff]  ;;  %v1160_v35 = vmax.f32 %v2578_v52, %v1151_v10 }
  0xfe   : > { %1064 = vst [vmem:[#allocation2 + $0x28] sm:$0xff] %v727_v0  ;;  %1108 = vst [vmem:[#allocation2 + $0x188] sm:$0xff] %v903_v1  ;;  %v1374_v49 = vmax.f32 %v2580_v53, %v1365_v16 }
 0x102   : > { %v2095_v2 = vpop.f32.mrb[8].mxu0  ;;  %v2139_v3 = vpop.f32.mrb[8].mxu1 }
 0x103   : > { %1069 = vst [vmem:[#allocation2 + $0x50] sm:$0xff] %v2095_v2  ;;  %1113 = vst [vmem:[#allocation2 + $0x1b0] sm:$0xff] %v2139_v3  ;;  %v740_v4 = vpop.f32.mrb[9].mxu0  ;;  %v916_v5 = vpop.f32.mrb[9].mxu1  ;;  %v1152_v13 = vld [vmem:[#allocation2 + $0x1e] sm:$0xff] }
 0x104   : > { %1067 = vst [vmem:[#allocation2 + $0x40] sm:$0xff] %v740_v4  ;;  %1111 = vst [vmem:[#allocation2 + $0x1a0] sm:$0xff] %v916_v5  ;;  %v2586_v6 = vpop.f32.mrb[10].mxu0  ;;  %v2588_v7 = vpop.f32.mrb[10].mxu1  ;;  %v1366_v26 = vld [vmem:[#allocation2 + $0x17e] sm:$0xff]  ;;  %v1155_v27 = vld [vmem:[#allocation2 + $0x34] sm:$0xff]  ;;  %v1161_v36 = vmax.f32 %v2582_v56, %v1152_v13 }
 0x105   : > { %v743_v8 = vpop.f32.mrb[11].mxu0  ;;  %v919_v9 = vpop.f32.mrb[11].mxu1  ;;  %v1153_v14 = vld [vmem:[#allocation2 + $0x26] sm:$0x3f]  ;;  %v1369_v28 = vld [vmem:[#allocation2 + $0x194] sm:$0xff]  ;;  %v1154_v37 = vld [vmem:[#allocation2 + $0x2c] sm:$0xff]  ;;  %v1375_v50 = vmax.f32 %v2584_v57, %v1366_v26 }
 0x106   : > { %1068 = vst [vmem:[#allocation2 + $0x48] sm:$0xff] %v743_v8  ;;  %1112 = vst [vmem:[#allocation2 + $0x1a8] sm:$0xff] %v919_v9  ;;  %v1367_v15 = vld [vmem:[#allocation2 + $0x186] sm:$0x3f]  ;;  %v1162_v29 = vmax.f32 %v1150_v11, %v1153_v14  ;;  %v1368_v42 = vld [vmem:[#allocation2 + $0x18c] sm:$0xff] }
 0x107   : > { %v1376_v30 = vmax.f32 %v1364_v12, %v1367_v15 }
 0x10a   : > { %v1159_v17 = vld [vmem:[#allocation2 + $0x52] sm:$0x3f]  ;;  %v2099_v19 = vpop.f32.mrb[12].mxu0  ;;  %v2143_v20 = vpop.f32.mrb[12].mxu1 }
 0x10b   : > { %v1373_v18 = vld [vmem:[#allocation2 + $0x1b2] sm:$0x3f]  ;;  %v1156_v22 = vld [vmem:[#allocation2 + $0x3c] sm:$0x3f]  ;;  %1073 = vst [vmem:[#allocation2 + $0x70] sm:$0xff] %v2099_v19  ;;  %1117 = vst [vmem:[#allocation2 + $0x1d0] sm:$0xff] %v2143_v20 }
 0x10c   : > { %v1370_v23 = vld [vmem:[#allocation2 + $0x19c] sm:$0x3f]  ;;  %v2595_v24 = vpop.f32.mrb[13].mxu0  ;;  %v2597_v25 = vpop.f32.mrb[13].mxu1  ;;  %v1165_v31 = vmax.f32 %v1156_v22, %v1159_v17 }
 0x10d   : > { %v1379_v32 = vmax.f32 %v1370_v23, %v1373_v18  ;;  %v2100_v33 = vpop.f32.mrb[14].mxu0  ;;  %v2144_v34 = vpop.f32.mrb[14].mxu1  ;;  %v1157_v38 = vld [vmem:[#allocation2 + $0x42] sm:$0xff]  ;;  %v1158_v39 = vld [vmem:[#allocation2 + $0x4a] sm:$0xff] }
 0x10e   : > { %1074 = vst [vmem:[#allocation2 + $0x78] sm:$0xff] %v2100_v33  ;;  %1118 = vst [vmem:[#allocation2 + $0x1d8] sm:$0xff] %v2144_v34  ;;  %v759_v40 = vpop.f32.mrb[15].mxu0  ;;  %v935_v41 = vpop.f32.mrb[15].mxu1  ;;  %v1168_v43 = vmax.f32 %v1162_v29, %v1165_v31  ;;  %v1163_v45 = vmax.f32 %v1154_v37, %v1157_v38  ;;  %v1164_v46 = vmax.f32 %v1155_v27, %v1158_v39  ;;  %v1371_v47 = vld [vmem:[#allocation2 + $0x1a2] sm:$0xff]  ;;  %v1372_v48 = vld [vmem:[#allocation2 + $0x1aa] sm:$0xff] }
 0x10f   : > { %v1382_v44 = vmax.f32 %v1376_v30, %v1379_v32  ;;  %1072 = vst [vmem:[#allocation2 + $0x68] sm:$0xff] %v759_v40  ;;  %1116 = vst [vmem:[#allocation2 + $0x1c8] sm:$0xff] %v935_v41  ;;  %v1377_v51 = vmax.f32 %v1368_v42, %v1371_v47  ;;  %v1378_v52 = vmax.f32 %v1369_v28, %v1372_v48 }
 0x110   : > { %v1177_v54 = vadd.f32 %v2593_v21, %v1168_v43  ;;  %v1166_v56 = vmax.f32 %v1160_v35, %v1163_v45  ;;  %v1167_v58 = vmax.f32 %v1161_v36, %v1164_v46 }
 0x111   : > { %v1385_v55 = vadd.f32 %v2593_v21, %v1382_v44  ;;  %v1380_v59 = vmax.f32 %v1374_v49, %v1377_v51  ;;  %v1381_v60 = vmax.f32 %v1375_v50, %v1378_v52 }
 0x112   : > { %v1180_v61 = vmax.f32 %v1177_v54, 0.0  ;;  %v1175_v63 = vadd.f32 %v2593_v21, %v1166_v56  ;;  %v1176_v53 = vadd.f32 %v2593_v21, %v1167_v58  ;;  %v2103_v0 = vpop.f32.mrb[16].mxu0  ;;  %v2147_v57 = vpop.f32.mrb[16].mxu1 }
 0x113   : > { %v1388_v62 = vmax.f32 %v1385_v55, 0.0  ;;  %v1383_v1 = vadd.f32 %v2593_v21, %v1380_v59  ;;  %v1384_v2 = vadd.f32 %v2593_v21, %v1381_v60  ;;  %1077 = vst [vmem:[#allocation2 + $0x90] sm:$0xff] %v2103_v0  ;;  %1121 = vst [vmem:[#allocation2 + $0x1f0] sm:$0xff] %v2147_v57  ;;  %v772_v3 = vpop.f32.mrb[17].mxu0  ;;  %v948_v4 = vpop.f32.mrb[17].mxu1 }
 0x114   : > { %v1998_v5 = vpack.c.bf16 %v1180_v61, %v1180_v61  ;;  %v1178_v9 = vmax.f32 %v1175_v63, 0.0  ;;  %v1179_v10 = vmax.f32 %v1176_v53, 0.0  ;;  %1075 = vst [vmem:[#allocation2 + $0x80] sm:$0xff] %v772_v3  ;;  %1119 = vst [vmem:[#allocation2 + $0x1e0] sm:$0xff] %v948_v4  ;;  %v2104_v11 = vpop.f32.mrb[18].mxu0  ;;  %v2148_v12 = vpop.f32.mrb[18].mxu1 }
 0x115   : > { %v2010_v8 = vpack.c.bf16 %v1388_v62, %v1388_v62  ;;  %v1386_v13 = vmax.f32 %v1383_v1, 0.0  ;;  %v1387_v14 = vmax.f32 %v1384_v2, 0.0  ;;  %1078 = vst [vmem:[#allocation2 + $0x98] sm:$0xff] %v2104_v11  ;;  %1122 = vst [vmem:[#allocation2 + $0x1f8] sm:$0xff] %v2148_v12  ;;  %v775_v16 = vpop.f32.mrb[19].mxu0  ;;  %v951_v17 = vpop.f32.mrb[19].mxu1 }
 0x116   : > { %1196 = vst [vmem:[%s2613_s17 + $0x8] sm:$0x7] %v1998_v5  ;;  %v2024_v15 = vpack.c.bf16 %v1179_v10, %v1178_v9  ;;  %1076 = vst [vmem:[#allocation2 + $0x88] sm:$0xff] %v775_v16  ;;  %v1200_v31 = vld [vmem:[#allocation2 + $0x6e] sm:$0xff]  ;;  %v1201_v34 = vld [vmem:[#allocation2 + $0x76] sm:$0xff] }
 0x117   : > { %1404 = vst [vmem:[%s2613_s17 + $0x34] sm:$0x7] %v2010_v8  ;;  %v2008_v18 = vpack.c.bf16 %v1386_v13, %v1386_v13  ;;  %v2009_v19 = vpack.c.bf16 %v1387_v14, %v1387_v14  ;;  %1120 = vst [vmem:[#allocation2 + $0x1e8] sm:$0xff] %v951_v17  ;;  %v1408_v32 = vld [vmem:[#allocation2 + $0x1ce] sm:$0xff]  ;;  %v1199_v35 = vld [vmem:[#allocation2 + $0x68] sm:$0x3f]  ;;  %v1209_v46 = vmax.f32 %v2586_v6, %v1200_v31 }
 0x118   : > { %2025 = vst [vmem:[%s2613_s17] sm:$0xff] %v2024_v15   ;;  %v1409_v45 = vld [vmem:[#allocation2 + $0x1d6] sm:$0xff]  ;;  %v1407_v47 = vld [vmem:[#allocation2 + $0x1c8] sm:$0x3f]  ;;  %v1417_v48 = vmax.f32 %v2588_v7, %v1408_v32  ;;  %v1210_v56 = vmax.f32 %v2595_v24, %v1201_v34 }
 0x119   : > { %1402 = vst [vmem:[%s2613_s17 + $0x2c] sm:$0xf] %v2008_v18  ;;  %1403 = vst [vmem:[%s2613_s17 + $0x30] sm:$0xf] %v2009_v19  ;;  %v1418_v3 = vmax.f32 %v2597_v25, %v1409_v45 }
 0x11a   : > { %v2620_v20 = vpop.f32.mrb[20].mxu0  ;;  %v2622_v22 = vpop.f32.mrb[20].mxu1 }
 0x11b   : > { %v788_v23 = vpop.f32.mrb[21].mxu0  ;;  %v964_v26 = vpop.f32.mrb[21].mxu1  ;;  %v1202_v33 = vld [vmem:[#allocation2 + $0x7e] sm:$0x3f] }
 0x11c   : > { %1079 = vst [vmem:[#allocation2 + $0xa0] sm:$0xff] %v788_v23  ;;  %1123 = vst [vmem:[#allocation2 + $0x200] sm:$0xff] %v964_v26  ;;  %v2624_v27 = vpop.f32.mrb[22].mxu0  ;;  %v2626_v28 = vpop.f32.mrb[22].mxu1  ;;  %v1410_v36 = vld [vmem:[#allocation2 + $0x1de] sm:$0x3f]  ;;  %v1211_v58 = vmax.f32 %v1199_v35, %v1202_v33 }
 0x11d   : > { %v791_v29 = vpop.f32.mrb[23].mxu0  ;;  %v967_v30 = vpop.f32.mrb[23].mxu1  ;;  %v1203_v37 = vld [vmem:[#allocation2 + $0x84] sm:$0xff]  ;;  %v1205_v49 = vld [vmem:[#allocation2 + $0x94] sm:$0x3f]  ;;  %v1204_v50 = vld [vmem:[#allocation2 + $0x8c] sm:$0xff]  ;;  %v1419_v24 = vmax.f32 %v1407_v47, %v1410_v36 }
 0x11e   : > { %1080 = vst [vmem:[#allocation2 + $0xa8] sm:$0xff] %v791_v29  ;;  %1124 = vst [vmem:[#allocation2 + $0x208] sm:$0xff] %v967_v30  ;;  %v1411_v40 = vld [vmem:[#allocation2 + $0x1e4] sm:$0xff]  ;;  %v1413_v63 = vld [vmem:[#allocation2 + $0x1f4] sm:$0x3f] }
 0x11f   : > { %v1412_v7 = vld [vmem:[#allocation2 + $0x1ec] sm:$0xff] }
 0x122   : > { %v2111_v38 = vpop.f32.mrb[24].mxu0  ;;  %v2155_v39 = vpop.f32.mrb[24].mxu1 }
 0x123   : > { %v1206_v41 = vld [vmem:[#allocation2 + $0x9a] sm:$0xff]  ;;  %1085 = vst [vmem:[#allocation2 + $0xd0] sm:$0xff] %v2111_v38  ;;  %1129 = vst [vmem:[#allocation2 + $0x230] sm:$0xff] %v2155_v39  ;;  %v804_v43 = vpop.f32.mrb[25].mxu0  ;;  %v980_v44 = vpop.f32.mrb[25].mxu1 }
 0x124   : > { %v1414_v42 = vld [vmem:[#allocation2 + $0x1fa] sm:$0xff]  ;;  %v1212_v51 = vmax.f32 %v1203_v37, %v1206_v41  ;;  %1083 = vst [vmem:[#allocation2 + $0xc0] sm:$0xff] %v804_v43  ;;  %1127 = vst [vmem:[#allocation2 + $0x220] sm:$0xff] %v980_v44  ;;  %v2112_v54 = vpop.f32.mrb[26].mxu0  ;;  %v2156_v55 = vpop.f32.mrb[26].mxu1 }
 0x125   : > { %v1420_v52 = vmax.f32 %v1411_v40, %v1414_v42  ;;  %v1207_v59 = vld [vmem:[#allocation2 + $0xa2] sm:$0xff]  ;;  %v1208_v60 = vld [vmem:[#allocation2 + $0xaa] sm:$0x3f]  ;;  %1086 = vst [vmem:[#allocation2 + $0xd8] sm:$0xff] %v2112_v54  ;;  %1130 = vst [vmem:[#allocation2 + $0x238] sm:$0xff] %v2156_v55  ;;  %v807_v6 = vpop.f32.mrb[27].mxu0 }
 0x126   : > { %v1415_v61 = vld [vmem:[#allocation2 + $0x202] sm:$0xff]  ;;  %v983_v62 = vpop.f32.mrb[27].mxu1  ;;  %v1215_v53 = vmax.f32 %v1209_v46, %v1212_v51  ;;  %v1213_v57 = vmax.f32 %v1204_v50, %v1207_v59  ;;  %v1214_v1 = vmax.f32 %v1205_v49, %v1208_v60  ;;  %v1416_v2 = vld [vmem:[#allocation2 + $0x20a] sm:$0x3f]  ;;  %1084 = vst [vmem:[#allocation2 + $0xc8] sm:$0xff] %v807_v6 }
 0x127   : > { %v1423_v0 = vmax.f32 %v1417_v48, %v1420_v52  ;;  %1128 = vst [vmem:[#allocation2 + $0x228] sm:$0xff] %v983_v62  ;;  %v1421_v4 = vmax.f32 %v1412_v7, %v1415_v61  ;;  %v1422_v5 = vmax.f32 %v1413_v63, %v1416_v2 }
 0x128   : > { %v1218_v8 = vadd.f32 %v2593_v21, %v1215_v53  ;;  %v1216_v10 = vmax.f32 %v1210_v56, %v1213_v57  ;;  %v1217_v11 = vmax.f32 %v1211_v58, %v1214_v1 }
 0x129   : > { %v1426_v9 = vadd.f32 %v2593_v21, %v1423_v0  ;;  %v1424_v12 = vmax.f32 %v1418_v3, %v1421_v4  ;;  %v1425_v13 = vmax.f32 %v1419_v24, %v1422_v5 }
 0x12a   : > { %v1221_v14 = vmax.f32 %v1218_v8, 0.0  ;;  %v1219_v16 = vadd.f32 %v2593_v21, %v1216_v10  ;;  %v1220_v17 = vadd.f32 %v2593_v21, %v1217_v11  ;;  %v2115_v18 = vpop.f32.mrb[28].mxu0  ;;  %v2159_v19 = vpop.f32.mrb[28].mxu1 }
 0x12b   : > { %v1429_v15 = vmax.f32 %v1426_v9, 0.0  ;;  %v1427_v25 = vadd.f32 %v2593_v21, %v1424_v12  ;;  %v1428_v23 = vadd.f32 %v2593_v21, %v1425_v13  ;;  %1089 = vst [vmem:[#allocation2 + $0xf0] sm:$0xff] %v2115_v18  ;;  %1133 = vst [vmem:[#allocation2 + $0x250] sm:$0xff] %v2159_v19  ;;  %v820_v26 = vpop.f32.mrb[29].mxu0  ;;  %v996_v29 = vpop.f32.mrb[29].mxu1 }
 0x12c   : > { %v1999_v30 = vpack.c.bf16 %v1221_v14, %v1221_v14  ;;  %v1222_v32 = vmax.f32 %v1219_v16, 0.0  ;;  %v1223_v33 = vmax.f32 %v1220_v17, 0.0  ;;  %1087 = vst [vmem:[#allocation2 + $0xe0] sm:$0xff] %v820_v26  ;;  %1131 = vst [vmem:[#allocation2 + $0x240] sm:$0xff] %v996_v29  ;;  %v2116_v36 = vpop.f32.mrb[30].mxu0  ;;  %v2160_v41 = vpop.f32.mrb[30].mxu1 }
 0x12d   : > { %v2011_v31 = vpack.c.bf16 %v1429_v15, %v1429_v15  ;;  %v1430_v34 = vmax.f32 %v1427_v25, 0.0  ;;  %v1431_v35 = vmax.f32 %v1428_v23, 0.0  ;;  %1090 = vst [vmem:[#allocation2 + $0xf8] sm:$0xff] %v2116_v36  ;;  %v823_v42 = vpop.f32.mrb[31].mxu0  ;;  %1134 = vst [vmem:[#allocation2 + $0x258] sm:$0xff] %v2160_v41  ;;  %v999_v46 = vpop.f32.mrb[31].mxu1 }
 0x12e   : > { %v1237_v37 = vrot.slane %v1999_v30, 5  ;;  %v2000_v39 = vpack.c.bf16 %v1222_v32, %v1222_v32  ;;  %v2001_v40 = vpack.c.bf16 %v1223_v33, %v1223_v33  ;;  %1088 = vst [vmem:[#allocation2 + $0xe8] sm:$0xff] %v823_v42  ;;  %1132 = vst [vmem:[#allocation2 + $0x248] sm:$0xff] %v999_v46  ;;  %v1256_v62 = vld [vmem:[#allocation2 + $0xc6] sm:$0xff]  ;;  %v1255_v12 = vld [vmem:[#allocation2 + $0xc0] sm:$0x3f] }
 0x12f   : > { %v1442_v38 = vrot.slane %v2011_v31, 5  ;;  %v2012_v44 = vpack.c.bf16 %v1430_v34, %v1430_v34  ;;  %v2013_v45 = vpack.c.bf16 %v1431_v35, %v1431_v35  ;;  %v1461_v57 = vld [vmem:[#allocation2 + $0x226] sm:$0xff]  ;;  %v1265_v9 = vmax.f32 %v2620_v20, %v1256_v62  ;;  %v1258_v15 = vld [vmem:[#allocation2 + $0xd6] sm:$0x3f]  ;;  %v1257_v16 = vld [vmem:[#allocation2 + $0xce] sm:$0xff] }
 0x130   : > { %v1238_v47 = vrot.slane %v1237_v37, 4  ;;  %1249 = vst [vmem:[%s2613_s17 + $0x8] sm:$0x8] %v1237_v37  ;;  %v1239_v49 = vrot.slane %v2000_v39, 5  ;;  %v1242_v50 = vrot.slane %v2001_v40, 5  ;;  %v1470_v13 = vmax.f32 %v2622_v22, %v1461_v57  ;;  %v1462_v17 = vld [vmem:[#allocation2 + $0x22e] sm:$0xff] }
 0x131   : > { %v1443_v48 = vrot.slane %v1442_v38, 4  ;;  %1454 = vst [vmem:[%s2613_s17 + $0x34] sm:$0x8] %v1442_v38  ;;  %v1444_v51 = vrot.slane %v2012_v44, 5  ;;  %v1447_v52 = vrot.slane %v2013_v45, 5  ;;  %v1267_v33 = vmax.f32 %v1255_v12, %v1258_v15 }
 0x132   : > { %v1240_v54 = vsel %vm2640_vm4, %v1238_v47, %v1239_v49  ;;  %v1241_v55 = vrot.slane %v1239_v49, 4  ;;  %v1244_v56 = vrot.slane %v1242_v50, 4  ;;  %v2648_v58 = vpop.f32.mrb[32].mxu0  ;;  %v2650_v59 = vpop.f32.mrb[32].mxu1  ;;  %v1460_v19 = vld [vmem:[#allocation2 + $0x220] sm:$0x3f]  ;;  %v1266_v34 = vmax.f32 %v2624_v27, %v1257_v16 }
 0x133   : > { %1250 = vst [vmem:[%s2613_s17 + $0xc] sm:$0xf] %v1240_v54  ;;  %v1445_v60 = vsel %vm2640_vm4, %v1443_v48, %v1444_v51  ;;  %v1446_v61 = vrot.slane %v1444_v51, 4  ;;  %v1449_v6 = vrot.slane %v1447_v52, 4  ;;  %v1259_v63 = vld [vmem:[#allocation2 + $0xdc] sm:$0xff]  ;;  %v836_v7 = vpop.f32.mrb[33].mxu0  ;;  %v1471_v22 = vmax.f32 %v2626_v28, %v1462_v17 }
 0x134   : > { %v1012_v53 = vpop.f32.mrb[33].mxu1  ;;  %v1243_v0 = vsel %vm2640_vm4, %v1241_v55, %v1242_v50  ;;  %1252 = vst [vmem:[%s2613_s17 + $0x14] sm:$0x3] %v1244_v56  ;;  %1455 = vst [vmem:[%s2613_s17 + $0x38] sm:$0xf] %v1445_v60  ;;  %v1464_v1 = vld [vmem:[#allocation2 + $0x23c] sm:$0xff] }
 0x135   : > { %1091 = vst [vmem:[#allocation2 + $0x100] sm:$0xff] %v836_v7  ;;  %1135 = vst [vmem:[#allocation2 + $0x260] sm:$0xff] %v1012_v53  ;;  %v2120_v2 = vpop.f32.mrb[34].mxu0  ;;  %v2164_v3 = vpop.f32.mrb[34].mxu1  ;;  %v1448_v24 = vsel %vm2640_vm4, %v1446_v61, %v1447_v52  ;;  %v1262_v4 = vld [vmem:[#allocation2 + $0xf2] sm:$0xff]  ;;  %v1260_v29 = vld [vmem:[#allocation2 + $0xe4] sm:$0xff] }
 0x136   : > { %1251 = vst [vmem:[%s2613_s17 + $0x10] sm:$0xf] %v1243_v0  ;;  %1457 = vst [vmem:[%s2613_s17 + $0x40] sm:$0x3] %v1449_v6  ;;  %v2663_v5 = vpop.f32.mrb[35].mxu0  ;;  %v2665_v8 = vpop.f32.mrb[35].mxu1  ;;  %v1268_v10 = vmax.f32 %v1259_v63, %v1262_v4 }
 0x137   : > { %1094 = vst [vmem:[#allocation2 + $0x118] sm:$0xff] %v2120_v2  ;;  %1138 = vst [vmem:[#allocation2 + $0x278] sm:$0xff] %v2164_v3  ;;  %v1467_v11 = vld [vmem:[#allocation2 + $0x252] sm:$0xff]  ;;  %v1261_v30 = vld [vmem:[#allocation2 + $0xec] sm:$0x3f] }
 0x138   : > { %1456 = vst [vmem:[%s2613_s17 + $0x3c] sm:$0xf] %v1448_v24  ;;  %v1473_v14 = vmax.f32 %v1464_v1, %v1467_v11  ;;  %v1271_v18 = vmax.f32 %v1265_v9, %v1268_v10  ;;  %v1463_v25 = vld [vmem:[#allocation2 + $0x236] sm:$0x3f]  ;;  %v1465_v31 = vld [vmem:[#allocation2 + $0x244] sm:$0xff] }
 0x139   : > { %v1466_v42 = vld [vmem:[#allocation2 + $0x24c] sm:$0x3f]  ;;  %v1472_v47 = vmax.f32 %v1460_v19, %v1463_v25 }
 0x13a   : > { %v1476_v23 = vmax.f32 %v1470_v13, %v1473_v14  ;;  %v1274_v26 = vadd.f32 %v2593_v21, %v1271_v18  ;;  %v2123_v32 = vpop.f32.mrb[36].mxu0  ;;  %v2167_v20 = vpop.f32.mrb[36].mxu1 }
 0x13b   : > { %1097 = vst [vmem:[#allocation2 + $0x130] sm:$0xff] %v2123_v32  ;;  %1141 = vst [vmem:[#allocation2 + $0x290] sm:$0xff] %v2167_v20  ;;  %v852_v39 = vpop.f32.mrb[37].mxu0  ;;  %v1028_v40 = vpop.f32.mrb[37].mxu1 }
 0x13c   : > { %v1479_v35 = vadd.f32 %v2593_v21, %v1476_v23  ;;  %v1263_v36 = vld [vmem:[#allocation2 + $0xfa] sm:$0xff]  ;;  %v1264_v37 = vld [vmem:[#allocation2 + $0x102] sm:$0x3f]  ;;  %v1277_v41 = vmax.f32 %v1274_v26, 0.0  ;;  %1095 = vst [vmem:[#allocation2 + $0x120] sm:$0xff] %v852_v39  ;;  %1139 = vst [vmem:[#allocation2 + $0x280] sm:$0xff] %v1028_v40 }
 0x13d   : > { %v1468_v38 = vld [vmem:[#allocation2 + $0x25a] sm:$0xff]  ;;  %v1269_v43 = vmax.f32 %v1260_v29, %v1263_v36  ;;  %v1270_v44 = vmax.f32 %v1261_v30, %v1264_v37  ;;  %v1469_v45 = vld [vmem:[#allocation2 + $0x262] sm:$0x3f]  ;;  %v2124_v27 = vpop.f32.mrb[38].mxu0  ;;  %v2168_v49 = vpop.f32.mrb[38].mxu1 }
 0x13e   : > { %v1474_v46 = vmax.f32 %v1465_v31, %v1468_v38  ;;  %v1482_v28 = vmax.f32 %v1479_v35, 0.0  ;;  %v1475_v48 = vmax.f32 %v1466_v42, %v1469_v45  ;;  %1098 = vst [vmem:[#allocation2 + $0x138] sm:$0xff] %v2124_v27  ;;  %v855_v50 = vpop.f32.mrb[39].mxu0  ;;  %v2002_v51 = vpack.c.bf16 %v1277_v41, %v1277_v41  ;;  %1142 = vst [vmem:[#allocation2 + $0x298] sm:$0xff] %v2168_v49  ;;  %v1031_v56 = vpop.f32.mrb[39].mxu1 }
 0x13f   : > { %v1272_v52 = vmax.f32 %v1266_v34, %v1269_v43  ;;  %v1273_v54 = vmax.f32 %v1267_v33, %v1270_v44  ;;  %1096 = vst [vmem:[#allocation2 + $0x128] sm:$0xff] %v855_v50  ;;  %1140 = vst [vmem:[#allocation2 + $0x288] sm:$0xff] %v1031_v56  ;;  %v1311_v43 = vld [vmem:[#allocation2 + $0x118] sm:$0x3f] }
 0x140   : > { %v1477_v55 = vmax.f32 %v1471_v22, %v1474_v46  ;;  %v2014_v60 = vpack.c.bf16 %v1482_v28, %v1482_v28  ;;  %v1478_v61 = vmax.f32 %v1472_v47, %v1475_v48  ;;  %v1293_v6 = vrot.slane %v2002_v51, 6  ;;  %v1513_v44 = vld [vmem:[#allocation2 + $0x278] sm:$0x3f] }
 0x141   : > { %v1275_v62 = vadd.f32 %v2593_v21, %v1272_v52  ;;  %v1276_v63 = vadd.f32 %v2593_v21, %v1273_v54 }
 0x142   : > { %v1480_v7 = vadd.f32 %v2593_v21, %v1477_v55  ;;  %v1495_v53 = vrot.slane %v2014_v60, 6  ;;  %v1481_v0 = vadd.f32 %v2593_v21, %v1478_v61  ;;  %1305 = vst [vmem:[%s2613_s17 + $0x14] sm:$0xc] %v1293_v6  ;;  %v2127_v3 = vpop.f32.mrb[40].mxu0  ;;  %v2171_v24 = vpop.f32.mrb[40].mxu1  ;;  %v1294_v16 = vrot.slane %v1293_v6, 4 }
 0x143   : > { %v1278_v57 = vmax.f32 %v1275_v62, 0.0  ;;  %v1279_v1 = vmax.f32 %v1276_v63, 0.0  ;;  %1101 = vst [vmem:[#allocation2 + $0x150] sm:$0xff] %v2127_v3  ;;  %1145 = vst [vmem:[#allocation2 + $0x2b0] sm:$0xff] %v2171_v24  ;;  %v868_v9 = vpop.f32.mrb[41].mxu0  ;;  %v1044_v10 = vpop.f32.mrb[41].mxu1 }
 0x144   : > { %v1483_v2 = vmax.f32 %v1480_v7, 0.0  ;;  %1507 = vst [vmem:[%s2613_s17 + $0x40] sm:$0xc] %v1495_v53  ;;  %v1484_v4 = vmax.f32 %v1481_v0, 0.0  ;;  %1099 = vst [vmem:[#allocation2 + $0x140] sm:$0xff] %v868_v9  ;;  %v2128_v14 = vpop.f32.mrb[42].mxu0 }
 0x145   : > { %v2003_v11 = vpack.c.bf16 %v1278_v57, %v1278_v57  ;;  %v2004_v12 = vpack.c.bf16 %v1279_v1, %v1279_v1  ;;  %1143 = vst [vmem:[#allocation2 + $0x2a0] sm:$0xff] %v1044_v10  ;;  %v2172_v15 = vpop.f32.mrb[42].mxu1  ;;  %1102 = vst [vmem:[#allocation2 + $0x158] sm:$0xff] %v2128_v14  ;;  %v871_v19 = vpop.f32.mrb[43].mxu0  ;;  %v1496_v23 = vrot.slane %v1495_v53, 4  ;;  %v1312_v36 = vld [vmem:[#allocation2 + $0x11e] sm:$0xff] }
 0x146   : > { %v2015_v13 = vpack.c.bf16 %v1483_v2, %v1483_v2  ;;  %v2016_v18 = vpack.c.bf16 %v1484_v4, %v1484_v4  ;;  %1146 = vst [vmem:[#allocation2 + $0x2b8] sm:$0xff] %v2172_v15  ;;  %v1047_v25 = vpop.f32.mrb[43].mxu1  ;;  %1100 = vst [vmem:[#allocation2 + $0x148] sm:$0xff] %v871_v19  ;;  %v1514_v37 = vld [vmem:[#allocation2 + $0x27e] sm:$0xff]  ;;  %v1313_v39 = vld [vmem:[#allocation2 + $0x126] sm:$0xff]  ;;  %v1321_v28 = vmax.f32 %v2663_v5, %v1312_v36 }
 0x147   : > { %v1295_v26 = vrot.slane %v2003_v11, 6  ;;  %v1298_v29 = vrot.slane %v2004_v12, 6  ;;  %1144 = vst [vmem:[#allocation2 + $0x2a8] sm:$0xff] %v1047_v25  ;;  %v1314_v40 = vld [vmem:[#allocation2 + $0x12e] sm:$0x3f]  ;;  %v1515_v41 = vld [vmem:[#allocation2 + $0x286] sm:$0xff]  ;;  %v1523_v48 = vmax.f32 %v2665_v8, %v1514_v37  ;;  %v1322_v52 = vmax.f32 %v2648_v58, %v1313_v39 }
 0x148   : > { %v1497_v30 = vrot.slane %v2015_v13, 6  ;;  %v1500_v31 = vrot.slane %v2016_v18, 6  ;;  %v1315_v45 = vld [vmem:[#allocation2 + $0x134] sm:$0xff]  ;;  %v1516_v46 = vld [vmem:[#allocation2 + $0x28e] sm:$0x3f]  ;;  %v1524_v54 = vmax.f32 %v2650_v59, %v1515_v41  ;;  %v1323_v63 = vmax.f32 %v1311_v43, %v1314_v40 }
 0x149   : > { %v1296_v32 = vsel %vm2682_vm7, %v1294_v16, %v1295_v26  ;;  %v1297_v20 = vrot.slane %v1295_v26, 4  ;;  %v1300_v33 = vrot.slane %v1298_v29, 4  ;;  %v1517_v62 = vld [vmem:[#allocation2 + $0x294] sm:$0xff]  ;;  %v1525_v7 = vmax.f32 %v1513_v44, %v1516_v46 }
 0x14a   : > { %v1498_v34 = vsel %vm2682_vm7, %v1496_v23, %v1497_v30  ;;  %1306 = vst [vmem:[%s2613_s17 + $0x18] sm:$0xf] %v1296_v32  ;;  %v1499_v22 = vrot.slane %v1497_v30, 4  ;;  %v1502_v35 = vrot.slane %v1500_v31, 4 }
 0x14b   : > { %1508 = vst [vmem:[%s2613_s17 + $0x44] sm:$0xf] %v1498_v34  ;;  %v1299_v38 = vsel %vm2682_vm7, %v1297_v20, %v1298_v29  ;;  %1308 = vst [vmem:[%s2613_s17 + $0x20] sm:$0x1] %v1300_v33  ;;  %v1316_v27 = vld [vmem:[#allocation2 + $0x13c] sm:$0xff] }
 0x14c   : > { %1307 = vst [vmem:[%s2613_s17 + $0x1c] sm:$0xf] %v1299_v38  ;;  %v1501_v42 = vsel %vm2682_vm7, %v1499_v22, %v1500_v31  ;;  %1510 = vst [vmem:[%s2613_s17 + $0x4c] sm:$0x1] %v1502_v35  ;;  %v1518_v47 = vld [vmem:[#allocation2 + $0x29c] sm:$0xff]  ;;  %v1319_v49 = vld [vmem:[#allocation2 + $0x152] sm:$0xff] }
 0x14d   : > { %1509 = vst [vmem:[%s2613_s17 + $0x48] sm:$0xf] %v1501_v42  ;;  %v1320_v50 = vld [vmem:[#allocation2 + $0x15a] sm:$0x3f]  ;;  %v1521_v51 = vld [vmem:[#allocation2 + $0x2b2] sm:$0xff]  ;;  %v1325_v55 = vmax.f32 %v1316_v27, %v1319_v49  ;;  %v1318_v6 = vld [vmem:[#allocation2 + $0x14a] sm:$0xff] }
 0x14e   : > { %v1522_v56 = vld [vmem:[#allocation2 + $0x2ba] sm:$0x3f]  ;;  %v1527_v60 = vmax.f32 %v1518_v47, %v1521_v51  ;;  %v1317_v61 = vld [vmem:[#allocation2 + $0x144] sm:$0x3f]  ;;  %v1324_v53 = vmax.f32 %v1315_v45, %v1318_v6  ;;  %v1520_v57 = vld [vmem:[#allocation2 + $0x2aa] sm:$0xff] }
 0x14f   : > { %v1326_v0 = vmax.f32 %v1317_v61, %v1320_v50  ;;  %v1519_v5 = vld [vmem:[#allocation2 + $0x2a4] sm:$0x3f]  ;;  %v1328_v8 = vmax.f32 %v1322_v52, %v1325_v55  ;;  %v1526_v2 = vmax.f32 %v1517_v62, %v1520_v57 }
 0x150   : > { %v1530_v1 = vmax.f32 %v1524_v54, %v1527_v60  ;;  %v1528_v3 = vmax.f32 %v1519_v5, %v1522_v56  ;;  %v1327_v24 = vmax.f32 %v1321_v28, %v1324_v53 }
 0x151   : > { %v1329_v58 = vmax.f32 %v1323_v63, %v1326_v0  ;;  %v1331_v59 = vadd.f32 %v2593_v21, %v1328_v8  ;;  %v1529_v9 = vmax.f32 %v1523_v48, %v1526_v2 }
 0x152   : > { %v1533_v4 = vadd.f32 %v2593_v21, %v1530_v1  ;;  %v1531_v10 = vmax.f32 %v1525_v7, %v1528_v3  ;;  %v1330_v11 = vadd.f32 %v2593_v21, %v1327_v24 }
 0x153   : > { %v1332_v12 = vadd.f32 %v2593_v21, %v1329_v58  ;;  %v1334_v13 = vmax.f32 %v1331_v59, 0.0  ;;  %v1532_v15 = vadd.f32 %v2593_v21, %v1529_v9 }
 0x154   : > { %v1536_v14 = vmax.f32 %v1533_v4, 0.0  ;;  %v1534_v16 = vadd.f32 %v2593_v21, %v1531_v10  ;;  %v1333_v17 = vmax.f32 %v1330_v11, 0.0 }
 0x155   : > { %v1335_v18 = vmax.f32 %v1332_v12, 0.0  ;;  %v2006_v19 = vpack.c.bf16 %v1334_v13, %v1334_v13  ;;  %v1535_v23 = vmax.f32 %v1532_v15, 0.0 }
 0x156   : > { %v2018_v25 = vpack.c.bf16 %v1536_v14, %v1536_v14  ;;  %v1537_v26 = vmax.f32 %v1534_v16, 0.0  ;;  %v2005_v29 = vpack.c.bf16 %v1333_v17, %v1333_v17 }
 0x157   : > { %v2007_v30 = vpack.c.bf16 %v1335_v18, %v1335_v18  ;;  %v1351_v31 = vrot.slane %v2006_v19, 7  ;;  %v2017_v20 = vpack.c.bf16 %v1535_v23, %v1535_v23 }
 0x158   : > { %v1550_v32 = vrot.slane %v2018_v25, 7  ;;  %v2019_v33 = vpack.c.bf16 %v1537_v26, %v1537_v26  ;;  %v1349_v34 = vrot.slane %v2005_v29, 7  ;;  %1567 = sbr.rel (!%p2461_p4) target bundleno = 427 (0x1ab), region = 36 }
 0x159   : > { %v1354_v22 = vrot.slane %v2007_v30, 7  ;;  %v1353_v35 = vrot.slane %v1351_v31, 4  ;;  %v1548_v37 = vrot.slane %v2017_v20, 7 }
 0x15a   : > { %v1552_v36 = vrot.slane %v1550_v32, 4  ;;  %v1553_v38 = vrot.slane %v2019_v33, 7  ;;  %v1350_v39 = vrot.slane %v1349_v34, 4  ;;  %1359 = vst [vmem:[%s2613_s17 + $0x20] sm:$0xe] %v1349_v34 }
 0x15b   : > { %v1355_v40 = vsel %vm2710_vm10, %v1353_v35, %v1354_v22  ;;  %v1549_v41 = vrot.slane %v1548_v37, 4  ;;  %1558 = vst [vmem:[%s2613_s17 + $0x4c] sm:$0xe] %v1548_v37 }
 0x15c   : > { %v1554_v42 = vsel %vm2710_vm10, %v1552_v36, %v1553_v38  ;;  %v1352_v43 = vsel %vm2710_vm10, %v1350_v39, %v1351_v31  ;;  %1361 = vst [vmem:[%s2613_s17 + $0x28] sm:$0xf] %v1355_v40 }
 0x15d   : > { %1560 = vst [vmem:[%s2613_s17 + $0x54] sm:$0xf] %v1554_v42  ;;  %1360 = vst [vmem:[%s2613_s17 + $0x24] sm:$0xf] %v1352_v43  ;;  %v1551_v44 = vsel %vm2710_vm10, %v1549_v41, %v1550_v32 }
 0x15e   : > { %1559 = vst [vmem:[%s2613_s17 + $0x50] sm:$0xf] %v1551_v44 }
 0x15f   : > { %s2856_s24 = smov (!%p1570_p8, %s1569_s24), 22 }
 0x160   : > { %s1984_s26 = sshll.u32 %s2856_s24, 6 }
 0x161   : > { %p1987_p9 = scmp.eq.s32.totalorder %s1984_s26, 0 }
 0x162   : > { %2324 = sdivrem.u32 (!%p1987_p9), %s2856_s24, 22 }
 0x163   : > { %1578 = sbr.rel (%p1987_p9) target bundleno = 427 (0x1ab), region = 40 }
 0x16b   : > { %s2741_s20 = spop.drf %2324 }
 0x16c   : > { %p1988_p10 = scmp.le.s32.totalorder %s2741_s20, 0 }
 0x16d   : > { %s2849_s15 = smov (!%p1988_p10), %s2735_s23  ;;  %s2850_s25 = smov (!%p1988_p10), %s2613_s17 }
 0x16e   : > { %1817 = sbr.rel (%p1988_p10) target bundleno = 398 (0x18e), region = 112  ;;  %s2750_s27 = smov (!%p1988_p10), 0  }
 0x16f   : > { %s2752_s28 = smov (!%p1988_p10), 0  }
 0x175 LB: >> { %v1595_v45 = vld [vmem:[%s2390_s25] sm:$0xf]  ;;  %v1597_v46 = vld [vmem:[%s2390_s25 + $0x4] sm:$0xf]  ;;  %v1599_v27 = vld [vmem:[%s2390_s25 + $0x8] sm:$0xf]  ;;  %s2398_s28 = sphi %s2752_s28, %s1589_s28   ;;  %s2394_s27 = sphi %s2750_s27, %s2851_s27   ;;  %s2390_s25 = sphi %s2850_s25, %s1644_s25   ;;  %s2386_s15 = sphi %s2849_s15, %s1645_s15  }
 0x176   : >> { %1596 = vst [vmem:[%s2386_s15] sm:$0xf] %v1595_v45  ;;  %1598 = vst [vmem:[%s2386_s15 + $0x4] sm:$0xf] %v1597_v46  ;;  %v1601_v47 = vld [vmem:[%s2390_s25 + $0xc] sm:$0xf]  ;;  %s1639_s29 = sadd.s32 1, %s2394_s27 }
 0x177   : >> { %1600 = vst [vmem:[%s2386_s15 + $0x8] sm:$0xf] %v1599_v27  ;;  %v1603_v28 = vld [vmem:[%s2390_s25 + $0x10] sm:$0xf]  ;;  %v1605_v48 = vld [vmem:[%s2390_s25 + $0x14] sm:$0xf]  ;;  %p1640_p11 = scmp.ge.s32.totalorder %s1639_s29, %s2741_s20 }
 0x178   : >> { %1602 = vst [vmem:[%s2386_s15 + $0xc] sm:$0xf] %v1601_v47  ;;  %1604 = vst [vmem:[%s2386_s15 + $0x10] sm:$0xf] %v1603_v28  ;;  %v1607_v49 = vld [vmem:[%s2390_s25 + $0x18] sm:$0xf] }
 0x179   : >> { %1606 = vst [vmem:[%s2386_s15 + $0x14] sm:$0xf] %v1605_v48  ;;  %v1609_v50 = vld [vmem:[%s2390_s25 + $0x1c] sm:$0xf]  ;;  %v1611_v51 = vld [vmem:[%s2390_s25 + $0x20] sm:$0xf] }
 0x17a   : >> { %1608 = vst [vmem:[%s2386_s15 + $0x18] sm:$0xf] %v1607_v49  ;;  %1610 = vst [vmem:[%s2386_s15 + $0x1c] sm:$0xf] %v1609_v50  ;;  %v1613_v52 = vld [vmem:[%s2390_s25 + $0x24] sm:$0xf] }
 0x17b   : >> { %1612 = vst [vmem:[%s2386_s15 + $0x20] sm:$0xf] %v1611_v51  ;;  %v1615_v54 = vld [vmem:[%s2390_s25 + $0x28] sm:$0xf]  ;;  %v1617_v55 = vld [vmem:[%s2390_s25 + $0x2c] sm:$0xf] }
 0x17c   : >> { %1614 = vst [vmem:[%s2386_s15 + $0x24] sm:$0xf] %v1613_v52  ;;  %1616 = vst [vmem:[%s2386_s15 + $0x28] sm:$0xf] %v1615_v54  ;;  %v1619_v56 = vld [vmem:[%s2390_s25 + $0x30] sm:$0xf] }
 0x17d   : >> { %1618 = vst [vmem:[%s2386_s15 + $0x2c] sm:$0xf] %v1617_v55  ;;  %v1621_v60 = vld [vmem:[%s2390_s25 + $0x34] sm:$0xf]  ;;  %v1623_v61 = vld [vmem:[%s2390_s25 + $0x38] sm:$0xf] }
 0x17e   : >> { %1620 = vst [vmem:[%s2386_s15 + $0x30] sm:$0xf] %v1619_v56  ;;  %1622 = vst [vmem:[%s2386_s15 + $0x34] sm:$0xf] %v1621_v60  ;;  %v1625_v6 = vld [vmem:[%s2390_s25 + $0x3c] sm:$0xf] }
 0x17f   : >> { %1624 = vst [vmem:[%s2386_s15 + $0x38] sm:$0xf] %v1623_v61  ;;  %v1627_v62 = vld [vmem:[%s2390_s25 + $0x40] sm:$0xf]  ;;  %v1629_v63 = vld [vmem:[%s2390_s25 + $0x44] sm:$0xf] }
 0x180   : >> { %1626 = vst [vmem:[%s2386_s15 + $0x3c] sm:$0xf] %v1625_v6  ;;  %1628 = vst [vmem:[%s2386_s15 + $0x40] sm:$0xf] %v1627_v62  ;;  %v1631_v7 = vld [vmem:[%s2390_s25 + $0x48] sm:$0xf] }
 0x181   : >> { %1630 = vst [vmem:[%s2386_s15 + $0x44] sm:$0xf] %v1629_v63  ;;  %v1633_v53 = vld [vmem:[%s2390_s25 + $0x4c] sm:$0xf]  ;;  %v1635_v0 = vld [vmem:[%s2390_s25 + $0x50] sm:$0xf] }
 0x182   : >> { %1632 = vst [vmem:[%s2386_s15 + $0x48] sm:$0xf] %v1631_v7  ;;  %1634 = vst [vmem:[%s2386_s15 + $0x4c] sm:$0xf] %v1633_v53  ;;  %v1637_v5 = vld [vmem:[%s2390_s25 + $0x54] sm:$0xf] }
 0x183   : >> { %1636 = vst [vmem:[%s2386_s15 + $0x50] sm:$0xf] %v1635_v0  ;;  %1638 = vst [vmem:[%s2386_s15 + $0x54] sm:$0xf] %v1637_v5  ;;  %s2858_s29 = smov (%p1640_p11, %s1639_s29), 0  ;;  %s1589_s28 = sadd.s32 1, %s2398_s28  }
 0x184   : >> { %s1642_s30 = smul.u32 88, %s2858_s29  ;;  %p1588_p12 = scmp.ge.s32.totalorder %s1589_s28, %s2741_s20 }
 0x185   : >> { %s2851_s27 = smov %s2858_s29 }
 0x186   : >> { %s1644_s25 = scalar_lea.vmem %s2613_s17, %s1642_s30 [#allocation3]   ;;  %s1645_s15 = scalar_lea.vmem %s2735_s23, %s1642_s30  }
 0x187   : > { %1591 = sbr.rel (!%p1588_p12) target bundleno = 373 (0x175), region = 118 }
 0x18e PF: > { %2326 = sdivrem.u32 %s2856_s24, 22 }
 0x18f   : > { %s1989_s4 = smul.u32 88, %s2741_s20 }
 0x191   : > { %s1650_s5 = scalar_lea.vmem %s2613_s17, %s1989_s4 [#allocation3]   ;;  %s1652_s6 = scalar_lea.vmem %s2735_s23, %s1989_s4  }
 0x197   : > { %s2327_s7 = spop.drf %2326 }
 0x198   : > { %p1991_p13 = scmp.le.s32.totalorder %s2327_s7, 0 }
 0x199   : > { %s2400_s8 = smov (!%p1991_p13), %s1652_s6   ;;  %s2404_s9 = smov (!%p1991_p13), %s1650_s5  }
 0x19a   : > { %1831 = sbr.rel (%p1991_p13) target bundleno = 427 (0x1ab), region = 123  ;;  %s2408_s10 = smov (!%p1991_p13), 0  }
 0x19b   : > { %s2412_s11 = smov (!%p1991_p13), 0  }
 0x1a1 LB: >> { %v1662_v57 = vld [vmem:[%s2406_s9] sm:$0xf]  ;;  %s1664_s14 = sadd.s32 1, %s2410_s10  ;;  %s1656_s11 = sadd.s32 1, %s2414_s11   ;;  %s2414_s11 = sphi %s2412_s11, %s1656_s11   ;;  %s2410_s10 = sphi %s2408_s10, %s2409_s10   ;;  %s2406_s9 = sphi %s2404_s9, %s1669_s9   ;;  %s2402_s8 = sphi %s2400_s8, %s1670_s8  }
 0x1a2   : >> { %1663 = vst [vmem:[%s2402_s8] sm:$0xf] %v1662_v57  ;;  %p1665_p0 = scmp.ge.s32.totalorder %s1664_s14, %s2327_s7  ;;  %p1655_p1 = scmp.ge.s32.totalorder %s1656_s11, %s2327_s7 }
 0x1a4   : >> { %s2860_s14 = smov (%p1665_p0, %s1664_s14), 0  ;;  %1658 = sbr.rel (!%p1655_p1) target bundleno = 417 (0x1a1), region = 129 }
 0x1a5   : >> { %s1992_s12 = sshll.u32 %s2860_s14, 2  ;;  %s2409_s10 = smov %s2860_s14  }
 0x1a6   : >> { %s1669_s9 = scalar_lea.vmem %s1650_s5, %s1992_s12 [#allocation3]   ;;  %s1670_s8 = scalar_lea.vmem %s1652_s6, %s1992_s12  }
 0x1ab PF: > { %p10_p2 = scmp.ge.s32.totalorder %s2451_s16, 8   ;;  %s2852_s12 = smov %s2378_s13 }
 0x1ac   : > { %s2853_s13 = smov %s2459_s19  ;;  %s2854_s14 = smov %s2451_s16 }
 0x1ad   :  { %12 = sbr.rel (!%p10_p2) target bundleno = 2 (0x2), region = 140 }

// kernel: species_cnn_forward.9
= control target key start
LH: loop header
LB: loop body
LE: loop exit
PB: predicated region body
PF: predicated region fallthrough
CT: control target
= control target key end

     0   :  { %s2637_s12 = smov 0   ;;  %s2639_s13 = smov 0   ;;  %s3084_s0 = inlined_call_operand.vmem [shape: bf16[800,144], index: 0, kind: input, shape index: {}]   ;;  %s3085_s1 = inlined_call_operand.vmem [shape: bf16[144,128], index: 1, kind: input, shape index: {}]   ;;  %s3086_s2 = inlined_call_operand.vmem [shape: f32[1,128], index: 2, kind: input, shape index: {}]   ;;  %s3087_s3 = inlined_call_operand.vmem [shape: bf16[200,128], index: 3, kind: output, shape index: {}]  }
   0x1   :  { %s2641_s14 = smov 0  }
   0x2 LB: > { %s2650_s15 = sadd.s32 4294967295, %s2582_s14   ;;  %s2652_s16 = sadd.s32 1, %s2582_s14   ;;  %s2582_s14 = sphi %s2641_s14, %s3100_s14   ;;  %s2578_s13 = sphi %s2639_s13, %s3099_s13   ;;  %s2574_s12 = sphi %s2637_s12, %s3098_s12  }
   0x3   : > { %s85_s17 = ssub.s32 %s2582_s14, %s2652_s16  ;;  %s88_s18 = sadd.s32 1, %s2578_s13 }
   0x4   : > { %p86_p0 = scmp.eq.s32.totalorder %s85_s17, 0  ;;  %p98_p1 = scmp.ne.s32.totalorder %s2578_s13, %s2574_s12 }
   0x5   : > { %p99_p2 = scmp.eq.s32.totalorder %s2650_s15, 1  ;;  %p2074_p3 = scmp.ge.s32.totalorder %s2582_s14, 1 }
   0x6   : > { %s2660_s19 = scalar_select %p86_p0, %s2578_s13, %s88_s18  }
   0x7   : > { %p2662_p4 = por %p99_p2, %p98_p1  ;;  %p149_p5 = scmp.lt.s32.totalorder %s2582_s14, 3 }
   0x9   : > { %p150_p6 = pnand %p2074_p3, %p149_p5 }
   0xa   : > { %v2394_v0 = vld [vmem:[%s3085_s1] sm:$0xff] (!%p150_p6)   ;;  %v2616_v1 = vmov (!%p150_p6), 0   ;;  %s2670_s23 = smul.u32 (!%p150_p6), 80, %s2650_s15  ;;  %v2395_v2 = vld [vmem:[%s3085_s1 + $0x8] sm:$0xff] (!%p150_p6)   ;;  %v2396_v3 = vld [vmem:[%s3085_s1 + $0x10] sm:$0xff] (!%p150_p6)   ;;  %vm713_vm0 = vcmask (!%p150_p6), 130048  }
   0xb   : > { %153 = sbr.rel (%p150_p6) target bundleno = 513 (0x201), region = 32  ;;  %834 = vmatprep.subr.bf16.mxu0 (!%p150_p6), %v2616_v1  ;;  %2285 = vmatprep.subr.bf16.mxu1 (!%p150_p6), %v2616_v1  ;;  %v2397_v4 = vld [vmem:[%s3085_s1 + $0x18] sm:$0xff] (!%p150_p6)   ;;  %v2398_v7 = vld [vmem:[%s3085_s1 + $0x20] sm:$0xff] (!%p150_p6)   ;;  %v2399_v8 = vld [vmem:[%s3085_s1 + $0x28] sm:$0xff] (!%p150_p6)   ;;  %s175_s25 = sand.u32 (!%p150_p6), 1, %s2574_s12   ;;  %vm1326_vm1 = vcmask (!%p150_p6), 1040384  }
   0xc   : > { %835 = vmatpush1.bf16.msra.mxu0 (!%p150_p6), %v2394_v0  ;;  %2294 = vmatpush1.bf16.msra.mxu1 (!%p150_p6), %v2394_v0  ;;  %p184_p7 = scmp.lt.s32.totalorder (!%p150_p6), %s2670_s23, 99  ;;  %v2400_v9 = vld [vmem:[%s3085_s1 + $0x30] sm:$0xff] (!%p150_p6)   ;;  %v2401_v10 = vld [vmem:[%s3085_s1 + $0x38] sm:$0xff] (!%p150_p6)   ;;  %v2402_v11 = vld [vmem:[%s3085_s1 + $0x40] sm:$0xff] (!%p150_p6)   ;;  %s2303_s27 = smul.u32 (!%p150_p6), 80, %s175_s25  ;;  %vm1327_vm2 = vcmask (!%p150_p6), 1044484  }
   0xd   : > { %836 = vmatprep.subr.bf16.mxu0 (!%p150_p6), %v2616_v1  ;;  %2286 = vmatprep.subr.bf16.mxu1 (!%p150_p6), %v2616_v1  ;;  %vm2859_vm3 = vmor (!%p150_p6), %vm1326_vm1, %vm1327_vm2  ;;  %vm1361_vm4 = vcmask (!%p150_p6), 1041408   ;;  %vm1362_vm5 = vcmask (!%p150_p6), 1045508   ;;  %vm1396_vm7 = vcmask (!%p150_p6), 1042432   ;;  %vm1397_vm8 = vcmask (!%p150_p6), 1046532  }
   0xe   : > { %s2843_s28 = scalar_lea.vmem (!%p150_p6), [#allocation3], %s2303_s27   ;;  %vm2881_vm6 = vmor (!%p150_p6), %vm1361_vm4, %vm1362_vm5 }
   0xf   : > { %vm2903_vm9 = vmor (!%p150_p6), %vm1396_vm7, %vm1397_vm8 }
  0x10   : > { %837 = vmatpush1.bf16.msra.mxu0 (!%p150_p6), %v2395_v2  ;;  %2295 = vmatpush1.bf16.msra.mxu1 (!%p150_p6), %v2395_v2 }
  0x11   : > { %838 = vmatprep.subr.bf16.mxu0 (!%p150_p6), %v2616_v1  ;;  %2287 = vmatprep.subr.bf16.mxu1 (!%p150_p6), %v2616_v1 }
  0x12   : > { %s185_s26 = scalar_select %p184_p7, %s2670_s23, 99 }
  0x13   : > { %s1786_s4 = smul.u32 (%p2662_p4), 20, %s2650_s15  ;;  %s2985_s7 = scalar_lea.vmem (%p2662_p4), %s3087_s3, %s2670_s23  }
  0x14   : > { %s2251_s29 = sshll.u32 %s185_s26, 3  ;;  %839 = vmatpush1.bf16.msra.mxu0 %v2396_v3  ;;  %2296 = vmatpush1.bf16.msra.mxu1 %v2396_v3 }
  0x15   : > { %s2683_s5 = scalar_lea.vmem %s3084_s0, %s2251_s29  ;;  %840 = vmatprep.subr.bf16.mxu0 %v2616_v1  ;;  %2288 = vmatprep.subr.bf16.mxu1 %v2616_v1  ;;  %s1787_s8 = ssub.s32 (%p2662_p4), 25, %s1786_s4 }
  0x16   : > { %v2405_v5 = vld [vmem:[%s2683_s5 + $0x4] ss:$8 sps:$4 sm:$0xff]   ;;  %v2403_v12 = vld [vmem:[%s2683_s5] ss:$8 sps:$4 sm:$0xff]   ;;  %v2409_v14 = vld [vmem:[%s2683_s5 + $0x14] ss:$8 sps:$4 sm:$0xff]  }
  0x17   : > { %v2408_v6 = vld [vmem:[%s2683_s5 + $0x144] ss:$8 sps:$4 sm:$0xff]   ;;  %2166 = vmatprep.mubr.msk.bf16.mxu0 %vm713_vm0, %v2405_v5  ;;  %v2406_v13 = vld [vmem:[%s2683_s5 + $0x140] ss:$8 sps:$4 sm:$0xff]   ;;  %v2411_v15 = vld [vmem:[%s2683_s5 + $0x154] ss:$8 sps:$4 sm:$0xff]  }
  0x18   : > { %2186 = vmatprep.mubr.msk.bf16.mxu1 %vm713_vm0, %v2408_v6  ;;  %841 = vmatpush1.bf16.msra.mxu0 %v2397_v4  ;;  %v2413_v16 = vld [vmem:[%s2683_s5 + $0x10] ss:$8 sps:$4 sm:$0xff]   ;;  %v2415_v18 = vld [vmem:[%s2683_s5 + $0x24] ss:$8 sps:$4 sm:$0xff]   ;;  %v2419_v20 = vld [vmem:[%s2683_s5 + $0x20] ss:$8 sps:$4 sm:$0xff]  }
  0x19   : > { %2297 = vmatpush1.bf16.msra.mxu1 %v2397_v4  ;;  %842 = vmatprep.subr.bf16.mxu0 %v2616_v1  ;;  %v2414_v17 = vld [vmem:[%s2683_s5 + $0x150] ss:$8 sps:$4 sm:$0xff]   ;;  %v2417_v19 = vld [vmem:[%s2683_s5 + $0x164] ss:$8 sps:$4 sm:$0xff]   ;;  %v2420_v21 = vld [vmem:[%s2683_s5 + $0x160] ss:$8 sps:$4 sm:$0xff]  }
  0x1a   : > { %2289 = vmatprep.subr.bf16.mxu1 %v2616_v1  ;;  %v2421_v22 = vld [vmem:[%s2683_s5 + $0x34] ss:$8 sps:$4 sm:$0xff]   ;;  %v2425_v24 = vld [vmem:[%s2683_s5 + $0x30] ss:$8 sps:$4 sm:$0xff]   ;;  %v2427_v26 = vld [vmem:[%s2683_s5 + $0x44] ss:$8 sps:$4 sm:$0xff]  }
  0x1b   : > { %v2423_v23 = vld [vmem:[%s2683_s5 + $0x174] ss:$8 sps:$4 sm:$0xff]   ;;  %v2426_v25 = vld [vmem:[%s2683_s5 + $0x170] ss:$8 sps:$4 sm:$0xff]   ;;  %v2429_v27 = vld [vmem:[%s2683_s5 + $0x184] ss:$8 sps:$4 sm:$0xff]  }
  0x1c   : > { %843 = vmatpush1.bf16.msra.mxu0 %v2398_v7  ;;  %v2431_v28 = vld [vmem:[%s2683_s5 + $0x40] ss:$8 sps:$4 sm:$0xff]   ;;  %v2433_v30 = vld [vmem:[%s2683_s5 + $0x54] ss:$8 sps:$4 sm:$0xff]   ;;  %v2437_v32 = vld [vmem:[%s2683_s5 + $0x50] ss:$8 sps:$4 sm:$0xff]  }
  0x1d   : > { %2298 = vmatpush1.bf16.msra.mxu1 %v2398_v7  ;;  %844 = vmatprep.subr.bf16.mxu0 %v2616_v1  ;;  %v2432_v29 = vld [vmem:[%s2683_s5 + $0x180] ss:$8 sps:$4 sm:$0xff]   ;;  %v2435_v31 = vld [vmem:[%s2683_s5 + $0x194] ss:$8 sps:$4 sm:$0xff]   ;;  %v2438_v33 = vld [vmem:[%s2683_s5 + $0x190] ss:$8 sps:$4 sm:$0xff]  }
  0x1e   : > { %2290 = vmatprep.subr.bf16.mxu1 %v2616_v1  ;;  %v2439_v34 = vld [vmem:[%s2683_s5 + $0x64] ss:$8 sps:$4 sm:$0xff]   ;;  %v2443_v36 = vld [vmem:[%s2683_s5 + $0x60] ss:$8 sps:$4 sm:$0xff]   ;;  %v2445_v38 = vld [vmem:[%s2683_s5 + $0x74] ss:$8 sps:$4 sm:$0xff]  }
  0x1f   : > { %v2441_v35 = vld [vmem:[%s2683_s5 + $0x1a4] ss:$8 sps:$4 sm:$0xff]   ;;  %v2444_v37 = vld [vmem:[%s2683_s5 + $0x1a0] ss:$8 sps:$4 sm:$0xff]   ;;  %v2447_v39 = vld [vmem:[%s2683_s5 + $0x1b4] ss:$8 sps:$4 sm:$0xff]  }
  0x20   : > { %845 = vmatpush1.bf16.msra.mxu0 %v2399_v8  ;;  %v2449_v40 = vld [vmem:[%s2683_s5 + $0x70] ss:$8 sps:$4 sm:$0xff]   ;;  %v2451_v42 = vld [vmem:[%s2683_s5 + $0x84] ss:$8 sps:$4 sm:$0xff]   ;;  %v2455_v44 = vld [vmem:[%s2683_s5 + $0x80] ss:$8 sps:$4 sm:$0xff]  }
  0x21   : > { %2299 = vmatpush1.bf16.msra.mxu1 %v2399_v8  ;;  %846 = vmatprep.subr.bf16.mxu0 %v2616_v1  ;;  %v2450_v41 = vld [vmem:[%s2683_s5 + $0x1b0] ss:$8 sps:$4 sm:$0xff]   ;;  %v2453_v43 = vld [vmem:[%s2683_s5 + $0x1c4] ss:$8 sps:$4 sm:$0xff]   ;;  %v2456_v45 = vld [vmem:[%s2683_s5 + $0x1c0] ss:$8 sps:$4 sm:$0xff]  }
  0x22   : > { %2291 = vmatprep.subr.bf16.mxu1 %v2616_v1  ;;  %v2457_v46 = vld [vmem:[%s2683_s5 + $0x94] ss:$8 sps:$4 sm:$0xff]   ;;  %v2461_v48 = vld [vmem:[%s2683_s5 + $0x90] ss:$8 sps:$4 sm:$0xff]   ;;  %v2463_v50 = vld [vmem:[%s2683_s5 + $0xa4] ss:$8 sps:$4 sm:$0xff]  }
  0x23   : > { %v2459_v47 = vld [vmem:[%s2683_s5 + $0x1d4] ss:$8 sps:$4 sm:$0xff]   ;;  %v2462_v49 = vld [vmem:[%s2683_s5 + $0x1d0] ss:$8 sps:$4 sm:$0xff]   ;;  %v2465_v51 = vld [vmem:[%s2683_s5 + $0x1e4] ss:$8 sps:$4 sm:$0xff]  }
  0x24   : > { %847 = vmatpush1.bf16.msra.mxu0 %v2400_v9  ;;  %v2467_v52 = vld [vmem:[%s2683_s5 + $0xa0] ss:$8 sps:$4 sm:$0xff]   ;;  %v2469_v54 = vld [vmem:[%s2683_s5 + $0xb4] ss:$8 sps:$4 sm:$0xff]   ;;  %v2473_v56 = vld [vmem:[%s2683_s5 + $0xb0] ss:$8 sps:$4 sm:$0xff]  }
  0x25   : > { %2300 = vmatpush1.bf16.msra.mxu1 %v2400_v9  ;;  %848 = vmatprep.subr.bf16.mxu0 %v2616_v1  ;;  %v2468_v53 = vld [vmem:[%s2683_s5 + $0x1e0] ss:$8 sps:$4 sm:$0xff]   ;;  %v2471_v55 = vld [vmem:[%s2683_s5 + $0x1f4] ss:$8 sps:$4 sm:$0xff]   ;;  %v2474_v57 = vld [vmem:[%s2683_s5 + $0x1f0] ss:$8 sps:$4 sm:$0xff]  }
  0x26   : > { %2292 = vmatprep.subr.bf16.mxu1 %v2616_v1  ;;  %v2475_v58 = vld [vmem:[%s2683_s5 + $0xc4] ss:$8 sps:$4 sm:$0xff]   ;;  %v2479_v60 = vld [vmem:[%s2683_s5 + $0xc0] ss:$8 sps:$4 sm:$0xff]   ;;  %v2481_v62 = vld [vmem:[%s2683_s5 + $0xd4] ss:$8 sps:$4 sm:$0xff]  }
  0x27   : > { %v2477_v59 = vld [vmem:[%s2683_s5 + $0x204] ss:$8 sps:$4 sm:$0xff]   ;;  %v2480_v61 = vld [vmem:[%s2683_s5 + $0x200] ss:$8 sps:$4 sm:$0xff]   ;;  %v2483_v63 = vld [vmem:[%s2683_s5 + $0x214] ss:$8 sps:$4 sm:$0xff]  }
  0x28   : > { %849 = vmatpush1.bf16.msra.mxu0 %v2401_v10  ;;  %v2485_v0 = vld [vmem:[%s2683_s5 + $0xd0] ss:$8 sps:$4 sm:$0xff]   ;;  %v2487_v2 = vld [vmem:[%s2683_s5 + $0xe4] ss:$8 sps:$4 sm:$0xff]   ;;  %v2491_v4 = vld [vmem:[%s2683_s5 + $0xe0] ss:$8 sps:$4 sm:$0xff]  }
  0x29   : > { %2301 = vmatpush1.bf16.msra.mxu1 %v2401_v10  ;;  %850 = vmatprep.subr.bf16.mxu0 %v2616_v1  ;;  %v2489_v3 = vld [vmem:[%s2683_s5 + $0x224] ss:$8 sps:$4 sm:$0xff]   ;;  %v2492_v5 = vld [vmem:[%s2683_s5 + $0x220] ss:$8 sps:$4 sm:$0xff]   ;;  %v2493_v6 = vld [vmem:[%s2683_s5 + $0xf4] ss:$8 sps:$4 sm:$0xff]  }
  0x2a   : > { %2293 = vmatprep.subr.bf16.mxu1 %v2616_v1  ;;  %v2486_v1 = vld [vmem:[%s2683_s5 + $0x210] ss:$8 sps:$4 sm:$0xff]   ;;  %v2495_v7 = vld [vmem:[%s2683_s5 + $0x234] ss:$8 sps:$4 sm:$0xff]   ;;  %v2499_v10 = vld [vmem:[%s2683_s5 + $0x104] ss:$8 sps:$4 sm:$0xff]  }
  0x2b   : > { %v2497_v8 = vld [vmem:[%s2683_s5 + $0xf0] ss:$8 sps:$4 sm:$0xff]   ;;  %p1788_p8 = scmp.lt.s32.totalorder (%p2662_p4), %s1787_s8, 20 }
  0x2c   : > { %851 = vmatpush1.bf16.msra.mxu0 %v2402_v11  ;;  %v2498_v9 = vld [vmem:[%s2683_s5 + $0x230] ss:$8 sps:$4 sm:$0xff]  }
  0x2d   : > { %2302 = vmatpush1.bf16.msra.mxu1 %v2402_v11  ;;  %v2501_v11 = vld [vmem:[%s2683_s5 + $0x244] ss:$8 sps:$4 sm:$0xff]  }
  0x2f   : > { %867 = vmatmul.mubr.bf16.vlgmr.msra.gmra.mrb[0].mxu0 %v2403_v12  ;;  %v2503_v12 = vld [vmem:[%s2683_s5 + $0x100] ss:$8 sps:$4 sm:$0xff]  }
  0x30   : > { %1027 = vmatmul.mubr.bf16.vlgmr.msra.gmra.mrb[0].mxu1 %v2406_v13  ;;  %2167 = vmatprep.mubr.msk.bf16.mxu0 %vm713_vm0, %v2409_v14  ;;  %v2504_v13 = vld [vmem:[%s2683_s5 + $0x240] ss:$8 sps:$4 sm:$0xff]   ;;  %v2505_v14 = vld [vmem:[%s2683_s5 + $0x114] ss:$8 sps:$4 sm:$0xff]  }
  0x31   : > { %2187 = vmatprep.mubr.msk.bf16.mxu1 %vm713_vm0, %v2411_v15  ;;  %v2507_v15 = vld [vmem:[%s2683_s5 + $0x254] ss:$8 sps:$4 sm:$0xff]  }
  0x37   : > { %875 = vmatmul.mubr.bf16.gmra.mrb[4].mxu0 %v2413_v16  ;;  %v2509_v16 = vld [vmem:[%s2683_s5 + $0x110] ss:$8 sps:$4 sm:$0xff]  }
  0x38   : > { %1035 = vmatmul.mubr.bf16.gmra.mrb[4].mxu1 %v2414_v17  ;;  %2168 = vmatprep.mubr.msk.bf16.mxu0 %vm713_vm0, %v2415_v18  ;;  %v2510_v17 = vld [vmem:[%s2683_s5 + $0x250] ss:$8 sps:$4 sm:$0xff]   ;;  %v2511_v18 = vld [vmem:[%s2683_s5 + $0x124] ss:$8 sps:$4 sm:$0xff]  }
  0x39   : > { %2188 = vmatprep.mubr.msk.bf16.mxu1 %vm713_vm0, %v2417_v19  ;;  %v2513_v19 = vld [vmem:[%s2683_s5 + $0x264] ss:$8 sps:$4 sm:$0xff]  }
  0x3f   : > { %883 = vmatmul.mubr.bf16.gmra.mrb[8].mxu0 %v2419_v20  ;;  %v2515_v20 = vld [vmem:[%s2683_s5 + $0x120] ss:$8 sps:$4 sm:$0xff]  }
  0x40   : > { %1043 = vmatmul.mubr.bf16.gmra.mrb[8].mxu1 %v2420_v21  ;;  %2169 = vmatprep.mubr.msk.bf16.mxu0 %vm713_vm0, %v2421_v22  ;;  %v2516_v21 = vld [vmem:[%s2683_s5 + $0x260] ss:$8 sps:$4 sm:$0xff]   ;;  %v2517_v22 = vld [vmem:[%s2683_s5 + $0x134] ss:$8 sps:$4 sm:$0xff]  }
  0x41   : > { %2189 = vmatprep.mubr.msk.bf16.mxu1 %vm713_vm0, %v2423_v23  ;;  %v2519_v23 = vld [vmem:[%s2683_s5 + $0x274] ss:$8 sps:$4 sm:$0xff]  }
  0x47   : > { %891 = vmatmul.mubr.bf16.gmra.mrb[12].mxu0 %v2425_v24  ;;  %v2521_v24 = vld [vmem:[%s2683_s5 + $0x130] ss:$8 sps:$4 sm:$0xff]  }
  0x48   : > { %1051 = vmatmul.mubr.bf16.gmra.mrb[12].mxu1 %v2426_v25  ;;  %2170 = vmatprep.mubr.msk.bf16.mxu0 %vm713_vm0, %v2427_v26  ;;  %v2522_v25 = vld [vmem:[%s2683_s5 + $0x270] ss:$8 sps:$4 sm:$0xff]  }
  0x49   : > { %2190 = vmatprep.mubr.msk.bf16.mxu1 %vm713_vm0, %v2429_v27 }
  0x4f   : > { %899 = vmatmul.mubr.bf16.gmra.mrb[16].mxu0 %v2431_v28 }
  0x50   : > { %1059 = vmatmul.mubr.bf16.gmra.mrb[16].mxu1 %v2432_v29  ;;  %2171 = vmatprep.mubr.msk.bf16.mxu0 %vm713_vm0, %v2433_v30 }
  0x51   : > { %2191 = vmatprep.mubr.msk.bf16.mxu1 %vm713_vm0, %v2435_v31 }
  0x57   : > { %907 = vmatmul.mubr.bf16.gmra.mrb[20].mxu0 %v2437_v32 }
  0x58   : > { %1067 = vmatmul.mubr.bf16.gmra.mrb[20].mxu1 %v2438_v33  ;;  %2172 = vmatprep.mubr.msk.bf16.mxu0 %vm713_vm0, %v2439_v34 }
  0x59   : > { %2192 = vmatprep.mubr.msk.bf16.mxu1 %vm713_vm0, %v2441_v35 }
  0x5f   : > { %915 = vmatmul.mubr.bf16.gmra.mrb[24].mxu0 %v2443_v36 }
  0x60   : > { %1075 = vmatmul.mubr.bf16.gmra.mrb[24].mxu1 %v2444_v37  ;;  %2173 = vmatprep.mubr.msk.bf16.mxu0 %vm713_vm0, %v2445_v38 }
  0x61   : > { %2193 = vmatprep.mubr.msk.bf16.mxu1 %vm713_vm0, %v2447_v39 }
  0x67   : > { %923 = vmatmul.mubr.bf16.gmra.mrb[28].mxu0 %v2449_v40 }
  0x68   : > { %1083 = vmatmul.mubr.bf16.gmra.mrb[28].mxu1 %v2450_v41  ;;  %2174 = vmatprep.mubr.msk.bf16.mxu0 %vm713_vm0, %v2451_v42 }
  0x69   : > { %2194 = vmatprep.mubr.msk.bf16.mxu1 %vm713_vm0, %v2453_v43 }
  0x6f   : > { %931 = vmatmul.mubr.bf16.gmra.mrb[32].mxu0 %v2455_v44 }
  0x70   : > { %1091 = vmatmul.mubr.bf16.gmra.mrb[32].mxu1 %v2456_v45  ;;  %2175 = vmatprep.mubr.msk.bf16.mxu0 %vm713_vm0, %v2457_v46 }
  0x71   : > { %2195 = vmatprep.mubr.msk.bf16.mxu1 %vm713_vm0, %v2459_v47 }
  0x77   : > { %939 = vmatmul.mubr.bf16.gmra.mrb[36].mxu0 %v2461_v48 }
  0x78   : > { %1099 = vmatmul.mubr.bf16.gmra.mrb[36].mxu1 %v2462_v49  ;;  %2176 = vmatprep.mubr.msk.bf16.mxu0 %vm713_vm0, %v2463_v50 }
  0x79   : > { %2196 = vmatprep.mubr.msk.bf16.mxu1 %vm713_vm0, %v2465_v51 }
  0x7f   : > { %947 = vmatmul.mubr.bf16.gmra.mrb[40].mxu0 %v2467_v52 }
  0x80   : > { %1107 = vmatmul.mubr.bf16.gmra.mrb[40].mxu1 %v2468_v53  ;;  %2177 = vmatprep.mubr.msk.bf16.mxu0 %vm713_vm0, %v2469_v54 }
  0x81   : > { %2197 = vmatprep.mubr.msk.bf16.mxu1 %vm713_vm0, %v2471_v55 }
  0x87   : > { %955 = vmatmul.mubr.bf16.gmra.mrb[44].mxu0 %v2473_v56 }
  0x88   : > { %1115 = vmatmul.mubr.bf16.gmra.mrb[44].mxu1 %v2474_v57  ;;  %2178 = vmatprep.mubr.msk.bf16.mxu0 %vm713_vm0, %v2475_v58 }
  0x89   : > { %2198 = vmatprep.mubr.msk.bf16.mxu1 %vm713_vm0, %v2477_v59 }
  0x8f   : > { %963 = vmatmul.mubr.bf16.gmra.mrb[48].mxu0 %v2479_v60 }
  0x90   : > { %1123 = vmatmul.mubr.bf16.gmra.mrb[48].mxu1 %v2480_v61  ;;  %2179 = vmatprep.mubr.msk.bf16.mxu0 %vm713_vm0, %v2481_v62 }
  0x91   : > { %2199 = vmatprep.mubr.msk.bf16.mxu1 %vm713_vm0, %v2483_v63 }
  0x97   : > { %971 = vmatmul.mubr.bf16.gmra.mrb[52].mxu0 %v2485_v0 }
  0x98   : > { %1131 = vmatmul.mubr.bf16.gmra.mrb[52].mxu1 %v2486_v1  ;;  %2180 = vmatprep.mubr.msk.bf16.mxu0 %vm713_vm0, %v2487_v2 }
  0x99   : > { %2200 = vmatprep.mubr.msk.bf16.mxu1 %vm713_vm0, %v2489_v3 }
  0x9f   : > { %979 = vmatmul.mubr.bf16.gmra.mrb[56].mxu0 %v2491_v4 }
  0xa0   : > { %1139 = vmatmul.mubr.bf16.gmra.mrb[56].mxu1 %v2492_v5  ;;  %2181 = vmatprep.mubr.msk.bf16.mxu0 %vm713_vm0, %v2493_v6 }
  0xa1   : > { %2201 = vmatprep.mubr.msk.bf16.mxu1 %vm713_vm0, %v2495_v7 }
  0xa7   : > { %987 = vmatmul.mubr.bf16.gmra.mrb[60].mxu0 %v2497_v8 }
  0xa8   : > { %1147 = vmatmul.mubr.bf16.gmra.mrb[60].mxu1 %v2498_v9  ;;  %2182 = vmatprep.mubr.msk.bf16.mxu0 %vm713_vm0, %v2499_v10 }
  0xa9   : > { %2202 = vmatprep.mubr.msk.bf16.mxu1 %vm713_vm0, %v2501_v11  ;;  %v2837_v11 = vld [vmem:[%s3086_s2] ss:$0 sm:$0xff] }
  0xaf   : > { %995 = vmatmul.mubr.bf16.gmra.mrb[64].mxu0 %v2503_v12 }
  0xb0   : > { %1155 = vmatmul.mubr.bf16.gmra.mrb[64].mxu1 %v2504_v13  ;;  %2183 = vmatprep.mubr.msk.bf16.mxu0 %vm713_vm0, %v2505_v14 }
  0xb1   : > { %2203 = vmatprep.mubr.msk.bf16.mxu1 %vm713_vm0, %v2507_v15 }
  0xb7   : > { %1003 = vmatmul.mubr.bf16.gmra.mrb[68].mxu0 %v2509_v16 }
  0xb8   : > { %1163 = vmatmul.mubr.bf16.gmra.mrb[68].mxu1 %v2510_v17  ;;  %2184 = vmatprep.mubr.msk.bf16.mxu0 %vm713_vm0, %v2511_v18 }
  0xb9   : > { %2204 = vmatprep.mubr.msk.bf16.mxu1 %vm713_vm0, %v2513_v19 }
  0xbf   : > { %1011 = vmatmul.mubr.bf16.gmra.mrb[72].mxu0 %v2515_v20 }
  0xc0   : > { %1171 = vmatmul.mubr.bf16.gmra.mrb[72].mxu1 %v2516_v21  ;;  %2185 = vmatprep.mubr.msk.bf16.mxu0 %vm713_vm0, %v2517_v22 }
  0xc1   : > { %2205 = vmatprep.mubr.msk.bf16.mxu1 %vm713_vm0, %v2519_v23 }
  0xc7   : > { %1019 = vmatmul.mubr.bf16.gmra.mrb[76].mxu0 %v2521_v24 }
  0xc8   : > { %1179 = vmatmul.mubr.bf16.gmra.mrb[76].mxu1 %v2522_v25 }
 0x102   : > { %v2823_v26 = vpop.f32.mrb[0].mxu0 }
 0x103   : > { %v2825_v27 = vpop.f32.mrb[0].mxu1  ;;  %v870_v28 = vpop.f32.mrb[1].mxu0 }
 0x104   : > { %v1030_v29 = vpop.f32.mrb[1].mxu1  ;;  %v871_v30 = vpop.f32.mrb[2].mxu0 }
 0x105   : > { %v1031_v31 = vpop.f32.mrb[2].mxu1  ;;  %1188 = vst [vmem:[#allocation2 + $0x8] sm:$0xff] %v871_v30  ;;  %v873_v32 = vpop.f32.mrb[3].mxu0 }
 0x106   : > { %1228 = vst [vmem:[#allocation2 + $0x148] sm:$0xff] %v1031_v31  ;;  %v1033_v33 = vpop.f32.mrb[3].mxu1 }
 0x10a   : > { %v876_v34 = vpop.f32.mrb[4].mxu0 }
 0x10b   : > { %v1036_v35 = vpop.f32.mrb[4].mxu1  ;;  %1189 = vst [vmem:[#allocation2 + $0x10] sm:$0xff] %v876_v34  ;;  %v878_v36 = vpop.f32.mrb[5].mxu0 }
 0x10c   : > { %1229 = vst [vmem:[#allocation2 + $0x150] sm:$0xff] %v1036_v35  ;;  %v1038_v37 = vpop.f32.mrb[5].mxu1  ;;  %v879_v38 = vpop.f32.mrb[6].mxu0  ;;  %v1269_v52 = vld [vmem:[#allocation2 + $0x8] sm:$0x3] }
 0x10d   : > { %v1039_v39 = vpop.f32.mrb[6].mxu1  ;;  %1190 = vst [vmem:[#allocation2 + $0x18] sm:$0xff] %v879_v38  ;;  %v881_v40 = vpop.f32.mrb[7].mxu0  ;;  %v1532_v55 = vld [vmem:[#allocation2 + $0x148] sm:$0x3] }
 0x10e   : > { %1230 = vst [vmem:[#allocation2 + $0x158] sm:$0xff] %v1039_v39  ;;  %v1041_v41 = vpop.f32.mrb[7].mxu1 }
 0x112   : > { %v884_v42 = vpop.f32.mrb[8].mxu0  ;;  %v1270_v50 = vld [vmem:[#allocation2 + $0xa] sm:$0xff]  ;;  %v1271_v51 = vld [vmem:[#allocation2 + $0x12] sm:$0x3] }
 0x113   : > { %v1044_v43 = vpop.f32.mrb[8].mxu1  ;;  %1191 = vst [vmem:[#allocation2 + $0x20] sm:$0xff] %v884_v42  ;;  %v886_v44 = vpop.f32.mrb[9].mxu0  ;;  %v1533_v53 = vld [vmem:[#allocation2 + $0x14a] sm:$0xff]  ;;  %v1534_v54 = vld [vmem:[#allocation2 + $0x152] sm:$0x3]  ;;  %v1276_v59 = vmax.f32 %v2823_v26, %v1270_v50  ;;  %v1277_v60 = vmax.f32 %v1269_v52, %v1271_v51 }
 0x114   : > { %1231 = vst [vmem:[#allocation2 + $0x160] sm:$0xff] %v1044_v43  ;;  %v1046_v45 = vpop.f32.mrb[9].mxu1  ;;  %v2827_v46 = vpop.f32.mrb[10].mxu0  ;;  %v1272_v56 = vld [vmem:[#allocation2 + $0x14] sm:$0xff]  ;;  %v1273_v57 = vld [vmem:[#allocation2 + $0x1c] sm:$0x3]  ;;  %v1539_v2 = vmax.f32 %v2825_v27, %v1533_v53  ;;  %v1540_v10 = vmax.f32 %v1532_v55, %v1534_v54 }
 0x115   : > { %v2829_v47 = vpop.f32.mrb[10].mxu1  ;;  %v889_v48 = vpop.f32.mrb[11].mxu0  ;;  %v1535_v58 = vld [vmem:[#allocation2 + $0x154] sm:$0xff]  ;;  %v1536_v3 = vld [vmem:[#allocation2 + $0x15c] sm:$0x3] }
 0x116   : > { %v1049_v49 = vpop.f32.mrb[11].mxu1 }
 0x11a   : > { %v1274_v61 = vld [vmem:[#allocation2 + $0x1e] sm:$0xff]  ;;  %v1275_v62 = vld [vmem:[#allocation2 + $0x26] sm:$0x3]  ;;  %v892_v0 = vpop.f32.mrb[12].mxu0 }
 0x11b   : > { %v1537_v63 = vld [vmem:[#allocation2 + $0x15e] sm:$0xff]  ;;  %v1052_v1 = vpop.f32.mrb[12].mxu1  ;;  %v1278_v4 = vmax.f32 %v1272_v56, %v1274_v61  ;;  %v1279_v5 = vmax.f32 %v1273_v57, %v1275_v62  ;;  %v1538_v6 = vld [vmem:[#allocation2 + $0x166] sm:$0x3]  ;;  %1193 = vst [vmem:[#allocation2 + $0x30] sm:$0xff] %v892_v0  ;;  %v894_v8 = vpop.f32.mrb[13].mxu0 }
 0x11c   : > { %v1541_v7 = vmax.f32 %v1535_v58, %v1537_v63  ;;  %1233 = vst [vmem:[#allocation2 + $0x170] sm:$0xff] %v1052_v1  ;;  %v1054_v9 = vpop.f32.mrb[13].mxu1  ;;  %v1542_v12 = vmax.f32 %v1536_v3, %v1538_v6  ;;  %v895_v13 = vpop.f32.mrb[14].mxu0 }
 0x11d   : > { %v1055_v14 = vpop.f32.mrb[14].mxu1  ;;  %v1280_v15 = vmax.f32 %v1276_v59, %v1278_v4  ;;  %v1281_v16 = vmax.f32 %v1277_v60, %v1279_v5  ;;  %1194 = vst [vmem:[#allocation2 + $0x38] sm:$0xff] %v895_v13  ;;  %v897_v18 = vpop.f32.mrb[15].mxu0 }
 0x11e   : > { %v1543_v17 = vmax.f32 %v1539_v2, %v1541_v7  ;;  %1234 = vst [vmem:[#allocation2 + $0x178] sm:$0xff] %v1055_v14  ;;  %v1057_v19 = vpop.f32.mrb[15].mxu1  ;;  %v1544_v20 = vmax.f32 %v1540_v10, %v1542_v12 }
 0x11f   : > { %v1288_v21 = vadd.f32 %v2837_v11, %v1280_v15  ;;  %v1289_v22 = vadd.f32 %v2837_v11, %v1281_v16 }
 0x120   : > { %v1545_v23 = vadd.f32 %v2837_v11, %v1543_v17  ;;  %v1546_v24 = vadd.f32 %v2837_v11, %v1544_v20 }
 0x121   : > { %v1290_v25 = vmax.f32 %v1288_v21, 0.0  ;;  %v1291_v26 = vmax.f32 %v1289_v22, 0.0 }
 0x122   : > { %v1547_v27 = vmax.f32 %v1545_v23, 0.0  ;;  %v1548_v28 = vmax.f32 %v1546_v24, 0.0  ;;  %v900_v29 = vpop.f32.mrb[16].mxu0  ;;  %v1303_v42 = vld [vmem:[#allocation2 + $0x30] sm:$0x3] }
 0x123   : > { %v2252_v30 = vpack.c.bf16 %v1290_v25, %v1290_v25  ;;  %v2253_v31 = vpack.c.bf16 %v1291_v26, %v1291_v26  ;;  %1195 = vst [vmem:[#allocation2 + $0x40] sm:$0xff] %v900_v29  ;;  %v1060_v33 = vpop.f32.mrb[16].mxu1  ;;  %v902_v34 = vpop.f32.mrb[17].mxu0  ;;  %v1560_v50 = vld [vmem:[#allocation2 + $0x170] sm:$0x3] }
 0x124   : > { %v2268_v32 = vpack.c.bf16 %v1547_v27, %v1547_v27  ;;  %v2269_v35 = vpack.c.bf16 %v1548_v28, %v1548_v28  ;;  %1235 = vst [vmem:[#allocation2 + $0x180] sm:$0xff] %v1060_v33  ;;  %v1062_v36 = vpop.f32.mrb[17].mxu1  ;;  %v903_v37 = vpop.f32.mrb[18].mxu0  ;;  %v1305_v41 = vld [vmem:[#allocation2 + $0x3a] sm:$0x3]  ;;  %v1304_v43 = vld [vmem:[#allocation2 + $0x32] sm:$0xff] }
 0x125   : > { %1300 = vst [vmem:[%s2843_s28] sm:$0xf] %v2252_v30  ;;  %1301 = vst [vmem:[%s2843_s28 + $0x4] sm:$0x1] %v2253_v31  ;;  %v1063_v38 = vpop.f32.mrb[18].mxu1  ;;  %v905_v39 = vpop.f32.mrb[19].mxu0  ;;  %v1561_v44 = vld [vmem:[#allocation2 + $0x172] sm:$0xff]  ;;  %v1310_v60 = vmax.f32 %v2827_v46, %v1304_v43  ;;  %v1311_v61 = vmax.f32 %v1303_v42, %v1305_v41 }
 0x126   : > { %1557 = vst [vmem:[%s2843_s28 + $0x28] sm:$0xf] %v2268_v32  ;;  %1196 = vst [vmem:[#allocation2 + $0x48] sm:$0xff] %v903_v37  ;;  %v1065_v40 = vpop.f32.mrb[19].mxu1  ;;  %v1562_v45 = vld [vmem:[#allocation2 + $0x17a] sm:$0x3]  ;;  %v1567_v5 = vmax.f32 %v2829_v47, %v1561_v44 }
 0x127   : > { %1558 = vst [vmem:[%s2843_s28 + $0x2c] sm:$0x1] %v2269_v35  ;;  %1236 = vst [vmem:[#allocation2 + $0x188] sm:$0xff] %v1063_v38  ;;  %v1568_v6 = vmax.f32 %v1560_v50, %v1562_v45 }
 0x12a   : > { %v2849_v48 = vpop.f32.mrb[20].mxu0  ;;  %v1307_v51 = vld [vmem:[#allocation2 + $0x44] sm:$0x3]  ;;  %v1306_v55 = vld [vmem:[#allocation2 + $0x3c] sm:$0xff] }
 0x12b   : > { %v2851_v49 = vpop.f32.mrb[20].mxu1  ;;  %v1564_v52 = vld [vmem:[#allocation2 + $0x184] sm:$0x3]  ;;  %v910_v53 = vpop.f32.mrb[21].mxu0  ;;  %v1563_v62 = vld [vmem:[#allocation2 + $0x17c] sm:$0xff] }
 0x12c   : > { %v1070_v54 = vpop.f32.mrb[21].mxu1  ;;  %v911_v58 = vpop.f32.mrb[22].mxu0 }
 0x12d   : > { %v1308_v56 = vld [vmem:[#allocation2 + $0x46] sm:$0xff]  ;;  %v1309_v57 = vld [vmem:[#allocation2 + $0x4e] sm:$0x3]  ;;  %v1071_v59 = vpop.f32.mrb[22].mxu1  ;;  %1198 = vst [vmem:[#allocation2 + $0x58] sm:$0xff] %v911_v58  ;;  %v913_v3 = vpop.f32.mrb[23].mxu0 }
 0x12e   : > { %v1312_v63 = vmax.f32 %v1306_v55, %v1308_v56  ;;  %v1313_v0 = vmax.f32 %v1307_v51, %v1309_v57  ;;  %v1565_v1 = vld [vmem:[#allocation2 + $0x186] sm:$0xff]  ;;  %v1566_v2 = vld [vmem:[#allocation2 + $0x18e] sm:$0x3]  ;;  %1238 = vst [vmem:[#allocation2 + $0x198] sm:$0xff] %v1071_v59  ;;  %v1073_v4 = vpop.f32.mrb[23].mxu1 }
 0x12f   : > { %v1569_v7 = vmax.f32 %v1563_v62, %v1565_v1  ;;  %v1570_v8 = vmax.f32 %v1564_v52, %v1566_v2 }
 0x130   : > { %v1314_v9 = vmax.f32 %v1310_v60, %v1312_v63  ;;  %v1315_v10 = vmax.f32 %v1311_v61, %v1313_v0 }
 0x131   : > { %v1571_v12 = vmax.f32 %v1567_v5, %v1569_v7  ;;  %v1572_v13 = vmax.f32 %v1568_v6, %v1570_v8 }
 0x132   : > { %v1316_v46 = vadd.f32 %v2837_v11, %v1314_v9  ;;  %v1317_v14 = vadd.f32 %v2837_v11, %v1315_v10  ;;  %v916_v17 = vpop.f32.mrb[24].mxu0 }
 0x133   : > { %v1573_v15 = vadd.f32 %v2837_v11, %v1571_v12  ;;  %v1574_v16 = vadd.f32 %v2837_v11, %v1572_v13  ;;  %v1076_v18 = vpop.f32.mrb[24].mxu1  ;;  %1199 = vst [vmem:[#allocation2 + $0x60] sm:$0xff] %v916_v17  ;;  %v918_v47 = vpop.f32.mrb[25].mxu0 }
 0x134   : > { %v1318_v19 = vmax.f32 %v1316_v46, 0.0  ;;  %v1319_v20 = vmax.f32 %v1317_v14, 0.0  ;;  %1239 = vst [vmem:[#allocation2 + $0x1a0] sm:$0xff] %v1076_v18  ;;  %v1078_v21 = vpop.f32.mrb[25].mxu1  ;;  %v919_v26 = vpop.f32.mrb[26].mxu0 }
 0x135   : > { %v1575_v22 = vmax.f32 %v1573_v15, 0.0  ;;  %v1576_v23 = vmax.f32 %v1574_v16, 0.0  ;;  %v1079_v27 = vpop.f32.mrb[26].mxu1  ;;  %1200 = vst [vmem:[#allocation2 + $0x68] sm:$0xff] %v919_v26  ;;  %v921_v30 = vpop.f32.mrb[27].mxu0 }
 0x136   : > { %v2254_v24 = vpack.c.bf16 %v1318_v19, %v1318_v19  ;;  %v2255_v25 = vpack.c.bf16 %v1319_v20, %v1319_v20  ;;  %1240 = vst [vmem:[#allocation2 + $0x1a8] sm:$0xff] %v1079_v27  ;;  %v1081_v31 = vpop.f32.mrb[27].mxu1  ;;  %v1338_v53 = vld [vmem:[#allocation2 + $0x58] sm:$0x3] }
 0x137   : > { %v2270_v28 = vpack.c.bf16 %v1575_v22, %v1575_v22  ;;  %v2271_v29 = vpack.c.bf16 %v1576_v23, %v1576_v23  ;;  %v1592_v57 = vld [vmem:[#allocation2 + $0x198] sm:$0x3] }
 0x138   : > { %v1329_v32 = vrot.slane %v2254_v24, 7  ;;  %v1331_v36 = vrot.slane %v2255_v25, 7 }
 0x139   : > { %v1583_v34 = vrot.slane %v2270_v28, 7  ;;  %v1585_v38 = vrot.slane %v2271_v29, 7 }
 0x13a   : > { %v1330_v35 = vrot.slane %v1329_v32, 4  ;;  %1335 = vst [vmem:[%s2843_s28 + $0x4] sm:$0xe] %v1329_v32  ;;  %v924_v39 = vpop.f32.mrb[28].mxu0  ;;  %v1339_v54 = vld [vmem:[#allocation2 + $0x5a] sm:$0xff] }
 0x13b   : > { %v1584_v37 = vrot.slane %v1583_v34, 4  ;;  %1589 = vst [vmem:[%s2843_s28 + $0x2c] sm:$0xe] %v1583_v34  ;;  %1201 = vst [vmem:[#allocation2 + $0x70] sm:$0xff] %v924_v39  ;;  %v1084_v41 = vpop.f32.mrb[28].mxu1  ;;  %v926_v42 = vpop.f32.mrb[29].mxu0  ;;  %v1345_v2 = vmax.f32 %v2849_v48, %v1339_v54 }
 0x13c   : > { %v1332_v40 = vsel %vm2859_vm3, %v1330_v35, %v1331_v36  ;;  %1241 = vst [vmem:[#allocation2 + $0x1b0] sm:$0xff] %v1084_v41  ;;  %v1086_v44 = vpop.f32.mrb[29].mxu1  ;;  %v2870_v45 = vpop.f32.mrb[30].mxu0  ;;  %v1340_v55 = vld [vmem:[#allocation2 + $0x62] sm:$0x3]  ;;  %v1593_v56 = vld [vmem:[#allocation2 + $0x19a] sm:$0xff] }
 0x13d   : > { %1336 = vst [vmem:[%s2843_s28 + $0x8] sm:$0x3] %v1332_v40  ;;  %v1586_v43 = vsel %vm2859_vm3, %v1584_v37, %v1585_v38  ;;  %v2873_v50 = vpop.f32.mrb[30].mxu1  ;;  %v929_v51 = vpop.f32.mrb[31].mxu0  ;;  %v1594_v58 = vld [vmem:[#allocation2 + $0x1a2] sm:$0x3]  ;;  %v1346_v3 = vmax.f32 %v1338_v53, %v1340_v55  ;;  %v1599_v12 = vmax.f32 %v2851_v49, %v1593_v56 }
 0x13e   : > { %1590 = vst [vmem:[%s2843_s28 + $0x30] sm:$0x3] %v1586_v43  ;;  %v1089_v52 = vpop.f32.mrb[31].mxu1  ;;  %v1342_v59 = vld [vmem:[#allocation2 + $0x6c] sm:$0x3]  ;;  %v1341_v61 = vld [vmem:[#allocation2 + $0x64] sm:$0xff]  ;;  %v1600_v13 = vmax.f32 %v1592_v57, %v1594_v58 }
 0x13f   : > { %v1596_v60 = vld [vmem:[#allocation2 + $0x1ac] sm:$0x3]  ;;  %v1595_v4 = vld [vmem:[#allocation2 + $0x1a4] sm:$0xff] }
 0x142   : > { %v1343_v62 = vld [vmem:[#allocation2 + $0x6e] sm:$0xff]  ;;  %v1344_v63 = vld [vmem:[#allocation2 + $0x76] sm:$0x3]  ;;  %v932_v0 = vpop.f32.mrb[32].mxu0 }
 0x143   : > { %v1092_v1 = vpop.f32.mrb[32].mxu1  ;;  %v1347_v5 = vmax.f32 %v1341_v61, %v1343_v62  ;;  %v1348_v6 = vmax.f32 %v1342_v59, %v1344_v63  ;;  %v1597_v7 = vld [vmem:[#allocation2 + $0x1ae] sm:$0xff]  ;;  %v1598_v8 = vld [vmem:[#allocation2 + $0x1b6] sm:$0x3]  ;;  %1203 = vst [vmem:[#allocation2 + $0x80] sm:$0xff] %v932_v0  ;;  %v934_v9 = vpop.f32.mrb[33].mxu0 }
 0x144   : > { %1243 = vst [vmem:[#allocation2 + $0x1c0] sm:$0xff] %v1092_v1  ;;  %v1094_v10 = vpop.f32.mrb[33].mxu1  ;;  %v1601_v46 = vmax.f32 %v1595_v4, %v1597_v7  ;;  %v1602_v14 = vmax.f32 %v1596_v60, %v1598_v8  ;;  %v935_v15 = vpop.f32.mrb[34].mxu0 }
 0x145   : > { %v1095_v16 = vpop.f32.mrb[34].mxu1  ;;  %v1349_v17 = vmax.f32 %v1345_v2, %v1347_v5  ;;  %v1350_v18 = vmax.f32 %v1346_v3, %v1348_v6  ;;  %1204 = vst [vmem:[#allocation2 + $0x88] sm:$0xff] %v935_v15  ;;  %v937_v48 = vpop.f32.mrb[35].mxu0 }
 0x146   : > { %1244 = vst [vmem:[#allocation2 + $0x1c8] sm:$0xff] %v1095_v16  ;;  %v1097_v19 = vpop.f32.mrb[35].mxu1  ;;  %v1603_v20 = vmax.f32 %v1599_v12, %v1601_v46  ;;  %v1604_v47 = vmax.f32 %v1600_v13, %v1602_v14 }
 0x147   : > { %v1351_v21 = vadd.f32 %v2837_v11, %v1349_v17  ;;  %v1352_v22 = vadd.f32 %v2837_v11, %v1350_v18 }
 0x148   : > { %v1605_v23 = vadd.f32 %v2837_v11, %v1603_v20  ;;  %v1606_v49 = vadd.f32 %v2837_v11, %v1604_v47 }
 0x149   : > { %v1353_v24 = vmax.f32 %v1351_v21, 0.0  ;;  %v1354_v25 = vmax.f32 %v1352_v22, 0.0 }
 0x14a   : > { %v1607_v26 = vmax.f32 %v1605_v23, 0.0  ;;  %v1608_v27 = vmax.f32 %v1606_v49, 0.0  ;;  %v940_v30 = vpop.f32.mrb[36].mxu0  ;;  %v1373_v56 = vld [vmem:[#allocation2 + $0x80] sm:$0x3] }
 0x14b   : > { %v2256_v28 = vpack.c.bf16 %v1353_v24, %v1353_v24  ;;  %v2257_v29 = vpack.c.bf16 %v1354_v25, %v1354_v25  ;;  %v1100_v31 = vpop.f32.mrb[36].mxu1  ;;  %1205 = vst [vmem:[#allocation2 + $0x90] sm:$0xff] %v940_v30  ;;  %v942_v35 = vpop.f32.mrb[37].mxu0  ;;  %v1624_v46 = vld [vmem:[#allocation2 + $0x1c0] sm:$0x3] }
 0x14c   : > { %v2272_v32 = vpack.c.bf16 %v1607_v26, %v1607_v26  ;;  %v2273_v34 = vpack.c.bf16 %v1608_v27, %v1608_v27  ;;  %1245 = vst [vmem:[#allocation2 + $0x1d0] sm:$0xff] %v1100_v31  ;;  %v1102_v36 = vpop.f32.mrb[37].mxu1  ;;  %v943_v38 = vpop.f32.mrb[38].mxu0  ;;  %v1374_v57 = vld [vmem:[#allocation2 + $0x82] sm:$0xff]  ;;  %v1375_v58 = vld [vmem:[#allocation2 + $0x8a] sm:$0x3] }
 0x14d   : > { %v1364_v37 = vrot.slane %v2256_v28, 6  ;;  %v1103_v39 = vpop.f32.mrb[38].mxu1  ;;  %1206 = vst [vmem:[#allocation2 + $0x98] sm:$0xff] %v943_v38  ;;  %v945_v42 = vpop.f32.mrb[39].mxu0  ;;  %v1366_v51 = vrot.slane %v2257_v29, 6  ;;  %v1625_v61 = vld [vmem:[#allocation2 + $0x1c2] sm:$0xff]  ;;  %v1380_v6 = vmax.f32 %v2870_v45, %v1374_v57  ;;  %v1381_v7 = vmax.f32 %v1373_v56, %v1375_v58 }
 0x14e   : > { %v1615_v41 = vrot.slane %v2272_v32, 6  ;;  %1246 = vst [vmem:[#allocation2 + $0x1d8] sm:$0xff] %v1103_v39  ;;  %v1105_v43 = vpop.f32.mrb[39].mxu1  ;;  %v1617_v53 = vrot.slane %v2273_v34, 6  ;;  %v1626_v62 = vld [vmem:[#allocation2 + $0x1ca] sm:$0x3]  ;;  %v1631_v14 = vmax.f32 %v2873_v50, %v1625_v61 }
 0x14f   : > { %v1365_v44 = vrot.slane %v1364_v37, 4  ;;  %1370 = vst [vmem:[%s2843_s28 + $0x8] sm:$0xc] %v1364_v37  ;;  %v1632_v19 = vmax.f32 %v1624_v46, %v1626_v62 }
 0x150   : > { %v1616_v52 = vrot.slane %v1615_v41, 4  ;;  %1621 = vst [vmem:[%s2843_s28 + $0x30] sm:$0xc] %v1615_v41 }
 0x151   : > { %v1367_v54 = vsel %vm2881_vm6, %v1365_v44, %v1366_v51 }
 0x152   : > { %1371 = vst [vmem:[%s2843_s28 + $0xc] sm:$0x7] %v1367_v54  ;;  %v1618_v55 = vsel %vm2881_vm6, %v1616_v52, %v1617_v53  ;;  %v2892_v59 = vpop.f32.mrb[40].mxu0  ;;  %v1376_v1 = vld [vmem:[#allocation2 + $0x8c] sm:$0xff]  ;;  %v1377_v2 = vld [vmem:[#allocation2 + $0x94] sm:$0x3] }
 0x153   : > { %v2894_v60 = vpop.f32.mrb[40].mxu1  ;;  %1622 = vst [vmem:[%s2843_s28 + $0x34] sm:$0x7] %v1618_v55  ;;  %v950_v63 = vpop.f32.mrb[41].mxu0  ;;  %v1627_v3 = vld [vmem:[#allocation2 + $0x1cc] sm:$0xff] }
 0x154   : > { %v1110_v0 = vpop.f32.mrb[41].mxu1  ;;  %v951_v4 = vpop.f32.mrb[42].mxu0  ;;  %v1378_v8 = vld [vmem:[#allocation2 + $0x96] sm:$0xff]  ;;  %v1379_v9 = vld [vmem:[#allocation2 + $0x9e] sm:$0x3] }
 0x155   : > { %v1111_v5 = vpop.f32.mrb[42].mxu1  ;;  %v1629_v10 = vld [vmem:[#allocation2 + $0x1d6] sm:$0xff]  ;;  %1208 = vst [vmem:[#allocation2 + $0xa8] sm:$0xff] %v951_v4  ;;  %v953_v12 = vpop.f32.mrb[43].mxu0  ;;  %v1628_v15 = vld [vmem:[#allocation2 + $0x1d4] sm:$0x3]  ;;  %v1382_v16 = vmax.f32 %v1376_v1, %v1378_v8  ;;  %v1383_v17 = vmax.f32 %v1377_v2, %v1379_v9 }
 0x156   : > { %1248 = vst [vmem:[#allocation2 + $0x1e8] sm:$0xff] %v1111_v5  ;;  %v1113_v13 = vpop.f32.mrb[43].mxu1  ;;  %v1630_v18 = vld [vmem:[#allocation2 + $0x1de] sm:$0x3]  ;;  %v1633_v48 = vmax.f32 %v1627_v3, %v1629_v10 }
 0x157   : > { %v1634_v20 = vmax.f32 %v1628_v15, %v1630_v18  ;;  %v1384_v47 = vmax.f32 %v1380_v6, %v1382_v16  ;;  %v1385_v45 = vmax.f32 %v1381_v7, %v1383_v17 }
 0x158   : > { %v1635_v21 = vmax.f32 %v1631_v14, %v1633_v48 }
 0x159   : > { %v1636_v22 = vmax.f32 %v1632_v19, %v1634_v20  ;;  %v1386_v23 = vadd.f32 %v2837_v11, %v1384_v47  ;;  %v1387_v49 = vadd.f32 %v2837_v11, %v1385_v45 }
 0x15a   : > { %v1637_v24 = vadd.f32 %v2837_v11, %v1635_v21  ;;  %v956_v25 = vpop.f32.mrb[44].mxu0 }
 0x15b   : > { %v1116_v26 = vpop.f32.mrb[44].mxu1  ;;  %v1638_v50 = vadd.f32 %v2837_v11, %v1636_v22  ;;  %1209 = vst [vmem:[#allocation2 + $0xb0] sm:$0xff] %v956_v25  ;;  %v958_v27 = vpop.f32.mrb[45].mxu0  ;;  %v1388_v29 = vmax.f32 %v1386_v23, 0.0  ;;  %v1389_v30 = vmax.f32 %v1387_v49, 0.0 }
 0x15c   : > { %1249 = vst [vmem:[#allocation2 + $0x1f0] sm:$0xff] %v1116_v26  ;;  %v1118_v28 = vpop.f32.mrb[45].mxu1  ;;  %v1639_v31 = vmax.f32 %v1637_v24, 0.0  ;;  %v959_v32 = vpop.f32.mrb[46].mxu0  ;;  %v1408_v6 = vld [vmem:[#allocation2 + $0xa8] sm:$0x3] }
 0x15d   : > { %v1640_v34 = vmax.f32 %v1638_v50, 0.0  ;;  %1210 = vst [vmem:[#allocation2 + $0xb8] sm:$0xff] %v959_v32  ;;  %v1119_v35 = vpop.f32.mrb[46].mxu1  ;;  %v961_v36 = vpop.f32.mrb[47].mxu0  ;;  %v2258_v37 = vpack.c.bf16 %v1388_v29, %v1388_v29  ;;  %v2259_v38 = vpack.c.bf16 %v1389_v30, %v1389_v30  ;;  %v1656_v9 = vld [vmem:[#allocation2 + $0x1e8] sm:$0x3] }
 0x15e   : > { %v2274_v39 = vpack.c.bf16 %v1639_v31, %v1639_v31  ;;  %1250 = vst [vmem:[#allocation2 + $0x1f8] sm:$0xff] %v1119_v35  ;;  %v1121_v41 = vpop.f32.mrb[47].mxu1 }
 0x15f   : > { %v2275_v42 = vpack.c.bf16 %v1640_v34, %v1640_v34  ;;  %v1399_v43 = vrot.slane %v2258_v37, 5  ;;  %v1401_v53 = vrot.slane %v2259_v38, 5 }
 0x160   : > { %v1647_v44 = vrot.slane %v2274_v39, 5 }
 0x161   : > { %v1400_v52 = vrot.slane %v1399_v43, 4  ;;  %1405 = vst [vmem:[%s2843_s28 + $0xc] sm:$0x8] %v1399_v43  ;;  %v1649_v55 = vrot.slane %v2275_v42, 5 }
 0x162   : > { %v1648_v54 = vrot.slane %v1647_v44, 4  ;;  %1653 = vst [vmem:[%s2843_s28 + $0x34] sm:$0x8] %v1647_v44  ;;  %v964_v56 = vpop.f32.mrb[48].mxu0  ;;  %v1409_v4 = vld [vmem:[#allocation2 + $0xaa] sm:$0xff] }
 0x163   : > { %v1124_v57 = vpop.f32.mrb[48].mxu1  ;;  %v1402_v58 = vsel %vm2903_vm9, %v1400_v52, %v1401_v53  ;;  %1211 = vst [vmem:[#allocation2 + $0xc0] sm:$0xff] %v964_v56  ;;  %v966_v62 = vpop.f32.mrb[49].mxu0  ;;  %v1410_v5 = vld [vmem:[#allocation2 + $0xb2] sm:$0x3]  ;;  %v1657_v7 = vld [vmem:[#allocation2 + $0x1ea] sm:$0xff]  ;;  %v1415_v15 = vmax.f32 %v2892_v59, %v1409_v4 }
 0x164   : > { %v1650_v61 = vsel %vm2903_vm9, %v1648_v54, %v1649_v55  ;;  %1251 = vst [vmem:[#allocation2 + $0x200] sm:$0xff] %v1124_v57  ;;  %v1126_v63 = vpop.f32.mrb[49].mxu1  ;;  %1406 = vst [vmem:[%s2843_s28 + $0x10] sm:$0xf] %v1402_v58  ;;  %v2915_v0 = vpop.f32.mrb[50].mxu0  ;;  %v1411_v10 = vld [vmem:[#allocation2 + $0xb4] sm:$0xff]  ;;  %v1416_v16 = vmax.f32 %v1408_v6, %v1410_v5  ;;  %v1663_v47 = vmax.f32 %v2894_v60, %v1657_v7 }
 0x165   : > { %1654 = vst [vmem:[%s2843_s28 + $0x38] sm:$0xf] %v1650_v61  ;;  %v2917_v1 = vpop.f32.mrb[50].mxu1  ;;  %v969_v2 = vpop.f32.mrb[51].mxu0  ;;  %v1658_v8 = vld [vmem:[#allocation2 + $0x1f2] sm:$0x3] }
 0x166   : > { %v1129_v3 = vpop.f32.mrb[51].mxu1  ;;  %v1412_v12 = vld [vmem:[#allocation2 + $0xbc] sm:$0x3]  ;;  %v1659_v13 = vld [vmem:[#allocation2 + $0x1f4] sm:$0xff]  ;;  %v1664_v26 = vmax.f32 %v1656_v9, %v1658_v8 }
 0x167   : > { %v1660_v45 = vld [vmem:[#allocation2 + $0x1fc] sm:$0x3] }
 0x16a   : > { %v972_v46 = vpop.f32.mrb[52].mxu0  ;;  %v1413_v17 = vld [vmem:[#allocation2 + $0xbe] sm:$0xff]  ;;  %v1414_v18 = vld [vmem:[#allocation2 + $0xc6] sm:$0x3] }
 0x16b   : > { %v1132_v14 = vpop.f32.mrb[52].mxu1  ;;  %v1661_v48 = vld [vmem:[#allocation2 + $0x1fe] sm:$0xff]  ;;  %1213 = vst [vmem:[#allocation2 + $0xd0] sm:$0xff] %v972_v46  ;;  %v974_v19 = vpop.f32.mrb[53].mxu0  ;;  %v1417_v21 = vmax.f32 %v1411_v10, %v1413_v17  ;;  %v1418_v22 = vmax.f32 %v1412_v12, %v1414_v18  ;;  %v1662_v23 = vld [vmem:[#allocation2 + $0x206] sm:$0x3] }
 0x16c   : > { %1253 = vst [vmem:[#allocation2 + $0x210] sm:$0xff] %v1132_v14  ;;  %v1134_v20 = vpop.f32.mrb[53].mxu1  ;;  %v1665_v49 = vmax.f32 %v1659_v13, %v1661_v48  ;;  %v975_v24 = vpop.f32.mrb[54].mxu0  ;;  %v1666_v50 = vmax.f32 %v1660_v45, %v1662_v23 }
 0x16d   : > { %v1135_v25 = vpop.f32.mrb[54].mxu1  ;;  %1214 = vst [vmem:[#allocation2 + $0xd8] sm:$0xff] %v975_v24  ;;  %v977_v59 = vpop.f32.mrb[55].mxu0  ;;  %v1419_v28 = vmax.f32 %v1415_v15, %v1417_v21  ;;  %v1420_v29 = vmax.f32 %v1416_v16, %v1418_v22 }
 0x16e   : > { %1254 = vst [vmem:[#allocation2 + $0x218] sm:$0xff] %v1135_v25  ;;  %v1137_v27 = vpop.f32.mrb[55].mxu1  ;;  %v1667_v30 = vmax.f32 %v1663_v47, %v1665_v49  ;;  %v1668_v31 = vmax.f32 %v1664_v26, %v1666_v50 }
 0x16f   : > { %v1421_v32 = vadd.f32 %v2837_v11, %v1419_v28  ;;  %v1422_v60 = vadd.f32 %v2837_v11, %v1420_v29 }
 0x170   : > { %v1669_v34 = vadd.f32 %v2837_v11, %v1667_v30  ;;  %v1670_v35 = vadd.f32 %v2837_v11, %v1668_v31 }
 0x171   : > { %v1423_v36 = vmax.f32 %v1421_v32, 0.0  ;;  %v1424_v37 = vmax.f32 %v1422_v60, 0.0 }
 0x172   : > { %v1671_v38 = vmax.f32 %v1669_v34, 0.0  ;;  %v980_v39 = vpop.f32.mrb[56].mxu0  ;;  %v1672_v41 = vmax.f32 %v1670_v35, 0.0  ;;  %v1436_v63 = vld [vmem:[#allocation2 + $0xd0] sm:$0x3] }
 0x173   : > { %1215 = vst [vmem:[#allocation2 + $0xe0] sm:$0xff] %v980_v39  ;;  %v1140_v42 = vpop.f32.mrb[56].mxu1  ;;  %v982_v43 = vpop.f32.mrb[57].mxu0  ;;  %v2260_v44 = vpack.c.bf16 %v1423_v36, %v1423_v36  ;;  %v2261_v52 = vpack.c.bf16 %v1424_v37, %v1424_v37  ;;  %v1684_v7 = vld [vmem:[#allocation2 + $0x210] sm:$0x3] }
 0x174   : > { %v2276_v53 = vpack.c.bf16 %v1671_v38, %v1671_v38  ;;  %1255 = vst [vmem:[#allocation2 + $0x220] sm:$0xff] %v1140_v42  ;;  %v1142_v54 = vpop.f32.mrb[57].mxu1  ;;  %v983_v55 = vpop.f32.mrb[58].mxu0  ;;  %v2277_v56 = vpack.c.bf16 %v1672_v41, %v1672_v41  ;;  %v1438_v62 = vld [vmem:[#allocation2 + $0xda] sm:$0x3]  ;;  %v1437_v2 = vld [vmem:[#allocation2 + $0xd2] sm:$0xff] }
 0x175   : > { %1216 = vst [vmem:[#allocation2 + $0xe8] sm:$0xff] %v983_v55  ;;  %v1143_v57 = vpop.f32.mrb[58].mxu1  ;;  %v985_v58 = vpop.f32.mrb[59].mxu0  ;;  %1433 = vst [vmem:[%s2843_s28 + $0x14] sm:$0xf] %v2260_v44  ;;  %v1685_v3 = vld [vmem:[#allocation2 + $0x212] sm:$0xff]  ;;  %v1443_v17 = vmax.f32 %v2915_v0, %v1437_v2  ;;  %v1444_v18 = vmax.f32 %v1436_v63, %v1438_v62 }
 0x176   : > { %1434 = vst [vmem:[%s2843_s28 + $0x18] sm:$0x1] %v2261_v52  ;;  %1681 = vst [vmem:[%s2843_s28 + $0x3c] sm:$0xf] %v2276_v53  ;;  %v1145_v61 = vpop.f32.mrb[59].mxu1  ;;  %v1691_v23 = vmax.f32 %v2917_v1, %v1685_v3 }
 0x177   : > { %1256 = vst [vmem:[#allocation2 + $0x228] sm:$0xff] %v1143_v57  ;;  %1682 = vst [vmem:[%s2843_s28 + $0x40] sm:$0x1] %v2277_v56  ;;  %v1686_v4 = vld [vmem:[#allocation2 + $0x21a] sm:$0x3] }
 0x178   : > { %v1692_v49 = vmax.f32 %v1684_v7, %v1686_v4 }
 0x17a   : > { %v2929_v5 = vpop.f32.mrb[60].mxu0  ;;  %v1440_v8 = vld [vmem:[#allocation2 + $0xe4] sm:$0x3]  ;;  %v1439_v13 = vld [vmem:[#allocation2 + $0xdc] sm:$0xff] }
 0x17b   : > { %v2931_v6 = vpop.f32.mrb[60].mxu1  ;;  %v1688_v9 = vld [vmem:[#allocation2 + $0x224] sm:$0x3]  ;;  %v990_v10 = vpop.f32.mrb[61].mxu0  ;;  %v1687_v48 = vld [vmem:[#allocation2 + $0x21c] sm:$0xff] }
 0x17c   : > { %v1150_v12 = vpop.f32.mrb[61].mxu1  ;;  %v1441_v46 = vld [vmem:[#allocation2 + $0xe6] sm:$0xff]  ;;  %v1442_v14 = vld [vmem:[#allocation2 + $0xee] sm:$0x3]  ;;  %v991_v15 = vpop.f32.mrb[62].mxu0 }
 0x17d   : > { %v1151_v16 = vpop.f32.mrb[62].mxu1  ;;  %v1445_v19 = vmax.f32 %v1439_v13, %v1441_v46  ;;  %v1446_v20 = vmax.f32 %v1440_v8, %v1442_v14  ;;  %1218 = vst [vmem:[#allocation2 + $0xf8] sm:$0xff] %v991_v15  ;;  %v993_v21 = vpop.f32.mrb[63].mxu0 }
 0x17e   : > { %v1689_v47 = vld [vmem:[#allocation2 + $0x226] sm:$0xff]  ;;  %v1690_v45 = vld [vmem:[#allocation2 + $0x22e] sm:$0x3]  ;;  %1258 = vst [vmem:[#allocation2 + $0x238] sm:$0xff] %v1151_v16  ;;  %v1153_v22 = vpop.f32.mrb[63].mxu1 }
 0x17f   : > { %v1693_v24 = vmax.f32 %v1687_v48, %v1689_v47  ;;  %v1694_v25 = vmax.f32 %v1688_v9, %v1690_v45  ;;  %v1447_v26 = vmax.f32 %v1443_v17, %v1445_v19  ;;  %v1448_v50 = vmax.f32 %v1444_v18, %v1446_v20 }
 0x181   : > { %v1695_v59 = vmax.f32 %v1691_v23, %v1693_v24  ;;  %v1696_v27 = vmax.f32 %v1692_v49, %v1694_v25  ;;  %v1449_v0 = vadd.f32 %v2837_v11, %v1447_v26  ;;  %v1450_v28 = vadd.f32 %v2837_v11, %v1448_v50 }
 0x182   : > { %v996_v31 = vpop.f32.mrb[64].mxu0 }
 0x183   : > { %v1697_v29 = vadd.f32 %v2837_v11, %v1695_v59  ;;  %v1698_v30 = vadd.f32 %v2837_v11, %v1696_v27  ;;  %v1156_v32 = vpop.f32.mrb[64].mxu1  ;;  %v1451_v60 = vmax.f32 %v1449_v0, 0.0  ;;  %v1452_v34 = vmax.f32 %v1450_v28, 0.0  ;;  %1219 = vst [vmem:[#allocation2 + $0x100] sm:$0xff] %v996_v31  ;;  %v998_v1 = vpop.f32.mrb[65].mxu0 }
 0x184   : > { %1259 = vst [vmem:[#allocation2 + $0x240] sm:$0xff] %v1156_v32  ;;  %v1158_v35 = vpop.f32.mrb[65].mxu1  ;;  %v999_v41 = vpop.f32.mrb[66].mxu0  ;;  %v1468_v13 = vld [vmem:[#allocation2 + $0xf8] sm:$0x3] }
 0x185   : > { %v1699_v36 = vmax.f32 %v1697_v29, 0.0  ;;  %v1700_v37 = vmax.f32 %v1698_v30, 0.0  ;;  %v2262_v38 = vpack.c.bf16 %v1451_v60, %v1451_v60  ;;  %v2263_v39 = vpack.c.bf16 %v1452_v34, %v1452_v34  ;;  %v1159_v42 = vpop.f32.mrb[66].mxu1  ;;  %1220 = vst [vmem:[#allocation2 + $0x108] sm:$0xff] %v999_v41  ;;  %v1001_v52 = vpop.f32.mrb[67].mxu0 }
 0x186   : > { %1260 = vst [vmem:[#allocation2 + $0x248] sm:$0xff] %v1159_v42  ;;  %v1161_v53 = vpop.f32.mrb[67].mxu1  ;;  %v1716_v16 = vld [vmem:[#allocation2 + $0x238] sm:$0x3] }
 0x187   : > { %v2278_v43 = vpack.c.bf16 %v1699_v36, %v1699_v36  ;;  %v2279_v44 = vpack.c.bf16 %v1700_v37, %v1700_v37  ;;  %v1459_v54 = vrot.slane %v2262_v38, 7  ;;  %v1461_v57 = vrot.slane %v2263_v39, 7 }
 0x189   : > { %v1707_v55 = vrot.slane %v2278_v43, 7  ;;  %v1460_v56 = vrot.slane %v1459_v54, 4  ;;  %1465 = vst [vmem:[%s2843_s28 + $0x18] sm:$0xe] %v1459_v54  ;;  %v1709_v61 = vrot.slane %v2279_v44, 7 }
 0x18a   : > { %v1004_v62 = vpop.f32.mrb[68].mxu0  ;;  %v1469_v46 = vld [vmem:[#allocation2 + $0xfa] sm:$0xff]  ;;  %v1470_v14 = vld [vmem:[#allocation2 + $0x102] sm:$0x3] }
 0x18b   : > { %v1708_v58 = vrot.slane %v1707_v55, 4  ;;  %1713 = vst [vmem:[%s2843_s28 + $0x40] sm:$0xe] %v1707_v55  ;;  %v1462_v63 = vsel %vm2859_vm3, %v1460_v56, %v1461_v57  ;;  %1221 = vst [vmem:[#allocation2 + $0x110] sm:$0xff] %v1004_v62  ;;  %v1164_v2 = vpop.f32.mrb[68].mxu1  ;;  %v1006_v3 = vpop.f32.mrb[69].mxu0  ;;  %v1475_v21 = vmax.f32 %v2929_v5, %v1469_v46  ;;  %v1476_v22 = vmax.f32 %v1468_v13, %v1470_v14 }
 0x18c   : > { %1466 = vst [vmem:[%s2843_s28 + $0x1c] sm:$0x3] %v1462_v63  ;;  %1261 = vst [vmem:[#allocation2 + $0x250] sm:$0xff] %v1164_v2  ;;  %v1166_v7 = vpop.f32.mrb[69].mxu1  ;;  %v2946_v8 = vpop.f32.mrb[70].mxu0  ;;  %v1717_v15 = vld [vmem:[#allocation2 + $0x23a] sm:$0xff] }
 0x18d   : > { %v1710_v4 = vsel %vm2859_vm3, %v1708_v58, %v1709_v61  ;;  %v2949_v9 = vpop.f32.mrb[70].mxu1  ;;  %v1009_v10 = vpop.f32.mrb[71].mxu0  ;;  %v1718_v17 = vld [vmem:[#allocation2 + $0x242] sm:$0x3]  ;;  %v1472_v18 = vld [vmem:[#allocation2 + $0x10c] sm:$0x3]  ;;  %v1723_v27 = vmax.f32 %v2931_v6, %v1717_v15 }
 0x18e   : > { %1714 = vst [vmem:[%s2843_s28 + $0x44] sm:$0x3] %v1710_v4  ;;  %v1169_v12 = vpop.f32.mrb[71].mxu1  ;;  %v1720_v48 = vld [vmem:[#allocation2 + $0x24c] sm:$0x3]  ;;  %v1471_v19 = vld [vmem:[#allocation2 + $0x104] sm:$0xff]  ;;  %v1724_v0 = vmax.f32 %v1716_v16, %v1718_v17 }
 0x18f   : > { %v1719_v23 = vld [vmem:[#allocation2 + $0x244] sm:$0xff] }
 0x192   : > { %v1473_v33 = vld [vmem:[#allocation2 + $0x10e] sm:$0xff]  ;;  %v1474_v20 = vld [vmem:[#allocation2 + $0x116] sm:$0x3]  ;;  %v1012_v47 = vpop.f32.mrb[72].mxu0 }
 0x193   : > { %v1172_v45 = vpop.f32.mrb[72].mxu1  ;;  %v1477_v49 = vmax.f32 %v1471_v19, %v1473_v33  ;;  %v1478_v24 = vmax.f32 %v1472_v18, %v1474_v20  ;;  %v1721_v25 = vld [vmem:[#allocation2 + $0x24e] sm:$0xff]  ;;  %v1722_v26 = vld [vmem:[#allocation2 + $0x256] sm:$0x3]  ;;  %1223 = vst [vmem:[#allocation2 + $0x120] sm:$0xff] %v1012_v47  ;;  %v1014_v50 = vpop.f32.mrb[73].mxu0 }
 0x194   : > { %1263 = vst [vmem:[#allocation2 + $0x260] sm:$0xff] %v1172_v45  ;;  %v1174_v59 = vpop.f32.mrb[73].mxu1  ;;  %v1725_v28 = vmax.f32 %v1719_v23, %v1721_v25  ;;  %v1726_v29 = vmax.f32 %v1720_v48, %v1722_v26  ;;  %v1015_v30 = vpop.f32.mrb[74].mxu0 }
 0x195   : > { %v1175_v31 = vpop.f32.mrb[74].mxu1  ;;  %v1479_v32 = vmax.f32 %v1475_v21, %v1477_v49  ;;  %v1480_v60 = vmax.f32 %v1476_v22, %v1478_v24  ;;  %1224 = vst [vmem:[#allocation2 + $0x128] sm:$0xff] %v1015_v30  ;;  %v1017_v5 = vpop.f32.mrb[75].mxu0 }
 0x196   : > { %1264 = vst [vmem:[#allocation2 + $0x268] sm:$0xff] %v1175_v31  ;;  %v1177_v34 = vpop.f32.mrb[75].mxu1  ;;  %v1727_v1 = vmax.f32 %v1723_v27, %v1725_v28  ;;  %v1728_v35 = vmax.f32 %v1724_v0, %v1726_v29 }
 0x197   : > { %v1481_v36 = vadd.f32 %v2837_v11, %v1479_v32  ;;  %v1482_v37 = vadd.f32 %v2837_v11, %v1480_v60 }
 0x198   : > { %v1729_v38 = vadd.f32 %v2837_v11, %v1727_v1  ;;  %v1730_v6 = vadd.f32 %v2837_v11, %v1728_v35 }
 0x199   : > { %v1483_v39 = vmax.f32 %v1481_v36, 0.0  ;;  %v1484_v41 = vmax.f32 %v1482_v37, 0.0 }
 0x19a   : > { %v1731_v42 = vmax.f32 %v1729_v38, 0.0  ;;  %v1732_v43 = vmax.f32 %v1730_v6, 0.0  ;;  %v1020_v53 = vpop.f32.mrb[76].mxu0  ;;  %v1500_v16 = vld [vmem:[#allocation2 + $0x120] sm:$0x3] }
 0x19b   : > { %v2264_v44 = vpack.c.bf16 %v1483_v39, %v1483_v39  ;;  %v2265_v52 = vpack.c.bf16 %v1484_v41, %v1484_v41  ;;  %v1180_v54 = vpop.f32.mrb[76].mxu1  ;;  %1225 = vst [vmem:[#allocation2 + $0x130] sm:$0xff] %v1020_v53  ;;  %v1022_v57 = vpop.f32.mrb[77].mxu0  ;;  %v1748_v23 = vld [vmem:[#allocation2 + $0x260] sm:$0x3] }
 0x19c   : > { %v2280_v55 = vpack.c.bf16 %v1731_v42, %v1731_v42  ;;  %v2281_v56 = vpack.c.bf16 %v1732_v43, %v1732_v43  ;;  %1265 = vst [vmem:[#allocation2 + $0x270] sm:$0xff] %v1180_v54  ;;  %v1182_v58 = vpop.f32.mrb[77].mxu1  ;;  %v1023_v62 = vpop.f32.mrb[78].mxu0  ;;  %v1501_v14 = vld [vmem:[#allocation2 + $0x122] sm:$0xff]  ;;  %v1502_v15 = vld [vmem:[#allocation2 + $0x12a] sm:$0x3] }
 0x19d   : > { %v1491_v61 = vrot.slane %v2264_v44, 6  ;;  %v1183_v11 = vpop.f32.mrb[78].mxu1  ;;  %1226 = vst [vmem:[#allocation2 + $0x138] sm:$0xff] %v1023_v62  ;;  %v1025_v2 = vpop.f32.mrb[79].mxu0  ;;  %v1493_v7 = vrot.slane %v2265_v52, 6  ;;  %v1749_v17 = vld [vmem:[#allocation2 + $0x262] sm:$0xff]  ;;  %v1507_v20 = vmax.f32 %v2946_v8, %v1501_v14  ;;  %v1508_v47 = vmax.f32 %v1500_v16, %v1502_v15 }
 0x19e   : > { %v1739_v63 = vrot.slane %v2280_v55, 6  ;;  %1266 = vst [vmem:[#allocation2 + $0x278] sm:$0xff] %v1183_v11  ;;  %v1185_v3 = vpop.f32.mrb[79].mxu1  ;;  %v1741_v12 = vrot.slane %v2281_v56, 6  ;;  %v1750_v18 = vld [vmem:[#allocation2 + $0x26a] sm:$0x3]  ;;  %v1755_v49 = vmax.f32 %v2949_v9, %v1749_v17 }
 0x19f   : > { %v1492_v4 = vrot.slane %v1491_v61, 4  ;;  %1497 = vst [vmem:[%s2843_s28 + $0x1c] sm:$0xc] %v1491_v61  ;;  %v1756_v59 = vmax.f32 %v1748_v23, %v1750_v18  ;;  %v2523_v8 = vld [vmem:[%s3086_s2] ss:$0 sm:$0xff] }
 0x1a0   : > { %v1740_v10 = vrot.slane %v1739_v63, 4  ;;  %1745 = vst [vmem:[%s2843_s28 + $0x44] sm:$0xc] %v1739_v63 }
 0x1a1   : > { %v1494_v13 = vsel %vm2881_vm6, %v1492_v4, %v1493_v7 }
 0x1a2   : > { %1498 = vst [vmem:[%s2843_s28 + $0x20] sm:$0x7] %v1494_v13  ;;  %v1742_v46 = vsel %vm2881_vm6, %v1740_v10, %v1741_v12  ;;  %v1503_v48 = vld [vmem:[#allocation2 + $0x12c] sm:$0xff]  ;;  %v1504_v19 = vld [vmem:[#allocation2 + $0x134] sm:$0x3] }
 0x1a3   : > { %1746 = vst [vmem:[%s2843_s28 + $0x48] sm:$0x7] %v1742_v46  ;;  %v1751_v33 = vld [vmem:[#allocation2 + $0x26c] sm:$0xff]  ;;  %v1752_v40 = vld [vmem:[#allocation2 + $0x274] sm:$0x3] }
 0x1a4   : > { %v1505_v45 = vld [vmem:[#allocation2 + $0x136] sm:$0xff]  ;;  %v1506_v21 = vld [vmem:[#allocation2 + $0x13e] sm:$0x3] }
 0x1a5   : > { %v1753_v22 = vld [vmem:[#allocation2 + $0x276] sm:$0xff]  ;;  %v1509_v24 = vmax.f32 %v1503_v48, %v1505_v45  ;;  %v1510_v25 = vmax.f32 %v1504_v19, %v1506_v21  ;;  %v1754_v26 = vld [vmem:[#allocation2 + $0x27e] sm:$0x3] }
 0x1a6   : > { %v1757_v50 = vmax.f32 %v1751_v33, %v1753_v22  ;;  %v1758_v27 = vmax.f32 %v1752_v40, %v1754_v26 }
 0x1a7   : > { %v1511_v0 = vmax.f32 %v1507_v20, %v1509_v24  ;;  %v1512_v28 = vmax.f32 %v1508_v47, %v1510_v25 }
 0x1a8   : > { %v1759_v29 = vmax.f32 %v1755_v49, %v1757_v50  ;;  %v1760_v30 = vmax.f32 %v1756_v59, %v1758_v27 }
 0x1a9   : > { %v1513_v31 = vadd.f32 %v2523_v8, %v1511_v0  ;;  %v1514_v32 = vadd.f32 %v2523_v8, %v1512_v28 }
 0x1aa   : > { %v1761_v60 = vadd.f32 %v2523_v8, %v1759_v29  ;;  %v1762_v9 = vadd.f32 %v2523_v8, %v1760_v30 }
 0x1ab   : > { %v1515_v5 = vmax.f32 %v1513_v31, 0.0  ;;  %v1516_v34 = vmax.f32 %v1514_v32, 0.0 }
 0x1ac   : > { %v1763_v1 = vmax.f32 %v1761_v60, 0.0  ;;  %v1764_v35 = vmax.f32 %v1762_v9, 0.0 }
 0x1ad   : > { %v2266_v36 = vpack.c.bf16 %v1515_v5, %v1515_v5  ;;  %v2267_v37 = vpack.c.bf16 %v1516_v34, %v1516_v34 }
 0x1ae   : > { %v2282_v38 = vpack.c.bf16 %v1763_v1, %v1763_v1  ;;  %v2283_v6 = vpack.c.bf16 %v1764_v35, %v1764_v35 }
 0x1af   : > { %v1523_v39 = vrot.slane %v2266_v36, 5  ;;  %v1525_v43 = vrot.slane %v2267_v37, 5  ;;  %1785 = sbr.rel (!%p2662_p4) target bundleno = 513 (0x201), region = 36 }
 0x1b0   : > { %v1771_v41 = vrot.slane %v2282_v38, 5  ;;  %v1773_v52 = vrot.slane %v2283_v6, 5 }
 0x1b1   : > { %v1524_v42 = vrot.slane %v1523_v39, 4  ;;  %1529 = vst [vmem:[%s2843_s28 + $0x20] sm:$0x8] %v1523_v39 }
 0x1b2   : > { %v1772_v44 = vrot.slane %v1771_v41, 4  ;;  %1777 = vst [vmem:[%s2843_s28 + $0x48] sm:$0x8] %v1771_v41 }
 0x1b3   : > { %v1526_v53 = vsel %vm2903_vm9, %v1524_v42, %v1525_v43 }
 0x1b4   : > { %v1774_v54 = vsel %vm2903_vm9, %v1772_v44, %v1773_v52  ;;  %1530 = vst [vmem:[%s2843_s28 + $0x24] sm:$0xf] %v1526_v53 }
 0x1b5   : > { %1778 = vst [vmem:[%s2843_s28 + $0x4c] sm:$0xf] %v1774_v54 }
 0x1b6   : > { %s3102_s8 = smov (!%p1788_p8, %s1787_s8), 20 }
 0x1b7   : > { %s2239_s9 = sshll.u32 %s3102_s8, 6 }
 0x1b8   : > { %p2242_p9 = scmp.eq.s32.totalorder %s2239_s9, 0 }
 0x1b9   : > { %2524 = sdivrem.u32 (!%p2242_p9), %s3102_s8, 20 }
 0x1ba   : > { %1796 = sbr.rel (%p2242_p9) target bundleno = 513 (0x201), region = 40 }
 0x1c2   : > { %s2991_s20 = spop.drf %2524 }
 0x1c3   : > { %p2243_p10 = scmp.le.s32.totalorder %s2991_s20, 0 }
 0x1c4   : > { %s3095_s15 = smov (!%p2243_p10), %s2985_s7  ;;  %s3096_s23 = smov (!%p2243_p10), %s2843_s28 }
 0x1c5   : > { %2027 = sbr.rel (%p2243_p10) target bundleno = 484 (0x1e4), region = 112  ;;  %s3000_s10 = smov (!%p2243_p10), 0  }
 0x1c6   : > { %s3002_s11 = smov (!%p2243_p10), 0  }
 0x1cc LB: >> { %v1813_v51 = vld [vmem:[%s2590_s23] sm:$0xf]  ;;  %v1815_v55 = vld [vmem:[%s2590_s23 + $0x4] sm:$0xf]  ;;  %v1817_v56 = vld [vmem:[%s2590_s23 + $0x8] sm:$0xf]  ;;  %s2598_s11 = sphi %s3002_s11, %s1807_s11   ;;  %s2594_s10 = sphi %s3000_s10, %s3097_s10   ;;  %s2590_s23 = sphi %s3096_s23, %s1858_s23   ;;  %s2586_s15 = sphi %s3095_s15, %s1859_s15  }
 0x1cd   : >> { %1814 = vst [vmem:[%s2586_s15] sm:$0xf] %v1813_v51  ;;  %1816 = vst [vmem:[%s2586_s15 + $0x4] sm:$0xf] %v1815_v55  ;;  %v1819_v57 = vld [vmem:[%s2590_s23 + $0xc] sm:$0xf]  ;;  %s1853_s14 = sadd.s32 1, %s2594_s10 }
 0x1ce   : >> { %1818 = vst [vmem:[%s2586_s15 + $0x8] sm:$0xf] %v1817_v56  ;;  %v1821_v58 = vld [vmem:[%s2590_s23 + $0x10] sm:$0xf]  ;;  %v1823_v61 = vld [vmem:[%s2590_s23 + $0x14] sm:$0xf]  ;;  %p1854_p11 = scmp.ge.s32.totalorder %s1853_s14, %s2991_s20 }
 0x1cf   : >> { %1820 = vst [vmem:[%s2586_s15 + $0xc] sm:$0xf] %v1819_v57  ;;  %1822 = vst [vmem:[%s2586_s15 + $0x10] sm:$0xf] %v1821_v58  ;;  %v1825_v62 = vld [vmem:[%s2590_s23 + $0x18] sm:$0xf] }
 0x1d0   : >> { %1824 = vst [vmem:[%s2586_s15 + $0x14] sm:$0xf] %v1823_v61  ;;  %v1827_v11 = vld [vmem:[%s2590_s23 + $0x1c] sm:$0xf]  ;;  %v1829_v63 = vld [vmem:[%s2590_s23 + $0x20] sm:$0xf] }
 0x1d1   : >> { %1826 = vst [vmem:[%s2586_s15 + $0x18] sm:$0xf] %v1825_v62  ;;  %1828 = vst [vmem:[%s2586_s15 + $0x1c] sm:$0xf] %v1827_v11  ;;  %v1831_v2 = vld [vmem:[%s2590_s23 + $0x24] sm:$0xf] }
 0x1d2   : >> { %1830 = vst [vmem:[%s2586_s15 + $0x20] sm:$0xf] %v1829_v63  ;;  %v1833_v3 = vld [vmem:[%s2590_s23 + $0x28] sm:$0xf]  ;;  %v1835_v4 = vld [vmem:[%s2590_s23 + $0x2c] sm:$0xf] }
 0x1d3   : >> { %1832 = vst [vmem:[%s2586_s15 + $0x24] sm:$0xf] %v1831_v2  ;;  %1834 = vst [vmem:[%s2586_s15 + $0x28] sm:$0xf] %v1833_v3  ;;  %v1837_v7 = vld [vmem:[%s2590_s23 + $0x30] sm:$0xf] }
 0x1d4   : >> { %1836 = vst [vmem:[%s2586_s15 + $0x2c] sm:$0xf] %v1835_v4  ;;  %v1839_v10 = vld [vmem:[%s2590_s23 + $0x34] sm:$0xf]  ;;  %v1841_v12 = vld [vmem:[%s2590_s23 + $0x38] sm:$0xf] }
 0x1d5   : >> { %1838 = vst [vmem:[%s2586_s15 + $0x30] sm:$0xf] %v1837_v7  ;;  %1840 = vst [vmem:[%s2586_s15 + $0x34] sm:$0xf] %v1839_v10  ;;  %v1843_v13 = vld [vmem:[%s2590_s23 + $0x3c] sm:$0xf] }
 0x1d6   : >> { %1842 = vst [vmem:[%s2586_s15 + $0x38] sm:$0xf] %v1841_v12  ;;  %v1845_v46 = vld [vmem:[%s2590_s23 + $0x40] sm:$0xf]  ;;  %v1847_v14 = vld [vmem:[%s2590_s23 + $0x44] sm:$0xf] }
 0x1d7   : >> { %1844 = vst [vmem:[%s2586_s15 + $0x3c] sm:$0xf] %v1843_v13  ;;  %1846 = vst [vmem:[%s2586_s15 + $0x40] sm:$0xf] %v1845_v46  ;;  %v1849_v15 = vld [vmem:[%s2590_s23 + $0x48] sm:$0xf] }
 0x1d8   : >> { %1848 = vst [vmem:[%s2586_s15 + $0x44] sm:$0xf] %v1847_v14  ;;  %v1851_v16 = vld [vmem:[%s2590_s23 + $0x4c] sm:$0xf]  ;;  %1850 = vst [vmem:[%s2586_s15 + $0x48] sm:$0xf] %v1849_v15 }
 0x1d9   : >> { %1852 = vst [vmem:[%s2586_s15 + $0x4c] sm:$0xf] %v1851_v16  ;;  %s3104_s14 = smov (%p1854_p11, %s1853_s14), 0  ;;  %s1807_s11 = sadd.s32 1, %s2598_s11  }
 0x1da   : >> { %s1856_s17 = smul.u32 80, %s3104_s14  ;;  %p1806_p12 = scmp.ge.s32.totalorder %s1807_s11, %s2991_s20 }
 0x1db   : >> { %s3097_s10 = smov %s3104_s14 }
 0x1dc   : >> { %s1858_s23 = scalar_lea.vmem %s2843_s28, %s1856_s17 [#allocation3]   ;;  %s1859_s15 = scalar_lea.vmem %s2985_s7, %s1856_s17  }
 0x1dd   : > { %1809 = sbr.rel (!%p1806_p12) target bundleno = 460 (0x1cc), region = 118 }
 0x1e4 PF: > { %2526 = sdivrem.u32 %s3102_s8, 20 }
 0x1e5   : > { %s2244_s18 = smul.u32 80, %s2991_s20 }
 0x1e7   : > { %s1864_s21 = scalar_lea.vmem %s2843_s28, %s2244_s18 [#allocation3]   ;;  %s1866_s22 = scalar_lea.vmem %s2985_s7, %s2244_s18  }
 0x1ed   : > { %s2527_s24 = spop.drf %2526 }
 0x1ee   : > { %p2246_p13 = scmp.le.s32.totalorder %s2527_s24, 0 }
 0x1ef   : > { %s2600_s25 = smov (!%p2246_p13), %s1866_s22   ;;  %s2604_s12 = smov (!%p2246_p13), %s1864_s21  }
 0x1f0   : > { %2041 = sbr.rel (%p2246_p13) target bundleno = 513 (0x201), region = 123  ;;  %s2608_s26 = smov (!%p2246_p13), 0  }
 0x1f1   : > { %s2612_s27 = smov (!%p2246_p13), 0  }
 0x1f7 LB: >> { %v1876_v17 = vld [vmem:[%s2606_s12] sm:$0xf]  ;;  %s1878_s29 = sadd.s32 1, %s2610_s26  ;;  %s1870_s27 = sadd.s32 1, %s2614_s27   ;;  %s2614_s27 = sphi %s2612_s27, %s1870_s27   ;;  %s2610_s26 = sphi %s2608_s26, %s2609_s26   ;;  %s2606_s12 = sphi %s2604_s12, %s1883_s12   ;;  %s2602_s25 = sphi %s2600_s25, %s1884_s25  }
 0x1f8   : >> { %1877 = vst [vmem:[%s2602_s25] sm:$0xf] %v1876_v17  ;;  %p1879_p0 = scmp.ge.s32.totalorder %s1878_s29, %s2527_s24  ;;  %p1869_p1 = scmp.ge.s32.totalorder %s1870_s27, %s2527_s24 }
 0x1fa   : >> { %s3106_s29 = smov (%p1879_p0, %s1878_s29), 0  ;;  %1872 = sbr.rel (!%p1869_p1) target bundleno = 503 (0x1f7), region = 129 }
 0x1fb   : >> { %s2247_s28 = sshll.u32 %s3106_s29, 2  ;;  %s2609_s26 = smov %s3106_s29  }
 0x1fc   : >> { %s1883_s12 = scalar_lea.vmem %s1864_s21, %s2247_s28 [#allocation3]   ;;  %s1884_s25 = scalar_lea.vmem %s1866_s22, %s2247_s28  }
 0x201 PF: > { %p10_p2 = scmp.ge.s32.totalorder %s2652_s16, 4   ;;  %s3098_s12 = smov %s2578_s13 }
 0x202   : > { %s3099_s13 = smov %s2660_s19  ;;  %s3100_s14 = smov %s2652_s16 }
 0x203   :  { %12 = sbr.rel (!%p10_p2) target bundleno = 2 (0x2), region = 140 }

// kernel: species_cnn_forward.10
= control target key start
LH: loop header
LB: loop body
LE: loop exit
PB: predicated region body
PF: predicated region fallthrough
CT: control target
= control target key end

     0   :  { %vm311_vm0 = vcmask 261120   ;;  %s1087_s1 = inlined_call_operand.vmem [shape: bf16[288,128], index: 1, kind: input, shape index: {}]   ;;  %s1088_s0 = inlined_call_operand.vmem [shape: bf16[128,288], index: 0, kind: input, shape index: {}]   ;;  %s1089_s2 = inlined_call_operand.vmem [shape: f32[1,128], index: 2, kind: input, shape index: {}]   ;;  %s1090_s3 = inlined_call_operand.vmem [shape: bf16[32,128], index: 3, kind: output, shape index: {}]  }
   0x1   :  { %v834_v0 = vld [vmem:[%s1087_s1 + $0x40] sm:$0xff]   ;;  %v836_v2 = vld [vmem:[%s1087_s1 + $0x48] sm:$0xff]   ;;  %v838_v4 = vld [vmem:[%s1087_s1 + $0x50] sm:$0xff]  }
   0x2   :  { %v835_v1 = vld [vmem:[%s1087_s1] sm:$0xff]   ;;  %724 = vmatprep.subr.bf16.mxu0 %v834_v0  ;;  %818 = vmatprep.subr.bf16.mxu1 %v834_v0  ;;  %v837_v3 = vld [vmem:[%s1087_s1 + $0x8] sm:$0xff]   ;;  %v839_v5 = vld [vmem:[%s1087_s1 + $0x10] sm:$0xff]  }
   0x3   :  { %725 = vmatpush3.bf16.msra.mxu0 %v835_v1  ;;  %826 = vmatpush3.bf16.msra.mxu1 %v835_v1  ;;  %v840_v6 = vld [vmem:[%s1087_s1 + $0x58] sm:$0xff]   ;;  %v842_v8 = vld [vmem:[%s1087_s1 + $0x60] sm:$0xff]   ;;  %v844_v10 = vld [vmem:[%s1087_s1 + $0x68] sm:$0xff]  }
   0x4   :  { %726 = vmatprep.subr.bf16.mxu0 %v836_v2  ;;  %819 = vmatprep.subr.bf16.mxu1 %v836_v2  ;;  %v841_v7 = vld [vmem:[%s1087_s1 + $0x18] sm:$0xff]   ;;  %v843_v9 = vld [vmem:[%s1087_s1 + $0x20] sm:$0xff]   ;;  %v845_v13 = vld [vmem:[%s1087_s1 + $0x28] sm:$0xff]  }
   0x5   :  { %v852_v11 = vld [vmem:[%s1088_s0 + $0x4] ss:$12 sps:$4 sm:$0xff]   ;;  %v855_v12 = vld [vmem:[%s1088_s0 + $0x94] ss:$12 sps:$4 sm:$0xff]   ;;  %v848_v16 = vld [vmem:[%s1087_s1 + $0x78] sm:$0xff]  }
   0x6   :  { %v846_v14 = vld [vmem:[%s1087_s1 + $0x70] sm:$0xff]   ;;  %368 = vmatprep.mubr.bf16.mxu0 %v852_v11  ;;  %416 = vmatprep.mubr.bf16.mxu1 %v855_v12  ;;  %v849_v17 = vld [vmem:[%s1087_s1 + $0x38] sm:$0xff]   ;;  %v850_v18 = vld [vmem:[%s1088_s0] ss:$12 sps:$4 sm:$0xff]  }
   0x7   :  { %727 = vmatpush3.bf16.msra.mxu0 %v837_v3  ;;  %827 = vmatpush3.bf16.msra.mxu1 %v837_v3  ;;  %v847_v15 = vld [vmem:[%s1087_s1 + $0x30] sm:$0xff]   ;;  %v856_v19 = vld [vmem:[%s1087_s1 + $0x80] sm:$0xff]   ;;  %v857_v21 = vld [vmem:[%s1088_s0 + $0x1c] ss:$12 sps:$4 sm:$0xff]  }
   0x8   :  { %728 = vmatprep.subr.bf16.mxu0 %v838_v4  ;;  %820 = vmatprep.subr.bf16.mxu1 %v838_v4  ;;  %v853_v20 = vld [vmem:[%s1088_s0 + $0x90] ss:$12 sps:$4 sm:$0xff]   ;;  %v859_v22 = vld [vmem:[%s1088_s0 + $0xac] ss:$12 sps:$4 sm:$0xff]   ;;  %v862_v25 = vld [vmem:[%s1088_s0 + $0xa8] ss:$12 sps:$4 sm:$0xff]  }
   0x9   :  { %v863_v23 = vld [vmem:[%s1087_s1 + $0x88] sm:$0xff]   ;;  %v861_v24 = vld [vmem:[%s1088_s0 + $0x18] ss:$12 sps:$4 sm:$0xff]   ;;  %v864_v26 = vld [vmem:[%s1088_s0 + $0x34] ss:$12 sps:$4 sm:$0xff]  }
   0xa   :  { %v866_v27 = vld [vmem:[%s1088_s0 + $0x8] ss:$12 sps:$4 sm:$0xff]   ;;  %v867_v28 = vld [vmem:[%s1088_s0 + $0x30] ss:$12 sps:$4 sm:$0xff]   ;;  %v868_v29 = vld [vmem:[%s1088_s0 + $0x20] ss:$12 sps:$4 sm:$0xff]  }
   0xb   :  { %729 = vmatpush3.bf16.msra.mxu0 %v839_v5  ;;  %828 = vmatpush3.bf16.msra.mxu1 %v839_v5  ;;  %v869_v30 = vld [vmem:[%s1088_s0 + $0x4c] ss:$12 sps:$4 sm:$0xff]   ;;  %v872_v32 = vld [vmem:[%s1088_s0 + $0x48] ss:$12 sps:$4 sm:$0xff]   ;;  %v873_v33 = vld [vmem:[%s1088_s0 + $0x50] ss:$12 sps:$4 sm:$0xff]  }
   0xc   :  { %730 = vmatprep.subr.bf16.mxu0 %v840_v6  ;;  %821 = vmatprep.subr.bf16.mxu1 %v840_v6  ;;  %v871_v31 = vld [vmem:[%s1088_s0 + $0x38] ss:$12 sps:$4 sm:$0xff]   ;;  %v876_v35 = vld [vmem:[%s1088_s0 + $0x68] ss:$12 sps:$4 sm:$0xff]   ;;  %v877_v36 = vld [vmem:[%s1088_s0 + $0x60] ss:$12 sps:$4 sm:$0xff]  }
   0xd   :  { %v874_v34 = vld [vmem:[%s1088_s0 + $0x64] ss:$12 sps:$4 sm:$0xff]   ;;  %v878_v37 = vld [vmem:[%s1088_s0 + $0x80] ss:$12 sps:$4 sm:$0xff]   ;;  %v879_v38 = vld [vmem:[%s1088_s0 + $0x7c] ss:$12 sps:$4 sm:$0xff]  }
   0xe   :  { %v881_v39 = vld [vmem:[%s1088_s0 + $0x98] ss:$12 sps:$4 sm:$0xff]   ;;  %v883_v41 = vld [vmem:[%s1088_s0 + $0xb0] ss:$12 sps:$4 sm:$0xff]  }
   0xf   :  { %731 = vmatpush3.bf16.msra.mxu0 %v841_v7  ;;  %829 = vmatpush3.bf16.msra.mxu1 %v841_v7  ;;  %v882_v40 = vld [vmem:[%s1088_s0 + $0x78] ss:$12 sps:$4 sm:$0xff]  }
  0x10   :  { %732 = vmatprep.subr.bf16.mxu0 %v842_v8  ;;  %822 = vmatprep.subr.bf16.mxu1 %v842_v8 }
  0x13   :  { %733 = vmatpush3.bf16.msra.mxu0 %v843_v9  ;;  %830 = vmatpush3.bf16.msra.mxu1 %v843_v9 }
  0x14   :  { %734 = vmatprep.subr.bf16.mxu0 %v844_v10  ;;  %823 = vmatprep.subr.bf16.mxu1 %v844_v10 }
  0x17   :  { %735 = vmatpush3.bf16.msra.mxu0 %v845_v13  ;;  %831 = vmatpush3.bf16.msra.mxu1 %v845_v13 }
  0x18   :  { %736 = vmatprep.subr.bf16.mxu0 %v846_v14  ;;  %824 = vmatprep.subr.bf16.mxu1 %v846_v14 }
  0x1b   :  { %737 = vmatpush3.bf16.msra.mxu0 %v847_v15  ;;  %832 = vmatpush3.bf16.msra.mxu1 %v847_v15 }
  0x1c   :  { %738 = vmatprep.subr.bf16.mxu0 %v848_v16  ;;  %825 = vmatprep.subr.bf16.mxu1 %v848_v16 }
  0x1f   :  { %739 = vmatpush3.bf16.msra.mxu0 %v849_v17  ;;  %833 = vmatpush3.bf16.msra.mxu1 %v849_v17 }
  0x20   :  { %798 = vmatprep.subr.bf16.mxu1 %v856_v19 }
  0x22   :  { %369 = vmatmul.mubr.bf16.vlgmr.msra.gmra.mrb[0].mxu0 %v850_v18  ;;  %417 = vmatmul.mubr.bf16.vlgmr.msra.gmra.mrb[0].mxu1 %v853_v20 }
  0x23   :  { %799 = vmatpush3.bf16.msra.mxu1 %v856_v19  ;;  %376 = vmatprep.mubr.bf16.mxu0 %v857_v21 }
  0x24   :  { %424 = vmatprep.mubr.bf16.mxu1 %v859_v22  ;;  %800 = vmatprep.subr.bf16.mxu1 %v863_v23 }
  0x27   :  { %801 = vmatpush3.bf16.msra.mxu1 %v863_v23 }
  0x2a   :  { %377 = vmatmul.mubr.bf16.gmra.mrb[4].mxu0 %v861_v24  ;;  %425 = vmatmul.mubr.bf16.gmra.mrb[4].mxu1 %v862_v25 }
  0x2b   :  { %384 = vmatprep.mubr.bf16.mxu0 %v864_v26  ;;  %802 = vmatprep.mubr.msk.bf16.mxu1 %vm311_vm0, %v866_v27 }
  0x32   :  { %385 = vmatmul.mubr.bf16.gmra.mrb[8].mxu0 %v867_v28  ;;  %803 = vmatmul.mubr.msk.bf16.vlgmr.msra.gmra.mrb[8].mxu1 %vm311_vm0, %v868_v29 }
  0x33   :  { %392 = vmatprep.mubr.bf16.mxu0 %v869_v30  ;;  %806 = vmatprep.mubr.msk.bf16.mxu1 %vm311_vm0, %v871_v31 }
  0x3a   :  { %393 = vmatmul.mubr.bf16.gmra.mrb[12].mxu0 %v872_v32  ;;  %807 = vmatmul.mubr.msk.bf16.gmra.mrb[12].mxu1 %vm311_vm0, %v873_v33 }
  0x3b   :  { %400 = vmatprep.mubr.bf16.mxu0 %v874_v34  ;;  %810 = vmatprep.mubr.msk.bf16.mxu1 %vm311_vm0, %v876_v35 }
  0x42   :  { %401 = vmatmul.mubr.bf16.gmra.mrb[16].mxu0 %v877_v36  ;;  %811 = vmatmul.mubr.msk.bf16.gmra.mrb[16].mxu1 %vm311_vm0, %v878_v37 }
  0x43   :  { %408 = vmatprep.mubr.bf16.mxu0 %v879_v38  ;;  %814 = vmatprep.mubr.msk.bf16.mxu1 %vm311_vm0, %v881_v39 }
  0x4a   :  { %409 = vmatmul.mubr.bf16.gmra.mrb[20].mxu0 %v882_v40  ;;  %815 = vmatmul.mubr.msk.bf16.gmra.mrb[20].mxu1 %vm311_vm0, %v883_v41  ;;  %v1049_v40 = vld [vmem:[%s1089_s2] ss:$0 sm:$0xff] }
  0xf5   :  { %v740_v42 = vpop.f32.mrb[0].mxu0  ;;  %v776_v43 = vpop.f32.mrb[0].mxu1 }
  0xf6   :  { %v741_v44 = vpop.f32.mrb[1].mxu0  ;;  %v777_v45 = vpop.f32.mrb[1].mxu1 }
  0xf7   :  { %v742_v46 = vadd.f32 %v741_v44, %v740_v42  ;;  %v1038_v47 = vadd.f32 %v777_v45, %v776_v43  ;;  %v743_v48 = vpop.f32.mrb[2].mxu0  ;;  %v779_v49 = vpop.f32.mrb[2].mxu1 }
  0xf8   :  { %v744_v50 = vpop.f32.mrb[3].mxu0  ;;  %v780_v51 = vpop.f32.mrb[3].mxu1 }
  0xf9   :  { %v745_v52 = vadd.f32 %v744_v50, %v743_v48  ;;  %v1040_v53 = vadd.f32 %v780_v51, %v779_v49 }
  0xfd   :  { %v746_v54 = vpop.f32.mrb[4].mxu0  ;;  %v782_v55 = vpop.f32.mrb[4].mxu1 }
  0xfe   :  { %v747_v56 = vpop.f32.mrb[5].mxu0  ;;  %v783_v57 = vpop.f32.mrb[5].mxu1 }
  0xff   :  { %v748_v58 = vadd.f32 %v747_v56, %v746_v54  ;;  %v1042_v59 = vadd.f32 %v783_v57, %v782_v55  ;;  %v749_v60 = vpop.f32.mrb[6].mxu0  ;;  %v785_v61 = vpop.f32.mrb[6].mxu1 }
 0x100   :  { %v750_v62 = vpop.f32.mrb[7].mxu0  ;;  %v786_v63 = vpop.f32.mrb[7].mxu1 }
 0x101   :  { %v751_v0 = vadd.f32 %v750_v62, %v749_v60  ;;  %v1044_v1 = vadd.f32 %v786_v63, %v785_v61 }
 0x105   :  { %v752_v2 = vpop.f32.mrb[8].mxu0  ;;  %v804_v3 = vpop.f32.mrb[8].mxu1 }
 0x106   :  { %v476_v4 = vadd.f32 %v804_v3, %v748_v58  ;;  %v753_v5 = vpop.f32.mrb[9].mxu0  ;;  %v467_v6 = vpop.f32.mrb[9].mxu1 }
 0x107   :  { %v754_v7 = vadd.f32 %v753_v5, %v752_v2  ;;  %v468_v8 = vadd.f32 %v742_v46, %v467_v6  ;;  %v755_v9 = vpop.f32.mrb[10].mxu0  ;;  %v805_v10 = vpop.f32.mrb[10].mxu1 }
 0x108   :  { %532 = vst [vmem:[#allocation2 + $0x10] sm:$0xff] %v476_v4  ;;  %v479_v11 = vadd.f32 %v805_v10, %v751_v0  ;;  %v756_v12 = vpop.f32.mrb[11].mxu0  ;;  %v470_v13 = vpop.f32.mrb[11].mxu1 }
 0x109   :  { %530 = vst [vmem:[#allocation2] sm:$0xff] %v468_v8  ;;  %v757_v14 = vadd.f32 %v756_v12, %v755_v9  ;;  %v471_v15 = vadd.f32 %v745_v52, %v470_v13 }
 0x10a   :  { %533 = vst [vmem:[#allocation2 + $0x18] sm:$0xff] %v479_v11 }
 0x10b   :  { %531 = vst [vmem:[#allocation2 + $0x8] sm:$0xff] %v471_v15 }
 0x10d   :  { %v758_v16 = vpop.f32.mrb[12].mxu0  ;;  %v808_v17 = vpop.f32.mrb[12].mxu1 }
 0x10e   :  { %v759_v18 = vpop.f32.mrb[13].mxu0  ;;  %v483_v19 = vpop.f32.mrb[13].mxu1 }
 0x10f   :  { %v564_v20 = vld [vmem:[#allocation2 + $0x10] sm:$0xf]  ;;  %v565_v21 = vld [vmem:[#allocation2 + $0x14] sm:$0xf]  ;;  %v760_v22 = vadd.f32 %v759_v18, %v758_v16  ;;  %v484_v23 = vadd.f32 %v754_v7, %v483_v19  ;;  %v761_v24 = vpop.f32.mrb[14].mxu0  ;;  %v809_v25 = vpop.f32.mrb[14].mxu1 }
 0x110   :  { %v547_v26 = vld [vmem:[#allocation2] sm:$0xf]  ;;  %v548_v27 = vld [vmem:[#allocation2 + $0x4] sm:$0xf]  ;;  %v762_v28 = vpop.f32.mrb[15].mxu0  ;;  %v486_v29 = vpop.f32.mrb[15].mxu1  ;;  %v568_v35 = vmax.f32 %v564_v20, %v565_v21 }
 0x111   :  { %v566_v30 = vld [vmem:[#allocation2 + $0x18] sm:$0xf]  ;;  %v567_v31 = vld [vmem:[#allocation2 + $0x1c] sm:$0xf]  ;;  %v492_v32 = vadd.f32 %v808_v17, %v760_v22  ;;  %534 = vst [vmem:[#allocation2 + $0x20] sm:$0xff] %v484_v23  ;;  %v763_v33 = vadd.f32 %v762_v28, %v761_v24  ;;  %v487_v34 = vadd.f32 %v757_v14, %v486_v29  ;;  %v551_v39 = vmax.f32 %v547_v26, %v548_v27 }
 0x112   :  { %v569_v36 = vmax.f32 %v566_v30, %v567_v31  ;;  %v549_v37 = vld [vmem:[#allocation2 + $0x8] sm:$0xf]  ;;  %v550_v38 = vld [vmem:[#allocation2 + $0xc] sm:$0xf] }
 0x113   :  { %v552_v41 = vmax.f32 %v549_v37, %v550_v38  ;;  %536 = vst [vmem:[#allocation2 + $0x30] sm:$0xff] %v492_v32  ;;  %v495_v42 = vadd.f32 %v809_v25, %v763_v33  ;;  %535 = vst [vmem:[#allocation2 + $0x28] sm:$0xff] %v487_v34 }
 0x114   :  { %v570_v43 = vmax.f32 %v568_v35, %v569_v36 }
 0x115   :  { %v553_v44 = vmax.f32 %v551_v39, %v552_v41  ;;  %537 = vst [vmem:[#allocation2 + $0x38] sm:$0xff] %v495_v42  ;;  %v764_v45 = vpop.f32.mrb[16].mxu0  ;;  %v812_v46 = vpop.f32.mrb[16].mxu1 }
 0x116   :  { %v571_v48 = vadd.f32 %v1049_v40, %v570_v43  ;;  %v765_v49 = vpop.f32.mrb[17].mxu0  ;;  %v499_v50 = vpop.f32.mrb[17].mxu1 }
 0x117   :  { %v560_v51 = vadd.f32 %v1049_v40, %v553_v44  ;;  %v766_v52 = vadd.f32 %v765_v49, %v764_v45  ;;  %v767_v54 = vpop.f32.mrb[18].mxu0  ;;  %v813_v55 = vpop.f32.mrb[18].mxu1 }
 0x118   :  { %v572_v56 = vmax.f32 %v571_v48, 0.0  ;;  %v768_v57 = vpop.f32.mrb[19].mxu0  ;;  %v580_v60 = vld [vmem:[#allocation2 + $0x20] sm:$0xf]  ;;  %v581_v61 = vld [vmem:[#allocation2 + $0x24] sm:$0xf] }
 0x119   :  { %v561_v58 = vmax.f32 %v560_v51, 0.0  ;;  %v500_v62 = vadd.f32 %v766_v52, %v499_v50  ;;  %v769_v63 = vadd.f32 %v768_v57, %v767_v54  ;;  %v502_v0 = vpop.f32.mrb[19].mxu1  ;;  %v584_v10 = vmax.f32 %v580_v60, %v581_v61 }
 0x11a   :  { %v720_v2 = vpack.c.bf16 %v572_v56, %v572_v56  ;;  %v591_v3 = vld [vmem:[#allocation2 + $0x30] sm:$0xf]  ;;  %v592_v4 = vld [vmem:[#allocation2 + $0x34] sm:$0xf]  ;;  %v582_v5 = vld [vmem:[#allocation2 + $0x28] sm:$0xf] }
 0x11b   :  { %v562_v6 = vpack.c.bf16 %v561_v58, %v561_v58  ;;  %v583_v7 = vld [vmem:[#allocation2 + $0x2c] sm:$0xf]  ;;  %538 = vst [vmem:[#allocation2 + $0x40] sm:$0xff] %v500_v62  ;;  %v503_v8 = vadd.f32 %v769_v63, %v502_v0  ;;  %v595_v14 = vmax.f32 %v591_v3, %v592_v4 }
 0x11c   :  { %v577_v9 = vrot.slane %v720_v2, 6  ;;  %v593_v11 = vld [vmem:[#allocation2 + $0x38] sm:$0xf]  ;;  %v594_v12 = vld [vmem:[#allocation2 + $0x3c] sm:$0xf]  ;;  %v585_v13 = vmax.f32 %v582_v5, %v583_v7 }
 0x11d   :  { %563 = vst [vmem:[%s1090_s3] sm:$0x3] %v562_v6  ;;  %v596_v15 = vmax.f32 %v593_v11, %v594_v12  ;;  %539 = vst [vmem:[#allocation2 + $0x48] sm:$0xff] %v503_v8  ;;  %v770_v16 = vpop.f32.mrb[20].mxu0  ;;  %v816_v17 = vpop.f32.mrb[20].mxu1 }
 0x11e   :  { %579 = vst [vmem:[%s1090_s3] sm:$0xc] %v577_v9  ;;  %v586_v18 = vmax.f32 %v584_v10, %v585_v13  ;;  %v524_v19 = vadd.f32 %v816_v17, %v1042_v59  ;;  %v771_v20 = vpop.f32.mrb[21].mxu0  ;;  %v515_v21 = vpop.f32.mrb[21].mxu1 }
 0x11f   :  { %v597_v22 = vmax.f32 %v595_v14, %v596_v15  ;;  %v772_v23 = vadd.f32 %v771_v20, %v770_v16  ;;  %v516_v24 = vadd.f32 %v1038_v47, %v515_v21  ;;  %v773_v25 = vpop.f32.mrb[22].mxu0  ;;  %v817_v26 = vpop.f32.mrb[22].mxu1 }
 0x120   :  { %v587_v27 = vadd.f32 %v1049_v40, %v586_v18  ;;  %544 = vst [vmem:[#allocation2 + $0x70] sm:$0xff] %v524_v19  ;;  %v527_v28 = vadd.f32 %v817_v26, %v1044_v1  ;;  %v774_v29 = vpop.f32.mrb[23].mxu0  ;;  %v518_v30 = vpop.f32.mrb[23].mxu1 }
 0x121   :  { %v598_v31 = vadd.f32 %v1049_v40, %v597_v22  ;;  %v508_v32 = vadd.f32 %v812_v46, %v772_v23  ;;  %542 = vst [vmem:[#allocation2 + $0x60] sm:$0xff] %v516_v24  ;;  %v775_v59 = vadd.f32 %v774_v29, %v773_v25  ;;  %v519_v33 = vadd.f32 %v1040_v53, %v518_v30 }
 0x122   :  { %v588_v34 = vmax.f32 %v587_v27, 0.0  ;;  %v607_v35 = vld [vmem:[#allocation2 + $0x40] sm:$0xf]  ;;  %v608_v36 = vld [vmem:[#allocation2 + $0x44] sm:$0xf]  ;;  %545 = vst [vmem:[#allocation2 + $0x78] sm:$0xff] %v527_v28 }
 0x123   :  { %v599_v47 = vmax.f32 %v598_v31, 0.0  ;;  %540 = vst [vmem:[#allocation2 + $0x50] sm:$0xff] %v508_v32  ;;  %v511_v37 = vadd.f32 %v813_v55, %v775_v59  ;;  %543 = vst [vmem:[#allocation2 + $0x68] sm:$0xff] %v519_v33  ;;  %v611_v42 = vmax.f32 %v607_v35, %v608_v36 }
 0x124   :  { %v589_v38 = vpack.c.bf16 %v588_v34, %v588_v34  ;;  %v609_v39 = vld [vmem:[#allocation2 + $0x48] sm:$0xf]  ;;  %v610_v1 = vld [vmem:[#allocation2 + $0x4c] sm:$0xf] }
 0x125   :  { %v721_v41 = vpack.c.bf16 %v599_v47, %v599_v47  ;;  %v612_v43 = vmax.f32 %v609_v39, %v610_v1  ;;  %541 = vst [vmem:[#allocation2 + $0x58] sm:$0xff] %v511_v37 }
 0x126   :  { %590 = vst [vmem:[%s1090_s3 + $0x4] sm:$0x3] %v589_v38 }
 0x127   :  { %v604_v53 = vrot.slane %v721_v41, 6  ;;  %v613_v44 = vmax.f32 %v611_v42, %v612_v43  ;;  %v645_v45 = vld [vmem:[#allocation2 + $0x70] sm:$0xf]  ;;  %v646_v46 = vld [vmem:[#allocation2 + $0x74] sm:$0xf] }
 0x128   :  { %v634_v48 = vld [vmem:[#allocation2 + $0x60] sm:$0xf]  ;;  %v635_v50 = vld [vmem:[#allocation2 + $0x64] sm:$0xf]  ;;  %v649_v54 = vmax.f32 %v645_v45, %v646_v46 }
 0x129   :  { %606 = vst [vmem:[%s1090_s3 + $0x4] sm:$0xc] %v604_v53  ;;  %v614_v49 = vadd.f32 %v1049_v40, %v613_v44  ;;  %v647_v51 = vld [vmem:[#allocation2 + $0x78] sm:$0xf]  ;;  %v648_v52 = vld [vmem:[#allocation2 + $0x7c] sm:$0xf]  ;;  %v638_v62 = vmax.f32 %v634_v48, %v635_v50 }
 0x12a   :  { %v618_v55 = vld [vmem:[#allocation2 + $0x50] sm:$0xf]  ;;  %v619_v56 = vld [vmem:[#allocation2 + $0x54] sm:$0xf]  ;;  %v650_v57 = vmax.f32 %v647_v51, %v648_v52  ;;  %v636_v58 = vld [vmem:[#allocation2 + $0x68] sm:$0xf] }
 0x12b   :  { %v615_v60 = vmax.f32 %v614_v49, 0.0  ;;  %v637_v61 = vld [vmem:[#allocation2 + $0x6c] sm:$0xf]  ;;  %v622_v5 = vmax.f32 %v618_v55, %v619_v56 }
 0x12c   :  { %v651_v63 = vmax.f32 %v649_v54, %v650_v57  ;;  %v620_v0 = vld [vmem:[#allocation2 + $0x58] sm:$0xf]  ;;  %v621_v2 = vld [vmem:[#allocation2 + $0x5c] sm:$0xf]  ;;  %v639_v3 = vmax.f32 %v636_v58, %v637_v61 }
 0x12d   :  { %v616_v4 = vpack.c.bf16 %v615_v60, %v615_v60  ;;  %v623_v6 = vmax.f32 %v620_v0, %v621_v2 }
 0x12e   :  { %v652_v7 = vadd.f32 %v1049_v40, %v651_v63  ;;  %v640_v8 = vmax.f32 %v638_v62, %v639_v3 }
 0x12f   :  { %617 = vst [vmem:[%s1090_s3 + $0x8] sm:$0x3] %v616_v4  ;;  %v624_v9 = vmax.f32 %v622_v5, %v623_v6 }
 0x130   :  { %v653_v10 = vmax.f32 %v652_v7, 0.0  ;;  %v641_v11 = vadd.f32 %v1049_v40, %v640_v8 }
 0x131   :  { %v625_v12 = vadd.f32 %v1049_v40, %v624_v9 }
 0x132   :  { %v723_v13 = vpack.c.bf16 %v653_v10, %v653_v10  ;;  %v642_v14 = vmax.f32 %v641_v11, 0.0 }
 0x133   :  { %v626_v15 = vmax.f32 %v625_v12, 0.0 }
 0x134   :  { %v658_v16 = vrot.slane %v723_v13, 6  ;;  %v643_v17 = vpack.c.bf16 %v642_v14, %v642_v14 }
 0x135   :  { %v722_v18 = vpack.c.bf16 %v626_v15, %v626_v15 }
 0x136   :  { %660 = vst [vmem:[%s1090_s3 + $0xc] sm:$0xc] %v658_v16  ;;  %644 = vst [vmem:[%s1090_s3 + $0xc] sm:$0x3] %v643_v17 }
 0x137   :  { %v631_v19 = vrot.slane %v722_v18, 6 }
 0x139   :  { %633 = vst [vmem:[%s1090_s3 + $0x8] sm:$0xc] %v631_v19 }

// kernel: species_cnn_forward.11
= control target key start
LH: loop header
LB: loop body
LE: loop exit
PB: predicated region body
PF: predicated region fallthrough
CT: control target
= control target key end

     0   :  { %v650_v36 = vmov 0.0   ;;  %vm651_vm0 = vmmov 0   ;;  %vm323_vm1 = vcmask 523264   ;;  %vm459_vm2 = vcmask 1040384   ;;  %s807_s1 = inlined_call_operand.vmem [shape: bf16[576,128], index: 1, kind: input, shape index: {}]   ;;  %s808_s0 = inlined_call_operand.vmem [shape: bf16[8,576], index: 0, kind: input, shape index: {}]   ;;  %s809_s2 = inlined_call_operand.vmem [shape: f32[1,128], index: 2, kind: input, shape index: {}]   ;;  %s810_s3 = inlined_call_operand.vmem [shape: bf16[2,128], index: 3, kind: output, shape index: {}]  }
   0x1   :  { %v609_v0 = vld [vmem:[%s807_s1 + $0x40] sm:$0xff]   ;;  %v613_v4 = vld [vmem:[%s807_s1 + $0x48] sm:$0xff]   ;;  %v617_v8 = vld [vmem:[%s807_s1 + $0x50] sm:$0xff]   ;;  %vm460_vm3 = vsmask.f32 256 }
   0x2   :  { %v610_v1 = vld [vmem:[%s807_s1 + $0xc0] sm:$0xff]   ;;  %545 = vmatprep.subr.bf16.mxu0 %v609_v0  ;;  %v614_v5 = vld [vmem:[%s807_s1 + $0xc8] sm:$0xff]   ;;  %v618_v9 = vld [vmem:[%s807_s1 + $0xd0] sm:$0xff]   ;;  %vm494_vm5 = vsmask.f32 7938 }
   0x3   :  { %v611_v2 = vld [vmem:[%s807_s1] sm:$0xff]   ;;  %567 = vmatprep.subr.bf16.mxu1 %v610_v1  ;;  %v615_v6 = vld [vmem:[%s807_s1 + $0x8] sm:$0xff]   ;;  %v619_v10 = vld [vmem:[%s807_s1 + $0x10] sm:$0xff]  }
   0x4   :  { %v612_v3 = vld [vmem:[%s807_s1 + $0x80] sm:$0xff]   ;;  %546 = vmatpush3.bf16.msra.mxu0 %v611_v2  ;;  %v616_v7 = vld [vmem:[%s807_s1 + $0x88] sm:$0xff]   ;;  %v620_v11 = vld [vmem:[%s807_s1 + $0x90] sm:$0xff]  }
   0x5   :  { %568 = vmatpush3.bf16.msra.mxu1 %v612_v3  ;;  %547 = vmatprep.subr.bf16.mxu0 %v613_v4  ;;  %v621_v12 = vld [vmem:[%s807_s1 + $0x58] sm:$0xff]   ;;  %v625_v16 = vld [vmem:[%s807_s1 + $0x60] sm:$0xff]   ;;  %v629_v20 = vld [vmem:[%s807_s1 + $0x68] sm:$0xff]   ;;  %v652_v3 = vmov 1966171168  }
   0x6   :  { %569 = vmatprep.subr.bf16.mxu1 %v614_v5  ;;  %v622_v13 = vld [vmem:[%s807_s1 + $0xd8] sm:$0xff]   ;;  %v626_v17 = vld [vmem:[%s807_s1 + $0xe0] sm:$0xff]   ;;  %v630_v21 = vld [vmem:[%s807_s1 + $0xe8] sm:$0xff]   ;;  %v477_v4 = vunpack.c.l.s4 %v652_v3  ;;  %v479_v5 = vlaneseq }
   0x7   :  { %v623_v14 = vld [vmem:[%s807_s1 + $0x18] sm:$0xff]   ;;  %v627_v18 = vld [vmem:[%s807_s1 + $0x20] sm:$0xff]   ;;  %v631_v22 = vld [vmem:[%s807_s1 + $0x28] sm:$0xff]  }
   0x8   :  { %548 = vmatpush3.bf16.msra.mxu0 %v615_v6  ;;  %v624_v15 = vld [vmem:[%s807_s1 + $0x98] sm:$0xff]   ;;  %v628_v19 = vld [vmem:[%s807_s1 + $0xa0] sm:$0xff]   ;;  %v632_v23 = vld [vmem:[%s807_s1 + $0xa8] sm:$0xff]  }
   0x9   :  { %570 = vmatpush3.bf16.msra.mxu1 %v616_v7  ;;  %549 = vmatprep.subr.bf16.mxu0 %v617_v8  ;;  %v633_v24 = vld [vmem:[%s807_s1 + $0x70] sm:$0xff]   ;;  %v637_v28 = vld [vmem:[%s807_s1 + $0x78] sm:$0xff]   ;;  %v15_v32 = vld [vmem:[%s808_s0] sm:$0xff] }
   0xa   :  { %571 = vmatprep.subr.bf16.mxu1 %v618_v9  ;;  %v634_v25 = vld [vmem:[%s807_s1 + $0xf0] sm:$0xff]   ;;  %v638_v29 = vld [vmem:[%s807_s1 + $0xf8] sm:$0xff]   ;;  %v503_v33 = vcombine.low %v15_v32, %v15_v32  ;;  %v504_v34 = vcombine.high %v15_v32, %v15_v32  ;;  %v16_v35 = vld [vmem:[%s808_s0 + $0x8] sm:$0xff] }
   0xb   :  { %v635_v26 = vld [vmem:[%s807_s1 + $0x30] sm:$0xff]   ;;  %v639_v30 = vld [vmem:[%s807_s1 + $0x38] sm:$0xff]   ;;  %v505_v37 = vcombine.low %v16_v35, %v16_v35  ;;  %v506_v38 = vcombine.high %v16_v35, %v16_v35  ;;  %v646_v39 = vld [vmem:[%s807_s1 + $0x100] sm:$0xff]  }
   0xc   :  { %550 = vmatpush3.bf16.msra.mxu0 %v619_v10  ;;  %v636_v27 = vld [vmem:[%s807_s1 + $0xb0] sm:$0xff]   ;;  %v640_v31 = vld [vmem:[%s807_s1 + $0xb8] sm:$0xff]   ;;  %359 = vmatprep.mubr.bf16.mxu0 %v504_v34  ;;  %v647_v40 = vld [vmem:[%s807_s1 + $0x108] sm:$0xff]  }
   0xd   :  { %572 = vmatpush3.bf16.msra.mxu1 %v620_v11  ;;  %551 = vmatprep.subr.bf16.mxu0 %v621_v12  ;;  %v648_v41 = vld [vmem:[%s807_s1 + $0x110] sm:$0xff]   ;;  %v649_v42 = vld [vmem:[%s807_s1 + $0x118] sm:$0xff]   ;;  %v448_v10 = vld [vmem:[%s809_s2] sm:$0x1] }
   0xe   :  { %573 = vmatprep.subr.bf16.mxu1 %v622_v13  ;;  %399 = vmatprep.mubr.bf16.mxu1 %v506_v38  ;;  %v643_v43 = vld [vmem:[%s808_s0 + $0x10] ss:$0 sps:$4 sm:$0xff]   ;;  %vm461_vm4 = vmand %vm459_vm2, %vm460_vm3 }
   0xf   :  { %vm495_vm6 = vmand %vm459_vm2, %vm494_vm5 }
  0x10   :  { %552 = vmatpush3.bf16.msra.mxu0 %v623_v14  ;;  %v478_v14 = vunpack.c.0.s8 %v477_v4 }
  0x11   :  { %574 = vmatpush3.bf16.msra.mxu1 %v624_v15  ;;  %553 = vmatprep.subr.bf16.mxu0 %v625_v16  ;;  %v480_v15 = vshrl.u32 %v479_v5, 7 }
  0x12   :  { %575 = vmatprep.subr.bf16.mxu1 %v626_v17 }
  0x14   :  { %554 = vmatpush3.bf16.msra.mxu0 %v627_v18 }
  0x15   :  { %576 = vmatpush3.bf16.msra.mxu1 %v628_v19  ;;  %555 = vmatprep.subr.bf16.mxu0 %v629_v20  ;;  %v462_v19 = vld [vmem:[%s810_s3] sm:$0x1] }
  0x16   :  { %577 = vmatprep.subr.bf16.mxu1 %v630_v21  ;;  %v481_v21 = vsub.s32 %v478_v14, %v480_v15 }
  0x18   :  { %556 = vmatpush3.bf16.msra.mxu0 %v631_v22 }
  0x19   :  { %578 = vmatpush3.bf16.msra.mxu1 %v632_v23  ;;  %557 = vmatprep.subr.bf16.mxu0 %v633_v24 }
  0x1a   :  { %579 = vmatprep.subr.bf16.mxu1 %v634_v25 }
  0x1c   :  { %558 = vmatpush3.bf16.msra.mxu0 %v635_v26 }
  0x1d   :  { %580 = vmatpush3.bf16.msra.mxu1 %v636_v27  ;;  %559 = vmatprep.subr.bf16.mxu0 %v637_v28 }
  0x1e   :  { %581 = vmatprep.subr.bf16.mxu1 %v638_v29 }
  0x20   :  { %560 = vmatpush3.bf16.msra.mxu0 %v639_v30 }
  0x21   :  { %582 = vmatpush3.bf16.msra.mxu1 %v640_v31  ;;  %594 = vmatprep.subr.bf16.mxu0 %v650_v36 }
  0x23   :  { %360 = vmatmul.mubr.bf16.vlgmr.msra.gmra.mrb[0].mxu0 %v503_v33 }
  0x24   :  { %400 = vmatmul.mubr.bf16.vlgmr.msra.gmra.mrb[0].mxu1 %v505_v37  ;;  %595 = vmatpush3.bf16.msra.mxu0 %v646_v39 }
  0x25   :  { %596 = vmatprep.subr.bf16.mxu0 %v650_v36  ;;  %602 = vmatprep.mubr.msk.bf16.mxu0 %vm651_vm0, %v650_v36 }
  0x28   :  { %597 = vmatpush3.bf16.msra.mxu0 %v647_v40 }
  0x29   :  { %598 = vmatprep.subr.bf16.mxu0 %v650_v36 }
  0x2c   :  { %599 = vmatpush3.bf16.msra.mxu0 %v648_v41 }
  0x2d   :  { %600 = vmatprep.subr.bf16.mxu0 %v650_v36 }
  0x30   :  { %601 = vmatpush3.bf16.msra.mxu0 %v649_v42 }
  0x33   :  { %603 = vmatmul.mubr.msk.bf16.vlgmr.msra.gmra.mrb[4].mxu0 %vm323_vm1, %v643_v43 }
  0xf6   :  { %v561_v44 = vpop.f32.mrb[0].mxu0 }
  0xf7   :  { %v583_v45 = vpop.f32.mrb[0].mxu1  ;;  %v562_v46 = vpop.f32.mrb[1].mxu0 }
  0xf8   :  { %v563_v47 = vadd.f32 %v562_v46, %v561_v44  ;;  %v584_v48 = vpop.f32.mrb[1].mxu1  ;;  %v564_v49 = vpop.f32.mrb[2].mxu0 }
  0xf9   :  { %v585_v50 = vadd.f32 %v584_v48, %v583_v45  ;;  %v565_v51 = vpop.f32.mrb[3].mxu0  ;;  %v586_v52 = vpop.f32.mrb[2].mxu1 }
  0xfa   :  { %v587_v53 = vpop.f32.mrb[3].mxu1 }
  0xfb   :  { %v402_v54 = vadd.f32 %v585_v50, %v563_v47 }
 0x106   :  { %v441_v55 = vpop.f32.mrb[4].mxu0 }
 0x107   :  { %v442_v56 = vadd.f32 %v441_v55, %v402_v54  ;;  %v604_v57 = vpop.f32.mrb[5].mxu0 }
 0x108   :  { %v444_v58 = vpop.f32.mrb[6].mxu0 }
 0x109   :  { %447 = vst [vmem:[#allocation2] sm:$0xff] %v442_v56  ;;  %v605_v59 = vpop.f32.mrb[7].mxu0 }
 0x110   :  { %v449_v60 = vld [vmem:[#allocation2] sm:$0x1]  ;;  %v450_v61 = vld [vmem:[#allocation2 + $0x1] sm:$0x1]  ;;  %v451_v62 = vld [vmem:[#allocation2 + $0x2] sm:$0x1] }
 0x111   :  { %v452_v63 = vld [vmem:[#allocation2 + $0x3] sm:$0x1]  ;;  %v453_v0 = vmax.f32 %v449_v60, %v450_v61  ;;  %v465_v1 = vld [vmem:[#allocation2 + $0x4] sm:$0x1]  ;;  %v466_v2 = vld [vmem:[#allocation2 + $0x5] sm:$0x1] }
 0x112   :  { %v454_v6 = vmax.f32 %v451_v62, %v452_v63  ;;  %v467_v7 = vld [vmem:[#allocation2 + $0x6] sm:$0x1]  ;;  %v468_v8 = vld [vmem:[#allocation2 + $0x7] sm:$0x1]  ;;  %v469_v9 = vmax.f32 %v465_v1, %v466_v2 }
 0x113   :  { %v470_v11 = vmax.f32 %v467_v7, %v468_v8 }
 0x114   :  { %v455_v12 = vmax.f32 %v453_v0, %v454_v6 }
 0x115   :  { %v471_v13 = vmax.f32 %v469_v9, %v470_v11 }
 0x116   :  { %v456_v16 = vadd.f32 %v455_v12, %v448_v10 }
 0x117   :  { %v472_v17 = vadd.f32 %v471_v13, %v448_v10 }
 0x118   :  { %v457_v18 = vmax.f32 %v456_v16, 0.0 }
 0x119   :  { %v473_v20 = vmax.f32 %v472_v17, 0.0 }
 0x11a   :  { %v458_v22 = vpack.c.bf16 %v457_v18, %v457_v18 }
 0x11b   :  { %v474_v23 = vpack.c.bf16 %v473_v20, %v473_v20 }
 0x11c   :  { %v463_v24 = vsel %vm461_vm4, %v458_v22, %v462_v19 }
 0x11d   :  { %464 = vst [vmem:[%s810_s3] sm:$0x1] %v463_v24  ;;  %v482_v25 = vrot.slane %v474_v23, %v481_v21 }
 0x11f   :  { %v489_v26 = vrot.slane %v482_v25, %v481_v21 }
 0x121   :  { %v491_v27 = vshll.u32 %v489_v26, 16 }
 0x124   :  { %v496_v28 = vld [vmem:[%s810_s3] sm:$0x1] }
 0x125   :  { %v497_v29 = vsel %vm495_vm6, %v491_v27, %v496_v28 }
 0x126   :  { %498 = vst [vmem:[%s810_s3] sm:$0x1] %v497_v29 }

// kernel: species_cnn_forward.12
= control target key start
LH: loop header
LB: loop body
LE: loop exit
PB: predicated region body
PF: predicated region fallthrough
CT: control target
= control target key end

     0   :  { %v183_v0 = vmov 0.0   ;;  %vm184_vm0 = vmmov 0   ;;  %vm129_vm1 = vcmask 516096   ;;  %s238_s1 = inlined_call_operand.vmem [shape: bf16[128,64], index: 1, kind: input, shape index: {}]   ;;  %s239_s0 = inlined_call_operand.vmem [shape: bf16[2,128], index: 0, kind: input, shape index: {}]   ;;  %s240_s2 = inlined_call_operand.vmem [shape: f32[1,64], index: 2, kind: input, shape index: {}]   ;;  %s241_s3 = inlined_call_operand.vmem [shape: bf16[2,64], index: 3, kind: output, shape index: {}]  }
   0x1   :  { %153 = vmatprep.subr.bf16.mxu0 %v183_v0  ;;  %v175_v1 = vld [vmem:[%s238_s1] sm:$0xff]   ;;  %169 = vmatprep.mubr.msk.bf16.mxu0 %vm184_vm0, %v183_v0  ;;  %v176_v2 = vld [vmem:[%s238_s1 + $0x8] sm:$0xff]   ;;  %v177_v3 = vld [vmem:[%s238_s1 + $0x10] sm:$0xff]  }
   0x2   :  { %154 = vmatpush3.bf16.msra.mxu0 %v175_v1  ;;  %v178_v4 = vld [vmem:[%s238_s1 + $0x18] sm:$0xff]   ;;  %v179_v5 = vld [vmem:[%s238_s1 + $0x20] sm:$0xff]   ;;  %v180_v6 = vld [vmem:[%s238_s1 + $0x28] sm:$0xff]  }
   0x3   :  { %155 = vmatprep.subr.bf16.mxu0 %v183_v0  ;;  %v181_v7 = vld [vmem:[%s238_s1 + $0x30] sm:$0xff]   ;;  %v182_v8 = vld [vmem:[%s238_s1 + $0x38] sm:$0xff]   ;;  %v15_v9 = vld [vmem:[%s239_s0] sm:$0x1] }
   0x4   :  { %v135_v10 = vld [vmem:[%s240_s2] ss:$0 sm:$0xff] }
   0x6   :  { %156 = vmatpush3.bf16.msra.mxu0 %v176_v2 }
   0x7   :  { %157 = vmatprep.subr.bf16.mxu0 %v183_v0 }
   0xa   :  { %158 = vmatpush3.bf16.msra.mxu0 %v177_v3 }
   0xb   :  { %159 = vmatprep.subr.bf16.mxu0 %v183_v0 }
   0xe   :  { %160 = vmatpush3.bf16.msra.mxu0 %v178_v4 }
   0xf   :  { %161 = vmatprep.subr.bf16.mxu0 %v183_v0 }
  0x12   :  { %162 = vmatpush3.bf16.msra.mxu0 %v179_v5 }
  0x13   :  { %163 = vmatprep.subr.bf16.mxu0 %v183_v0 }
  0x16   :  { %164 = vmatpush3.bf16.msra.mxu0 %v180_v6 }
  0x17   :  { %165 = vmatprep.subr.bf16.mxu0 %v183_v0 }
  0x1a   :  { %166 = vmatpush3.bf16.msra.mxu0 %v181_v7 }
  0x1b   :  { %167 = vmatprep.subr.bf16.mxu0 %v183_v0 }
  0x1e   :  { %168 = vmatpush3.bf16.msra.mxu0 %v182_v8 }
  0x21   :  { %170 = vmatmul.mubr.bf16.vlgmr.msra.gmra.mrb[0].mxu0 %v15_v9 }
  0xf4   :  { %v121_v11 = vpop.f32.mrb[0].mxu0 }
  0xf5   :  { %v122_v12 = vadd.f32 %v135_v10, %v121_v11  ;;  %v171_v13 = vpop.f32.mrb[1].mxu0 }
  0xf6   :  { %v124_v14 = vpop.f32.mrb[2].mxu0 }
  0xf7   :  { %v127_v15 = vmax.f32 %v122_v12, 0.0  ;;  %v172_v16 = vpop.f32.mrb[3].mxu0 }
  0xf9   :  { %v128_v17 = vpack.c.bf16 %v127_v15, %v127_v15 }
  0xfb   :  { %130 = vst.msk [vmem:[%s241_s3] sm:$0x1] %vm129_vm1, %v128_v17 }

// kernel: species_cnn_forward.13
= control target key start
LH: loop header
LB: loop body
LE: loop exit
PB: predicated region body
PF: predicated region fallthrough
CT: control target
= control target key end

     0   :  { %v185_v1 = vmov 0.0   ;;  %vm186_vm0 = vmmov 0   ;;  %s241_s0 = inlined_call_operand.vmem [shape: bf16[2,64], index: 0, kind: input, shape index: {}]   ;;  %s242_s1 = inlined_call_operand.vmem [shape: bf16[64,10], index: 1, kind: input, shape index: {}]   ;;  %s243_s2 = inlined_call_operand.vmem [shape: f32[1,10], index: 2, kind: input, shape index: {}]   ;;  %s244_s3 = inlined_call_operand.hbm [shape: f32[2,10], index: 3, kind: output, shape index: {}]  }
   0x1   :  { %v153_v0 = vld [vmem:[%s242_s1] sm:$0xff]   ;;  %138 = vmatprep.subr.bf16.mxu0 %v185_v1  ;;  %v154_v2 = vld [vmem:[%s242_s1 + $0x8] sm:$0xff]   ;;  %146 = vmatprep.mubr.msk.bf16.mxu0 %vm186_vm0, %v185_v1 }
   0x2   :  { %139 = vmatpush3.bf16.msra.mxu0 %v153_v0 }
   0x3   :  { %140 = vmatprep.subr.bf16.mxu0 %v185_v1 }
   0x4   :  { %8 = vsyncpa [#allocation3], 0  ;;  %v155_v3 = vld [vmem:[%s242_s1 + $0x10] sm:$0xff]   ;;  %v156_v4 = vld [vmem:[%s242_s1 + $0x18] sm:$0xff]   ;;  %vm56_vm1 = vcmask 523264   ;;  %vm100_vm2 = vcmask 74752  }
   0x5   :  { %v16_v5 = vld [vmem:[%s241_s0] sm:$0x1]  ;;  %s187_s0 = smov [#allocation2]  }
   0x6   :  { %141 = vmatpush3.bf16.msra.mxu0 %v154_v2  ;;  %v127_v6 = vld [vmem:[%s243_s2] ss:$0 sm:$0xff]  ;;  %s119_s1 = sshll.u32 %s187_s0, 4  ;;  %s120_s1 = int_to_ptr.vmem [resolvable:$true] %s119_s1 }
   0x7   :  { %142 = vmatprep.subr.bf16.mxu0 %v185_v1  ;;  %s161_s2 = scalar_lea.vmem %s120_s1, 32  ;;  %p166_p1 = scmp.lt.s32.totalorder %s120_s1, %s120_s1 }
   0x8   :  { %p162_p0 = scmp.ne.s32.totalorder %s120_s1, %s161_s2  ;;  %p167_p2 = scmp.lt.s32.totalorder %s161_s2, %s161_s2 }
   0xa   :  { %143 = vmatpush3.bf16.msra.mxu0 %v155_v3  ;;  %p168_p3 = por %p167_p2, %p166_p1 }
   0xb   :  { %144 = vmatprep.subr.bf16.mxu0 %v185_v1 }
   0xc   :  { %p169_p4 = pnand %p168_p3, %p162_p0 }
   0xe   :  { %145 = vmatpush3.bf16.msra.mxu0 %v156_v4 }
  0x11   :  { %147 = vmatmul.mubr.msk.bf16.vlgmr.msra.gmra.mrb[0].mxu0 %vm56_vm1, %v16_v5 }
  0xe4   :  { %v94_v7 = vpop.f32.mrb[0].mxu0 }
  0xe5   :  { %v95_v8 = vadd.f32 %v127_v6, %v94_v7  ;;  %v148_v9 = vpop.f32.mrb[1].mxu0 }
  0xe6   :  { %v97_v10 = vpop.f32.mrb[2].mxu0 }
  0xe7   :  { %v149_v11 = vpop.f32.mrb[3].mxu0  ;;  %v101_v12 = vsel %vm100_vm2, %v95_v8, -inf }
  0xe8   :  { %102 = vmax.xlane.f32.xlu0 %v101_v12 }
 0x175   :  { %v103_v13 = vpop.xlane.xlu0 %102 }
 0x176   :  { %v104_v14 = vsub.f32 %v95_v8, %v103_v13 }
 0x178   :  { %v105_v15 = vmul.f32 1.442695, %v104_v14 }
 0x17a   :  { %157 = vpow2.f32 %v105_v15 }
 0x184   :  { %v158_v16 = vpop.eup %157 }
 0x185   :  { %v107_v17 = vsel %vm100_vm2, %v158_v16, 0.0 }
 0x186   :  { %108 = vadd.xlane.f32.xlu0 %v107_v17 }
 0x213   :  { %v109_v18 = vpop.xlane.xlu0 %108 }
 0x214   :  { %159 = vrcp.f32 %v109_v18 }
 0x21e   :  { %v160_v19 = vpop.eup %159 }
 0x21f   :  { %v111_v20 = vmul.f32 %v160_v19, %v158_v16 }
 0x221   :  { %112 = vst.msk [vmem:[#allocation2] sm:$0x3] %vm100_vm2, %v111_v20 }
 0x222   :  { %172 = shalt.err (!%p169_p4)
}
 0x223   :  { %s173_s26 = scalar_lea.hbm %s244_s3, 32 }
 0x224   :  { %p174_p5 = scmp.ne.s32.totalorder %s244_s3, %s173_s26  ;;  %p177_p6 = scmp.lt.u32.totalorder %s173_s26, %s244_s3 }
 0x226   :  { %p179_p7 = pnand %p177_p6, %p174_p5 }
 0x228   :  { %182 = shalt.err (!%p179_p7)
}
 0x229   :  { %122 = dma.vmem_to_hbm [thread:$0]  %s120_s1, 32, %s244_s3, [#allocation3]  }
 0x22a   :  { %183 = dma.done.wait [#allocation3], 32  }
 0x22b   :  { %184 = vsyncadd [#allocation3], 4294967264 }
 0x22c   :  { %126 = vsyncpa [#allocation3], 1 }

</bundles_post_ra>
